<compile_context>
chip_gen: v5e
topology: v5e:2x2
jax: 0.10.0
libtpu: 0.0.40
codegen_flags: <defaults>
</compile_context>

<pallas_src>
import functools

import jax
import jax.numpy as jnp
import numpy as np
from jax.experimental import pallas as pl
from jax.experimental.pallas import tpu as pltpu


def _fused_head_kernel(xflat_ref, w1_ref, b1_ref, w2_ref, b2_ref, out_ref, *,
                       H, W):
    # xflat_ref: (1, (H+3)*(W+2), Cin)  zero-padded image, flattened over (row,col), bf16
    # w1_ref:    (9*Cin, 3*Cmid)        fused 3x3 conv weights (tap-major rows), bf16
    # b1_ref:    (1, 3*Cmid)            f32
    # w2_ref:    (3*Cmid, Cout_pad)     block-diagonal fused 1x1 weights, bf16
    # b2_ref:    (1, Cout_pad)          f32
    # out_ref:   (1, H*(W+2), Cout_pad) f32 (extra W columns are garbage, cropped outside)
    Cin = xflat_ref.shape[2]
    Wp = W + 2
    HP = H * Wp

    # im2col: each 3x3 tap is a static contiguous row-slice of the flattened,
    # padded image.  Concatenate along lanes -> (HP, 9*Cin) and do ONE matmul.
    patches = []
    for dy in range(3):
        for dx in range(3):
            off = dy * Wp + dx
            patches.append(xflat_ref[0, off:off + HP, :])       # (HP, Cin) bf16
    im2col = jnp.concatenate(patches, axis=1)                   # (HP, 9*Cin)

    # Conv3x3 for all three heads at once: (HP, 576) @ (576, 768), f32 acc.
    pre = jnp.dot(im2col, w1_ref[...], preferred_element_type=jnp.float32)
    hidden = jnp.maximum(pre + b1_ref[...], 0.0)                # bias + ReLU (f32)

    # Fused 1x1 convs (block-diagonal weights) -> logits for all heads.
    logits = jnp.dot(hidden.astype(w2_ref.dtype), w2_ref[...],
                     preferred_element_type=jnp.float32) + b2_ref[...]

    out_ref[0] = 1.0 / (1.0 + jnp.exp(-logits))                 # sigmoid (f32)


@functools.partial(jax.jit, static_argnames=("num_classes",))
def _head_forward(feat_nchw, w1f, b1f, w2f, b2f, *, num_classes):
    N, Cin, H, W = feat_nchw.shape
    Wp = W + 2
    HP = H * Wp
    rows = (H + 3) * Wp                     # +1 top pad, +2 bottom pad (slice slack)
    Cmid3 = w1f.shape[1]
    Cout_pad = w2f.shape[1]

    # NCHW -> NHWC, bf16, zero-pad (top=1, bottom=2, left=1, right=1), flatten (row,col).
    x = jnp.transpose(feat_nchw, (0, 2, 3, 1)).astype(jnp.bfloat16)
    xpad = jnp.pad(x, ((0, 0), (1, 2), (1, 1), (0, 0)))
    xflat = xpad.reshape(N, rows, Cin)

    out = pl.pallas_call(
        functools.partial(_fused_head_kernel, H=H, W=W),
        out_shape=jax.ShapeDtypeStruct((N, HP, Cout_pad), jnp.float32),
        grid=(N,),
        in_specs=[
            pl.BlockSpec((1, rows, Cin), lambda n: (n, 0, 0)),
            pl.BlockSpec((9 * Cin, Cmid3), lambda n: (0, 0)),
            pl.BlockSpec((1, Cmid3), lambda n: (0, 0)),
            pl.BlockSpec((Cmid3, Cout_pad), lambda n: (0, 0)),
            pl.BlockSpec((1, Cout_pad), lambda n: (0, 0)),
        ],
        out_specs=pl.BlockSpec((1, HP, Cout_pad), lambda n: (n, 0, 0)),
        compiler_params=pltpu.CompilerParams(
            dimension_semantics=("parallel",)),
    )(xflat, w1f, b1f, w2f, b2f)

    # Un-flatten, drop the 2 garbage width columns and padded channels, go NCHW.
    out = out.reshape(N, H, Wp, Cout_pad)[:, :, :W, :]
    out = jnp.transpose(out, (0, 3, 1, 2))                      # (N, Cout_pad, H, W)
    hm = out[:, :num_classes]
    wh = out[:, num_classes:num_classes + 2]
    off = out[:, num_classes + 2:num_classes + 4]
    return hm, wh, off


def _init_branch(key, in_ch, mid_ch, out_ch):
    """Deterministic parameter init (kaiming-ish scaling). HWIO / IO layouts."""
    k1, k2, k3, k4 = jax.random.split(key, 4)
    s1 = 1.0 / np.sqrt(in_ch * 9)
    s2 = 1.0 / np.sqrt(mid_ch)
    w1 = jax.random.normal(k1, (3, 3, in_ch, mid_ch), jnp.float32) * s1
    b1 = jax.random.normal(k2, (mid_ch,), jnp.float32) * s1
    w2 = jax.random.normal(k3, (mid_ch, out_ch), jnp.float32) * s2
    b2 = jax.random.normal(k4, (out_ch,), jnp.float32) * s2
    return (w1, b1, w2, b2)


def _fuse_params(hm_p, wh_p, off_p, num_classes):
    """Concat the three branches: one (9*Cin, 3*Cmid) conv weight and one
    block-diagonal (3*Cmid, Cout_pad) pointwise weight."""
    branches = (hm_p, wh_p, off_p)
    couts = (num_classes, 2, 2)
    Cin, Cmid = branches[0][0].shape[2], branches[0][0].shape[3]
    total_cout = sum(couts)
    cout_pad = ((total_cout + 7) // 8) * 8

    w1f = jnp.concatenate([p[0] for p in branches], axis=3)      # (3,3,Cin,3*Cmid)
    w1f = w1f.reshape(9 * Cin, 3 * Cmid).astype(jnp.bfloat16)    # tap-major rows
    b1f = jnp.concatenate([p[1] for p in branches]).reshape(1, 3 * Cmid)

    w2f = jnp.zeros((3 * Cmid, cout_pad), jnp.float32)
    b2f = jnp.zeros((cout_pad,), jnp.float32)
    col = 0
    for i, (p, co) in enumerate(zip(branches, couts)):
        w2f = w2f.at[i * Cmid:(i + 1) * Cmid, col:col + co].set(p[2])
        b2f = b2f.at[col:col + co].set(p[3])
        col += co
    return w1f, b1f, w2f.astype(jnp.bfloat16), b2f.reshape(1, cout_pad)


class HeadPallas:
    """Pallas version of `Head` (post-backbone prediction heads only)."""

    def __init__(self, key, num_classes=1, channels=256, in_ch=64):
        self.num_classes = num_classes
        khm, kwh, koff = jax.random.split(key, 3)
        self.hm_params = _init_branch(khm, in_ch, channels, num_classes)
        self.wh_params = _init_branch(kwh, in_ch, channels, 2)
        self.off_params = _init_branch(koff, in_ch, channels, 2)
        self.fused = _fuse_params(self.hm_params, self.wh_params,
                                  self.off_params, num_classes)

    def __call__(self, feat_nchw):
        # feat_nchw: (N, 64, H, W) -- stand-in for the dla34 level-1 feature map.
        return _head_forward(feat_nchw, *self.fused,
                             num_classes=self.num_classes)


def _ref_branch(x_nhwc, w1_hwio, b1, w2_io, b2):
    """Pure-JAX f32 reference for correctness checking."""
    y = jax.lax.conv_general_dilated(
        x_nhwc, w1_hwio, window_strides=(1, 1), padding="SAME",
        dimension_numbers=("NHWC", "HWIO", "NHWC"))
    y = jnp.maximum(y + b1, 0.0)
    z = jnp.einsum("nhwc,co->nhwo", y, w2_io) + b2
    return jax.nn.sigmoid(z)


if __name__ == "__main__":
    key = jax.random.PRNGKey(0)
    kx, kp = jax.random.split(key)

    # Small, module-consistent shapes: batch=2, 64 backbone channels, 16x16 spatial.
    N, C_IN, H, W = 2, 64, 16, 16
    feat = jax.random.normal(kx, (N, C_IN, H, W), jnp.float32)

    head = HeadPallas(kp, num_classes=1, channels=256, in_ch=C_IN)
    hm, wh, offset = head(feat)
    jax.block_until_ready((hm, wh, offset))

    assert hm.shape == (N, 1, H, W)
    assert wh.shape == (N, 2, H, W)
    assert offset.shape == (N, 2, H, W)

    # Numerical check against a plain-JAX f32 reference (kernel matmuls use
    # bf16 operands with f32 accumulation, so tolerance is loosened).
    x_nhwc = jnp.transpose(feat, (0, 2, 3, 1))
    for got, params in ((hm, head.hm_params), (wh, head.wh_params),
                        (offset, head.off_params)):
        ref = jnp.transpose(_ref_branch(x_nhwc, *params), (0, 3, 1, 2))
        np.testing.assert_allclose(np.asarray(got), np.asarray(ref),
                                   rtol=1e-2, atol=1e-2)

    print("KERNEL_OK")
</pallas_src>

<mosaic_0001>
module attributes {stable_mosaic.version = 11 : i64} {
  func.func @_fused_head_kernel(%arg0: i32, %arg1: memref<1x342x64xbf16, #tpu.memory_space<vmem>>, %arg2: memref<576x768xbf16, #tpu.memory_space<vmem>>, %arg3: memref<1x768xf32, #tpu.memory_space<vmem>>, %arg4: memref<768x8xbf16, #tpu.memory_space<vmem>>, %arg5: memref<1x8xf32, #tpu.memory_space<vmem>>, %arg6: memref<1x288x8xf32, #tpu.memory_space<vmem>>) attributes {dimension_semantics = [#tpu.dimension_semantics<parallel>], iteration_bounds = array<i64: 2>, scalar_prefetch = 0 : i64, scratch_operands = 0 : i64, tpu.core_type = #tpu.core_type<tc>, window_params = [{transform_indices = @transform_0, window_bounds = array<i64: 1, 342, 64>}, {pipeline_mode = #tpu.pipeline_mode<synchronous>, transform_indices = @transform_1, window_bounds = array<i64: 576, 768>}, {pipeline_mode = #tpu.pipeline_mode<synchronous>, transform_indices = @transform_2, window_bounds = array<i64: 1, 768>}, {pipeline_mode = #tpu.pipeline_mode<synchronous>, transform_indices = @transform_3, window_bounds = array<i64: 768, 8>}, {pipeline_mode = #tpu.pipeline_mode<synchronous>, transform_indices = @transform_4, window_bounds = array<i64: 1, 8>}, {transform_indices = @transform_5, window_bounds = array<i64: 1, 288, 8>}]} {
    %c0 = arith.constant 0 : index
    %c0_0 = arith.constant 0 : index
    %c0_1 = arith.constant 0 : index
    %0 = vector.load %arg1[%c0, %c0_0, %c0_1] : memref<1x342x64xbf16, #tpu.memory_space<vmem>>, vector<1x288x64xbf16>
    %1 = vector.shape_cast %0 : vector<1x288x64xbf16> to vector<288x64xbf16>
    %c0_2 = arith.constant 0 : index
    %c1 = arith.constant 1 : index
    %c0_3 = arith.constant 0 : index
    %2 = vector.load %arg1[%c0_2, %c1, %c0_3] : memref<1x342x64xbf16, #tpu.memory_space<vmem>>, vector<1x288x64xbf16>
    %3 = vector.shape_cast %2 : vector<1x288x64xbf16> to vector<288x64xbf16>
    %c0_4 = arith.constant 0 : index
    %c2 = arith.constant 2 : index
    %c0_5 = arith.constant 0 : index
    %4 = vector.load %arg1[%c0_4, %c2, %c0_5] : memref<1x342x64xbf16, #tpu.memory_space<vmem>>, vector<1x288x64xbf16>
    %5 = vector.shape_cast %4 : vector<1x288x64xbf16> to vector<288x64xbf16>
    %c0_6 = arith.constant 0 : index
    %c18 = arith.constant 18 : index
    %c0_7 = arith.constant 0 : index
    %6 = vector.load %arg1[%c0_6, %c18, %c0_7] : memref<1x342x64xbf16, #tpu.memory_space<vmem>>, vector<1x288x64xbf16>
    %7 = vector.shape_cast %6 : vector<1x288x64xbf16> to vector<288x64xbf16>
    %c0_8 = arith.constant 0 : index
    %c19 = arith.constant 19 : index
    %c0_9 = arith.constant 0 : index
    %8 = vector.load %arg1[%c0_8, %c19, %c0_9] : memref<1x342x64xbf16, #tpu.memory_space<vmem>>, vector<1x288x64xbf16>
    %9 = vector.shape_cast %8 : vector<1x288x64xbf16> to vector<288x64xbf16>
    %c0_10 = arith.constant 0 : index
    %c20 = arith.constant 20 : index
    %c0_11 = arith.constant 0 : index
    %10 = vector.load %arg1[%c0_10, %c20, %c0_11] : memref<1x342x64xbf16, #tpu.memory_space<vmem>>, vector<1x288x64xbf16>
    %11 = vector.shape_cast %10 : vector<1x288x64xbf16> to vector<288x64xbf16>
    %c0_12 = arith.constant 0 : index
    %c36 = arith.constant 36 : index
    %c0_13 = arith.constant 0 : index
    %12 = vector.load %arg1[%c0_12, %c36, %c0_13] : memref<1x342x64xbf16, #tpu.memory_space<vmem>>, vector<1x288x64xbf16>
    %13 = vector.shape_cast %12 : vector<1x288x64xbf16> to vector<288x64xbf16>
    %c0_14 = arith.constant 0 : index
    %c37 = arith.constant 37 : index
    %c0_15 = arith.constant 0 : index
    %14 = vector.load %arg1[%c0_14, %c37, %c0_15] : memref<1x342x64xbf16, #tpu.memory_space<vmem>>, vector<1x288x64xbf16>
    %15 = vector.shape_cast %14 : vector<1x288x64xbf16> to vector<288x64xbf16>
    %c0_16 = arith.constant 0 : index
    %c38 = arith.constant 38 : index
    %c0_17 = arith.constant 0 : index
    %16 = vector.load %arg1[%c0_16, %c38, %c0_17] : memref<1x342x64xbf16, #tpu.memory_space<vmem>>, vector<1x288x64xbf16>
    %17 = vector.shape_cast %16 : vector<1x288x64xbf16> to vector<288x64xbf16>
    %18 = tpu.concatenate %1, %3, %5, %7, %9, %11, %13, %15, %17 in 1 : vector<288x64xbf16>, vector<288x64xbf16>, vector<288x64xbf16>, vector<288x64xbf16>, vector<288x64xbf16>, vector<288x64xbf16>, vector<288x64xbf16>, vector<288x64xbf16>, vector<288x64xbf16> -> vector<288x576xbf16>
    %c0_18 = arith.constant 0 : index
    %c0_19 = arith.constant 0 : index
    %19 = vector.load %arg2[%c0_18, %c0_19] : memref<576x768xbf16, #tpu.memory_space<vmem>>, vector<576x768xbf16>
    %cst = arith.constant dense<0.000000e+00> : vector<288x768xf32>
    %20 = tpu.matmul %18, %19, %cst {dimension_numbers = #tpu.dot_dimension_numbers<[1], [0], [0], [1], [0, 0, 1, 1], [], []>} : vector<288x576xbf16>, vector<576x768xbf16>, vector<288x768xf32> -> vector<288x768xf32>
    %c0_20 = arith.constant 0 : index
    %c0_21 = arith.constant 0 : index
    %21 = vector.load %arg3[%c0_20, %c0_21] : memref<1x768xf32, #tpu.memory_space<vmem>>, vector<1x768xf32>
    %22 = vector.broadcast %21 : vector<1x768xf32> to vector<288x768xf32>
    %23 = arith.addf %20, %22 : vector<288x768xf32>
    %cst_22 = arith.constant 0.000000e+00 : f32
    %24 = vector.broadcast %cst_22 : f32 to vector<288x768xf32>
    %25 = arith.maximumf %23, %24 : vector<288x768xf32>
    %26 = arith.truncf %25 : vector<288x768xf32> to vector<288x768xbf16>
    %c0_23 = arith.constant 0 : index
    %c0_24 = arith.constant 0 : index
    %27 = vector.load %arg4[%c0_23, %c0_24] : memref<768x8xbf16, #tpu.memory_space<vmem>>, vector<768x8xbf16>
    %cst_25 = arith.constant dense<0.000000e+00> : vector<288x8xf32>
    %28 = tpu.matmul %26, %27, %cst_25 {dimension_numbers = #tpu.dot_dimension_numbers<[1], [0], [0], [1], [0, 0, 1, 1], [], []>} : vector<288x768xbf16>, vector<768x8xbf16>, vector<288x8xf32> -> vector<288x8xf32>
    %c0_26 = arith.constant 0 : index
    %c0_27 = arith.constant 0 : index
    %29 = vector.load %arg5[%c0_26, %c0_27] : memref<1x8xf32, #tpu.memory_space<vmem>>, vector<1x8xf32>
    %30 = vector.broadcast %29 : vector<1x8xf32> to vector<288x8xf32>
    %31 = arith.addf %28, %30 : vector<288x8xf32>
    %cst_28 = arith.constant 0.000000e+00 : f32
    %32 = vector.broadcast %cst_28 : f32 to vector<288x8xf32>
    %33 = arith.subf %32, %31 : vector<288x8xf32>
    %34 = math.exp %33 : vector<288x8xf32>
    %cst_29 = arith.constant 1.000000e+00 : f32
    %35 = vector.broadcast %cst_29 : f32 to vector<288x8xf32>
    %36 = arith.addf %35, %34 : vector<288x8xf32>
    %cst_30 = arith.constant 1.000000e+00 : f32
    %37 = vector.broadcast %cst_30 : f32 to vector<288x8xf32>
    %38 = arith.divf %37, %36 : vector<288x8xf32>
    %c0_31 = arith.constant 0 : index
    %c0_32 = arith.constant 0 : index
    %c0_33 = arith.constant 0 : index
    %39 = vector.load %arg6[%c0_31, %c0_32, %c0_33] : memref<1x288x8xf32, #tpu.memory_space<vmem>>, vector<1x288x8xf32>
    %40 = vector.shape_cast %39 : vector<1x288x8xf32> to vector<288x8xf32>
    %41 = vector.shape_cast %38 : vector<288x8xf32> to vector<1x288x8xf32>
    tpu.vector_store %arg6[%c0_31, %c0_32, %c0_33], %41 {strides = array<i32>} : memref<1x288x8xf32, #tpu.memory_space<vmem>>, vector<1x288x8xf32>,
    return
  }
  func.func @transform_0(%arg0: i32) -> (i32, i32, i32) {
    %c0_i32 = arith.constant 0 : i32
    %c0_i32_0 = arith.constant 0 : i32
    %c0_i32_1 = arith.constant 0 : i32
    return %arg0, %c0_i32, %c0_i32_0 : i32, i32, i32
  }
  func.func @transform_1(%arg0: i32) -> (i32, i32) {
    %c0_i32 = arith.constant 0 : i32
    %c0_i32_0 = arith.constant 0 : i32
    %c0_i32_1 = arith.constant 0 : i32
    return %c0_i32, %c0_i32_0 : i32, i32
  }
  func.func @transform_2(%arg0: i32) -> (i32, i32) {
    %c0_i32 = arith.constant 0 : i32
    %c0_i32_0 = arith.constant 0 : i32
    %c0_i32_1 = arith.constant 0 : i32
    return %c0_i32, %c0_i32_0 : i32, i32
  }
  func.func @transform_3(%arg0: i32) -> (i32, i32) {
    %c0_i32 = arith.constant 0 : i32
    %c0_i32_0 = arith.constant 0 : i32
    %c0_i32_1 = arith.constant 0 : i32
    return %c0_i32, %c0_i32_0 : i32, i32
  }
  func.func @transform_4(%arg0: i32) -> (i32, i32) {
    %c0_i32 = arith.constant 0 : i32
    %c0_i32_0 = arith.constant 0 : i32
    %c0_i32_1 = arith.constant 0 : i32
    return %c0_i32, %c0_i32_0 : i32, i32
  }
  func.func @transform_5(%arg0: i32) -> (i32, i32, i32) {
    %c0_i32 = arith.constant 0 : i32
    %c0_i32_0 = arith.constant 0 : i32
    %c0_i32_1 = arith.constant 0 : i32
    return %arg0, %c0_i32, %c0_i32_0 : i32, i32, i32
  }
}

</mosaic_0001>

<bundles_post_ra>
// kernel: _head_forward.1
= control target key start
LH: loop header
LB: loop body
LE: loop exit
PB: predicated region body
PF: predicated region fallthrough
CT: control target
= control target key end

     0   :  { %s9454_s18 = smov 0   ;;  %s14238_s0 = inlined_call_operand.vmem [shape: bf16[2,342,64], index: 0, kind: input, shape index: {}]   ;;  %s14239_s1 = inlined_call_operand.vmem [shape: bf16[576,768], index: 1, kind: input, shape index: {}]   ;;  %s14240_s2 = inlined_call_operand.vmem [shape: f32[1,768], index: 2, kind: input, shape index: {}]   ;;  %s14241_s3 = inlined_call_operand.vmem [shape: bf16[768,8], index: 3, kind: input, shape index: {}]   ;;  %s14242_s4 = inlined_call_operand.vmem [shape: f32[1,8], index: 4, kind: input, shape index: {}]   ;;  %s14243_s5 = inlined_call_operand.vmem [shape: f32[2,288,8], index: 5, kind: output, shape index: {}]  }
   0x1 LB: > { %s7694_s19 = sadd.s32 4294967295, %s9421_s18   ;;  %p7698_p0 = scmp.ge.s32.totalorder %s9421_s18, 1  ;;  %s9421_s18 = sphi %s9454_s18, %s15_s18  }
   0x2   : > { %p187_p1 = scmp.lt.s32.totalorder %s9421_s18, 3 }
   0x4   : > { %p188_p2 = pnand %p7698_p0, %p187_p1 }
   0x6   : > { %191 = sbr.rel (%p188_p2) target bundleno = 2901 (0xb55), region = 40 }
   0xb   : > { %p215_p3 = scmp.lt.s32.totalorder %s7694_s19, 1  ;;  %vm745_vm0 = vcmask 1045504   ;;  %s9423_s24 = smov 64   ;;  %vm839_vm1 = vsmask.f32 5376  ;;  %vm557_vm3 = vcmask 1046528  }
   0xc   : > { %vm369_vm2 = vsmask.f32 7424  ;;  %vm651_vm4 = vsmask.f32 6400  ;;  %vm1007_vm5 = vcmask 523264   ;;  %vm969_vm6 = vcmask 1044480  }
   0xd   : > { %s15196_s19 = smov (!%p215_p3, %s7694_s19), 1  ;;  %vm7602_vm10 = vcmask 64512  }
   0xe   : > { %s9233_s20 = smul.u32 172, %s15196_s19 }
   0xf   : > { %s9234_s8 = smul.u32 288, %s15196_s19 }
  0x10   : > { %s9468_s23 = scalar_lea.vmem %s14238_s0, %s9233_s20 }
  0x11   : > { %v9471_v0 = vld [vmem:[%s9468_s23 + $0x8] sm:$0xff]   ;;  %v9474_v1 = vld [vmem:[%s9468_s23 + $0x10] sm:$0xff]   ;;  %v9481_v6 = vld [vmem:[%s9468_s23 + $0x18] sm:$0xff]  ;;  %s13943_s19 = scalar_lea.vmem %s14243_s5, %s9234_s8 }
  0x12   : > { %v264_v2 = vld [vmem:[%s9468_s23 + $0x8] sm:$0xe]  ;;  %v9223_v3 = vunpack.c.h.b16 %v9471_v0  ;;  %v14244_v5 = vunpack.c.h.b16 %v9474_v1  ;;  %v270_v7 = vld [vmem:[%s9468_s23 + $0x10] sm:$0xc]  ;;  %v9485_v10 = vld [vmem:[%s9468_s23] sm:$0xff]   ;;  %v9488_v12 = vshll.u32 %v9481_v6, 16 }
  0x13   : > { %v269_v4 = vld [vmem:[%s9468_s23 + $0x8] sm:$0xc]  ;;  %v823_v9 = vunpack.c.l.b16 %v270_v7  ;;  %v599_v11 = vunpack.c.l.b16 %v264_v2  ;;  %v9491_v13 = vshrl.u32 %v9481_v6, 16  ;;  %v747_v15 = vrot.slane %v9474_v1, 2  ;;  %v9504_v22 = vld [vmem:[%s9468_s23 + $0x20] sm:$0xff] }
  0x14   : > { %v743_v8 = vunpack.c.l.b16 %v269_v4  ;;  %v373_v17 = vshll.u32 %v9485_v10, 16  ;;  %v849_v19 = vrot.slane %v9488_v12, 3  ;;  %v371_v20 = vshrl.u32 %v9485_v10, 16  ;;  %v9539_v49 = vld [vmem:[%s9468_s23 + $0x28] sm:$0xff] }
  0x15   : > { %v9496_v16 = vpack.c.b16 %v14244_v5, %v823_v9  ;;  %v848_v18 = vrot.slane %v9491_v13, 2  ;;  %v378_v21 = vshll.u32 %v9471_v0, 16  ;;  %v9510_v31 = vpack.c.b16 %v9223_v3, %v599_v11 }
  0x16   : > { %v744_v14 = vpack.c.b16 %v9223_v3, %v743_v8  ;;  %v375_v26 = vrot.slane %v373_v17, 1  ;;  %v9513_v33 = vshll.u32 %v9504_v22, 16  ;;  %v9516_v36 = vshrl.u32 %v9504_v22, 16  ;;  %v9571_v3 = vld [vmem:[%s9468_s23 + $0x30] sm:$0xff] }
  0x17   : > { %v841_v24 = vshrl.u32 %v9496_v16, 16  ;;  %v844_v25 = vshll.u32 %v9496_v16, 16  ;;  %v850_v30 = vor.u32 %v849_v19, %v848_v18  ;;  %v380_v32 = vrot.slane %v378_v21, 1 }
  0x18   : > { %v746_v23 = vrot.slane %v744_v14, 2  ;;  %v376_v35 = vor.u32 %v375_v26, %v371_v20  ;;  %v9519_v37 = vrot.slane %v9481_v6, 2  ;;  %v386_v40 = vshll.u32 %v9474_v1, 16  ;;  %v9587_v14 = vld [vmem:[%s9468_s23 + $0x38] sm:$0xff]  ;;  %v8323_v26 = vld [vmem:[%s14239_s1 + $0x450] sm:$0xf] }
  0x19   : > { %v843_v28 = vrot.slane %v841_v24, 2  ;;  %v846_v29 = vrot.slane %v844_v25, 3  ;;  %v9527_v41 = vrot.slane %v9474_v1, 1  ;;  %v382_v42 = vshrl.u32 %v9471_v0, 16 }
  0x1a   : > { %v748_v27 = vsel %vm745_vm0, %v746_v23, %v747_v15  ;;  %v750_v39 = vsel %vm745_vm0, %v747_v15, %v9519_v37  ;;  %v381_v43 = vsel %vm369_vm2, %v376_v35, %v380_v32  ;;  %v606_v44 = vrot.slane %v9510_v31, 1  ;;  %v8515_v35 = vld [vmem:[%s14239_s1 + $0x5d0] sm:$0xf] }
  0x1b   : > { %783 = vrot.lane.b32.xlu0 %v748_v27, %s9423_s24  ;;  %v847_v34 = vor.u32 %v846_v29, %v843_v28  ;;  %785 = vrot.lane.b32.xlu2 %v750_v39, %s9423_s24  ;;  %v852_v45 = vrot.slane %v9516_v36, 2  ;;  %v853_v46 = vrot.slane %v9513_v33, 3  ;;  %v384_v47 = vor.u32 %v382_v42, %v380_v32  ;;  %v9093_v27 = vld [vmem:[%s14239_s1 + $0x464] sm:$0xf0]  ;;  %v8299_v32 = vld [vmem:[%s14239_s1 + $0x420] sm:$0xf] }
  0x1c   : > { %v388_v48 = vrot.slane %v386_v40, 1  ;;  %v607_v50 = vsel %vm557_vm3, %v606_v44, %v9527_v41  ;;  %v563_v53 = vrot.slane %v9481_v6, 1  ;;  %v9547_v54 = vshrl.u32 %v9539_v49, 16  ;;  %v7939_v39 = vld [vmem:[%s14239_s1 + $0x150] sm:$0xf] }
  0x1d   : > { %v851_v38 = vsel %vm839_vm1, %v847_v34, %v850_v30  ;;  %v854_v51 = vor.u32 %v853_v46, %v852_v45  ;;  %v9552_v56 = vshll.u32 %v9539_v49, 16  ;;  %v390_v57 = vshrl.u32 %v9474_v1, 16  ;;  %v9087_v34 = vld [vmem:[%s14239_s1 + $0x434] sm:$0xf0]  ;;  %v8997_v42 = vld [vmem:[%s14239_s1 + $0x164] sm:$0xf0] }
  0x1e   : > { %930 = vrot.lane.b32.xlu1 %v851_v38, %s9423_s24  ;;  %v389_v52 = vsel %vm369_vm2, %v384_v47, %v388_v48  ;;  %v751_v58 = vrot.slane %v9504_v22, 2  ;;  %v9559_v59 = vsel %vm557_vm3, %v9527_v41, %v563_v53  ;;  %v856_v60 = vrot.slane %v9547_v54, 2  ;;  %v9141_v38 = vld [vmem:[%s14239_s1 + $0x5e4] sm:$0xf0]  ;;  %v8275_v47 = vld [vmem:[%s14239_s1 + $0x3f0] sm:$0xf] }
  0x1f   : > { %v855_v55 = vsel %vm839_vm1, %v850_v30, %v854_v51  ;;  %v857_v61 = vrot.slane %v9552_v56, 3  ;;  %v392_v62 = vor.u32 %v390_v57, %v388_v48  ;;  %v396_v63 = vrot.slane %v9488_v12, 1  ;;  %v8491_v48 = vld [vmem:[%s14239_s1 + $0x5a0] sm:$0xf] }
  0x20   : > { %v9568_v2 = vsel %vm745_vm0, %v9519_v37, %v751_v58  ;;  %v565_v8 = vrot.slane %v9504_v22, 1  ;;  %v9580_v9 = vshll.u32 %v9571_v3, 16  ;;  %v9583_v11 = vshrl.u32 %v9571_v3, 16 }
  0x21   : > { %v858_v4 = vor.u32 %v857_v61, %v856_v60  ;;  %v397_v7 = vsel %vm369_vm2, %v392_v62, %v396_v63  ;;  %v753_v17 = vrot.slane %v9539_v49, 2  ;;  %v404_v19 = vrot.slane %v9513_v33, 1  ;;  %v8991_v60 = vld [vmem:[%s14239_s1 + $0x134] sm:$0xf0]  ;;  %v8131_v61 = vld [vmem:[%s14239_s1 + $0x2d0] sm:$0xf] }
  0x22   : > { %v9592_v18 = vsel %vm557_vm3, %v563_v53, %v565_v8  ;;  %v567_v20 = vrot.slane %v9539_v49, 1  ;;  %v755_v21 = vrot.slane %v9571_v3, 2  ;;  %v860_v22 = vrot.slane %v9583_v11, 2  ;;  %v9045_v62 = vld [vmem:[%s14239_s1 + $0x2e4] sm:$0xf0] }
  0x23   : > { %518 = vrot.lane.b32.xlu0 %v381_v43, %s9423_s24  ;;  %520 = vrot.lane.b32.xlu2 %v389_v52, %s9423_s24  ;;  %v859_v15 = vsel %vm839_vm1, %v854_v51, %v858_v4  ;;  %v861_v23 = vrot.slane %v9580_v9, 3  ;;  %v9603_v24 = vshll.u32 %v9587_v14, 16  ;;  %v9606_v25 = vshrl.u32 %v9587_v14, 16  ;;  %v9135_v51 = vld [vmem:[%s14239_s1 + $0x5b4] sm:$0xf0] }
  0x24   : > { %v9617_v28 = vsel %vm745_vm0, %v751_v58, %v753_v17  ;;  %v400_v29 = vor.u32 %v9491_v13, %v396_v63  ;;  %v8324_v30 = vor.u32 %v9093_v27, %v8323_v26  ;;  %v8300_v44 = vor.u32 %v9087_v34, %v8299_v32  ;;  %v7915_v52 = vld [vmem:[%s14239_s1 + $0x120] sm:$0xf]  ;;  %v9129_v26 = vld [vmem:[%s14239_s1 + $0x584] sm:$0xf0]  ;;  %v7891_v27 = vld [vmem:[%s14239_s1 + $0xf0] sm:$0xf] }
  0x25   : > { %v9638_v43 = vor.u32 %v861_v23, %v860_v22  ;;  %v8516_v45 = vor.u32 %v9141_v38, %v8515_v35  ;;  %v7940_v46 = vor.u32 %v8997_v42, %v7939_v39  ;;  %v8492_v58 = vor.u32 %v9135_v51, %v8491_v48  ;;  %v8467_v22 = vld [vmem:[%s14239_s1 + $0x570] sm:$0xf]  ;;  %v8107_v35 = vld [vmem:[%s14239_s1 + $0x2a0] sm:$0xf]  ;;  %v9039_v38 = vld [vmem:[%s14239_s1 + $0x2b4] sm:$0xf0] }
  0x26   : > { %612 = vrot.lane.b32.xlu1 %v607_v50, %s9423_s24  ;;  %2840 = vmatpush.bf16.msra.mxu2 %v8324_v30  ;;  %v9081_v50 = vld [vmem:[%s14239_s1 + $0x404] sm:$0xf0]  ;;  %v405_v53 = vsel %vm369_vm2, %v400_v29, %v404_v19  ;;  %v7916_v63 = vor.u32 %v8991_v60, %v7915_v52  ;;  %v9691_v30 = vsel %vm557_vm3, %v565_v8, %v567_v20  ;;  %v864_v32 = vrot.slane %v9606_v25, 2  ;;  %v9716_v48 = vld [vmem:[%s9468_s23 + $0x40] sm:$0xff]  ;;  %v8083_v52 = vld [vmem:[%s14239_s1 + $0x270] sm:$0xf] }
  0x27   : > { %2939 = vmatpush.bf16.msra.mxu3 %v8516_v45  ;;  %2642 = vmatpush.bf16.msra.mxu0 %v7940_v46  ;;  %v8276_v23 = vor.u32 %v9081_v50, %v8275_v47  ;;  %v8985_v29 = vld [vmem:[%s14239_s1 + $0x104] sm:$0xf0]  ;;  %v865_v34 = vrot.slane %v9603_v24, 3  ;;  %v408_v39 = vor.u32 %v9516_v36, %v404_v19  ;;  %v8468_v8 = vor.u32 %v9129_v26, %v8467_v22  ;;  %v9123_v46 = vld [vmem:[%s14239_s1 + $0x554] sm:$0xf0] }
  0x28   : > { %v7892_v42 = vor.u32 %v8985_v29, %v7891_v27  ;;  %v8108_v45 = vor.u32 %v9039_v38, %v8107_v35  ;;  %v7867_v47 = vld [vmem:[%s14239_s1 + $0xc0] sm:$0xf]  ;;  %v8979_v19 = vld [vmem:[%s14239_s1 + $0xd4] sm:$0xf0]  ;;  %v412_v50 = vrot.slane %v9552_v56, 1  ;;  %v569_v26 = vrot.slane %v9571_v3, 1 }
  0x29   : > { %v8227_v60 = vld [vmem:[%s14239_s1 + $0x390] sm:$0xf]  ;;  %v9117_v22 = vld [vmem:[%s14239_s1 + $0x524] sm:$0xf0]  ;;  %v9759_v27 = vshll.u32 %v9716_v48, 16  ;;  %v9770_v35 = vshrl.u32 %v9716_v48, 16 }
  0x2a   : > { %2841 = vmatpush.bf16.msra.mxu2 %v8300_v44  ;;  %v8443_v44 = vld [vmem:[%s14239_s1 + $0x540] sm:$0xf] }
  0x2b   : > { %932 = vrot.lane.b32.xlu0 %v855_v55, %s9423_s24  ;;  %787 = vrot.lane.b32.xlu2 %v9568_v2, %s9423_s24  ;;  %v863_v55 = vsel %vm839_vm1, %v858_v4, %v9638_v43  ;;  %v8251_v4 = vld [vmem:[%s14239_s1 + $0x3c0] sm:$0xf] }
  0x2c   : > { %2940 = vmatpush.bf16.msra.mxu3 %v8492_v58  ;;  %2643 = vmatpush.bf16.msra.mxu0 %v7916_v63  ;;  %v9734_v58 = vor.u32 %v865_v34, %v864_v32  ;;  %v413_v63 = vsel %vm369_vm2, %v408_v39, %v412_v50  ;;  %v8059_v32 = vld [vmem:[%s14239_s1 + $0x240] sm:$0xf]  ;;  %v9027_v34 = vld [vmem:[%s14239_s1 + $0x254] sm:$0xf0] }
  0x2d   : > { %v8203_v38 = vld [vmem:[%s14239_s1 + $0x360] sm:$0xf]  ;;  %v9063_v39 = vld [vmem:[%s14239_s1 + $0x374] sm:$0xf0] }
  0x2e   : > { %614 = vrot.lane.b32.xlu1 %v9559_v59, %s9423_s24  ;;  %2842 = vmatpush.bf16.msra.mxu2 %v8276_v23  ;;  %v8973_v23 = vld [vmem:[%s14239_s1 + $0xa4] sm:$0xf0] }
  0x30   : > { %2941 = vmatpush.bf16.msra.mxu3 %v8468_v8  ;;  %2644 = vmatpush.bf16.msra.mxu0 %v7892_v42  ;;  %v661_v8 = vrot.slane %v386_v40, 2  ;;  %v867_v42 = vsel %vm839_vm1, %v9638_v43, %v9734_v58  ;;  %v7819_v40 = vld [vmem:[%s14239_s1 + $0x60] sm:$0xf]  ;;  %v8967_v43 = vld [vmem:[%s14239_s1 + $0x74] sm:$0xf0] }
  0x33   : > { %522 = vrot.lane.b32.xlu0 %v397_v7, %s9423_s24  ;;  %616 = vrot.lane.b32.xlu2 %v9592_v18, %s9423_s24  ;;  %v8132_v7 = vor.u32 %v9045_v62, %v8131_v61  ;;  %v9069_v61 = vld [vmem:[%s14239_s1 + $0x3a4] sm:$0xf0]  ;;  %v660_v62 = vrot.slane %v390_v57, 1  ;;  %v7843_v57 = vld [vmem:[%s14239_s1 + $0x90] sm:$0xf] }
  0x34   : > { %v8228_v29 = vor.u32 %v9069_v61, %v8227_v60  ;;  %v8035_v60 = vld [vmem:[%s14239_s1 + $0x210] sm:$0xf]  ;;  %v9021_v61 = vld [vmem:[%s14239_s1 + $0x224] sm:$0xf0] }
  0x35   : > { %2741 = vmatpush.bf16.msra.mxu1 %v8132_v7  ;;  %v8444_v7 = vor.u32 %v9123_v46, %v8443_v44  ;;  %v8395_v46 = vld [vmem:[%s14239_s1 + $0x4e0] sm:$0xf] }
  0x36   : > { %934 = vrot.lane.b32.xlu1 %v859_v15, %s9423_s24  ;;  %v9075_v15 = vld [vmem:[%s14239_s1 + $0x3d4] sm:$0xf0] }
  0x37   : > { %v8252_v51 = vor.u32 %v9075_v15, %v8251_v4  ;;  %v8419_v4 = vld [vmem:[%s14239_s1 + $0x510] sm:$0xf]  ;;  %2942 = vmatpush.bf16.msra.mxu3 %v8444_v7  ;;  %v869_v7 = vrot.slane %v9759_v27, 3 }
  0x38   : > { %v8420_v44 = vor.u32 %v9117_v22, %v8419_v4  ;;  %v8179_v4 = vld [vmem:[%s14239_s1 + $0x330] sm:$0xf]  ;;  %v420_v22 = vrot.slane %v9580_v9, 1 }
  0x39   : > { %2742 = vmatpush.bf16.msra.mxu1 %v8108_v45  ;;  %2843 = vmatpush.bf16.msra.mxu2 %v8252_v51  ;;  %v7844_v45 = vor.u32 %v8973_v23, %v7843_v57  ;;  %v9796_v51 = vor.u32 %v661_v8, %v660_v62  ;;  %v9811_v62 = vsel %vm557_vm3, %v567_v20, %v569_v26  ;;  %v8371_v23 = vld [vmem:[%s14239_s1 + $0x4b0] sm:$0xf] }
  0x3a   : > { %v7820_v57 = vor.u32 %v8967_v43, %v7819_v40  ;;  %v571_v40 = vrot.slane %v9587_v14, 1  ;;  %v573_v43 = vrot.slane %v9716_v48, 1 }
  0x3b   : > { %789 = vrot.lane.b32.xlu0 %v9617_v28, %s9423_s24  ;;  %936 = vrot.lane.b32.xlu2 %v863_v55, %s9423_s24  ;;  %v9732_v55 = vsel %vm745_vm0, %v753_v17, %v755_v21  ;;  %v7868_v17 = vor.u32 %v8979_v19, %v7867_v47  ;;  %v8060_v47 = vor.u32 %v9027_v34, %v8059_v32  ;;  %v9111_v19 = vld [vmem:[%s14239_s1 + $0x4f4] sm:$0xf0] }
  0x3c   : > { %2943 = vmatpush.bf16.msra.mxu3 %v8420_v44  ;;  %v8396_v20 = vor.u32 %v9111_v19, %v8395_v46  ;;  %v9051_v34 = vld [vmem:[%s14239_s1 + $0x314] sm:$0xf0]  ;;  %v428_v19 = vrot.slane %v9603_v24, 1 }
  0x3d   : > { %2645 = vmatpush.bf16.msra.mxu0 %v7868_v17  ;;  %2844 = vmatpush.bf16.msra.mxu2 %v8228_v29  ;;  %v416_v17 = vor.u32 %v9547_v54, %v412_v50  ;;  %v8036_v50 = vor.u32 %v9021_v61, %v8035_v60  ;;  %v9105_v29 = vld [vmem:[%s14239_s1 + $0x4c4] sm:$0xf0] }
  0x3e   : > { %524 = vrot.lane.b32.xlu1 %v405_v53, %s9423_s24  ;;  %v9033_v53 = vld [vmem:[%s14239_s1 + $0x284] sm:$0xf0]  ;;  %v8372_v8 = vor.u32 %v9105_v29, %v8371_v23  ;;  %v7795_v23 = vld [vmem:[%s14239_s1 + $0x30] sm:$0xf] }
  0x3f   : > { %v8084_v15 = vor.u32 %v9033_v53, %v8083_v52  ;;  %v757_v52 = vrot.slane %v9587_v14, 2  ;;  %v8204_v53 = vor.u32 %v9063_v39, %v8203_v38  ;;  %v421_v39 = vsel %vm369_vm2, %v416_v17, %v420_v22  ;;  %v9881_v14 = vld [vmem:[%s9468_s23 + $0x50] sm:$0xff]  ;;  %v8961_v29 = vld [vmem:[%s14239_s1 + $0x44] sm:$0xf0] }
  0x40   : > { %2944 = vmatpush.bf16.msra.mxu3 %v8396_v20  ;;  %v9895_v17 = vshrl.u32 %v9881_v14, 16 }
  0x41   : > { %2743 = vmatpush.bf16.msra.mxu1 %v8084_v15  ;;  %v9057_v15 = vld [vmem:[%s14239_s1 + $0x344] sm:$0xf0]  ;;  %v9826_v49 = vsel %vm745_vm0, %v755_v21, %v757_v52  ;;  %2646 = vmatpush.bf16.msra.mxu0 %v7844_v45  ;;  %v8155_v21 = vld [vmem:[%s14239_s1 + $0x300] sm:$0xf]  ;;  %v759_v45 = vrot.slane %v9716_v48, 2 }
  0x42   : > { %2845 = vmatpush.bf16.msra.mxu2 %v8204_v53  ;;  %v8180_v32 = vor.u32 %v9057_v15, %v8179_v4  ;;  %v9866_v53 = vld [vmem:[%s9468_s23 + $0x48] sm:$0xff] }
  0x43   : > { %618 = vrot.lane.b32.xlu0 %v9691_v30, %s9423_s24  ;;  %526 = vrot.lane.b32.xlu2 %v413_v63, %s9423_s24  ;;  %v868_v63 = vrot.slane %v9770_v35, 2  ;;  %v9854_v46 = vsel %vm745_vm0, %v757_v52, %v759_v45  ;;  %v9870_v52 = vsel %vm557_vm3, %v571_v40, %v573_v43  ;;  %v761_v60 = vrot.slane %v9866_v53, 2 }
  0x44   : > { %2945 = vmatpush.bf16.msra.mxu3 %v8372_v8  ;;  %v9886_v48 = vshll.u32 %v9866_v53, 16  ;;  %v9015_v8 = vld [vmem:[%s14239_s1 + $0x1f4] sm:$0xf0] }
  0x45   : > { %2744 = vmatpush.bf16.msra.mxu1 %v8060_v47  ;;  %v9844_v38 = vor.u32 %v869_v7, %v868_v63  ;;  %2647 = vmatpush.bf16.msra.mxu0 %v7820_v57  ;;  %v424_v47 = vor.u32 %v9583_v11, %v420_v22  ;;  %v9878_v61 = vsel %vm745_vm0, %v759_v45, %v761_v60  ;;  %v9889_v63 = vshrl.u32 %v9866_v53, 16  ;;  %v7771_v45 = vld [vmem:[%s14239_s1] sm:$0xf] }
  0x46   : > { %791 = vrot.lane.b32.xlu1 %v9732_v55, %s9423_s24  ;;  %2846 = vmatpush.bf16.msra.mxu2 %v8180_v32  ;;  %v9892_v7 = vshll.u32 %v9881_v14, 16  ;;  %v873_v15 = vrot.slane %v9886_v48, 3  ;;  %v876_v22 = vrot.slane %v9895_v17, 2  ;;  %v8011_v32 = vld [vmem:[%s14239_s1 + $0x1e0] sm:$0xf] }
  0x47   : > { %v871_v44 = vsel %vm839_vm1, %v9734_v58, %v9844_v38  ;;  %v429_v58 = vsel %vm369_vm2, %v424_v47, %v428_v19  ;;  %v872_v4 = vrot.slane %v9889_v63, 2  ;;  %v8012_v3 = vor.u32 %v9015_v8, %v8011_v32  ;;  %v8955_v47 = vld [vmem:[%s14239_s1 + $0x14] sm:$0xf0]  ;;  %v8133_v32 = vld [vmem:[%s14239_s1 + $0x2e8] sm:$0xf0] }
  0x48   : > { %v877_v20 = vrot.slane %v9892_v7, 3 }
  0x49   : > { %2745 = vmatpush.bf16.msra.mxu1 %v8036_v50  ;;  %v874_v57 = vor.u32 %v873_v15, %v872_v4  ;;  %v9009_v4 = vld [vmem:[%s14239_s1 + $0x1c4] sm:$0xf0] }
  0x4a   : > { %v878_v50 = vor.u32 %v877_v20, %v876_v22  ;;  %v575_v22 = vrot.slane %v9866_v53, 1  ;;  %v7963_v20 = vld [vmem:[%s14239_s1 + $0x180] sm:$0xf] }
  0x4b   : > { %938 = vrot.lane.b32.xlu0 %v867_v42, %s9423_s24  ;;  %793 = vrot.lane.b32.xlu2 %v9826_v49, %s9423_s24  ;;  %v8156_v42 = vor.u32 %v9051_v34, %v8155_v21  ;;  %v9913_v21 = vsel %vm557_vm3, %v569_v26, %v571_v40  ;;  %v7772_v40 = vor.u32 %v8955_v47, %v7771_v45 }
  0x4c   : > { %v879_v34 = vsel %vm839_vm1, %v874_v57, %v878_v50 }
  0x4d   : > { %2847 = vmatpush.bf16.msra.mxu2 %v8156_v42  ;;  %v8347_v42 = vld [vmem:[%s14239_s1 + $0x480] sm:$0xf]  ;;  %2746 = vmatpush.bf16.msra.mxu1 %v8012_v3  ;;  %v8611_v3 = vld [vmem:[%s14239_s1 + $0x690] sm:$0xf] }
  0x4e   : > { %620 = vrot.lane.b32.xlu1 %v9811_v62, %s9423_s24 }
  0x53   : > { %528 = vrot.lane.b32.xlu0 %v421_v39, %s9423_s24  ;;  %v7796_v39 = vor.u32 %v8961_v29, %v7795_v23  ;;  %622 = vrot.lane.b32.xlu2 %v9913_v21, %s9423_s24  ;;  %v9003_v23 = vld [vmem:[%s14239_s1 + $0x194] sm:$0xf0]  ;;  %v9042_v29 = vld [vmem:[%s14239_s1 + $0x2d4] sm:$0xf] }
  0x54   : > { %v7964_v8 = vor.u32 %v9003_v23, %v7963_v20  ;;  %v7941_v20 = vld [vmem:[%s14239_s1 + $0x168] sm:$0xf0] }
  0x55   : > { %2648 = vmatpush.bf16.msra.mxu0 %v7796_v39  ;;  %v9958_v39 = vsel %vm557_vm3, %v573_v43, %v575_v22  ;;  %v9090_v43 = vld [vmem:[%s14239_s1 + $0x454] sm:$0xf] }
  0x56   : > { %940 = vrot.lane.b32.xlu1 %v871_v44, %s9423_s24  ;;  %v9099_v44 = vld [vmem:[%s14239_s1 + $0x494] sm:$0xf0] }
  0x57   : > { %v8348_v26 = vor.u32 %v9099_v44, %v8347_v42  ;;  %v9961_v42 = vld [vmem:[%s9468_s23 + $0x58] sm:$0xff]  ;;  %v8136_v44 = vor.u32 %v9042_v29, %v8133_v32 }
  0x58   : > { %v9979_v45 = vshll.u32 %v9961_v42, 16  ;;  %v9982_v47 = vshrl.u32 %v9961_v42, 16 }
  0x59   : > { %2946 = vmatpush.bf16.msra.mxu3 %v8348_v26  ;;  %2649 = vmatpush.bf16.msra.mxu0 %v7772_v40  ;;  %v8325_v26 = vld [vmem:[%s14239_s1 + $0x468] sm:$0xf0] }
  0x5a   : > { %3236 = vmatpush.bf16.msrb.mxu2 %v8136_v44  ;;  %v880_v40 = vrot.slane %v9982_v47, 2  ;;  %v656_v44 = vshll.u32 %v9510_v31, 16 }
  0x5b   : > { %795 = vrot.lane.b32.xlu0 %v9854_v46, %s9423_s24 }
  0x5e   : > { %530 = vrot.lane.b32.xlu1 %v429_v58, %s9423_s24  ;;  %v7987_v58 = vld [vmem:[%s14239_s1 + $0x1b0] sm:$0xf] }
  0x5f   : > { %v7988_v15 = vor.u32 %v9009_v4, %v7987_v58  ;;  %v8328_v58 = vor.u32 %v9090_v43, %v8325_v26  ;;  %v881_v4 = vrot.slane %v9979_v45, 3  ;;  %v658_v26 = vrot.slane %v656_v44, 2 }
  0x61   : > { %2747 = vmatpush.bf16.msra.mxu1 %v7988_v15  ;;  %3335 = vmatpush.bf16.msrb.mxu3 %v8328_v58  ;;  %v8994_v15 = vld [vmem:[%s14239_s1 + $0x154] sm:$0xf]  ;;  %v9992_v29 = vor.u32 %v881_v4, %v880_v40  ;;  %v432_v58 = vor.u32 %v9606_v25, %v428_v19  ;;  %v765_v40 = vrot.slane %v9961_v42, 2  ;;  %v9231_v19 = vld [vmem:[%s9468_s23] sm:$0xe] }
  0x62   : > { %v7944_v23 = vor.u32 %v8994_v15, %v7941_v20  ;;  %v830_v15 = vrot.slane %v9496_v16, 2 }
  0x63   : > { %624 = vrot.lane.b32.xlu0 %v9870_v52, %s9423_s24  ;;  %v883_v32 = vsel %vm839_vm1, %v878_v50, %v9992_v29 }
  0x64   : > { %v831_v16 = vsel %vm745_vm0, %v830_v15, %v9519_v37 }
  0x65   : > { %2748 = vmatpush.bf16.msra.mxu1 %v7964_v8  ;;  %v653_v8 = vshrl.u32 %v9510_v31, 16  ;;  %v763_v31 = vrot.slane %v9881_v14, 2 }
  0x66   : > { %797 = vrot.lane.b32.xlu1 %v9878_v61, %s9423_s24 }
  0x67   : > { %v655_v43 = vrot.slane %v653_v8, 1  ;;  %v10013_v20 = vsel %vm745_vm0, %v763_v31, %v765_v40 }
  0x69   : > { %3137 = vmatpush.bf16.msrb.mxu1 %v7944_v23  ;;  %v659_v50 = vor.u32 %v658_v26, %v655_v43  ;;  %v14246_v43 = vrot.slane %v9892_v7, 1  ;;  %v664_v26 = vrot.slane %v9491_v13, 1  ;;  %v559_v13 = vrot.slane %v9471_v0, 1 }
  0x6b   : > { %944 = vrot.lane.b32.xlu0 %v879_v34, %s9423_s24  ;;  %v875_v34 = vsel %vm839_vm1, %v9844_v38, %v874_v57  ;;  %v9165_v38 = vld [vmem:[%s14239_s1 + $0x6a4] sm:$0xf0]  ;;  %v663_v23 = vsel %vm651_vm4, %v659_v50, %v9796_v51  ;;  %v665_v50 = vrot.slane %v9488_v12, 2 }
  0x6c   : > { %942 = vrot.lane.b32.xlu2 %v875_v34, %s9423_s24  ;;  %v8612_v57 = vor.u32 %v9165_v38, %v8611_v3  ;;  %v436_v34 = vrot.slane %v9759_v27, 1  ;;  %v444_v3 = vrot.slane %v9886_v48, 1 }
  0x6e   : > { %626 = vrot.lane.b32.xlu1 %v9958_v39, %s9423_s24  ;;  %3042 = vmatpush.bf16.msrb.mxu0 %v8612_v57  ;;  %v440_v38 = vor.u32 %v9770_v35, %v436_v34  ;;  %v437_v4 = vsel %vm369_vm2, %v432_v58, %v436_v34 }
  0x70   : > { %v445_v57 = vsel %vm369_vm2, %v440_v38, %v444_v3  ;;  %v10030_v38 = vsel %vm745_vm0, %v761_v60, %v763_v31  ;;  %v577_v60 = vrot.slane %v9881_v14, 1  ;;  %v10049_v31 = vor.u32 %v665_v50, %v664_v26 }
  0x73   : > { %534 = vrot.lane.b32.xlu0 %v445_v57, %s9423_s24  ;;  %v448_v57 = vor.u32 %v9889_v63, %v444_v3  ;;  %v579_v3 = vrot.slane %v9961_v42, 1  ;;  %v9036_v42 = vld [vmem:[%s14239_s1 + $0x2a4] sm:$0xf] }
  0x74   : > { %532 = vrot.lane.b32.xlu2 %v437_v4, %s9423_s24 }
  0x75   : > { %v453_v37 = vsel %vm369_vm2, %v448_v57, %v14246_v43 }
  0x76   : > { %946 = vrot.lane.b32.xlu1 %v883_v32, %s9423_s24  ;;  %v9230_v32 = vld [vmem:[%s9468_s23] sm:$0xf0] }
  0x77   : > { %v9232_v34 = vor.u32 %v9231_v19, %v9230_v32  ;;  %v10052_v19 = vsel %vm557_vm3, %v577_v60, %v579_v3 }
  0x78   : > { %14485 = vst [vmem:[#allocation4_spill] sm:$0xff] %v10052_v19 }
  0x79   : > { %v558_v12 = vrot.slane %v9232_v34, 1  ;;  %v667_v34 = vsel %vm651_vm4, %v9796_v51, %v10049_v31 }
  0x7b   : > { %801 = vrot.lane.b32.xlu0 %v10013_v20, %s9423_s24  ;;  %v560_v14 = vsel %vm557_vm3, %v558_v12, %v559_v13 }
  0x7c   : > { %799 = vrot.lane.b32.xlu2 %v10030_v38, %s9423_s24 }
  0x7e   : > { %536 = vrot.lane.b32.xlu1 %v453_v37, %s9423_s24 }
  0x83   : > { %630 = vrot.lane.b32.xlu0 %v10052_v19, %s9423_s24  ;;  %v668_v19 = vrot.slane %v9516_v36, 1  ;;  %v562_v36 = vsel %vm557_vm3, %v559_v13, %v9527_v41 }
  0x8d   : > { %v784_v8 = vpop.permute.xlu0 %783 }
  0x8e   : > { %v10022_v44 = vsel %vm1007_vm5, %v663_v23, %v784_v8  ;;  %v786_v23 = vpop.permute.xlu2 %785  ;;  %v10061_v8 = vld [vmem:[%s9468_s23 + $0x60] sm:$0xff] }
  0x8f   : > { %14483 = vst [vmem:[#allocation2_spill] sm:$0xff] %v10022_v44  ;;  %2848 = vmatmul.bf16.vlgmr.msra.gmra.mxu2 %v10022_v44  ;;  %v14245_v26 = vrot.slane %v10061_v8, 2  ;;  %v10079_v50 = vshll.u32 %v10061_v8, 16  ;;  %v10082_v37 = vshrl.u32 %v10061_v8, 16  ;;  %v10101_v5 = vsel %vm1007_vm5, %v667_v34, %v786_v23 }
  0x90   : > { %v931_v58 = vpop.permute.xlu1 %930  ;;  %14488 = vst [vmem:[#allocation7_spill] sm:$0xff] %v10101_v5  ;;  %v10117_v23 = vsel %vm557_vm3, %v575_v22, %v577_v60 }
  0x91   : > { %v10040_v4 = vsel %vm1007_vm5, %v831_v16, %v931_v58  ;;  %v10064_v16 = vld [vmem:[%s9468_s23 + $0x68] sm:$0xff]  ;;  %v10093_v51 = vsel %vm745_vm0, %v765_v40, %v14245_v26  ;;  %v8301_v40 = vld [vmem:[%s14239_s1 + $0x438] sm:$0xf0]  ;;  %14489 = vst [vmem:[#allocation8_spill] sm:$0xff] %v10117_v23  ;;  %628 = vrot.lane.b32.xlu2 %v10117_v23, %s9423_s24  ;;  %v884_v26 = vrot.slane %v10082_v37, 2  ;;  %v669_v23 = vrot.slane %v9513_v33, 2 }
  0x92   : > { %14484 = vst [vmem:[#allocation3_spill] sm:$0xff] %v10040_v4  ;;  %2947 = vmatmul.bf16.vlgmr.msra.gmra.mxu3 %v10040_v4  ;;  %v10085_v12 = vshll.u32 %v10064_v16, 16  ;;  %803 = vrot.lane.b32.xlu1 %v10093_v51, %s9423_s24 }
  0x93   : > { %v670_v33 = vor.u32 %v669_v23, %v668_v19 }
  0x94   : > { %v889_v4 = vrot.slane %v10085_v12, 3 }
  0x95   : > { %v519_v15 = vpop.permute.xlu0 %518  ;;  %v671_v13 = vsel %vm651_vm4, %v10049_v31, %v670_v33 }
  0x96   : > { %v10056_v32 = vsel %vm1007_vm5, %v9485_v10, %v519_v15  ;;  %v8109_v10 = vld [vmem:[%s14239_s1 + $0x2b8] sm:$0xf0]  ;;  %v521_v60 = vpop.permute.xlu2 %520 }
  0x97   : > { %14486 = vst [vmem:[#allocation5_spill] sm:$0xff] %v10056_v32  ;;  %2650 = vmatmul.bf16.vlgmr.msra.gmra.mxu0 %v10056_v32  ;;  %v8112_v57 = vor.u32 %v9036_v42, %v8109_v10  ;;  %v10096_v42 = vshrl.u32 %v10064_v16, 16  ;;  %v885_v10 = vrot.slane %v10079_v50, 3 }
  0x98   : > { %v613_v58 = vpop.permute.xlu1 %612 }
  0x99   : > { %v10088_v15 = vsel %vm1007_vm5, %v560_v14, %v613_v58  ;;  %3237 = vmatpush.bf16.msrb.mxu2 %v8112_v57  ;;  %v9084_v14 = vld [vmem:[%s14239_s1 + $0x424] sm:$0xf]  ;;  %v7917_v58 = vld [vmem:[%s14239_s1 + $0x138] sm:$0xf0]  ;;  %v888_v43 = vrot.slane %v10096_v42, 2 }
  0x9a   : > { %14487 = vst [vmem:[#allocation6_spill] sm:$0xff] %v10088_v15  ;;  %2749 = vmatmul.bf16.vlgmr.msra.gmra.mxu1 %v10088_v15  ;;  %v8988_v57 = vld [vmem:[%s14239_s1 + $0x124] sm:$0xf]  ;;  %v8304_v34 = vor.u32 %v9084_v14, %v8301_v40  ;;  %v886_v15 = vor.u32 %v885_v10, %v884_v26 }
  0x9b   : > { %v7920_v44 = vor.u32 %v8988_v57, %v7917_v58  ;;  %v890_v22 = vor.u32 %v889_v4, %v888_v43  ;;  %v460_v58 = vrot.slane %v9979_v45, 1 }
  0x9c   : > { %3336 = vmatpush.bf16.msrb.mxu3 %v8304_v34  ;;  %v887_v4 = vsel %vm839_vm1, %v9992_v29, %v886_v15  ;;  %v10155_v29 = vld [vmem:[%s9468_s23 + $0x70] sm:$0xff] }
  0x9d   : > { %v933_v32 = vpop.permute.xlu0 %932  ;;  %3138 = vmatpush.bf16.msrb.mxu1 %v7920_v44  ;;  %v891_v40 = vsel %vm839_vm1, %v886_v15, %v890_v22  ;;  %v14257_v44 = vrot.slane %v10061_v8, 1  ;;  %948 = vrot.lane.b32.xlu2 %v887_v4, %s9423_s24  ;;  %v10162_v26 = vshll.u32 %v10155_v29, 16  ;;  %v10165_v41 = vshrl.u32 %v10155_v29, 16 }
  0x9e   : > { %v10130_v14 = vsel %vm1007_vm5, %v9568_v2, %v933_v32  ;;  %950 = vrot.lane.b32.xlu0 %v891_v40, %s9423_s24  ;;  %v10142_v2 = vsel %vm1007_vm5, %v9471_v0, %v521_v60  ;;  %v468_v60 = vrot.slane %v10079_v50, 1  ;;  %v672_v4 = vrot.slane %v9547_v54, 1 }
  0x9f   : > { %2853 = vmatmul.bf16.gmra.mxu2 %v10101_v5  ;;  %14490 = vst [vmem:[#allocation9_spill] sm:$0xff] %v10130_v14  ;;  %v10150_v32 = vsel %vm557_vm3, %v579_v3, %v14257_v44  ;;  %v788_v3 = vpop.permute.xlu2 %787  ;;  %v892_v19 = vrot.slane %v10165_v41, 2  ;;  %v893_v15 = vrot.slane %v10162_v26, 3  ;;  %v9159_v44 = vld [vmem:[%s14239_s1 + $0x674] sm:$0xf0] }
  0xa0   : > { %v615_v43 = vpop.permute.xlu1 %614  ;;  %14491 = vst [vmem:[#allocation10_spill] sm:$0xff] %v10142_v2  ;;  %632 = vrot.lane.b32.xlu1 %v10150_v32, %s9423_s24  ;;  %v10173_v10 = vsel %vm1007_vm5, %v671_v13, %v788_v3 }
  0xa1   : > { %v10159_v0 = vsel %vm1007_vm5, %v562_v36, %v615_v43  ;;  %14493 = vst [vmem:[#allocation12_spill] sm:$0xff] %v10173_v10  ;;  %v10175_v57 = vor.u32 %v893_v15, %v892_v19  ;;  %v464_v43 = vor.u32 %v9982_v47, %v460_v58  ;;  %v673_v36 = vrot.slane %v9552_v56, 2 }
  0xa2   : > { %2952 = vmatmul.bf16.gmra.mxu3 %v10130_v14  ;;  %14492 = vst [vmem:[#allocation11_spill] sm:$0xff] %v10159_v0  ;;  %v769_v56 = vrot.slane %v10064_v16, 2  ;;  %v771_v15 = vrot.slane %v10155_v29, 2 }
  0xa3   : > { %v895_v34 = vsel %vm839_vm1, %v890_v22, %v10175_v57  ;;  %v469_v22 = vsel %vm369_vm2, %v464_v43, %v468_v60  ;;  %v674_v19 = vor.u32 %v673_v36, %v672_v4 }
  0xa4   : > { %v10210_v4 = vsel %vm745_vm0, %v769_v56, %v771_v15 }
  0xa5   : > { %v523_v31 = vpop.permute.xlu0 %522 }
  0xa6   : > { %540 = vrot.lane.b32.xlu0 %v469_v22, %s9423_s24  ;;  %v10195_v3 = vsel %vm1007_vm5, %v9474_v1, %v523_v31  ;;  %v676_v22 = vrot.slane %v9583_v11, 1  ;;  %v472_v11 = vor.u32 %v10082_v37, %v468_v60 }
  0xa7   : > { %2655 = vmatmul.bf16.gmra.mxu0 %v10142_v2  ;;  %v617_v13 = vpop.permute.xlu2 %616  ;;  %14495 = vst [vmem:[#allocation14_spill] sm:$0xff] %v10195_v3 }
  0xa8   : > { %v935_v23 = vpop.permute.xlu1 %934  ;;  %952 = vrot.lane.b32.xlu1 %v895_v34, %s9423_s24  ;;  %v675_v34 = vsel %vm651_vm4, %v670_v33, %v674_v19 }
  0xa9   : > { %v10185_v40 = vsel %vm1007_vm5, %v9617_v28, %v935_v23  ;;  %v14496_v28 = vrot.slane %v9892_v7, 1  ;;  %v10205_v23 = vsel %vm1007_vm5, %v9559_v59, %v617_v13  ;;  %v8085_v13 = vld [vmem:[%s14239_s1 + $0x288] sm:$0xf0] }
  0xaa   : > { %2754 = vmatmul.bf16.gmra.mxu1 %v10159_v0  ;;  %14494 = vst [vmem:[#allocation13_spill] sm:$0xff] %v10185_v40 }
  0xab   : > { %v456_v54 = vor.u32 %v9895_v17, %v14496_v28  ;;  %14497 = vst [vmem:[#allocation15_spill] sm:$0xff] %v10205_v23  ;;  %v8587_v28 = vld [vmem:[%s14239_s1 + $0x660] sm:$0xf] }
  0xac   : > { %v8588_v60 = vor.u32 %v9159_v44, %v8587_v28  ;;  %v585_v28 = vrot.slane %v10155_v29, 1 }
  0xad   : > { %v790_v43 = vpop.permute.xlu0 %789  ;;  %v461_v31 = vsel %vm369_vm2, %v456_v54, %v460_v58  ;;  %v9030_v58 = vld [vmem:[%s14239_s1 + $0x274] sm:$0xf]  ;;  %v14499_v54 = vrot.slane %v10061_v8, 2 }
  0xae   : > { %538 = vrot.lane.b32.xlu2 %v461_v31, %s9423_s24  ;;  %807 = vrot.lane.b32.xlu0 %v10210_v4, %s9423_s24  ;;  %v10217_v36 = vsel %vm1007_vm5, %v675_v34, %v790_v43  ;;  %v8088_v31 = vor.u32 %v9030_v58, %v8085_v13  ;;  %v14262_v58 = vrot.slane %v10085_v12, 1 }
  0xaf   : > { %2858 = vmatmul.bf16.gmra.mxu2 %v10173_v10  ;;  %14498 = vst [vmem:[#allocation16_spill] sm:$0xff] %v10217_v36  ;;  %v937_v59 = vpop.permute.xlu2 %936  ;;  %v10233_v34 = vsel %vm745_vm0, %v14499_v54, %v769_v56  ;;  %v8277_v56 = vld [vmem:[%s14239_s1 + $0x408] sm:$0xf0]  ;;  %v677_v54 = vrot.slane %v9580_v9, 2  ;;  %3043 = vmatpush.bf16.msrb.mxu0 %v8588_v60 }
  0xb0   : > { %v525_v33 = vpop.permute.xlu1 %524  ;;  %v10238_v43 = vsel %vm1007_vm5, %v9732_v55, %v937_v59  ;;  %v8982_v55 = vld [vmem:[%s14239_s1 + $0xf4] sm:$0xf]  ;;  %v7893_v59 = vld [vmem:[%s14239_s1 + $0x108] sm:$0xf0]  ;;  %3238 = vmatpush.bf16.msrb.mxu2 %v8088_v31  ;;  %v477_v44 = vsel %vm369_vm2, %v472_v11, %v14262_v58  ;;  %v10276_v11 = vld [vmem:[%s9468_s23 + $0x78] sm:$0xff] }
  0xb1   : > { %14500 = vst [vmem:[#allocation17_spill] sm:$0xff] %v10238_v43  ;;  %v7896_v13 = vor.u32 %v8982_v55, %v7893_v59  ;;  %v10267_v31 = vsel %vm1007_vm5, %v9481_v6, %v525_v33  ;;  %542 = vrot.lane.b32.xlu1 %v477_v44, %s9423_s24  ;;  %v10288_v29 = vshll.u32 %v10276_v11, 16 }
  0xb2   : > { %2957 = vmatmul.bf16.gmra.mxu3 %v10185_v40  ;;  %v9078_v40 = vld [vmem:[%s14239_s1 + $0x3f4] sm:$0xf]  ;;  %14501 = vst [vmem:[#allocation18_spill] sm:$0xff] %v10267_v31 }
  0xb3   : > { %v8280_v14 = vor.u32 %v9078_v40, %v8277_v56  ;;  %v583_v40 = vrot.slane %v10064_v16, 1  ;;  %3139 = vmatpush.bf16.msrb.mxu1 %v7896_v13  ;;  %v678_v56 = vor.u32 %v677_v54, %v676_v22  ;;  %v10279_v16 = vld [vmem:[%s9468_s23 + $0x80] sm:$0xff]  ;;  %v10291_v22 = vshrl.u32 %v10276_v11, 16 }
  0xb4   : > { %v10294_v33 = vshll.u32 %v10279_v16, 16  ;;  %v10298_v59 = vshrl.u32 %v10279_v16, 16 }
  0xb5   : > { %v619_v9 = vpop.permute.xlu0 %618  ;;  %3337 = vmatpush.bf16.msrb.mxu3 %v8280_v14  ;;  %v10271_v55 = vsel %vm557_vm3, %v583_v40, %v585_v28  ;;  %v14265_v14 = vrot.slane %v10276_v11, 2  ;;  %v679_v54 = vsel %vm651_vm4, %v674_v19, %v678_v56  ;;  %v896_v13 = vrot.slane %v10291_v22, 2 }
  0xb6   : > { %805 = vrot.lane.b32.xlu2 %v10233_v34, %s9423_s24  ;;  %636 = vrot.lane.b32.xlu0 %v10271_v55, %s9423_s24  ;;  %v10284_v6 = vsel %vm1007_vm5, %v9592_v18, %v619_v9  ;;  %v14503_v9 = vrot.slane %v10061_v8, 1  ;;  %v897_v19 = vrot.slane %v10288_v29, 3  ;;  %v900_v58 = vrot.slane %v10298_v59, 2 }
  0xb7   : > { %2660 = vmatmul.bf16.gmra.mxu0 %v10195_v3  ;;  %14502 = vst [vmem:[#allocation19_spill] sm:$0xff] %v10284_v6  ;;  %v10303_v18 = vsel %vm745_vm0, %v771_v15, %v14265_v14  ;;  %v901_v15 = vrot.slane %v10294_v33, 3 }
  0xb8   : > { %v792_v60 = vpop.permute.xlu1 %791  ;;  %v10310_v44 = vsel %vm557_vm3, %v14503_v9, %v583_v40  ;;  %v527_v9 = vpop.permute.xlu2 %526 }
  0xb9   : > { %809 = vrot.lane.b32.xlu1 %v10303_v18, %s9423_s24  ;;  %v902_v40 = vor.u32 %v901_v15, %v900_v58  ;;  %v9389_v15 = vld [vmem:[%s9468_s23 + $0x20] sm:$0xff] }
  0xba   : > { %2759 = vmatmul.bf16.gmra.mxu1 %v10205_v23 }
  0xbd   : > { %v939_v14 = vpop.permute.xlu0 %938 }
  0xbe   : > { %634 = vrot.lane.b32.xlu2 %v10310_v44, %s9423_s24 }
  0xbf   : > { %2863 = vmatmul.bf16.gmra.mxu2 %v10217_v36  ;;  %v680_v36 = vrot.slane %v9606_v25, 1  ;;  %v10348_v25 = vld [vmem:[%s9468_s23 + $0x88] sm:$0xff] }
  0xc2   : > { %2962 = vmatmul.bf16.gmra.mxu3 %v10238_v43  ;;  %v10315_v43 = vsel %vm1007_vm5, %v679_v54, %v792_v60  ;;  %v10325_v54 = vsel %vm1007_vm5, %v9826_v49, %v939_v14  ;;  %v10337_v49 = vsel %vm1007_vm5, %v9389_v15, %v527_v9 }
  0xc3   : > { %14504 = vst [vmem:[#allocation20_spill] sm:$0xff] %v10315_v43 }
  0xc4   : > { %14505 = vst [vmem:[#allocation21_spill] sm:$0xff] %v10325_v54 }
  0xc5   : > { %14506 = vst [vmem:[#allocation22_spill] sm:$0xff] %v10337_v49 }
  0xc7   : > { %2665 = vmatmul.bf16.gmra.mxu0 %v10267_v31  ;;  %v898_v31 = vor.u32 %v897_v19, %v896_v13  ;;  %v621_v13 = vpop.permute.xlu1 %620  ;;  %v14272_v19 = vrot.slane %v10276_v11, 1 }
  0xc9   : > { %v903_v60 = vsel %vm839_vm1, %v898_v31, %v902_v40  ;;  %v899_v58 = vsel %vm839_vm1, %v10175_v57, %v898_v31  ;;  %v10353_v57 = vsel %vm1007_vm5, %v9691_v30, %v621_v13  ;;  %v10356_v31 = vshll.u32 %v10348_v25, 16 }
  0xca   : > { %2764 = vmatmul.bf16.gmra.mxu1 %v10284_v6  ;;  %v681_v6 = vrot.slane %v9603_v24, 2  ;;  %956 = vrot.lane.b32.xlu0 %v903_v60, %s9423_s24  ;;  %v10343_v24 = vsel %vm557_vm3, %v585_v28, %v14272_v19  ;;  %14507 = vst [vmem:[#allocation23_spill] sm:$0xff] %v10353_v57  ;;  %v484_v19 = vrot.slane %v10162_v26, 1 }
  0xcb   : > { %954 = vrot.lane.b32.xlu2 %v899_v58, %s9423_s24  ;;  %638 = vrot.lane.b32.xlu1 %v10343_v24, %s9423_s24  ;;  %v905_v60 = vrot.slane %v10356_v31, 3 }
  0xcc   : > { %v682_v14 = vor.u32 %v681_v6, %v680_v36  ;;  %v10359_v36 = vshrl.u32 %v10348_v25, 16  ;;  %v794_v6 = vpop.permute.xlu2 %793 }
  0xce   : > { %v683_v28 = vsel %vm651_vm4, %v678_v56, %v682_v14  ;;  %v904_v9 = vrot.slane %v10359_v36, 2  ;;  %v529_v56 = vpop.permute.xlu0 %528 }
  0xcf   : > { %2868 = vmatmul.bf16.gmra.mxu2 %v10315_v43  ;;  %v10366_v58 = vsel %vm1007_vm5, %v683_v28, %v794_v6  ;;  %v941_v13 = vpop.permute.xlu1 %940  ;;  %v8061_v28 = vld [vmem:[%s14239_s1 + $0x258] sm:$0xf0]  ;;  %v492_v6 = vrot.slane %v10288_v29, 1 }
  0xd0   : > { %14508 = vst [vmem:[#allocation24_spill] sm:$0xff] %v10366_v58  ;;  %v10368_v30 = vor.u32 %v905_v60, %v904_v9  ;;  %v488_v60 = vor.u32 %v10165_v41, %v484_v19 }
  0xd2   : > { %2967 = vmatmul.bf16.gmra.mxu3 %v10325_v54  ;;  %v907_v15 = vsel %vm839_vm1, %v902_v40, %v10368_v30  ;;  %v9024_v54 = vld [vmem:[%s14239_s1 + $0x244] sm:$0xf]  ;;  %v10384_v40 = vsel %vm1007_vm5, %v9854_v46, %v941_v13  ;;  %v9390_v13 = vld [vmem:[%s9468_s23 + $0x28] sm:$0xff] }
  0xd3   : > { %958 = vrot.lane.b32.xlu1 %v907_v15, %s9423_s24  ;;  %14509 = vst [vmem:[#allocation25_spill] sm:$0xff] %v10384_v40  ;;  %v8064_v9 = vor.u32 %v9024_v54, %v8061_v28  ;;  %v684_v15 = vrot.slane %v9770_v35, 1  ;;  %v9072_v46 = vld [vmem:[%s14239_s1 + $0x3c4] sm:$0xf]  ;;  %v8253_v54 = vld [vmem:[%s14239_s1 + $0x3d8] sm:$0xf0]  ;;  %v10400_v35 = vsel %vm1007_vm5, %v9390_v13, %v529_v56 }
  0xd4   : > { %v623_v43 = vpop.permute.xlu2 %622  ;;  %14510 = vst [vmem:[#allocation26_spill] sm:$0xff] %v10400_v35  ;;  %v775_v56 = vrot.slane %v10279_v16, 2 }
  0xd5   : > { %3239 = vmatpush.bf16.msrb.mxu2 %v8064_v9  ;;  %v7869_v9 = vld [vmem:[%s14239_s1 + $0xd8] sm:$0xf0] }
  0xd6   : > { %v796_v13 = vpop.permute.xlu0 %795 }
  0xd7   : > { %2670 = vmatmul.bf16.gmra.mxu0 %v10337_v49  ;;  %v493_v49 = vsel %vm369_vm2, %v488_v60, %v492_v6  ;;  %v14511_v60 = vrot.slane %v10085_v12, 1 }
  0xd8   : > { %546 = vrot.lane.b32.xlu0 %v493_v49, %s9423_s24  ;;  %v8976_v49 = vld [vmem:[%s14239_s1 + $0xc4] sm:$0xf] }
  0xda   : > { %2769 = vmatmul.bf16.gmra.mxu1 %v10353_v57 }
  0xdf   : > { %2873 = vmatmul.bf16.gmra.mxu2 %v10366_v58  ;;  %v685_v58 = vrot.slane %v9759_v27, 2  ;;  %v8256_v27 = vor.u32 %v9072_v46, %v8253_v54  ;;  %v777_v46 = vrot.slane %v10348_v25, 2 }
  0xe1   : > { %v686_v28 = vor.u32 %v685_v58, %v684_v15  ;;  %3338 = vmatpush.bf16.msrb.mxu3 %v8256_v27  ;;  %v10416_v58 = vsel %vm1007_vm5, %v9811_v62, %v623_v43  ;;  %v7872_v15 = vor.u32 %v8976_v49, %v7869_v9  ;;  %v943_v43 = vpop.permute.xlu2 %942  ;;  %v14285_v49 = vrot.slane %v10294_v33, 1 }
  0xe2   : > { %2972 = vmatmul.bf16.gmra.mxu3 %v10384_v40  ;;  %v480_v40 = vor.u32 %v10096_v42, %v14511_v60  ;;  %14512 = vst [vmem:[#allocation27_spill] sm:$0xff] %v10416_v58  ;;  %v688_v9 = vrot.slane %v9889_v63, 1  ;;  %v689_v60 = vrot.slane %v9886_v48, 2  ;;  %v589_v48 = vrot.slane %v10279_v16, 1 }
  0xe3   : > { %v687_v54 = vsel %vm651_vm4, %v682_v14, %v686_v28  ;;  %3140 = vmatpush.bf16.msrb.mxu1 %v7872_v15  ;;  %v531_v14 = vpop.permute.xlu1 %530  ;;  %v14515_v15 = vrot.slane %v10276_v11, 2 }
  0xe4   : > { %v485_v27 = vsel %vm369_vm2, %v480_v40, %v484_v19  ;;  %v10428_v62 = vsel %vm1007_vm5, %v687_v54, %v796_v13  ;;  %v10433_v19 = vsel %vm1007_vm5, %v9878_v61, %v943_v43  ;;  %v496_v40 = vor.u32 %v10291_v22, %v492_v6  ;;  %v625_v6 = vpop.permute.xlu0 %624  ;;  %v9391_v13 = vld [vmem:[%s9468_s23 + $0x30] sm:$0xff] }
  0xe5   : > { %544 = vrot.lane.b32.xlu2 %v485_v27, %s9423_s24  ;;  %14513 = vst [vmem:[#allocation28_spill] sm:$0xff] %v10428_v62  ;;  %v10442_v54 = vsel %vm745_vm0, %v14515_v15, %v775_v56  ;;  %v10452_v63 = vsel %vm1007_vm5, %v9391_v13, %v531_v14  ;;  %v690_v27 = vor.u32 %v689_v60, %v688_v9  ;;  %v10467_v15 = vld [vmem:[%s9468_s23 + $0x98] sm:$0xff] }
  0xe6   : > { %14514 = vst [vmem:[#allocation29_spill] sm:$0xff] %v10433_v19  ;;  %v501_v61 = vsel %vm369_vm2, %v496_v40, %v14285_v49  ;;  %v10464_v40 = vld [vmem:[%s9468_s23 + $0x90] sm:$0xff]  ;;  %v10472_v14 = vsel %vm1007_vm5, %v9913_v21, %v625_v6  ;;  %v913_v60 = vshrl.u32 %v10467_v15, 16  ;;  %v916_v49 = vshll.u32 %v10467_v15, 16 }
  0xe7   : > { %2675 = vmatmul.bf16.gmra.mxu0 %v10400_v35  ;;  %v10421_v35 = vsel %vm745_vm0, %v775_v56, %v777_v46  ;;  %14516 = vst [vmem:[#allocation30_spill] sm:$0xff] %v10452_v63  ;;  %548 = vrot.lane.b32.xlu1 %v501_v61, %s9423_s24  ;;  %v10457_v56 = vrot.slane %v10348_v25, 1  ;;  %v10477_v16 = vrot.slane %v10464_v40, 2  ;;  %v14296_v25 = vshrl.u32 %v10464_v40, 16 }
  0xe8   : > { %813 = vrot.lane.b32.xlu0 %v10421_v35, %s9423_s24  ;;  %14517 = vst [vmem:[#allocation31_spill] sm:$0xff] %v10472_v14  ;;  %v14299_v9 = vshll.u32 %v10464_v40, 16  ;;  %v691_v61 = vsel %vm651_vm4, %v686_v28, %v690_v27 }
  0xe9   : > { %v10461_v43 = vsel %vm557_vm3, %v589_v48, %v10457_v56  ;;  %v10486_v21 = vsel %vm745_vm0, %v777_v46, %v10477_v16  ;;  %v908_v6 = vrot.slane %v14296_v25, 2  ;;  %v14519_v25 = vrot.slane %v10276_v11, 1 }
  0xea   : > { %2774 = vmatmul.bf16.gmra.mxu1 %v10416_v58 }
  0xeb   : > { %v798_v13 = vpop.permute.xlu1 %797  ;;  %v10501_v3 = vsel %vm557_vm3, %v14519_v25, %v589_v48  ;;  %v274_v48 = vld [vmem:[%s9468_s23 + $0xa0] sm:$0x7]  ;;  %v9392_v25 = vld [vmem:[%s9468_s23 + $0x38] sm:$0xff] }
  0xec   : > { %v10494_v58 = vsel %vm1007_vm5, %v691_v61, %v798_v13  ;;  %v945_v46 = vpop.permute.xlu0 %944 }
  0xed   : > { %811 = vrot.lane.b32.xlu2 %v10442_v54, %s9423_s24  ;;  %14518 = vst [vmem:[#allocation32_spill] sm:$0xff] %v10494_v58  ;;  %v10509_v61 = vsel %vm1007_vm5, %v10030_v38, %v945_v46 }
  0xee   : > { %14520 = vst [vmem:[#allocation33_spill] sm:$0xff] %v10509_v61 }
  0xef   : > { %2878 = vmatmul.bf16.gmra.mxu2 %v10428_v62  ;;  %v918_v62 = vrot.slane %v916_v49, 3  ;;  %815 = vrot.lane.b32.xlu1 %v10486_v21, %s9423_s24 }
  0xf0   : > { %642 = vrot.lane.b32.xlu0 %v10461_v43, %s9423_s24 }
  0xf2   : > { %2977 = vmatmul.bf16.gmra.mxu3 %v10433_v19  ;;  %v909_v19 = vrot.slane %v14299_v9, 3  ;;  %v837_v9 = vunpack.c.l.b16 %v274_v48  ;;  %v262_v48 = vld [vmem:[%s9468_s23 + $0x90] sm:$0x1] }
  0xf4   : > { %v910_v28 = vor.u32 %v909_v19, %v908_v6  ;;  %v693_v19 = vrot.slane %v9892_v7, 2  ;;  %v14302_v6 = vrot.slane %v10464_v40, 1  ;;  %v8037_v7 = vld [vmem:[%s14239_s1 + $0x228] sm:$0xf0] }
  0xf5   : > { %640 = vrot.lane.b32.xlu2 %v10501_v3, %s9423_s24 }
  0xf6   : > { %v911_v38 = vsel %vm839_vm1, %v10368_v30, %v910_v28  ;;  %v609_v46 = vsel %vm557_vm3, %v10457_v56, %v14302_v6 }
  0xf7   : > { %2680 = vmatmul.bf16.gmra.mxu0 %v10452_v63  ;;  %v915_v63 = vrot.slane %v913_v60, 2  ;;  %v533_v60 = vpop.permute.xlu2 %532  ;;  %644 = vrot.lane.b32.xlu1 %v609_v46, %s9423_s24 }
  0xf8   : > { %v10518_v13 = vsel %vm1007_vm5, %v9392_v25, %v533_v60  ;;  %v10535_v60 = vpack.c.b16 %v837_v9, %v837_v9 }
  0xf9   : > { %v919_v57 = vor.u32 %v918_v62, %v915_v63  ;;  %v692_v62 = vrot.slane %v9895_v17, 1  ;;  %v627_v63 = vpop.permute.xlu1 %626  ;;  %14521 = vst [vmem:[#allocation34_spill] sm:$0xff] %v10518_v13  ;;  %v9018_v17 = vld [vmem:[%s14239_s1 + $0x214] sm:$0xf] }
  0xfa   : > { %2779 = vmatmul.bf16.gmra.mxu1 %v10472_v14  ;;  %14522 = vst [vmem:[#allocation35_spill] sm:$0xff] %v10535_v60  ;;  %v922_v30 = vshrl.u32 %v10535_v60, 16 }
  0xfb   : > { %v920_v49 = vsel %vm839_vm1, %v910_v28, %v919_v57  ;;  %v925_v28 = vshll.u32 %v10535_v60, 16 }
  0xfc   : > { %962 = vrot.lane.b32.xlu0 %v920_v49, %s9423_s24  ;;  %v8040_v49 = vor.u32 %v9018_v17, %v8037_v7  ;;  %v924_v25 = vrot.slane %v922_v30, 2  ;;  %v367_v7 = vunpack.c.l.b16 %v262_v48  ;;  %v8970_v30 = vld [vmem:[%s14239_s1 + $0x94] sm:$0xf] }
  0xfd   : > { %960 = vrot.lane.b32.xlu2 %v911_v38, %s9423_s24  ;;  %v927_v17 = vrot.slane %v925_v28, 3  ;;  %v7845_v28 = vld [vmem:[%s14239_s1 + $0xa8] sm:$0xf0] }
  0xfe   : > { %3240 = vmatpush.bf16.msrb.mxu2 %v8040_v49  ;;  %v8229_v49 = vld [vmem:[%s14239_s1 + $0x3a8] sm:$0xf0]  ;;  %v10571_v6 = vpack.c.b16 %v367_v7, %v367_v7 }
  0xff   : > { %2883 = vmatmul.bf16.gmra.mxu2 %v10494_v58  ;;  %v10521_v58 = vor.u32 %v693_v19, %v692_v62  ;;  %v10541_v62 = vsel %vm1007_vm5, %v9870_v52, %v627_v63  ;;  %v800_v9 = vpop.permute.xlu2 %799  ;;  %v8563_v52 = vld [vmem:[%s14239_s1 + $0x630] sm:$0xf]  ;;  %v9153_v63 = vld [vmem:[%s14239_s1 + $0x644] sm:$0xf0]  ;;  %v928_v48 = vor.u32 %v927_v17, %v924_v25 }
 0x100   : > { %14523 = vst [vmem:[#allocation36_spill] sm:$0xff] %v10541_v62  ;;  %v8564_v46 = vor.u32 %v9153_v63, %v8563_v52  ;;  %v508_v63 = vrot.slane %v10356_v31, 1 }
 0x101   : > { %v695_v19 = vsel %vm651_vm4, %v690_v27, %v10521_v58  ;;  %v9066_v27 = vld [vmem:[%s14239_s1 + $0x394] sm:$0xf]  ;;  %v929_v52 = vsel %vm839_vm1, %v919_v57, %v928_v48 }
 0x102   : > { %2982 = vmatmul.bf16.gmra.mxu3 %v10509_v61  ;;  %v10560_v38 = vsel %vm1007_vm5, %v695_v19, %v800_v9  ;;  %v947_v61 = vpop.permute.xlu1 %946  ;;  %v8232_v60 = vor.u32 %v9066_v27, %v8229_v49  ;;  %v7848_v19 = vor.u32 %v8970_v30, %v7845_v28  ;;  %v1494_v9 = vld [vmem:[%s14240_s2] sm:$0x3f]  ;;  %3044 = vmatpush.bf16.msrb.mxu0 %v8564_v46  ;;  %v696_v27 = vrot.slane %v9982_v47, 1 }
 0x103   : > { %14524 = vst [vmem:[#allocation37_spill] sm:$0xff] %v10560_v38  ;;  %v10582_v25 = vsel %vm1007_vm5, %v10013_v20, %v947_v61  ;;  %964 = vrot.lane.b32.xlu1 %v929_v52, %s9423_s24  ;;  %v512_v17 = vor.u32 %v10359_v36, %v508_v63  ;;  %v10586_v57 = vperm.slane %v1494_v9, 0  ;;  %v697_v46 = vrot.slane %v9979_v45, 2  ;;  %v9393_v61 = vld [vmem:[%s9468_s23 + $0x40] sm:$0xff] }
 0x104   : > { %3339 = vmatpush.bf16.msrb.mxu3 %v8232_v60  ;;  %14525 = vst [vmem:[#allocation38_spill] sm:$0xff] %v10582_v25  ;;  %3141 = vmatpush.bf16.msrb.mxu1 %v7848_v19  ;;  %v14528_v9 = vrot.slane %v10294_v33, 1 }
 0x105   : > { %v698_v48 = vor.u32 %v697_v46, %v696_v27 }
 0x106   : > { %v504_v52 = vor.u32 %v10298_v59, %v14528_v9 }
 0x107   : > { %2685 = vmatmul.bf16.gmra.mxu0 %v10518_v13  ;;  %v514_v13 = vshll.u32 %v10571_v6, 16  ;;  %v629_v60 = vpop.permute.xlu2 %628 }
 0x108   : > { %v10601_v19 = vsel %vm1007_vm5, %v9958_v39, %v629_v60  ;;  %v509_v27 = vsel %vm369_vm2, %v504_v52, %v508_v63 }
 0x109   : > { %v516_v7 = vrot.slane %v514_v13, 1  ;;  %14527 = vst [vmem:[#allocation40_spill] sm:$0xff] %v10601_v19  ;;  %550 = vrot.lane.b32.xlu2 %v509_v27, %s9423_s24 }
 0x10a   : > { %2784 = vmatmul.bf16.gmra.mxu1 %v10541_v62  ;;  %v535_v62 = vpop.permute.xlu0 %534  ;;  %v537_v63 = vpop.permute.xlu1 %536 }
 0x10b   : > { %v517_v30 = vsel %vm369_vm2, %v512_v17, %v516_v7  ;;  %v10595_v28 = vsel %vm1007_vm5, %v9393_v61, %v535_v62  ;;  %v699_v62 = vsel %vm651_vm4, %v10521_v58, %v698_v48 }
 0x10c   : > { %552 = vrot.lane.b32.xlu0 %v517_v30, %s9423_s24  ;;  %14526 = vst [vmem:[#allocation39_spill] sm:$0xff] %v10595_v28 }
 0x10f   : > { %2888 = vmatmul.bf16.gmra.mxu2 %v10560_v38  ;;  %v949_v9 = vpop.permute.xlu2 %948 }
 0x110   : > { %v10623_v52 = vsel %vm1007_vm5, %v10093_v51, %v949_v9 }
 0x111   : > { %14530 = vst [vmem:[#allocation42_spill] sm:$0xff] %v10623_v52 }
 0x112   : > { %v2849_v49 = vpop.f32.mrf.mxu2  ;;  %2987 = vmatmul.bf16.gmra.mxu3 %v10582_v25  ;;  %v802_v7 = vpop.permute.xlu0 %801 }
 0x113   : > { %v10613_v60 = vsel %vm1007_vm5, %v699_v62, %v802_v7  ;;  %v701_v7 = vrot.slane %v10079_v50, 2 }
 0x114   : > { %v2651_v20 = vpop.f32.mrf.mxu0  ;;  %14529 = vst [vmem:[#allocation41_spill] sm:$0xff] %v10613_v60 }
 0x115   : > { %v2652_v13 = vadd.f32 %v2651_v20, %v10586_v57  ;;  %v2948_v47 = vpop.f32.mrf.mxu3  ;;  %v268_v20 = vld [vmem:[%s9468_s23 + $0x98] sm:$0x3] }
 0x116   : > { %v649_v61 = vunpack.c.l.b16 %v268_v20 }
 0x117   : > { %2690 = vmatmul.bf16.gmra.mxu0 %v10595_v28  ;;  %v2750_v45 = vpop.f32.mrf.mxu1 }
 0x118   : > { %v2751_v17 = vadd.f32 %v2750_v45, %v2652_v13  ;;  %v10617_v58 = vpack.c.b16 %v649_v61, %v649_v61  ;;  %v10634_v61 = vsel %vm1007_vm5, %v9866_v53, %v537_v63  ;;  %v804_v53 = vpop.permute.xlu1 %803 }
 0x119   : > { %14531 = vst [vmem:[#allocation43_spill] sm:$0xff] %v10634_v61 }
 0x11a   : > { %v2851_v30 = vpop.f32.mrf.mxu2  ;;  %v2850_v46 = vadd.f32 %v2849_v49, %v2751_v17  ;;  %2789 = vmatmul.bf16.gmra.mxu1 %v10601_v19  ;;  %v781_v17 = vrot.slane %v10617_v58, 2 }
 0x11c   : > { %v2653_v39 = vpop.f32.mrf.mxu0  ;;  %v10615_v13 = vadd.f32 %v2948_v47, %v2850_v46  ;;  %v700_v47 = vrot.slane %v10082_v37, 1  ;;  %v782_v46 = vsel %vm745_vm0, %v10477_v16, %v781_v17  ;;  %v14532_v17 = vld [vmem:[#allocation8_spill] sm:$0xff] }
 0x11d   : > { %v2950_v45 = vpop.f32.mrf.mxu3  ;;  %v2654_v25 = vadd.f32 %v2653_v39, %v10586_v57  ;;  %v631_v39 = vpop.permute.xlu0 %630  ;;  %817 = vrot.lane.b32.xlu2 %v782_v46, %s9423_s24 }
 0x11e   : > { %v702_v37 = vor.u32 %v701_v7, %v700_v47  ;;  %v8013_v47 = vld [vmem:[%s14239_s1 + $0x1f8] sm:$0xf0] }
 0x11f   : > { %2893 = vmatmul.bf16.gmra.mxu2 %v10613_v60  ;;  %v2752_v49 = vpop.f32.mrf.mxu1 }
 0x120   : > { %v2753_v62 = vadd.f32 %v2752_v49, %v2654_v25  ;;  %v267_v49 = vld [vmem:[%s9468_s23 + $0x98] sm:$0x1]  ;;  %v703_v60 = vsel %vm651_vm4, %v698_v48, %v702_v37 }
 0x121   : > { %v602_v46 = vunpack.c.l.b16 %v267_v49 }
 0x122   : > { %v2854_v27 = vpop.f32.mrf.mxu2  ;;  %v2852_v20 = vadd.f32 %v2851_v30, %v2753_v62  ;;  %2992 = vmatmul.bf16.gmra.mxu3 %v10623_v52  ;;  %v10643_v62 = vsel %vm1007_vm5, %v14532_v17, %v631_v39 }
 0x123   : > { %14533 = vst [vmem:[#allocation8_spill] sm:$0xff] %v10643_v62  ;;  %v605_v28 = vpack.c.b16 %v602_v46, %v602_v46  ;;  %v14535_v46 = vrot.slane %v10464_v40, 1 }
 0x124   : > { %v2656_v51 = vpop.f32.mrf.mxu0  ;;  %v10637_v9 = vadd.f32 %v2950_v45, %v2852_v20  ;;  %v9012_v45 = vld [vmem:[%s14239_s1 + $0x1e4] sm:$0xf]  ;;  %v10654_v20 = vsel %vm1007_vm5, %v703_v60, %v804_v53 }
 0x125   : > { %v2657_v25 = vadd.f32 %v2656_v51, %v10586_v57  ;;  %v2953_v50 = vpop.f32.mrf.mxu3  ;;  %14534 = vst [vmem:[#allocation44_spill] sm:$0xff] %v10654_v20  ;;  %v8016_v39 = vor.u32 %v9012_v45, %v8013_v47  ;;  %v610_v48 = vrot.slane %v605_v28, 1  ;;  %v8964_v60 = vld [vmem:[%s14239_s1 + $0x64] sm:$0xf]  ;;  %v7821_v28 = vld [vmem:[%s14239_s1 + $0x78] sm:$0xf0] }
 0x127   : > { %2695 = vmatmul.bf16.gmra.mxu0 %v10634_v61  ;;  %v2755_v30 = vpop.f32.mrf.mxu1  ;;  %3241 = vmatpush.bf16.msrb.mxu2 %v8016_v39  ;;  %v611_v53 = vsel %vm557_vm3, %v14535_v46, %v610_v48  ;;  %v705_v48 = vrot.slane %v10085_v12, 2 }
 0x128   : > { %v2756_v52 = vadd.f32 %v2755_v30, %v2657_v25  ;;  %v951_v25 = vpop.permute.xlu0 %950  ;;  %646 = vrot.lane.b32.xlu2 %v611_v53, %s9423_s24 }
 0x129   : > { %v10678_v39 = vsel %vm1007_vm5, %v10233_v34, %v951_v25 }
 0x12a   : > { %v2856_v63 = vpop.f32.mrf.mxu2  ;;  %v2855_v51 = vadd.f32 %v2854_v27, %v2756_v52  ;;  %2794 = vmatmul.bf16.gmra.mxu1 %v10643_v62  ;;  %v9060_v52 = vld [vmem:[%s14239_s1 + $0x364] sm:$0xf]  ;;  %v8205_v27 = vld [vmem:[%s14239_s1 + $0x378] sm:$0xf0]  ;;  %14536 = vst [vmem:[#allocation45_spill] sm:$0xff] %v10678_v39 }
 0x12b   : > { %v8208_v17 = vor.u32 %v9060_v52, %v8205_v27  ;;  %v704_v27 = vrot.slane %v10096_v42, 1 }
 0x12c   : > { %v2658_v7 = vpop.f32.mrf.mxu0  ;;  %v10662_v49 = vadd.f32 %v2953_v50, %v2855_v51  ;;  %v539_v50 = vpop.permute.xlu2 %538  ;;  %v7824_v51 = vor.u32 %v8964_v60, %v7821_v28  ;;  %v10684_v28 = vld [vmem:[%s9468_s23 + $0x50] sm:$0xff] }
 0x12d   : > { %v2955_v30 = vpop.f32.mrf.mxu3  ;;  %v2659_v45 = vadd.f32 %v2658_v7, %v10586_v57  ;;  %3340 = vmatpush.bf16.msrb.mxu3 %v8208_v17  ;;  %v10688_v53 = vsel %vm1007_vm5, %v10684_v28, %v539_v50  ;;  %v706_v25 = vor.u32 %v705_v48, %v704_v27 }
 0x12e   : > { %3142 = vmatpush.bf16.msrb.mxu1 %v7824_v51  ;;  %14537 = vst [vmem:[#allocation46_spill] sm:$0xff] %v10688_v53 }
 0x12f   : > { %2898 = vmatmul.bf16.gmra.mxu2 %v10654_v20  ;;  %v2757_v47 = vpop.f32.mrf.mxu1  ;;  %v633_v20 = vpop.permute.xlu1 %632 }
 0x130   : > { %v2758_v52 = vadd.f32 %v2757_v47, %v2659_v45  ;;  %v707_v47 = vsel %vm651_vm4, %v702_v37, %v706_v25 }
 0x132   : > { %v2859_v7 = vpop.f32.mrf.mxu2  ;;  %v2857_v46 = vadd.f32 %v2856_v63, %v2758_v52  ;;  %2997 = vmatmul.bf16.gmra.mxu3 %v10678_v39  ;;  %v14538_v63 = vld [vmem:[#allocation4_spill] sm:$0xff] }
 0x133   : > { %v10696_v45 = vsel %vm1007_vm5, %v14538_v63, %v633_v20  ;;  %v708_v63 = vrot.slane %v10165_v41, 1 }
 0x134   : > { %v2661_v60 = vpop.f32.mrf.mxu0  ;;  %v10691_v17 = vadd.f32 %v2955_v30, %v2857_v46  ;;  %14539 = vst [vmem:[#allocation4_spill] sm:$0xff] %v10696_v45  ;;  %v806_v52 = vpop.permute.xlu2 %805 }
 0x135   : > { %v2662_v34 = vadd.f32 %v2661_v60, %v10586_v57  ;;  %v2958_v42 = vpop.f32.mrf.mxu3  ;;  %v10701_v30 = vsel %vm1007_vm5, %v707_v47, %v806_v52 }
 0x136   : > { %14540 = vst [vmem:[#allocation47_spill] sm:$0xff] %v10701_v30 }
 0x137   : > { %2700 = vmatmul.bf16.gmra.mxu0 %v10688_v53  ;;  %v2760_v12 = vpop.f32.mrf.mxu1  ;;  %v953_v27 = vpop.permute.xlu1 %952 }
 0x138   : > { %v2761_v51 = vadd.f32 %v2760_v12, %v2662_v34  ;;  %v541_v34 = vpop.permute.xlu0 %540 }
 0x13a   : > { %v2861_v39 = vpop.f32.mrf.mxu2  ;;  %v2860_v50 = vadd.f32 %v2859_v7, %v2761_v51  ;;  %2799 = vmatmul.bf16.gmra.mxu1 %v10696_v45  ;;  %v10709_v7 = vsel %vm1007_vm5, %v10210_v4, %v953_v27  ;;  %v709_v51 = vrot.slane %v10162_v26, 2 }
 0x13b   : > { %14541 = vst [vmem:[#allocation48_spill] sm:$0xff] %v10709_v7 }
 0x13c   : > { %v2663_v60 = vpop.f32.mrf.mxu0  ;;  %v10703_v48 = vadd.f32 %v2958_v42, %v2860_v50  ;;  %v635_v42 = vpop.permute.xlu2 %634  ;;  %v710_v27 = vor.u32 %v709_v51, %v708_v63 }
 0x13d   : > { %v2960_v46 = vpop.f32.mrf.mxu3  ;;  %v2664_v20 = vadd.f32 %v2663_v60, %v10586_v57  ;;  %v10715_v60 = vld [vmem:[%s9468_s23 + $0x58] sm:$0xff] }
 0x13f   : > { %2903 = vmatmul.bf16.gmra.mxu2 %v10701_v30  ;;  %v2762_v37 = vpop.f32.mrf.mxu1  ;;  %v10719_v30 = vsel %vm1007_vm5, %v10715_v60, %v541_v34 }
 0x140   : > { %v2763_v12 = vadd.f32 %v2762_v37, %v2664_v20  ;;  %14542 = vst [vmem:[#allocation49_spill] sm:$0xff] %v10719_v30 }
 0x142   : > { %v2864_v47 = vpop.f32.mrf.mxu2  ;;  %v2862_v52 = vadd.f32 %v2861_v39, %v2763_v12  ;;  %3002 = vmatmul.bf16.gmra.mxu3 %v10709_v7  ;;  %v10727_v39 = vsel %vm1007_vm5, %v10150_v32, %v635_v42  ;;  %v711_v12 = vsel %vm651_vm4, %v706_v25, %v710_v27  ;;  %v808_v7 = vpop.permute.xlu0 %807  ;;  %v9006_v25 = vld [vmem:[%s14239_s1 + $0x1b4] sm:$0xf] }
 0x143   : > { %14543 = vst [vmem:[#allocation50_spill] sm:$0xff] %v10727_v39  ;;  %v543_v32 = vpop.permute.xlu1 %542 }
 0x144   : > { %v2666_v50 = vpop.f32.mrf.mxu0  ;;  %v10722_v20 = vadd.f32 %v2960_v46, %v2862_v52  ;;  %v10732_v46 = vsel %vm1007_vm5, %v711_v12, %v808_v7  ;;  %v955_v63 = vpop.permute.xlu2 %954 }
 0x145   : > { %v2667_v4 = vadd.f32 %v2666_v50, %v10586_v57  ;;  %v2963_v41 = vpop.f32.mrf.mxu3  ;;  %14544 = vst [vmem:[#allocation51_spill] sm:$0xff] %v10732_v46  ;;  %v10746_v7 = vsel %vm1007_vm5, %v10303_v18, %v955_v63  ;;  %v9147_v18 = vld [vmem:[%s14239_s1 + $0x614] sm:$0xf0] }
 0x146   : > { %14546 = vst [vmem:[#allocation53_spill] sm:$0xff] %v10746_v7 }
 0x147   : > { %2705 = vmatmul.bf16.gmra.mxu0 %v10719_v30  ;;  %v2765_v26 = vpop.f32.mrf.mxu1 }
 0x148   : > { %v2766_v37 = vadd.f32 %v2765_v26, %v2667_v4  ;;  %v712_v4 = vrot.slane %v10291_v22, 1 }
 0x14a   : > { %v2866_v53 = vpop.f32.mrf.mxu2  ;;  %v2865_v34 = vadd.f32 %v2864_v47, %v2766_v37  ;;  %2804 = vmatmul.bf16.gmra.mxu1 %v10727_v39  ;;  %v7989_v47 = vld [vmem:[%s14239_s1 + $0x1c8] sm:$0xf0] }
 0x14b   : > { %v7992_v26 = vor.u32 %v9006_v25, %v7989_v47  ;;  %v8181_v25 = vld [vmem:[%s14239_s1 + $0x348] sm:$0xf0]  ;;  %v8958_v47 = vld [vmem:[%s14239_s1 + $0x34] sm:$0xf] }
 0x14c   : > { %v2668_v50 = vpop.f32.mrf.mxu0  ;;  %v10734_v51 = vadd.f32 %v2963_v41, %v2865_v34  ;;  %v713_v41 = vrot.slane %v10288_v29, 2  ;;  %v9054_v29 = vld [vmem:[%s14239_s1 + $0x334] sm:$0xf] }
 0x14d   : > { %v2965_v52 = vpop.f32.mrf.mxu3  ;;  %v2669_v30 = vadd.f32 %v2668_v50, %v10586_v57  ;;  %3242 = vmatpush.bf16.msrb.mxu2 %v7992_v26  ;;  %v637_v50 = vpop.permute.xlu0 %636 }
 0x14e   : > { %14545 = vst [vmem:[#allocation52_spill] sm:$0xff] %v10734_v51  ;;  %v810_v51 = vpop.permute.xlu1 %809 }
 0x14f   : > { %2908 = vmatmul.bf16.gmra.mxu2 %v10732_v46  ;;  %v2767_v42 = vpop.f32.mrf.mxu1  ;;  %v8539_v46 = vld [vmem:[%s14239_s1 + $0x600] sm:$0xf] }
 0x150   : > { %v2768_v37 = vadd.f32 %v2767_v42, %v2669_v30  ;;  %v10762_v30 = vsel %vm1007_vm5, %v10061_v8, %v543_v32  ;;  %v8540_v63 = vor.u32 %v9147_v18, %v8539_v46  ;;  %v7797_v42 = vld [vmem:[%s14239_s1 + $0x48] sm:$0xf0] }
 0x151   : > { %14547 = vst [vmem:[#allocation54_spill] sm:$0xff] %v10762_v30 }
 0x152   : > { %v2869_v12 = vpop.f32.mrf.mxu2  ;;  %v2867_v34 = vadd.f32 %v2866_v53, %v2768_v37  ;;  %3007 = vmatmul.bf16.gmra.mxu3 %v10746_v7  ;;  %v714_v53 = vor.u32 %v713_v41, %v712_v4  ;;  %v8184_v37 = vor.u32 %v9054_v29, %v8181_v25  ;;  %v7800_v7 = vor.u32 %v8958_v47, %v7797_v42 }
 0x153   : > { %3045 = vmatpush.bf16.msrb.mxu0 %v8540_v63  ;;  %v10779_v4 = vsel %vm1007_vm5, %v10310_v44, %v637_v50  ;;  %v716_v42 = vrot.slane %v10298_v59, 1 }
 0x154   : > { %v2671_v22 = vpop.f32.mrf.mxu0  ;;  %v10774_v8 = vadd.f32 %v2965_v52, %v2867_v34  ;;  %3341 = vmatpush.bf16.msrb.mxu3 %v8184_v37  ;;  %14548 = vst [vmem:[#allocation55_spill] sm:$0xff] %v10779_v4  ;;  %3143 = vmatpush.bf16.msrb.mxu1 %v7800_v7  ;;  %v715_v18 = vsel %vm651_vm4, %v710_v27, %v714_v53  ;;  %v545_v7 = vpop.permute.xlu2 %544 }
 0x155   : > { %v2672_v26 = vadd.f32 %v2671_v22, %v10586_v57  ;;  %v2968_v32 = vpop.f32.mrf.mxu3  ;;  %v10784_v34 = vsel %vm1007_vm5, %v715_v18, %v810_v51  ;;  %v957_v63 = vpop.permute.xlu0 %956  ;;  %v717_v51 = vrot.slane %v10294_v33, 2 }
 0x156   : > { %14549 = vst [vmem:[#allocation56_spill] sm:$0xff] %v10784_v34 }
 0x157   : > { %2710 = vmatmul.bf16.gmra.mxu0 %v10762_v30  ;;  %v2770_v46 = vpop.f32.mrf.mxu1 }
 0x158   : > { %v2771_v41 = vadd.f32 %v2770_v46, %v2672_v26 }
 0x15a   : > { %v2871_v22 = vpop.f32.mrf.mxu2  ;;  %v2870_v29 = vadd.f32 %v2869_v12, %v2771_v41  ;;  %2809 = vmatmul.bf16.gmra.mxu1 %v10779_v4  ;;  %v10792_v12 = vsel %vm1007_vm5, %v10442_v54, %v957_v63  ;;  %v10798_v41 = vld [vmem:[%s9468_s23 + $0x68] sm:$0xff] }
 0x15b   : > { %14550 = vst [vmem:[#allocation57_spill] sm:$0xff] %v10792_v12  ;;  %v10802_v18 = vsel %vm1007_vm5, %v10798_v41, %v545_v7 }
 0x15c   : > { %v2673_v52 = vpop.f32.mrf.mxu0  ;;  %v10786_v25 = vadd.f32 %v2968_v32, %v2870_v29  ;;  %v639_v32 = vpop.permute.xlu1 %638  ;;  %14551 = vst [vmem:[#allocation58_spill] sm:$0xff] %v10802_v18  ;;  %v718_v29 = vor.u32 %v717_v51, %v716_v42 }
 0x15d   : > { %v2970_v47 = vpop.f32.mrf.mxu3  ;;  %v2674_v44 = vadd.f32 %v2673_v52, %v10586_v57 }
 0x15f   : > { %2913 = vmatmul.bf16.gmra.mxu2 %v10784_v34  ;;  %v2772_v27 = vpop.f32.mrf.mxu1 }
 0x160   : > { %v2773_v50 = vadd.f32 %v2772_v27, %v2674_v44  ;;  %v719_v44 = vsel %vm651_vm4, %v714_v53, %v718_v29  ;;  %v812_v27 = vpop.permute.xlu2 %811 }
 0x162   : > { %v2874_v26 = vpop.f32.mrf.mxu2  ;;  %v2872_v37 = vadd.f32 %v2871_v22, %v2773_v50  ;;  %3012 = vmatmul.bf16.gmra.mxu3 %v10792_v12  ;;  %v10810_v22 = vsel %vm1007_vm5, %v10271_v55, %v639_v32  ;;  %v547_v32 = vpop.permute.xlu0 %546 }
 0x163   : > { %14552 = vst [vmem:[#allocation59_spill] sm:$0xff] %v10810_v22 }
 0x164   : > { %v2676_v46 = vpop.f32.mrf.mxu0  ;;  %v10805_v52 = vadd.f32 %v2970_v47, %v2872_v37  ;;  %v10815_v47 = vsel %vm1007_vm5, %v719_v44, %v812_v27  ;;  %v959_v42 = vpop.permute.xlu1 %958 }
 0x165   : > { %v2677_v54 = vadd.f32 %v2676_v46, %v10586_v57  ;;  %v2973_v59 = vpop.f32.mrf.mxu3  ;;  %14553 = vst [vmem:[#allocation60_spill] sm:$0xff] %v10815_v47 }
 0x167   : > { %2715 = vmatmul.bf16.gmra.mxu0 %v10802_v18  ;;  %v2775_v33 = vpop.f32.mrf.mxu1 }
 0x168   : > { %v2776_v63 = vadd.f32 %v2775_v33, %v2677_v54  ;;  %v720_v33 = vrot.slane %v10359_v36, 1  ;;  %v641_v27 = vpop.permute.xlu2 %640 }
 0x16a   : > { %v2876_v50 = vpop.f32.mrf.mxu2  ;;  %v2875_v7 = vadd.f32 %v2874_v26, %v2776_v63  ;;  %2814 = vmatmul.bf16.gmra.mxu1 %v10810_v22  ;;  %v10823_v26 = vsel %vm1007_vm5, %v10421_v35, %v959_v42  ;;  %v721_v63 = vrot.slane %v10356_v31, 2  ;;  %v10835_v42 = vld [vmem:[%s9468_s23 + $0x70] sm:$0xff] }
 0x16b   : > { %14554 = vst [vmem:[#allocation61_spill] sm:$0xff] %v10823_v26  ;;  %v10839_v36 = vsel %vm1007_vm5, %v10835_v42, %v547_v32  ;;  %v8952_v32 = vld [vmem:[%s14239_s1 + $0x4] sm:$0xf] }
 0x16c   : > { %v2678_v46 = vpop.f32.mrf.mxu0  ;;  %v10817_v51 = vadd.f32 %v2973_v59, %v2875_v7  ;;  %v9000_v7 = vld [vmem:[%s14239_s1 + $0x184] sm:$0xf]  ;;  %14555 = vst [vmem:[#allocation62_spill] sm:$0xff] %v10839_v36 }
 0x16d   : > { %v2975_v37 = vpop.f32.mrf.mxu3  ;;  %v2679_v55 = vadd.f32 %v2678_v46, %v10586_v57  ;;  %v7965_v46 = vld [vmem:[%s14239_s1 + $0x198] sm:$0xf0] }
 0x16e   : > { %v7968_v31 = vor.u32 %v9000_v7, %v7965_v46  ;;  %v10859_v7 = vsel %vm1007_vm5, %v10343_v24, %v641_v27  ;;  %v549_v27 = vpop.permute.xlu1 %548 }
 0x16f   : > { %2918 = vmatmul.bf16.gmra.mxu2 %v10815_v47  ;;  %v2777_v53 = vpop.f32.mrf.mxu1  ;;  %14557 = vst [vmem:[#allocation64_spill] sm:$0xff] %v10859_v7 }
 0x170   : > { %v2778_v54 = vadd.f32 %v2777_v53, %v2679_v55  ;;  %v722_v55 = vor.u32 %v721_v63, %v720_v33  ;;  %v9048_v53 = vld [vmem:[%s14239_s1 + $0x304] sm:$0xf]  ;;  %3243 = vmatpush.bf16.msrb.mxu2 %v7968_v31  ;;  %v7773_v33 = vld [vmem:[%s14239_s1 + $0x18] sm:$0xf0] }
 0x172   : > { %v2879_v44 = vpop.f32.mrf.mxu2  ;;  %v2877_v59 = vadd.f32 %v2876_v50, %v2778_v54  ;;  %3017 = vmatmul.bf16.gmra.mxu3 %v10823_v26  ;;  %v8157_v54 = vld [vmem:[%s14239_s1 + $0x318] sm:$0xf0]  ;;  %v723_v46 = vsel %vm651_vm4, %v718_v29, %v722_v55 }
 0x173   : > { %v8160_v47 = vor.u32 %v9048_v53, %v8157_v54 }
 0x174   : > { %v2681_v35 = vpop.f32.mrf.mxu0  ;;  %v10848_v26 = vadd.f32 %v2975_v37, %v2877_v59  ;;  %v7776_v37 = vor.u32 %v8952_v32, %v7773_v33  ;;  %v14560_v32 = vshrl.u32 %v10464_v40, 16 }
 0x175   : > { %v2682_v50 = vadd.f32 %v2681_v35, %v10586_v57  ;;  %v2978_v12 = vpop.f32.mrf.mxu3  ;;  %3342 = vmatpush.bf16.msrb.mxu3 %v8160_v47  ;;  %v814_v35 = vpop.permute.xlu0 %813 }
 0x176   : > { %14556 = vst [vmem:[#allocation63_spill] sm:$0xff] %v10848_v26  ;;  %3144 = vmatpush.bf16.msrb.mxu1 %v7776_v37  ;;  %v961_v26 = vpop.permute.xlu2 %960  ;;  %v727_v33 = vrot.slane %v14560_v32, 1  ;;  %v816_v32 = vpop.permute.xlu1 %815 }
 0x177   : > { %2720 = vmatmul.bf16.gmra.mxu0 %v10839_v36  ;;  %v2780_v63 = vpop.f32.mrf.mxu1  ;;  %v10864_v36 = vsel %vm1007_vm5, %v723_v46, %v814_v35 }
 0x178   : > { %v2781_v59 = vadd.f32 %v2780_v63, %v2682_v50  ;;  %14558 = vst [vmem:[#allocation65_spill] sm:$0xff] %v10864_v36  ;;  %v10872_v50 = vsel %vm1007_vm5, %v10486_v21, %v961_v26  ;;  %v14561_v63 = vshll.u32 %v10464_v40, 16 }
 0x179   : > { %14559 = vst [vmem:[#allocation66_spill] sm:$0xff] %v10872_v50 }
 0x17a   : > { %v2881_v31 = vpop.f32.mrf.mxu2  ;;  %v2880_v53 = vadd.f32 %v2879_v44, %v2781_v59  ;;  %2819 = vmatmul.bf16.gmra.mxu1 %v10859_v7  ;;  %v730_v37 = vrot.slane %v14561_v63, 2 }
 0x17c   : > { %v2683_v54 = vpop.f32.mrf.mxu0  ;;  %v10866_v18 = vadd.f32 %v2978_v12, %v2880_v53  ;;  %v10881_v53 = vsel %vm1007_vm5, %v10276_v11, %v549_v27  ;;  %v731_v26 = vor.u32 %v730_v37, %v727_v33  ;;  %v832_v11 = vrot.slane %v10467_v15, 2  ;;  %v273_v15 = vld [vmem:[%s9468_s23 + $0xa0] sm:$0x3] }
 0x17d   : > { %v2980_v24 = vpop.f32.mrf.mxu3  ;;  %v2684_v47 = vadd.f32 %v2683_v54, %v10586_v57  ;;  %v643_v46 = vpop.permute.xlu0 %642  ;;  %14562 = vst [vmem:[#allocation67_spill] sm:$0xff] %v10881_v53 }
 0x17e   : > { %v833_v37 = vsel %vm745_vm0, %v10477_v16, %v832_v11 }
 0x17f   : > { %2923 = vmatmul.bf16.gmra.mxu2 %v10864_v36  ;;  %v2782_v29 = vpop.f32.mrf.mxu1 }
 0x180   : > { %v2783_v44 = vadd.f32 %v2782_v29, %v2684_v47 }
 0x182   : > { %v2884_v12 = vpop.f32.mrf.mxu2  ;;  %v2882_v59 = vadd.f32 %v2881_v31, %v2783_v44  ;;  %3022 = vmatmul.bf16.gmra.mxu3 %v10872_v50  ;;  %v10889_v31 = vsel %vm1007_vm5, %v10501_v3, %v643_v46  ;;  %v732_v44 = vsel %vm651_vm4, %v722_v55, %v731_v26  ;;  %v737_v46 = vshll.u32 %v10617_v58, 16 }
 0x183   : > { %14563 = vst [vmem:[#allocation68_spill] sm:$0xff] %v10889_v31  ;;  %v10895_v33 = vsel %vm1007_vm5, %v732_v44, %v816_v32  ;;  %v826_v50 = vunpack.c.l.b16 %v273_v15 }
 0x184   : > { %v2686_v35 = vpop.f32.mrf.mxu0  ;;  %v10884_v54 = vadd.f32 %v2980_v24, %v2882_v59  ;;  %14564 = vst [vmem:[#allocation69_spill] sm:$0xff] %v10895_v33  ;;  %v734_v59 = vshrl.u32 %v10617_v58, 16  ;;  %v739_v32 = vrot.slane %v737_v46, 2  ;;  %v8998_v46 = vld [vmem:[%s14239_s1 + $0x16c] sm:$0xf0] }
 0x185   : > { %v2687_v21 = vadd.f32 %v2686_v35, %v10586_v57  ;;  %v2983_v47 = vpop.f32.mrf.mxu3  ;;  %v963_v3 = vpop.permute.xlu0 %962 }
 0x186   : > { %v736_v44 = vrot.slane %v734_v59, 1 }
 0x187   : > { %2725 = vmatmul.bf16.gmra.mxu0 %v10881_v53  ;;  %v2785_v40 = vpop.f32.mrf.mxu1 }
 0x188   : > { %v2786_v29 = vadd.f32 %v2785_v40, %v2687_v21  ;;  %v551_v21 = vpop.permute.xlu2 %550 }
 0x18a   : > { %v2886_v27 = vpop.f32.mrf.mxu2  ;;  %v2885_v63 = vadd.f32 %v2884_v12, %v2786_v29  ;;  %2824 = vmatmul.bf16.gmra.mxu1 %v10889_v31  ;;  %v10907_v29 = vsel %vm1007_vm5, %v833_v37, %v963_v3  ;;  %v740_v37 = vor.u32 %v739_v32, %v736_v44  ;;  %v829_v3 = vpack.c.b16 %v826_v50, %v826_v50 }
 0x18b   : > { %14566 = vst [vmem:[#allocation71_spill] sm:$0xff] %v10907_v29 }
 0x18c   : > { %v2688_v24 = vpop.f32.mrf.mxu0  ;;  %v10901_v55 = vadd.f32 %v2983_v47, %v2885_v63  ;;  %v645_v47 = vpop.permute.xlu1 %644  ;;  %v834_v44 = vrot.slane %v829_v3, 2  ;;  %v9162_v3 = vld [vmem:[%s14239_s1 + $0x694] sm:$0xf] }
 0x18d   : > { %v2985_v35 = vpop.f32.mrf.mxu3  ;;  %v2689_v12 = vadd.f32 %v2688_v24, %v10586_v57 }
 0x18e   : > { %14565 = vst [vmem:[#allocation70_spill] sm:$0xff] %v10901_v55  ;;  %v10911_v55 = vld [vmem:[%s9468_s23 + $0x80] sm:$0xff] }
 0x18f   : > { %2928 = vmatmul.bf16.gmra.mxu2 %v10895_v33  ;;  %v2787_v40 = vpop.f32.mrf.mxu1  ;;  %v10915_v24 = vsel %vm1007_vm5, %v10911_v55, %v551_v21  ;;  %v10929_v21 = vsel %vm1007_vm5, %v10461_v43, %v645_v47  ;;  %v8517_v43 = vld [vmem:[%s14239_s1 + $0x5e8] sm:$0xf0] }
 0x190   : > { %v2788_v16 = vadd.f32 %v2787_v40, %v2689_v12  ;;  %14567 = vst [vmem:[#allocation72_spill] sm:$0xff] %v10915_v24 }
 0x191   : > { %14568 = vst [vmem:[#allocation73_spill] sm:$0xff] %v10929_v21 }
 0x192   : > { %v2889_v53 = vpop.f32.mrf.mxu2  ;;  %v2887_v58 = vadd.f32 %v2886_v27, %v2788_v16  ;;  %3027 = vmatmul.bf16.gmra.mxu3 %v10907_v29  ;;  %v7947_v27 = vld [vmem:[%s14239_s1 + $0x158] sm:$0xf]  ;;  %v818_v16 = vpop.permute.xlu2 %817 }
 0x193   : > { %v7948_v40 = vor.u32 %v8998_v46, %v7947_v27  ;;  %v8613_v27 = vld [vmem:[%s14239_s1 + $0x6a8] sm:$0xf0]  ;;  %v835_v46 = vsel %vm745_vm0, %v832_v11, %v834_v44  ;;  %v553_v44 = vpop.permute.xlu0 %552 }
 0x194   : > { %v2691_v63 = vpop.f32.mrf.mxu0  ;;  %v10918_v12 = vadd.f32 %v2985_v35, %v2887_v58  ;;  %v741_v35 = vsel %vm651_vm4, %v731_v26, %v740_v37 }
 0x195   : > { %v2692_v33 = vadd.f32 %v2691_v63, %v10586_v57  ;;  %v2988_v59 = vpop.f32.mrf.mxu3  ;;  %3632 = vmatpush.bf16.msra.mxu2 %v7948_v40  ;;  %v9138_v63 = vld [vmem:[%s14239_s1 + $0x5d4] sm:$0xf]  ;;  %v10943_v47 = vsel %vm1007_vm5, %v741_v35, %v818_v16 }
 0x196   : > { %14569 = vst [vmem:[#allocation74_spill] sm:$0xff] %v10943_v47  ;;  %v8520_v37 = vor.u32 %v9138_v63, %v8517_v43 }
 0x197   : > { %2730 = vmatmul.bf16.gmra.mxu0 %v10915_v24  ;;  %v2790_v15 = vpop.f32.mrf.mxu1 }
 0x198   : > { %v2791_v50 = vadd.f32 %v2790_v15, %v2692_v33  ;;  %v8139_v33 = vld [vmem:[%s14239_s1 + $0x2d8] sm:$0xf]  ;;  %v965_v15 = vpop.permute.xlu1 %964  ;;  %3434 = vmatpush.bf16.msra.mxu0 %v8520_v37 }
 0x199   : > { %v10960_v29 = vsel %vm1007_vm5, %v835_v46, %v965_v15  ;;  %v275_v15 = vld [vmem:[%s9468_s23 + $0x10] sm:$0x8] }
 0x19a   : > { %v2891_v32 = vpop.f32.mrf.mxu2  ;;  %v2890_v58 = vadd.f32 %v2889_v53, %v2791_v50  ;;  %2829 = vmatmul.bf16.gmra.mxu1 %v10929_v21  ;;  %v9046_v53 = vld [vmem:[%s14239_s1 + $0x2ec] sm:$0xf0]  ;;  %v8616_v50 = vor.u32 %v9162_v3, %v8613_v27  ;;  %14570 = vst [vmem:[#allocation75_spill] sm:$0xff] %v10960_v29  ;;  %v647_v46 = vpop.permute.xlu2 %646 }
 0x19b   : > { %v8140_v40 = vor.u32 %v9046_v53, %v8139_v33  ;;  %v593_v33 = vrot.slane %v10571_v6, 1  ;;  %v10965_v53 = vld [vmem:[%s9468_s23 + $0x88] sm:$0xff] }
 0x19c   : > { %v2693_v26 = vpop.f32.mrf.mxu0  ;;  %v10955_v35 = vadd.f32 %v2988_v59, %v2890_v58  ;;  %3537 = vmatpush.bf16.msra.mxu1 %v8616_v50 }
 0x19d   : > { %v2990_v16 = vpop.f32.mrf.mxu3  ;;  %v2694_v63 = vadd.f32 %v2693_v26, %v10586_v57  ;;  %3731 = vmatpush.bf16.msra.mxu3 %v8140_v40  ;;  %v10969_v26 = vsel %vm1007_vm5, %v10965_v53, %v553_v44  ;;  %v594_v27 = vsel %vm557_vm3, %v10457_v56, %v593_v33  ;;  %v14573_v56 = vunpack.c.h.b16 %v9474_v1 }
 0x19e   : > { %14571 = vst [vmem:[#allocation76_spill] sm:$0xff] %v10969_v26  ;;  %v10979_v50 = vsel %vm1007_vm5, %v594_v27, %v647_v46  ;;  %v9400_v46 = vld [vmem:[%s9468_s23 + $0x18] sm:$0xff] }
 0x19f   : > { %2933 = vmatmul.bf16.gmra.mxu2 %v10943_v47  ;;  %v2792_v43 = vpop.f32.mrf.mxu1  ;;  %14572 = vst [vmem:[#allocation77_spill] sm:$0xff] %v10979_v50 }
 0x1a0   : > { %v2793_v11 = vadd.f32 %v2792_v43, %v2694_v63  ;;  %v967_v63 = vunpack.c.l.b16 %v275_v15  ;;  %v971_v15 = vrot.slane %v9400_v46, 3  ;;  %v9132_v46 = vld [vmem:[%s14239_s1 + $0x5a4] sm:$0xf] }
 0x1a2   : > { %v2894_v59 = vpop.f32.mrf.mxu2  ;;  %v2892_v58 = vadd.f32 %v2891_v32, %v2793_v11  ;;  %3032 = vmatmul.bf16.gmra.mxu3 %v10960_v29  ;;  %v968_v33 = vpack.c.b16 %v14573_v56, %v967_v63 }
 0x1a4   : > { %v2696_v37 = vpop.f32.mrf.mxu0  ;;  %v10975_v40 = vadd.f32 %v2990_v16, %v2892_v58  ;;  %v970_v27 = vrot.slane %v968_v33, 3  ;;  %v14577_v33 = vld [vmem:[#allocation5_spill] sm:$0xff] }
 0x1a5   : > { %v2697_v3 = vadd.f32 %v2696_v37, %v10586_v57  ;;  %v2993_v6 = vpop.f32.mrf.mxu3 }
 0x1a6   : > { %v10991_v1 = vsel %vm969_vm6, %v970_v27, %v971_v15 }
 0x1a7   : > { %2735 = vmatmul.bf16.gmra.mxu0 %v10969_v26  ;;  %v2795_v32 = vpop.f32.mrf.mxu1  ;;  %v14574_v26 = vld [vmem:[#allocation6_spill] sm:$0xff]  ;;  %14576 = vst [vmem:[#allocation78_spill] sm:$0xff] %v10991_v1 }
 0x1a8   : > { %v2796_v43 = vadd.f32 %v2795_v32, %v2697_v3 }
 0x1aa   : > { %v2896_v11 = vpop.f32.mrf.mxu2  ;;  %v2895_v44 = vadd.f32 %v2894_v59, %v2796_v43  ;;  %2834 = vmatmul.bf16.gmra.mxu1 %v10979_v50  ;;  %v14575_v43 = vld [vmem:[#allocation2_spill] sm:$0xff] }
 0x1ac   : > { %v2698_v37 = vpop.f32.mrf.mxu0  ;;  %v10984_v16 = vadd.f32 %v2993_v6, %v2895_v44 }
 0x1ad   : > { %v2995_v58 = vpop.f32.mrf.mxu3  ;;  %v2699_v29 = vadd.f32 %v2698_v37, %v10586_v57 }
 0x1af   : > { %3244 = vmatmul.bf16.vlgmr.msrb.gmra.mxu2 %v14574_v26  ;;  %v2797_v47 = vpop.f32.mrf.mxu1 }
 0x1b0   : > { %v2798_v3 = vadd.f32 %v2797_v47, %v2699_v29 }
 0x1b2   : > { %v2899_v59 = vpop.f32.mrf.mxu2  ;;  %v2897_v32 = vadd.f32 %v2896_v11, %v2798_v3  ;;  %3343 = vmatmul.bf16.vlgmr.msrb.gmra.mxu3 %v14575_v43  ;;  %v7923_v11 = vld [vmem:[%s14239_s1 + $0x128] sm:$0xf]  ;;  %v8493_v3 = vld [vmem:[%s14239_s1 + $0x5b8] sm:$0xf0] }
 0x1b4   : > { %v2701_v50 = vpop.f32.mrf.mxu0  ;;  %v10994_v63 = vadd.f32 %v2995_v58, %v2897_v32 }
 0x1b5   : > { %v2702_v6 = vadd.f32 %v2701_v50, %v10586_v57  ;;  %v2998_v44 = vpop.f32.mrf.mxu3  ;;  %v8992_v50 = vld [vmem:[%s14239_s1 + $0x13c] sm:$0xf0] }
 0x1b6   : > { %v7924_v27 = vor.u32 %v8992_v50, %v7923_v11 }
 0x1b7   : > { %8633 = vmatmul.msk.bf16.vlgmr.msrb.gmra.mxu0 %vm1007_vm5, %v10991_v1  ;;  %v2800_v37 = vpop.f32.mrf.mxu1  ;;  %v9401_v1 = vld [vmem:[%s9468_s23 + $0x20] sm:$0xff] }
 0x1b8   : > { %v2801_v56 = vadd.f32 %v2800_v37, %v2702_v6  ;;  %3633 = vmatpush.bf16.msra.mxu2 %v7924_v27  ;;  %v8496_v37 = vor.u32 %v9132_v46, %v8493_v3  ;;  %v973_v26 = vrot.slane %v9401_v1, 3 }
 0x1ba   : > { %v2901_v29 = vpop.f32.mrf.mxu2  ;;  %v2900_v47 = vadd.f32 %v2899_v59, %v2801_v56  ;;  %3145 = vmatmul.bf16.vlgmr.msrb.gmra.mxu1 %v14577_v33  ;;  %v8115_v59 = vld [vmem:[%s14239_s1 + $0x2a8] sm:$0xf]  ;;  %v9040_v56 = vld [vmem:[%s14239_s1 + $0x2bc] sm:$0xf0]  ;;  %3435 = vmatpush.bf16.msra.mxu0 %v8496_v37  ;;  %v11024_v46 = vsel %vm969_vm6, %v971_v15, %v973_v26 }
 0x1bb   : > { %v8116_v50 = vor.u32 %v9040_v56, %v8115_v59  ;;  %14578 = vst [vmem:[#allocation79_spill] sm:$0xff] %v11024_v46 }
 0x1bc   : > { %v2703_v58 = vpop.f32.mrf.mxu0  ;;  %v11014_v32 = vadd.f32 %v2998_v44, %v2900_v47 }
 0x1bd   : > { %v3000_v6 = vpop.f32.mrf.mxu3  ;;  %v2704_v11 = vadd.f32 %v2703_v58, %v10586_v57  ;;  %3732 = vmatpush.bf16.msra.mxu3 %v8116_v50  ;;  %v9402_v50 = vld [vmem:[%s9468_s23 + $0x28] sm:$0xff] }
 0x1bf   : > { %3249 = vmatmul.bf16.gmra.mxu2 %v10159_v0  ;;  %v2802_v43 = vpop.f32.mrf.mxu1  ;;  %v14587_v0 = vld [vmem:[#allocation18_spill] sm:$0xff] }
 0x1c0   : > { %v2803_v33 = vadd.f32 %v2802_v43, %v2704_v11 }
 0x1c2   : > { %v2904_v44 = vpop.f32.mrf.mxu2  ;;  %v2902_v47 = vadd.f32 %v2901_v29, %v2803_v33  ;;  %3348 = vmatmul.bf16.gmra.mxu3 %v10101_v5 }
 0x1c4   : > { %v2706_v27 = vpop.f32.mrf.mxu0  ;;  %v11027_v3 = vadd.f32 %v3000_v6, %v2902_v47  ;;  %v975_v47 = vrot.slane %v9402_v50, 3 }
 0x1c5   : > { %v2707_v58 = vadd.f32 %v2706_v27, %v10586_v57  ;;  %v3003_v59 = vpop.f32.mrf.mxu3 }
 0x1c7   : > { %8634 = vmatmul.msk.bf16.gmra.mxu0 %vm1007_vm5, %v11024_v46  ;;  %v2805_v1 = vpop.f32.mrf.mxu1 }
 0x1c8   : > { %v2806_v43 = vadd.f32 %v2805_v1, %v2707_v58 }
 0x1ca   : > { %v2906_v37 = vpop.f32.mrf.mxu2  ;;  %v2905_v56 = vadd.f32 %v2904_v44, %v2806_v43  ;;  %3150 = vmatmul.bf16.gmra.mxu1 %v10142_v2  ;;  %v11039_v44 = vsel %vm969_vm6, %v973_v26, %v975_v47 }
 0x1cb   : > { %14580 = vst [vmem:[#allocation81_spill] sm:$0xff] %v11039_v44 }
 0x1cc   : > { %v2708_v29 = vpop.f32.mrf.mxu0  ;;  %v11032_v33 = vadd.f32 %v3003_v59, %v2905_v56 }
 0x1cd   : > { %v3005_v15 = vpop.f32.mrf.mxu3  ;;  %v2709_v11 = vadd.f32 %v2708_v29, %v10586_v57 }
 0x1ce   : > { %14579 = vst [vmem:[#allocation80_spill] sm:$0xff] %v11032_v33 }
 0x1cf   : > { %3254 = vmatmul.bf16.gmra.mxu2 %v10205_v23  ;;  %v2807_v6 = vpop.f32.mrf.mxu1  ;;  %v8091_v23 = vld [vmem:[%s14239_s1 + $0x278] sm:$0xf] }
 0x1d0   : > { %v2808_v27 = vadd.f32 %v2807_v6, %v2709_v11 }
 0x1d2   : > { %v2909_v5 = vpop.f32.mrf.mxu2  ;;  %v2907_v46 = vadd.f32 %v2906_v37, %v2808_v27  ;;  %3353 = vmatmul.bf16.gmra.mxu3 %v10173_v10  ;;  %v14582_v37 = vld [vmem:[#allocation14_spill] sm:$0xff] }
 0x1d4   : > { %v2711_v58 = vpop.f32.mrf.mxu0  ;;  %v11042_v1 = vadd.f32 %v3005_v15, %v2907_v46  ;;  %v7899_v46 = vld [vmem:[%s14239_s1 + $0xf8] sm:$0xf]  ;;  %v8986_v15 = vld [vmem:[%s14239_s1 + $0x10c] sm:$0xf0] }
 0x1d5   : > { %v2712_v59 = vadd.f32 %v2711_v58, %v10586_v57  ;;  %v3008_v43 = vpop.f32.mrf.mxu3  ;;  %v14584_v58 = vld [vmem:[#allocation19_spill] sm:$0xff] }
 0x1d6   : > { %14581 = vst [vmem:[#allocation82_spill] sm:$0xff] %v11042_v1 }
 0x1d7   : > { %8635 = vmatmul.msk.bf16.gmra.mxu0 %vm1007_vm5, %v11039_v44  ;;  %v2810_v56 = vpop.f32.mrf.mxu1 }
 0x1d8   : > { %v2811_v29 = vadd.f32 %v2810_v56, %v2712_v59 }
 0x1da   : > { %v2911_v11 = vpop.f32.mrf.mxu2  ;;  %v2910_v6 = vadd.f32 %v2909_v5, %v2811_v29  ;;  %3155 = vmatmul.bf16.gmra.mxu1 %v14582_v37  ;;  %v9403_v5 = vld [vmem:[%s9468_s23 + $0x30] sm:$0xff]  ;;  %v7900_v29 = vor.u32 %v8986_v15, %v7899_v46  ;;  %v8589_v15 = vld [vmem:[%s14239_s1 + $0x678] sm:$0xf0] }
 0x1db   : > { %v977_v56 = vrot.slane %v9403_v5, 3 }
 0x1dc   : > { %v2713_v50 = vpop.f32.mrf.mxu0  ;;  %v11047_v27 = vadd.f32 %v3008_v43, %v2910_v6  ;;  %3634 = vmatpush.bf16.msra.mxu2 %v7900_v29 }
 0x1dd   : > { %v3010_v26 = vpop.f32.mrf.mxu3  ;;  %v2714_v10 = vadd.f32 %v2713_v50, %v10586_v57  ;;  %v9126_v50 = vld [vmem:[%s14239_s1 + $0x574] sm:$0xf] }
 0x1de   : > { %14583 = vst [vmem:[#allocation83_spill] sm:$0xff] %v11047_v27  ;;  %v14585_v27 = vld [vmem:[#allocation16_spill] sm:$0xff] }
 0x1df   : > { %3259 = vmatmul.bf16.gmra.mxu2 %v14584_v58  ;;  %v2812_v59 = vpop.f32.mrf.mxu1  ;;  %v8469_v58 = vld [vmem:[%s14239_s1 + $0x588] sm:$0xf0] }
 0x1e0   : > { %v2813_v44 = vadd.f32 %v2812_v59, %v2714_v10  ;;  %v11069_v10 = vsel %vm969_vm6, %v975_v47, %v977_v56  ;;  %v8472_v46 = vor.u32 %v9126_v50, %v8469_v58 }
 0x1e1   : > { %14586 = vst [vmem:[#allocation84_spill] sm:$0xff] %v11069_v10 }
 0x1e2   : > { %v2914_v43 = vpop.f32.mrf.mxu2  ;;  %v2912_v6 = vadd.f32 %v2911_v11, %v2813_v44  ;;  %3358 = vmatmul.bf16.gmra.mxu3 %v14585_v27  ;;  %v9034_v44 = vld [vmem:[%s14239_s1 + $0x28c] sm:$0xf0]  ;;  %v9156_v11 = vld [vmem:[%s14239_s1 + $0x664] sm:$0xf]  ;;  %3436 = vmatpush.bf16.msra.mxu0 %v8472_v46 }
 0x1e3   : > { %v8092_v29 = vor.u32 %v9034_v44, %v8091_v23  ;;  %v8592_v27 = vor.u32 %v9156_v11, %v8589_v15  ;;  %v14589_v44 = vld [vmem:[#allocation23_spill] sm:$0xff] }
 0x1e4   : > { %v2716_v5 = vpop.f32.mrf.mxu0  ;;  %v11081_v47 = vadd.f32 %v3010_v26, %v2912_v6  ;;  %v9404_v6 = vld [vmem:[%s9468_s23 + $0x38] sm:$0xff] }
 0x1e5   : > { %v2717_v59 = vadd.f32 %v2716_v5, %v10586_v57  ;;  %v3013_v37 = vpop.f32.mrf.mxu3  ;;  %3733 = vmatpush.bf16.msra.mxu3 %v8092_v29  ;;  %3538 = vmatpush.bf16.msra.mxu1 %v8592_v27  ;;  %v979_v11 = vrot.slane %v9404_v6, 3  ;;  %v14590_v27 = vld [vmem:[#allocation20_spill] sm:$0xff] }
 0x1e7   : > { %8636 = vmatmul.msk.bf16.gmra.mxu0 %vm1007_vm5, %v11069_v10  ;;  %v2815_v58 = vpop.f32.mrf.mxu1 }
 0x1e8   : > { %v2816_v50 = vadd.f32 %v2815_v58, %v2717_v59 }
 0x1ea   : > { %v2916_v1 = vpop.f32.mrf.mxu2  ;;  %v2915_v33 = vadd.f32 %v2914_v43, %v2816_v50  ;;  %3160 = vmatmul.bf16.gmra.mxu1 %v14587_v0  ;;  %v11093_v43 = vsel %vm969_vm6, %v977_v56, %v979_v11  ;;  %v14596_v0 = vld [vmem:[#allocation24_spill] sm:$0xff] }
 0x1eb   : > { %14591 = vst [vmem:[#allocation86_spill] sm:$0xff] %v11093_v43 }
 0x1ec   : > { %v2718_v2 = vpop.f32.mrf.mxu0  ;;  %v11086_v5 = vadd.f32 %v3013_v37, %v2915_v33 }
 0x1ed   : > { %v3015_v23 = vpop.f32.mrf.mxu3  ;;  %v2719_v46 = vadd.f32 %v2718_v2, %v10586_v57 }
 0x1ee   : > { %14588 = vst [vmem:[#allocation85_spill] sm:$0xff] %v11086_v5 }
 0x1ef   : > { %3264 = vmatmul.bf16.gmra.mxu2 %v14589_v44  ;;  %v2817_v26 = vpop.f32.mrf.mxu1  ;;  %v14595_v44 = vld [vmem:[#allocation27_spill] sm:$0xff] }
 0x1f0   : > { %v2818_v15 = vadd.f32 %v2817_v26, %v2719_v46 }
 0x1f2   : > { %v2919_v29 = vpop.f32.mrf.mxu2  ;;  %v2917_v10 = vadd.f32 %v2916_v1, %v2818_v15  ;;  %3363 = vmatmul.bf16.gmra.mxu3 %v14590_v27  ;;  %v14593_v1 = vld [vmem:[#allocation22_spill] sm:$0xff] }
 0x1f4   : > { %v2721_v59 = vpop.f32.mrf.mxu0  ;;  %v11096_v37 = vadd.f32 %v3015_v23, %v2917_v10  ;;  %v9405_v23 = vld [vmem:[%s9468_s23 + $0x40] sm:$0xff] }
 0x1f5   : > { %v2722_v33 = vadd.f32 %v2721_v59, %v10586_v57  ;;  %v3018_v2 = vpop.f32.mrf.mxu3  ;;  %v981_v59 = vrot.slane %v9405_v23, 3  ;;  %v9028_v23 = vld [vmem:[%s14239_s1 + $0x25c] sm:$0xf0] }
 0x1f6   : > { %14592 = vst [vmem:[#allocation87_spill] sm:$0xff] %v11096_v37 }
 0x1f7   : > { %8637 = vmatmul.msk.bf16.gmra.mxu0 %vm1007_vm5, %v11093_v43  ;;  %v2820_v58 = vpop.f32.mrf.mxu1 }
 0x1f8   : > { %v2821_v50 = vadd.f32 %v2820_v58, %v2722_v33  ;;  %v8980_v33 = vld [vmem:[%s14239_s1 + $0xdc] sm:$0xf0]  ;;  %v11114_v58 = vsel %vm969_vm6, %v979_v11, %v981_v59 }
 0x1f9   : > { %14597 = vst [vmem:[#allocation89_spill] sm:$0xff] %v11114_v58 }
 0x1fa   : > { %v2921_v46 = vpop.f32.mrf.mxu2  ;;  %v2920_v26 = vadd.f32 %v2919_v29, %v2821_v50  ;;  %3165 = vmatmul.bf16.gmra.mxu1 %v14593_v1  ;;  %v7875_v29 = vld [vmem:[%s14239_s1 + $0xc8] sm:$0xf] }
 0x1fb   : > { %v7876_v50 = vor.u32 %v8980_v33, %v7875_v29 }
 0x1fc   : > { %v2723_v6 = vpop.f32.mrf.mxu0  ;;  %v11101_v15 = vadd.f32 %v3018_v2, %v2920_v26 }
 0x1fd   : > { %v3020_v56 = vpop.f32.mrf.mxu3  ;;  %v2724_v27 = vadd.f32 %v2723_v6, %v10586_v57  ;;  %3635 = vmatpush.bf16.msra.mxu2 %v7876_v50 }
 0x1fe   : > { %14594 = vst [vmem:[#allocation88_spill] sm:$0xff] %v11101_v15  ;;  %v9406_v15 = vld [vmem:[%s9468_s23 + $0x48] sm:$0xff] }
 0x1ff   : > { %3269 = vmatmul.bf16.gmra.mxu2 %v14595_v44  ;;  %v2822_v10 = vpop.f32.mrf.mxu1 }
 0x200   : > { %v2823_v37 = vadd.f32 %v2822_v10, %v2724_v27  ;;  %v9120_v27 = vld [vmem:[%s14239_s1 + $0x544] sm:$0xf] }
 0x202   : > { %v2924_v5 = vpop.f32.mrf.mxu2  ;;  %v2922_v43 = vadd.f32 %v2921_v46, %v2823_v37  ;;  %3368 = vmatmul.bf16.gmra.mxu3 %v14596_v0  ;;  %v8445_v37 = vld [vmem:[%s14239_s1 + $0x558] sm:$0xf0]  ;;  %v8067_v46 = vld [vmem:[%s14239_s1 + $0x248] sm:$0xf] }
 0x203   : > { %v8448_v11 = vor.u32 %v9120_v27, %v8445_v37  ;;  %v8068_v29 = vor.u32 %v9028_v23, %v8067_v46 }
 0x204   : > { %v2726_v2 = vpop.f32.mrf.mxu0  ;;  %v11126_v6 = vadd.f32 %v3020_v56, %v2922_v43  ;;  %v14599_v43 = vld [vmem:[#allocation26_spill] sm:$0xff] }
 0x205   : > { %v2727_v26 = vadd.f32 %v2726_v2, %v10586_v57  ;;  %v3023_v10 = vpop.f32.mrf.mxu3  ;;  %3437 = vmatpush.bf16.msra.mxu0 %v8448_v11  ;;  %3734 = vmatpush.bf16.msra.mxu3 %v8068_v29 }
 0x206   : > { %14598 = vst [vmem:[#allocation90_spill] sm:$0xff] %v11126_v6 }
 0x207   : > { %8638 = vmatmul.msk.bf16.gmra.mxu0 %vm1007_vm5, %v11114_v58  ;;  %v2825_v33 = vpop.f32.mrf.mxu1  ;;  %v983_v58 = vrot.slane %v9406_v15, 3 }
 0x208   : > { %v2826_v2 = vadd.f32 %v2825_v33, %v2727_v26  ;;  %v14601_v26 = vld [vmem:[#allocation28_spill] sm:$0xff] }
 0x20a   : > { %v2926_v0 = vpop.f32.mrf.mxu2  ;;  %v2925_v44 = vadd.f32 %v2924_v5, %v2826_v2  ;;  %3170 = vmatmul.bf16.gmra.mxu1 %v14599_v43  ;;  %v11141_v5 = vsel %vm969_vm6, %v981_v59, %v983_v58 }
 0x20b   : > { %14602 = vst [vmem:[#allocation92_spill] sm:$0xff] %v11141_v5 }
 0x20c   : > { %v2728_v56 = vpop.f32.mrf.mxu0  ;;  %v11134_v50 = vadd.f32 %v3023_v10, %v2925_v44 }
 0x20d   : > { %v3025_v27 = vpop.f32.mrf.mxu3  ;;  %v2729_v37 = vadd.f32 %v2728_v56, %v10586_v57 }
 0x20e   : > { %14600 = vst [vmem:[#allocation91_spill] sm:$0xff] %v11134_v50  ;;  %v14607_v50 = vld [vmem:[#allocation32_spill] sm:$0xff] }
 0x20f   : > { %3274 = vmatmul.bf16.gmra.mxu2 %v10472_v14  ;;  %v2827_v6 = vpop.f32.mrf.mxu1  ;;  %v14606_v14 = vld [vmem:[#allocation36_spill] sm:$0xff] }
 0x210   : > { %v2828_v46 = vadd.f32 %v2827_v6, %v2729_v37  ;;  %v14604_v37 = vld [vmem:[#allocation30_spill] sm:$0xff] }
 0x212   : > { %v2929_v23 = vpop.f32.mrf.mxu2  ;;  %v2927_v11 = vadd.f32 %v2926_v0, %v2828_v46  ;;  %3373 = vmatmul.bf16.gmra.mxu3 %v14601_v26 }
 0x214   : > { %v2731_v29 = vpop.f32.mrf.mxu0  ;;  %v11144_v10 = vadd.f32 %v3025_v27, %v2927_v11  ;;  %v985_v11 = vrot.slane %v10684_v28, 3  ;;  %v7851_v28 = vld [vmem:[%s14239_s1 + $0x98] sm:$0xf] }
 0x215   : > { %v2732_v44 = vadd.f32 %v2731_v29, %v10586_v57  ;;  %v3028_v33 = vpop.f32.mrf.mxu3 }
 0x216   : > { %14603 = vst [vmem:[#allocation93_spill] sm:$0xff] %v11144_v10 }
 0x217   : > { %8639 = vmatmul.msk.bf16.gmra.mxu0 %vm1007_vm5, %v11141_v5  ;;  %v2830_v2 = vpop.f32.mrf.mxu1 }
 0x218   : > { %v2831_v56 = vadd.f32 %v2830_v2, %v2732_v44 }
 0x21a   : > { %v2931_v15 = vpop.f32.mrf.mxu2  ;;  %v2930_v6 = vadd.f32 %v2929_v23, %v2831_v56  ;;  %3175 = vmatmul.bf16.gmra.mxu1 %v14604_v37  ;;  %v11156_v23 = vsel %vm969_vm6, %v983_v58, %v985_v11 }
 0x21b   : > { %14608 = vst [vmem:[#allocation95_spill] sm:$0xff] %v11156_v23 }
 0x21c   : > { %v2733_v0 = vpop.f32.mrf.mxu0  ;;  %v11149_v46 = vadd.f32 %v3028_v33, %v2930_v6 }
 0x21d   : > { %v3030_v26 = vpop.f32.mrf.mxu3  ;;  %v2734_v59 = vadd.f32 %v2733_v0, %v10586_v57 }
 0x21e   : > { %14605 = vst [vmem:[#allocation94_spill] sm:$0xff] %v11149_v46 }
 0x21f   : > { %3279 = vmatmul.bf16.gmra.mxu2 %v14606_v14  ;;  %v2832_v27 = vpop.f32.mrf.mxu1  ;;  %v987_v14 = vrot.slane %v10715_v60, 3 }
 0x220   : > { %v2833_v29 = vadd.f32 %v2832_v27, %v2734_v59 }
 0x222   : > { %v2934_v10 = vpop.f32.mrf.mxu2  ;;  %v2932_v5 = vadd.f32 %v2931_v15, %v2833_v29  ;;  %3378 = vmatmul.bf16.gmra.mxu3 %v14607_v50  ;;  %v8974_v15 = vld [vmem:[%s14239_s1 + $0xac] sm:$0xf0]  ;;  %v8421_v29 = vld [vmem:[%s14239_s1 + $0x528] sm:$0xf0] }
 0x223   : > { %v7852_v0 = vor.u32 %v8974_v15, %v7851_v28  ;;  %v8565_v15 = vld [vmem:[%s14239_s1 + $0x648] sm:$0xf0] }
 0x224   : > { %v2736_v44 = vpop.f32.mrf.mxu0  ;;  %v11159_v2 = vadd.f32 %v3030_v26, %v2932_v5  ;;  %v14610_v26 = vld [vmem:[#allocation34_spill] sm:$0xff]  ;;  %v9114_v5 = vld [vmem:[%s14239_s1 + $0x514] sm:$0xf] }
 0x225   : > { %v2737_v33 = vadd.f32 %v2736_v44, %v10586_v57  ;;  %v3033_v56 = vpop.f32.mrf.mxu3  ;;  %3636 = vmatpush.bf16.msra.mxu2 %v7852_v0  ;;  %v8043_v44 = vld [vmem:[%s14239_s1 + $0x218] sm:$0xf]  ;;  %v8424_v28 = vor.u32 %v9114_v5, %v8421_v29 }
 0x226   : > { %14609 = vst [vmem:[#allocation96_spill] sm:$0xff] %v11159_v2 }
 0x227   : > { %8640 = vmatmul.msk.bf16.gmra.mxu0 %vm1007_vm5, %v11156_v23  ;;  %v2835_v6 = vpop.f32.mrf.mxu1 }
 0x228   : > { %v2836_v58 = vadd.f32 %v2835_v6, %v2737_v33  ;;  %v9150_v33 = vld [vmem:[%s14239_s1 + $0x634] sm:$0xf]  ;;  %3438 = vmatpush.bf16.msra.mxu0 %v8424_v28 }
 0x229   : > { %v8568_v0 = vor.u32 %v9150_v33, %v8565_v15  ;;  %v14612_v33 = vld [vmem:[#allocation39_spill] sm:$0xff] }
 0x22a   : > { %v2936_v59 = vpop.f32.mrf.mxu2  ;;  %v2935_v27 = vadd.f32 %v2934_v10, %v2836_v58  ;;  %3180 = vmatmul.bf16.gmra.mxu1 %v14610_v26  ;;  %v9022_v10 = vld [vmem:[%s14239_s1 + $0x22c] sm:$0xf0] }
 0x22b   : > { %v8044_v6 = vor.u32 %v9022_v10, %v8043_v44  ;;  %3539 = vmatpush.bf16.msra.mxu1 %v8568_v0 }
 0x22c   : > { %v2738_v50 = vpop.f32.mrf.mxu0  ;;  %v11188_v58 = vadd.f32 %v3033_v56, %v2935_v27  ;;  %v11195_v56 = vsel %vm969_vm6, %v985_v11, %v987_v14 }
 0x22d   : > { %v3035_v23 = vpop.f32.mrf.mxu3  ;;  %v2739_v5 = vadd.f32 %v2738_v50, %v10586_v57  ;;  %3735 = vmatpush.bf16.msra.mxu3 %v8044_v6  ;;  %14611 = vst [vmem:[#allocation97_spill] sm:$0xff] %v11195_v56  ;;  %v9407_v57 = vld [vmem:[%s14240_s2] sm:$0x3f] }
 0x22e   : > { %v11201_v50 = vperm.slane %v9407_v57, 1 }
 0x22f   : > { %3284 = vmatmul.bf16.gmra.mxu2 %v10601_v19  ;;  %v2837_v29 = vpop.f32.mrf.mxu1 }
 0x230   : > { %v2838_v26 = vadd.f32 %v2837_v29, %v2739_v5  ;;  %v9408_v29 = vld [vmem:[%s9468_s23 + $0x60] sm:$0xff] }
 0x232   : > { %v3245_v2 = vpop.f32.mrf.mxu2  ;;  %v2937_v46 = vadd.f32 %v2936_v59, %v2838_v26  ;;  %3383 = vmatmul.bf16.gmra.mxu3 %v10560_v38  ;;  %v14614_v38 = vld [vmem:[#allocation41_spill] sm:$0xff] }
 0x234   : > { %v3047_v44 = vpop.f32.mrf.mxu0  ;;  %v11203_v28 = vadd.f32 %v3035_v23, %v2937_v46 }
 0x235   : > { %v3048_v27 = vadd.f32 %v3047_v44, %v10615_v13  ;;  %v3344_v60 = vpop.f32.mrf.mxu3  ;;  %v989_v44 = vrot.slane %v9408_v29, 3 }
 0x237   : > { %8641 = vmatmul.msk.bf16.gmra.mxu0 %vm1007_vm5, %v11195_v56  ;;  %v3146_v59 = vpop.f32.mrf.mxu1  ;;  %v5612_v46 = vmax.f32 %v3048_v27, 0.0 }
 0x238   : > { %v3147_v26 = vadd.f32 %v3146_v59, %v11201_v50 }
 0x23a   : > { %v3247_v11 = vpop.f32.mrf.mxu2  ;;  %v3246_v10 = vadd.f32 %v3245_v2, %v3147_v26  ;;  %3185 = vmatmul.bf16.gmra.mxu1 %v14612_v33 }
 0x23c   : > { %v3049_v13 = vpop.f32.mrf.mxu0  ;;  %v11210_v6 = vadd.f32 %v3344_v60, %v3246_v10 }
 0x23d   : > { %v3050_v15 = vadd.f32 %v3049_v13, %v10637_v9  ;;  %v3346_v0 = vpop.f32.mrf.mxu3  ;;  %v11219_v9 = vsel %vm969_vm6, %v987_v14, %v989_v44  ;;  %v7827_v14 = vld [vmem:[%s14239_s1 + $0x68] sm:$0xf] }
 0x23e   : > { %14615 = vst [vmem:[#allocation99_spill] sm:$0xff] %v11219_v9 }
 0x23f   : > { %v5618_v23 = vmax.f32 %v3050_v15, 0.0  ;;  %3289 = vmatmul.bf16.gmra.mxu2 %v10643_v62  ;;  %v3148_v5 = vpop.f32.mrf.mxu1 }
 0x240   : > { %v3149_v59 = vadd.f32 %v3148_v5, %v11201_v50 }
 0x241   : > { %v11214_v57 = vpack.c.bf16 %v5618_v23, %v5612_v46 }
 0x242   : > { %v3250_v2 = vpop.f32.mrf.mxu2  ;;  %v3248_v26 = vadd.f32 %v3247_v11, %v3149_v59  ;;  %3388 = vmatmul.bf16.gmra.mxu3 %v14614_v38 }
 0x243   : > { %14613 = vst [vmem:[#allocation98_spill] sm:$0xff] %v11214_v57  ;;  %v14617_v57 = vld [vmem:[#allocation44_spill] sm:$0xff] }
 0x244   : > { %v3052_v56 = vpop.f32.mrf.mxu0  ;;  %v11222_v60 = vadd.f32 %v3346_v0, %v3248_v26  ;;  %v9108_v26 = vld [vmem:[%s14239_s1 + $0x4e4] sm:$0xf] }
 0x245   : > { %v3053_v27 = vadd.f32 %v3052_v56, %v10662_v49  ;;  %v3349_v10 = vpop.f32.mrf.mxu3  ;;  %v8968_v49 = vld [vmem:[%s14239_s1 + $0x7c] sm:$0xf0] }
 0x246   : > { %v7828_v11 = vor.u32 %v8968_v49, %v7827_v14  ;;  %v991_v14 = vrot.slane %v10798_v41, 3 }
 0x247   : > { %8642 = vmatmul.msk.bf16.gmra.mxu0 %vm1007_vm5, %v11219_v9  ;;  %v3151_v13 = vpop.f32.mrf.mxu1  ;;  %v5624_v59 = vmax.f32 %v3053_v27, 0.0  ;;  %v9016_v27 = vld [vmem:[%s14239_s1 + $0x1fc] sm:$0xf0] }
 0x248   : > { %v3152_v15 = vadd.f32 %v3151_v13, %v11201_v50  ;;  %3637 = vmatpush.bf16.msra.mxu2 %v7828_v11  ;;  %v8397_v13 = vld [vmem:[%s14239_s1 + $0x4f8] sm:$0xf0] }
 0x24a   : > { %v3252_v46 = vpop.f32.mrf.mxu2  ;;  %v3251_v23 = vadd.f32 %v3250_v2, %v3152_v15  ;;  %3190 = vmatmul.bf16.gmra.mxu1 %v10634_v61 }
 0x24c   : > { %v3054_v56 = vpop.f32.mrf.mxu0  ;;  %v11235_v5 = vadd.f32 %v3349_v10, %v3251_v23  ;;  %v8019_v10 = vld [vmem:[%s14239_s1 + $0x1e8] sm:$0xf] }
 0x24d   : > { %v3055_v0 = vadd.f32 %v3054_v56, %v10691_v17  ;;  %v3351_v29 = vpop.f32.mrf.mxu3  ;;  %v8400_v17 = vor.u32 %v9108_v26, %v8397_v13  ;;  %v8020_v49 = vor.u32 %v9016_v27, %v8019_v10  ;;  %v11256_v26 = vsel %vm969_vm6, %v989_v44, %v991_v14 }
 0x24e   : > { %14618 = vst [vmem:[#allocation101_spill] sm:$0xff] %v11256_v26 }
 0x24f   : > { %v5630_v2 = vmax.f32 %v3055_v0, 0.0  ;;  %3294 = vmatmul.bf16.gmra.mxu2 %v10696_v45  ;;  %v3153_v15 = vpop.f32.mrf.mxu1  ;;  %3439 = vmatpush.bf16.msra.mxu0 %v8400_v17  ;;  %v14619_v17 = vld [vmem:[#allocation46_spill] sm:$0xff] }
 0x250   : > { %v3154_v23 = vadd.f32 %v3153_v15, %v11201_v50  ;;  %3736 = vmatpush.bf16.msra.mxu3 %v8020_v49 }
 0x251   : > { %v11252_v56 = vpack.c.bf16 %v5630_v2, %v5624_v59 }
 0x252   : > { %v3255_v11 = vpop.f32.mrf.mxu2  ;;  %v3253_v0 = vadd.f32 %v3252_v46, %v3154_v23  ;;  %3393 = vmatmul.bf16.gmra.mxu3 %v14617_v57 }
 0x253   : > { %14616 = vst [vmem:[#allocation100_spill] sm:$0xff] %v11252_v56  ;;  %v14621_v56 = vld [vmem:[#allocation47_spill] sm:$0xff] }
 0x254   : > { %v3057_v41 = vpop.f32.mrf.mxu0  ;;  %v11259_v38 = vadd.f32 %v3351_v29, %v3253_v0  ;;  %v993_v0 = vrot.slane %v10835_v42, 3 }
 0x255   : > { %v3058_v13 = vadd.f32 %v3057_v41, %v10703_v48  ;;  %v3354_v45 = vpop.f32.mrf.mxu3 }
 0x257   : > { %8643 = vmatmul.msk.bf16.gmra.mxu0 %vm1007_vm5, %v11256_v26  ;;  %v3156_v59 = vpop.f32.mrf.mxu1  ;;  %v5636_v48 = vmax.f32 %v3058_v13, 0.0 }
 0x258   : > { %v3157_v2 = vadd.f32 %v3156_v59, %v11201_v50 }
 0x25a   : > { %v3257_v15 = vpop.f32.mrf.mxu2  ;;  %v3256_v46 = vadd.f32 %v3255_v11, %v3157_v2  ;;  %3195 = vmatmul.bf16.gmra.mxu1 %v14619_v17 }
 0x25c   : > { %v3059_v10 = vpop.f32.mrf.mxu0  ;;  %v11266_v27 = vadd.f32 %v3354_v45, %v3256_v46  ;;  %v11275_v45 = vsel %vm969_vm6, %v991_v14, %v993_v0 }
 0x25d   : > { %v3060_v44 = vadd.f32 %v3059_v10, %v10722_v20  ;;  %v3356_v23 = vpop.f32.mrf.mxu3  ;;  %14622 = vst [vmem:[#allocation103_spill] sm:$0xff] %v11275_v45  ;;  %v14623_v20 = vld [vmem:[#allocation52_spill] sm:$0xff] }
 0x25f   : > { %v5642_v29 = vmax.f32 %v3060_v44, 0.0  ;;  %3299 = vmatmul.bf16.gmra.mxu2 %v10727_v39  ;;  %v3158_v49 = vpop.f32.mrf.mxu1 }
 0x260   : > { %v3159_v41 = vadd.f32 %v3158_v49, %v11201_v50 }
 0x261   : > { %v11271_v59 = vpack.c.bf16 %v5642_v29, %v5636_v48  ;;  %v14624_v29 = vld [vmem:[#allocation49_spill] sm:$0xff] }
 0x262   : > { %v3260_v11 = vpop.f32.mrf.mxu2  ;;  %v3258_v2 = vadd.f32 %v3257_v15, %v3159_v41  ;;  %3398 = vmatmul.bf16.gmra.mxu3 %v14621_v56 }
 0x263   : > { %14620 = vst [vmem:[#allocation102_spill] sm:$0xff] %v11271_v59 }
 0x264   : > { %v3062_v57 = vpop.f32.mrf.mxu0  ;;  %v11278_v46 = vadd.f32 %v3356_v23, %v3258_v2 }
 0x265   : > { %v3063_v13 = vadd.f32 %v3062_v57, %v14623_v20  ;;  %v3359_v10 = vpop.f32.mrf.mxu3  ;;  %v7803_v20 = vld [vmem:[%s14239_s1 + $0x38] sm:$0xf] }
 0x267   : > { %8644 = vmatmul.msk.bf16.gmra.mxu0 %vm1007_vm5, %v11275_v45  ;;  %v3161_v42 = vpop.f32.mrf.mxu1  ;;  %v5648_v23 = vmax.f32 %v3063_v13, 0.0 }
 0x268   : > { %v3162_v44 = vadd.f32 %v3161_v42, %v11201_v50 }
 0x26a   : > { %v3262_v48 = vpop.f32.mrf.mxu2  ;;  %v3261_v15 = vadd.f32 %v3260_v11, %v3162_v44  ;;  %3200 = vmatmul.bf16.gmra.mxu1 %v14624_v29  ;;  %v8962_v11 = vld [vmem:[%s14239_s1 + $0x4c] sm:$0xf0]  ;;  %v9409_v44 = vld [vmem:[%s9468_s23 + $0x78] sm:$0xff] }
 0x26b   : > { %v995_v59 = vrot.slane %v9409_v44, 3  ;;  %v7804_v56 = vor.u32 %v8962_v11, %v7803_v20  ;;  %v7995_v20 = vld [vmem:[%s14239_s1 + $0x1b8] sm:$0xf] }
 0x26c   : > { %v3064_v49 = vpop.f32.mrf.mxu0  ;;  %v11285_v41 = vadd.f32 %v3359_v10, %v3261_v15 }
 0x26d   : > { %v3065_v14 = vadd.f32 %v3064_v49, %v10774_v8  ;;  %v3361_v57 = vpop.f32.mrf.mxu3  ;;  %3638 = vmatpush.bf16.msra.mxu2 %v7804_v56  ;;  %v14627_v49 = vld [vmem:[#allocation51_spill] sm:$0xff] }
 0x26e   : > { %14625 = vst [vmem:[#allocation52_spill] sm:$0xff] %v11285_v41 }
 0x26f   : > { %v5654_v2 = vmax.f32 %v3065_v14, 0.0  ;;  %3304 = vmatmul.bf16.gmra.mxu2 %v10779_v4  ;;  %v3163_v42 = vpop.f32.mrf.mxu1  ;;  %v9102_v14 = vld [vmem:[%s14239_s1 + $0x4b4] sm:$0xf]  ;;  %v8373_v4 = vld [vmem:[%s14239_s1 + $0x4c8] sm:$0xf0] }
 0x270   : > { %v3164_v8 = vadd.f32 %v3163_v42, %v11201_v50  ;;  %v8376_v56 = vor.u32 %v9102_v14, %v8373_v4  ;;  %v8541_v42 = vld [vmem:[%s14239_s1 + $0x618] sm:$0xf0] }
 0x271   : > { %v11296_v10 = vpack.c.bf16 %v5654_v2, %v5648_v23  ;;  %v11309_v23 = vsel %vm969_vm6, %v993_v0, %v995_v59  ;;  %v9144_v2 = vld [vmem:[%s14239_s1 + $0x604] sm:$0xf] }
 0x272   : > { %v3265_v13 = vpop.f32.mrf.mxu2  ;;  %v3263_v15 = vadd.f32 %v3262_v48, %v3164_v8  ;;  %3403 = vmatmul.bf16.gmra.mxu3 %v14627_v49  ;;  %14628 = vst [vmem:[#allocation105_spill] sm:$0xff] %v11309_v23  ;;  %v9010_v48 = vld [vmem:[%s14239_s1 + $0x1cc] sm:$0xf0]  ;;  %3440 = vmatpush.bf16.msra.mxu0 %v8376_v56 }
 0x273   : > { %14626 = vst [vmem:[#allocation104_spill] sm:$0xff] %v11296_v10  ;;  %v7996_v8 = vor.u32 %v9010_v48, %v7995_v20  ;;  %v8544_v10 = vor.u32 %v9144_v2, %v8541_v42  ;;  %v997_v48 = vrot.slane %v10911_v55, 3 }
 0x274   : > { %v3067_v11 = vpop.f32.mrf.mxu0  ;;  %v11321_v0 = vadd.f32 %v3361_v57, %v3263_v15 }
 0x275   : > { %v3068_v44 = vadd.f32 %v3067_v11, %v10786_v25  ;;  %v3364_v49 = vpop.f32.mrf.mxu3  ;;  %3737 = vmatpush.bf16.msra.mxu3 %v7996_v8  ;;  %3540 = vmatpush.bf16.msra.mxu1 %v8544_v10 }
 0x277   : > { %8645 = vmatmul.msk.bf16.gmra.mxu0 %vm1007_vm5, %v11309_v23  ;;  %v3166_v4 = vpop.f32.mrf.mxu1  ;;  %v5660_v57 = vmax.f32 %v3068_v44, 0.0 }
 0x278   : > { %v3167_v14 = vadd.f32 %v3166_v4, %v11201_v50 }
 0x27a   : > { %v3267_v45 = vpop.f32.mrf.mxu2  ;;  %v3266_v41 = vadd.f32 %v3265_v13, %v3167_v14  ;;  %3205 = vmatmul.bf16.gmra.mxu1 %v10762_v30 }
 0x27c   : > { %v3069_v39 = vpop.f32.mrf.mxu0  ;;  %v11328_v20 = vadd.f32 %v3364_v49, %v3266_v41 }
 0x27d   : > { %v3070_v25 = vadd.f32 %v3069_v39, %v10805_v52  ;;  %v3366_v11 = vpop.f32.mrf.mxu3  ;;  %v11337_v39 = vsel %vm969_vm6, %v995_v59, %v997_v48 }
 0x27e   : > { %14630 = vst [vmem:[#allocation107_spill] sm:$0xff] %v11337_v39 }
 0x27f   : > { %v5666_v15 = vmax.f32 %v3070_v25, 0.0  ;;  %3309 = vmatmul.bf16.gmra.mxu2 %v10810_v22  ;;  %v3168_v56 = vpop.f32.mrf.mxu1 }
 0x280   : > { %v3169_v10 = vadd.f32 %v3168_v56, %v11201_v50 }
 0x281   : > { %v11333_v2 = vpack.c.bf16 %v5666_v15, %v5660_v57  ;;  %v14632_v57 = vld [vmem:[#allocation63_spill] sm:$0xff] }
 0x282   : > { %v3270_v13 = vpop.f32.mrf.mxu2  ;;  %v3268_v42 = vadd.f32 %v3267_v45, %v3169_v10  ;;  %3408 = vmatmul.bf16.gmra.mxu3 %v10784_v34  ;;  %v14631_v45 = vld [vmem:[#allocation58_spill] sm:$0xff] }
 0x283   : > { %14629 = vst [vmem:[#allocation106_spill] sm:$0xff] %v11333_v2  ;;  %v14634_v2 = vld [vmem:[#allocation60_spill] sm:$0xff] }
 0x284   : > { %v3072_v8 = vpop.f32.mrf.mxu0  ;;  %v11340_v41 = vadd.f32 %v3366_v11, %v3268_v42  ;;  %v999_v42 = vrot.slane %v10965_v53, 3 }
 0x285   : > { %v3073_v52 = vadd.f32 %v3072_v8, %v10817_v51  ;;  %v3369_v49 = vpop.f32.mrf.mxu3 }
 0x287   : > { %8646 = vmatmul.msk.bf16.gmra.mxu0 %vm1007_vm5, %v11337_v39  ;;  %v3171_v55 = vpop.f32.mrf.mxu1  ;;  %v5672_v51 = vmax.f32 %v3073_v52, 0.0  ;;  %v8956_v52 = vld [vmem:[%s14239_s1 + $0x1c] sm:$0xf0] }
 0x288   : > { %v3172_v44 = vadd.f32 %v3171_v55, %v11201_v50 }
 0x28a   : > { %v3272_v4 = vpop.f32.mrf.mxu2  ;;  %v3271_v14 = vadd.f32 %v3270_v13, %v3172_v44  ;;  %3210 = vmatmul.bf16.gmra.mxu1 %v14631_v45 }
 0x28c   : > { %v3074_v25 = vpop.f32.mrf.mxu0  ;;  %v11347_v59 = vadd.f32 %v3369_v49, %v3271_v14  ;;  %v7779_v49 = vld [vmem:[%s14239_s1 + $0x8] sm:$0xf] }
 0x28d   : > { %v3075_v15 = vadd.f32 %v3074_v25, %v14632_v57  ;;  %v3371_v56 = vpop.f32.mrf.mxu3  ;;  %v11362_v25 = vsel %vm969_vm6, %v997_v48, %v999_v42  ;;  %v7780_v53 = vor.u32 %v8956_v52, %v7779_v49 }
 0x28e   : > { %14635 = vst [vmem:[#allocation108_spill] sm:$0xff] %v11362_v25 }
 0x28f   : > { %v5678_v11 = vmax.f32 %v3075_v15, 0.0  ;;  %3314 = vmatmul.bf16.gmra.mxu2 %v10859_v7  ;;  %v3173_v10 = vpop.f32.mrf.mxu1  ;;  %v9410_v7 = vld [vmem:[%s9468_s23 + $0x90] sm:$0xff] }
 0x290   : > { %v3174_v8 = vadd.f32 %v3173_v10, %v11201_v50  ;;  %3639 = vmatpush.bf16.msra.mxu2 %v7780_v53 }
 0x291   : > { %v11352_v55 = vpack.c.bf16 %v5678_v11, %v5672_v51  ;;  %v9096_v51 = vld [vmem:[%s14239_s1 + $0x484] sm:$0xf]  ;;  %v8349_v11 = vld [vmem:[%s14239_s1 + $0x498] sm:$0xf0] }
 0x292   : > { %v3275_v13 = vpop.f32.mrf.mxu2  ;;  %v3273_v44 = vadd.f32 %v3272_v4, %v3174_v8  ;;  %3413 = vmatmul.bf16.gmra.mxu3 %v14634_v2  ;;  %v8352_v10 = vor.u32 %v9096_v51, %v8349_v11 }
 0x293   : > { %14633 = vst [vmem:[#allocation63_spill] sm:$0xff] %v11352_v55 }
 0x294   : > { %v3077_v14 = vpop.f32.mrf.mxu0  ;;  %v11365_v15 = vadd.f32 %v3371_v56, %v3273_v44  ;;  %v9004_v56 = vld [vmem:[%s14239_s1 + $0x19c] sm:$0xf0]  ;;  %3441 = vmatpush.bf16.msra.mxu0 %v8352_v10 }
 0x295   : > { %v3078_v57 = vadd.f32 %v3077_v14, %v10866_v18  ;;  %v3374_v4 = vpop.f32.mrf.mxu3  ;;  %v7971_v18 = vld [vmem:[%s14239_s1 + $0x188] sm:$0xf]  ;;  %v14636_v14 = vld [vmem:[#allocation62_spill] sm:$0xff] }
 0x296   : > { %v7972_v44 = vor.u32 %v9004_v56, %v7971_v18 }
 0x297   : > { %8647 = vmatmul.msk.bf16.gmra.mxu0 %vm1007_vm5, %v11362_v25  ;;  %v3176_v48 = vpop.f32.mrf.mxu1  ;;  %v5684_v2 = vmax.f32 %v3078_v57, 0.0 }
 0x298   : > { %v3177_v8 = vadd.f32 %v3176_v48, %v11201_v50  ;;  %3738 = vmatpush.bf16.msra.mxu3 %v7972_v44  ;;  %v1001_v48 = vrot.slane %v9410_v7, 3 }
 0x29a   : > { %v3277_v49 = vpop.f32.mrf.mxu2  ;;  %v3276_v52 = vadd.f32 %v3275_v13, %v3177_v8  ;;  %3215 = vmatmul.bf16.gmra.mxu1 %v14636_v14 }
 0x29c   : > { %v3079_v53 = vpop.f32.mrf.mxu0  ;;  %v11384_v11 = vadd.f32 %v3374_v4, %v3276_v52  ;;  %v14639_v4 = vld [vmem:[#allocation70_spill] sm:$0xff] }
 0x29d   : > { %v3080_v51 = vadd.f32 %v3079_v53, %v10884_v54  ;;  %v3376_v55 = vpop.f32.mrf.mxu3  ;;  %v11393_v54 = vsel %vm969_vm6, %v999_v42, %v1001_v48 }
 0x29e   : > { %14638 = vst [vmem:[#allocation110_spill] sm:$0xff] %v11393_v54 }
 0x29f   : > { %v5690_v34 = vmax.f32 %v3080_v51, 0.0  ;;  %3319 = vmatmul.bf16.gmra.mxu2 %v10889_v31  ;;  %v3178_v25 = vpop.f32.mrf.mxu1 }
 0x2a0   : > { %v3179_v18 = vadd.f32 %v3178_v25, %v11201_v50 }
 0x2a1   : > { %v11389_v10 = vpack.c.bf16 %v5690_v34, %v5684_v2 }
 0x2a2   : > { %v3280_v13 = vpop.f32.mrf.mxu2  ;;  %v3278_v56 = vadd.f32 %v3277_v49, %v3179_v18  ;;  %3418 = vmatmul.bf16.gmra.mxu3 %v10864_v36  ;;  %v14640_v49 = vld [vmem:[#allocation67_spill] sm:$0xff] }
 0x2a3   : > { %14637 = vst [vmem:[#allocation109_spill] sm:$0xff] %v11389_v10 }
 0x2a4   : > { %v3082_v8 = vpop.f32.mrf.mxu0  ;;  %v11396_v44 = vadd.f32 %v3376_v55, %v3278_v56 }
 0x2a5   : > { %v3083_v57 = vadd.f32 %v3082_v8, %v14639_v4  ;;  %v3379_v52 = vpop.f32.mrf.mxu3  ;;  %v9411_v4 = vld [vmem:[%s9468_s23 + $0x98] sm:$0xff] }
 0x2a6   : > { %v1003_v10 = vrot.slane %v9411_v4, 3 }
 0x2a7   : > { %8648 = vmatmul.msk.bf16.gmra.mxu0 %vm1007_vm5, %v11393_v54  ;;  %v3181_v7 = vpop.f32.mrf.mxu1  ;;  %v5696_v55 = vmax.f32 %v3083_v57, 0.0  ;;  %v14643_v54 = vld [vmem:[#allocation69_spill] sm:$0xff] }
 0x2a8   : > { %v3182_v34 = vadd.f32 %v3181_v7, %v11201_v50 }
 0x2aa   : > { %v3282_v2 = vpop.f32.mrf.mxu2  ;;  %v3281_v25 = vadd.f32 %v3280_v13, %v3182_v34  ;;  %3220 = vmatmul.bf16.gmra.mxu1 %v14640_v49 }
 0x2ac   : > { %v3084_v53 = vpop.f32.mrf.mxu0  ;;  %v11403_v51 = vadd.f32 %v3379_v52, %v3281_v25 }
 0x2ad   : > { %v3085_v42 = vadd.f32 %v3084_v53, %v10918_v12  ;;  %v3381_v18 = vpop.f32.mrf.mxu3  ;;  %v11412_v12 = vsel %vm969_vm6, %v1001_v48, %v1003_v10  ;;  %v8619_v53 = vld [vmem:[%s14239_s1 + $0x698] sm:$0xf] }
 0x2ae   : > { %14641 = vst [vmem:[#allocation70_spill] sm:$0xff] %v11403_v51 }
 0x2af   : > { %v5702_v56 = vmax.f32 %v3085_v42, 0.0  ;;  %3324 = vmatmul.bf16.gmra.mxu2 %v10929_v21  ;;  %v3183_v8 = vpop.f32.mrf.mxu1  ;;  %14644 = vst [vmem:[#allocation112_spill] sm:$0xff] %v11412_v12  ;;  %v14647_v21 = vld [vmem:[#allocation35_spill] sm:$0xff] }
 0x2b0   : > { %v3184_v36 = vadd.f32 %v3183_v8, %v11201_v50 }
 0x2b1   : > { %v11408_v7 = vpack.c.bf16 %v5702_v56, %v5696_v55  ;;  %v8995_v56 = vld [vmem:[%s14239_s1 + $0x15c] sm:$0xf] }
 0x2b2   : > { %v3285_v13 = vpop.f32.mrf.mxu2  ;;  %v3283_v34 = vadd.f32 %v3282_v2, %v3184_v36  ;;  %3423 = vmatmul.bf16.gmra.mxu3 %v14643_v54  ;;  %v9166_v36 = vld [vmem:[%s14239_s1 + $0x6ac] sm:$0xf0]  ;;  %v14646_v54 = vld [vmem:[#allocation77_spill] sm:$0xff] }
 0x2b3   : > { %14642 = vst [vmem:[#allocation111_spill] sm:$0xff] %v11408_v7  ;;  %v8620_v42 = vor.u32 %v9166_v36, %v8619_v53  ;;  %v9142_v53 = vld [vmem:[%s14239_s1 + $0x5ec] sm:$0xf0] }
 0x2b4   : > { %v3087_v31 = vpop.f32.mrf.mxu0  ;;  %v11415_v52 = vadd.f32 %v3381_v18, %v3283_v34  ;;  %v9094_v18 = vld [vmem:[%s14239_s1 + $0x46c] sm:$0xf0]  ;;  %v8523_v34 = vld [vmem:[%s14239_s1 + $0x5d8] sm:$0xf] }
 0x2b5   : > { %v3088_v57 = vadd.f32 %v3087_v31, %v10955_v35  ;;  %v3384_v25 = vpop.f32.mrf.mxu3  ;;  %4032 = vmatpush.bf16.msrb.mxu2 %v8620_v42  ;;  %v8331_v35 = vld [vmem:[%s14239_s1 + $0x458] sm:$0xf]  ;;  %v8524_v42 = vor.u32 %v9142_v53, %v8523_v34 }
 0x2b6   : > { %14645 = vst [vmem:[#allocation113_spill] sm:$0xff] %v11415_v52  ;;  %v8332_v4 = vor.u32 %v9094_v18, %v8331_v35 }
 0x2b7   : > { %8649 = vmatmul.msk.bf16.gmra.mxu0 %vm1007_vm5, %v11412_v12  ;;  %v3186_v2 = vpop.f32.mrf.mxu1  ;;  %v5708_v35 = vmax.f32 %v3088_v57, 0.0  ;;  %3929 = vmatpush.bf16.msrb.mxu1 %v8524_v42 }
 0x2b8   : > { %v3187_v48 = vadd.f32 %v3186_v2, %v11201_v50  ;;  %3830 = vmatpush.bf16.msrb.mxu0 %v8332_v4 }
 0x2ba   : > { %v3287_v55 = vpop.f32.mrf.mxu2  ;;  %v3286_v31 = vadd.f32 %v3285_v13, %v3187_v48  ;;  %3225 = vmatmul.bf16.gmra.mxu1 %v10915_v24  ;;  %v7949_v13 = vld [vmem:[%s14239_s1 + $0x170] sm:$0xf0]  ;;  %v1005_v24 = vrot.slane %v14647_v21, 3 }
 0x2bb   : > { %v7952_v2 = vor.u32 %v8995_v56, %v7949_v13 }
 0x2bc   : > { %v3089_v8 = vpop.f32.mrf.mxu0  ;;  %v11446_v48 = vadd.f32 %v3384_v25, %v3286_v31  ;;  %v11455_v31 = vsel %vm969_vm6, %v1003_v10, %v1005_v24 }
 0x2bd   : > { %v3090_v36 = vadd.f32 %v3089_v8, %v10975_v40  ;;  %v3386_v7 = vpop.f32.mrf.mxu3  ;;  %4127 = vmatpush.bf16.msrb.mxu3 %v7952_v2  ;;  %v14649_v8 = vld [vmem:[#allocation74_spill] sm:$0xff]  ;;  %14650 = vst [vmem:[#allocation114_spill] sm:$0xff] %v11455_v31  ;;  %v14652_v2 = vld [vmem:[#allocation5_spill] sm:$0xff] }
 0x2bf   : > { %v5714_v18 = vmax.f32 %v3090_v36, 0.0  ;;  %3329 = vmatmul.bf16.gmra.mxu2 %v14646_v54  ;;  %v3188_v12 = vpop.f32.mrf.mxu1 }
 0x2c0   : > { %v3189_v52 = vadd.f32 %v3188_v12, %v11201_v50 }
 0x2c1   : > { %v11451_v51 = vpack.c.bf16 %v5714_v18, %v5708_v35 }
 0x2c2   : > { %v3290_v40 = vpop.f32.mrf.mxu2  ;;  %v3288_v56 = vadd.f32 %v3287_v55, %v3189_v52  ;;  %3428 = vmatmul.bf16.gmra.mxu3 %v14649_v8  ;;  %v14651_v52 = vld [vmem:[#allocation76_spill] sm:$0xff]  ;;  %v14660_v8 = vld [vmem:[#allocation11_spill] sm:$0xff] }
 0x2c3   : > { %14648 = vst [vmem:[#allocation35_spill] sm:$0xff] %v11451_v51 }
 0x2c4   : > { %v3092_v25 = vpop.f32.mrf.mxu0  ;;  %v11458_v4 = vadd.f32 %v3386_v7, %v3288_v56 }
 0x2c5   : > { %v3093_v57 = vadd.f32 %v3092_v25, %v10984_v16  ;;  %v3389_v13 = vpop.f32.mrf.mxu3 }
 0x2c7   : > { %8650 = vmatmul.msk.bf16.gmra.mxu0 %vm1007_vm5, %v11455_v31  ;;  %v3191_v21 = vpop.f32.mrf.mxu1  ;;  %v5720_v16 = vmax.f32 %v3093_v57, 0.0 }
 0x2c8   : > { %v3192_v12 = vadd.f32 %v3191_v21, %v11201_v50 }
 0x2ca   : > { %v3292_v34 = vpop.f32.mrf.mxu2  ;;  %v3291_v53 = vadd.f32 %v3290_v40, %v3192_v12  ;;  %3230 = vmatmul.bf16.gmra.mxu1 %v14651_v52  ;;  %v14654_v40 = vld [vmem:[#allocation6_spill] sm:$0xff] }
 0x2cc   : > { %v3094_v55 = vpop.f32.mrf.mxu0  ;;  %v11465_v24 = vadd.f32 %v3389_v13, %v3291_v53  ;;  %v14655_v53 = vld [vmem:[#allocation3_spill] sm:$0xff] }
 0x2cd   : > { %v3095_v36 = vadd.f32 %v3094_v55, %v10994_v63  ;;  %v3391_v10 = vpop.f32.mrf.mxu3 }
 0x2cf   : > { %v5726_v7 = vmax.f32 %v3095_v36, 0.0  ;;  %3640 = vmatmul.bf16.vlgmr.msra.gmra.mxu2 %v14652_v2  ;;  %v3193_v42 = vpop.f32.mrf.mxu1 }
 0x2d0   : > { %v3194_v35 = vadd.f32 %v3193_v42, %v11201_v50  ;;  %v14656_v42 = vld [vmem:[#allocation78_spill] sm:$0xff] }
 0x2d1   : > { %v11469_v18 = vpack.c.bf16 %v5726_v7, %v5720_v16 }
 0x2d2   : > { %v3295_v56 = vpop.f32.mrf.mxu2  ;;  %v3293_v25 = vadd.f32 %v3292_v34, %v3194_v35  ;;  %3739 = vmatmul.bf16.vlgmr.msra.gmra.mxu3 %v14654_v40 }
 0x2d3   : > { %14653 = vst [vmem:[#allocation115_spill] sm:$0xff] %v11469_v18 }
 0x2d4   : > { %v3097_v21 = vpop.f32.mrf.mxu0  ;;  %v11473_v63 = vadd.f32 %v3391_v10, %v3293_v25  ;;  %v14658_v25 = vld [vmem:[#allocation10_spill] sm:$0xff] }
 0x2d5   : > { %v3098_v12 = vadd.f32 %v3097_v21, %v11014_v32  ;;  %v3394_v13 = vpop.f32.mrf.mxu3  ;;  %v8307_v21 = vld [vmem:[%s14239_s1 + $0x428] sm:$0xf] }
 0x2d7   : > { %3442 = vmatmul.bf16.vlgmr.msra.gmra.mxu0 %v14655_v53  ;;  %v3196_v57 = vpop.f32.mrf.mxu1  ;;  %v5732_v32 = vmax.f32 %v3098_v12, 0.0  ;;  %v8499_v12 = vld [vmem:[%s14239_s1 + $0x5a8] sm:$0xf]  ;;  %v14661_v53 = vld [vmem:[#allocation80_spill] sm:$0xff] }
 0x2d8   : > { %v3197_v55 = vadd.f32 %v3196_v57, %v11201_v50 }
 0x2da   : > { %v3297_v36 = vpop.f32.mrf.mxu2  ;;  %v3296_v51 = vadd.f32 %v3295_v56, %v3197_v55  ;;  %8651 = vmatmul.msk.bf16.vlgmr.msra.gmra.mxu1 %vm1007_vm5, %v14656_v42  ;;  %v9088_v56 = vld [vmem:[%s14239_s1 + $0x43c] sm:$0xf0] }
 0x2db   : > { %v8308_v55 = vor.u32 %v9088_v56, %v8307_v21 }
 0x2dc   : > { %v3099_v16 = vpop.f32.mrf.mxu0  ;;  %v11480_v7 = vadd.f32 %v3394_v13, %v3296_v51  ;;  %v7925_v51 = vld [vmem:[%s14239_s1 + $0x140] sm:$0xf0] }
 0x2dd   : > { %v3100_v34 = vadd.f32 %v3099_v16, %v11027_v3  ;;  %v3396_v35 = vpop.f32.mrf.mxu3  ;;  %v8989_v3 = vld [vmem:[%s14239_s1 + $0x12c] sm:$0xf]  ;;  %3831 = vmatpush.bf16.msrb.mxu0 %v8308_v55 }
 0x2de   : > { %14657 = vst [vmem:[#allocation116_spill] sm:$0xff] %v11480_v7  ;;  %v7928_v16 = vor.u32 %v8989_v3, %v7925_v51  ;;  %v14663_v3 = vld [vmem:[#allocation9_spill] sm:$0xff]  ;;  %v14664_v55 = vld [vmem:[#allocation79_spill] sm:$0xff] }
 0x2df   : > { %v5738_v10 = vmax.f32 %v3100_v34, 0.0  ;;  %3645 = vmatmul.bf16.gmra.mxu2 %v14658_v25  ;;  %v3198_v57 = vpop.f32.mrf.mxu1  ;;  %v9136_v34 = vld [vmem:[%s14239_s1 + $0x5bc] sm:$0xf0] }
 0x2e0   : > { %v3199_v13 = vadd.f32 %v3198_v57, %v11201_v50  ;;  %v8500_v18 = vor.u32 %v9136_v34, %v8499_v12  ;;  %4128 = vmatpush.bf16.msrb.mxu3 %v7928_v16  ;;  %v14665_v12 = vld [vmem:[#allocation82_spill] sm:$0xff] }
 0x2e1   : > { %v11502_v21 = vpack.c.bf16 %v5738_v10, %v5732_v32 }
 0x2e2   : > { %v3300_v56 = vpop.f32.mrf.mxu2  ;;  %v3298_v40 = vadd.f32 %v3297_v36, %v3199_v13  ;;  %3744 = vmatmul.bf16.gmra.mxu3 %v14660_v8  ;;  %3930 = vmatpush.bf16.msrb.mxu1 %v8500_v18 }
 0x2e3   : > { %14659 = vst [vmem:[#allocation117_spill] sm:$0xff] %v11502_v21 }
 0x2e4   : > { %v3102_v25 = vpop.f32.mrf.mxu0  ;;  %v11506_v2 = vadd.f32 %v3396_v35, %v3298_v40  ;;  %v14667_v35 = vld [vmem:[#allocation14_spill] sm:$0xff] }
 0x2e5   : > { %v3103_v7 = vadd.f32 %v3102_v25, %v14661_v53  ;;  %v3399_v57 = vpop.f32.mrf.mxu3 }
 0x2e6   : > { %14662 = vst [vmem:[#allocation80_spill] sm:$0xff] %v11506_v2 }
 0x2e7   : > { %3447 = vmatmul.bf16.gmra.mxu0 %v14663_v3  ;;  %v3201_v51 = vpop.f32.mrf.mxu1  ;;  %v5744_v53 = vmax.f32 %v3103_v7, 0.0 }
 0x2e8   : > { %v3202_v32 = vadd.f32 %v3201_v51, %v11201_v50 }
 0x2ea   : > { %v3302_v10 = vpop.f32.mrf.mxu2  ;;  %v3301_v21 = vadd.f32 %v3300_v56, %v3202_v32  ;;  %8652 = vmatmul.msk.bf16.gmra.mxu1 %vm1007_vm5, %v14664_v55  ;;  %v14669_v32 = vld [vmem:[#allocation15_spill] sm:$0xff] }
 0x2eb   : > { %v14670_v55 = vld [vmem:[#allocation83_spill] sm:$0xff] }
 0x2ec   : > { %v3104_v36 = vpop.f32.mrf.mxu0  ;;  %v11513_v16 = vadd.f32 %v3399_v57, %v3301_v21  ;;  %v14672_v57 = vld [vmem:[#allocation13_spill] sm:$0xff] }
 0x2ed   : > { %v3105_v13 = vadd.f32 %v3104_v36, %v14665_v12  ;;  %v3401_v18 = vpop.f32.mrf.mxu3 }
 0x2ee   : > { %14666 = vst [vmem:[#allocation82_spill] sm:$0xff] %v11513_v16 }
 0x2ef   : > { %v5750_v40 = vmax.f32 %v3105_v13, 0.0  ;;  %3650 = vmatmul.bf16.gmra.mxu2 %v14667_v35  ;;  %v3203_v25 = vpop.f32.mrf.mxu1 }
 0x2f0   : > { %v3204_v34 = vadd.f32 %v3203_v25, %v11201_v50  ;;  %v14673_v25 = vld [vmem:[#allocation81_spill] sm:$0xff] }
 0x2f1   : > { %v11517_v8 = vpack.c.bf16 %v5750_v40, %v5744_v53 }
 0x2f2   : > { %v3305_v51 = vpop.f32.mrf.mxu2  ;;  %v3303_v56 = vadd.f32 %v3302_v10, %v3204_v34  ;;  %3749 = vmatmul.bf16.gmra.mxu3 %v14669_v32 }
 0x2f3   : > { %14668 = vst [vmem:[#allocation118_spill] sm:$0xff] %v11517_v8 }
 0x2f4   : > { %v3107_v3 = vpop.f32.mrf.mxu0  ;;  %v11521_v36 = vadd.f32 %v3401_v18, %v3303_v56  ;;  %v14675_v18 = vld [vmem:[#allocation18_spill] sm:$0xff]  ;;  %v8595_v56 = vld [vmem:[%s14239_s1 + $0x668] sm:$0xf] }
 0x2f5   : > { %v3108_v2 = vadd.f32 %v3107_v3, %v14670_v55  ;;  %v3404_v21 = vpop.f32.mrf.mxu3 }
 0x2f6   : > { %14671 = vst [vmem:[#allocation83_spill] sm:$0xff] %v11521_v36  ;;  %v14680_v36 = vld [vmem:[#allocation84_spill] sm:$0xff] }
 0x2f7   : > { %3452 = vmatmul.bf16.gmra.mxu0 %v14672_v57  ;;  %v3206_v7 = vpop.f32.mrf.mxu1  ;;  %v5756_v3 = vmax.f32 %v3108_v2, 0.0 }
 0x2f8   : > { %v3207_v12 = vadd.f32 %v3206_v7, %v11201_v50 }
 0x2fa   : > { %v3307_v13 = vpop.f32.mrf.mxu2  ;;  %v3306_v35 = vadd.f32 %v3305_v51, %v3207_v12  ;;  %8653 = vmatmul.msk.bf16.gmra.mxu1 %vm1007_vm5, %v14673_v25  ;;  %v9160_v51 = vld [vmem:[%s14239_s1 + $0x67c] sm:$0xf0] }
 0x2fb   : > { %v8596_v12 = vor.u32 %v9160_v51, %v8595_v56  ;;  %v8983_v56 = vld [vmem:[%s14239_s1 + $0xfc] sm:$0xf] }
 0x2fc   : > { %v3109_v53 = vpop.f32.mrf.mxu0  ;;  %v11528_v40 = vadd.f32 %v3404_v21, %v3306_v35  ;;  %v14677_v21 = vld [vmem:[#allocation19_spill] sm:$0xff] }
 0x2fd   : > { %v3110_v10 = vadd.f32 %v3109_v53, %v11081_v47  ;;  %v3406_v34 = vpop.f32.mrf.mxu3  ;;  %4033 = vmatpush.bf16.msrb.mxu2 %v8596_v12  ;;  %v8283_v53 = vld [vmem:[%s14239_s1 + $0x3f8] sm:$0xf] }
 0x2fe   : > { %14674 = vst [vmem:[#allocation119_spill] sm:$0xff] %v11528_v40 }
 0x2ff   : > { %v5762_v55 = vmax.f32 %v3110_v10, 0.0  ;;  %3655 = vmatmul.bf16.gmra.mxu2 %v14675_v18  ;;  %v3208_v7 = vpop.f32.mrf.mxu1  ;;  %v9082_v10 = vld [vmem:[%s14239_s1 + $0x40c] sm:$0xf0] }
 0x300   : > { %v3209_v8 = vadd.f32 %v3208_v7, %v11201_v50  ;;  %v14678_v7 = vld [vmem:[#allocation85_spill] sm:$0xff] }
 0x301   : > { %v11538_v47 = vpack.c.bf16 %v5762_v55, %v5756_v3  ;;  %v8284_v3 = vor.u32 %v9082_v10, %v8283_v53  ;;  %v9130_v55 = vld [vmem:[%s14239_s1 + $0x58c] sm:$0xf0]  ;;  %v14679_v53 = vld [vmem:[#allocation17_spill] sm:$0xff] }
 0x302   : > { %v3310_v35 = vpop.f32.mrf.mxu2  ;;  %v3308_v2 = vadd.f32 %v3307_v13, %v3209_v8  ;;  %3754 = vmatmul.bf16.gmra.mxu3 %v14677_v21  ;;  %v7901_v8 = vld [vmem:[%s14239_s1 + $0x110] sm:$0xf0]  ;;  %v8475_v13 = vld [vmem:[%s14239_s1 + $0x578] sm:$0xf] }
 0x303   : > { %14676 = vst [vmem:[#allocation120_spill] sm:$0xff] %v11538_v47  ;;  %v7904_v47 = vor.u32 %v8983_v56, %v7901_v8  ;;  %v8476_v21 = vor.u32 %v9130_v55, %v8475_v13  ;;  %3832 = vmatpush.bf16.msrb.mxu0 %v8284_v3 }
 0x304   : > { %v3112_v51 = vpop.f32.mrf.mxu0  ;;  %v11560_v32 = vadd.f32 %v3406_v34, %v3308_v2 }
 0x305   : > { %v3113_v12 = vadd.f32 %v3112_v51, %v14678_v7  ;;  %v3409_v18 = vpop.f32.mrf.mxu3  ;;  %4129 = vmatpush.bf16.msrb.mxu3 %v7904_v47  ;;  %3931 = vmatpush.bf16.msrb.mxu1 %v8476_v21  ;;  %v14681_v51 = vld [vmem:[#allocation87_spill] sm:$0xff] }
 0x307   : > { %3457 = vmatmul.bf16.gmra.mxu0 %v14679_v53  ;;  %v3211_v10 = vpop.f32.mrf.mxu1  ;;  %v5768_v2 = vmax.f32 %v3113_v12, 0.0 }
 0x308   : > { %v3212_v57 = vadd.f32 %v3211_v10, %v11201_v50  ;;  %v14684_v10 = vld [vmem:[#allocation88_spill] sm:$0xff] }
 0x30a   : > { %v3312_v40 = vpop.f32.mrf.mxu2  ;;  %v3311_v25 = vadd.f32 %v3310_v35, %v3212_v57  ;;  %8654 = vmatmul.msk.bf16.gmra.mxu1 %vm1007_vm5, %v14680_v36  ;;  %v14683_v35 = vld [vmem:[#allocation23_spill] sm:$0xff] }
 0x30c   : > { %v3114_v16 = vpop.f32.mrf.mxu0  ;;  %v11567_v8 = vadd.f32 %v3409_v18, %v3311_v25  ;;  %v14686_v18 = vld [vmem:[#allocation21_spill] sm:$0xff] }
 0x30d   : > { %v3115_v56 = vadd.f32 %v3114_v16, %v14681_v51  ;;  %v3411_v34 = vpop.f32.mrf.mxu3 }
 0x30f   : > { %v5774_v3 = vmax.f32 %v3115_v56, 0.0  ;;  %3660 = vmatmul.bf16.gmra.mxu2 %v14593_v1  ;;  %v3213_v47 = vpop.f32.mrf.mxu1 }
 0x310   : > { %v3214_v21 = vadd.f32 %v3213_v47, %v11201_v50  ;;  %v14687_v47 = vld [vmem:[#allocation86_spill] sm:$0xff] }
 0x311   : > { %v11571_v13 = vpack.c.bf16 %v5774_v3, %v5768_v2 }
 0x312   : > { %v3315_v55 = vpop.f32.mrf.mxu2  ;;  %v3313_v57 = vadd.f32 %v3312_v40, %v3214_v21  ;;  %3759 = vmatmul.bf16.gmra.mxu3 %v14683_v35  ;;  %v14688_v40 = vld [vmem:[#allocation90_spill] sm:$0xff] }
 0x313   : > { %14682 = vst [vmem:[#allocation85_spill] sm:$0xff] %v11571_v13 }
 0x314   : > { %v3117_v7 = vpop.f32.mrf.mxu0  ;;  %v11575_v16 = vadd.f32 %v3411_v34, %v3313_v57 }
 0x315   : > { %v3118_v53 = vadd.f32 %v3117_v7, %v14684_v10  ;;  %v3414_v25 = vpop.f32.mrf.mxu3 }
 0x316   : > { %14685 = vst [vmem:[#allocation87_spill] sm:$0xff] %v11575_v16 }
 0x317   : > { %3462 = vmatmul.bf16.gmra.mxu0 %v14686_v18  ;;  %v3216_v12 = vpop.f32.mrf.mxu1  ;;  %v5780_v7 = vmax.f32 %v3118_v53, 0.0  ;;  %v8259_v53 = vld [vmem:[%s14239_s1 + $0x3c8] sm:$0xf] }
 0x318   : > { %v3217_v51 = vadd.f32 %v3216_v12, %v11201_v50 }
 0x31a   : > { %v3317_v56 = vpop.f32.mrf.mxu2  ;;  %v3316_v1 = vadd.f32 %v3315_v55, %v3217_v51  ;;  %8655 = vmatmul.msk.bf16.gmra.mxu1 %vm1007_vm5, %v14687_v47  ;;  %v14690_v51 = vld [vmem:[#allocation27_spill] sm:$0xff] }
 0x31b   : > { %v14691_v47 = vld [vmem:[#allocation91_spill] sm:$0xff] }
 0x31c   : > { %v3119_v2 = vpop.f32.mrf.mxu0  ;;  %v11582_v21 = vadd.f32 %v3414_v25, %v3316_v1  ;;  %v14693_v25 = vld [vmem:[#allocation25_spill] sm:$0xff] }
 0x31d   : > { %v3120_v3 = vadd.f32 %v3119_v2, %v14688_v40  ;;  %v3416_v13 = vpop.f32.mrf.mxu3  ;;  %v9076_v40 = vld [vmem:[%s14239_s1 + $0x3dc] sm:$0xf0] }
 0x31f   : > { %v5786_v34 = vmax.f32 %v3120_v3, 0.0  ;;  %3665 = vmatmul.bf16.gmra.mxu2 %v14599_v43  ;;  %v3218_v57 = vpop.f32.mrf.mxu1 }
 0x320   : > { %v3219_v10 = vadd.f32 %v3218_v57, %v11201_v50  ;;  %v9124_v57 = vld [vmem:[%s14239_s1 + $0x55c] sm:$0xf0] }
 0x321   : > { %v11586_v35 = vpack.c.bf16 %v5786_v34, %v5780_v7  ;;  %v8977_v7 = vld [vmem:[%s14239_s1 + $0xcc] sm:$0xf] }
 0x322   : > { %v3320_v12 = vpop.f32.mrf.mxu2  ;;  %v3318_v55 = vadd.f32 %v3317_v56, %v3219_v10  ;;  %3764 = vmatmul.bf16.gmra.mxu3 %v14690_v51  ;;  %v8260_v56 = vor.u32 %v9076_v40, %v8259_v53  ;;  %v14694_v40 = vld [vmem:[#allocation89_spill] sm:$0xff] }
 0x323   : > { %14689 = vst [vmem:[#allocation88_spill] sm:$0xff] %v11586_v35  ;;  %v14695_v51 = vld [vmem:[#allocation93_spill] sm:$0xff] }
 0x324   : > { %v3122_v18 = vpop.f32.mrf.mxu0  ;;  %v11590_v2 = vadd.f32 %v3416_v13, %v3318_v55  ;;  %v7877_v13 = vld [vmem:[%s14239_s1 + $0xe0] sm:$0xf0]  ;;  %3833 = vmatpush.bf16.msrb.mxu0 %v8260_v56 }
 0x325   : > { %v3123_v16 = vadd.f32 %v3122_v18, %v14691_v47  ;;  %v3419_v1 = vpop.f32.mrf.mxu3  ;;  %v8451_v18 = vld [vmem:[%s14239_s1 + $0x548] sm:$0xf]  ;;  %v7880_v34 = vor.u32 %v8977_v7, %v7877_v13 }
 0x326   : > { %14692 = vst [vmem:[#allocation90_spill] sm:$0xff] %v11590_v2  ;;  %v8452_v55 = vor.u32 %v9124_v57, %v8451_v18  ;;  %v14697_v57 = vld [vmem:[#allocation31_spill] sm:$0xff] }
 0x327   : > { %3467 = vmatmul.bf16.gmra.mxu0 %v14693_v25  ;;  %v3221_v3 = vpop.f32.mrf.mxu1  ;;  %4130 = vmatpush.bf16.msrb.mxu3 %v7880_v34  ;;  %v5792_v7 = vmax.f32 %v3123_v16, 0.0 }
 0x328   : > { %v3222_v47 = vadd.f32 %v3221_v3, %v11201_v50  ;;  %3932 = vmatpush.bf16.msrb.mxu1 %v8452_v55  ;;  %v14698_v55 = vld [vmem:[#allocation94_spill] sm:$0xff] }
 0x32a   : > { %v3322_v10 = vpop.f32.mrf.mxu2  ;;  %v3321_v53 = vadd.f32 %v3320_v12, %v3222_v47  ;;  %8656 = vmatmul.msk.bf16.gmra.mxu1 %vm1007_vm5, %v14694_v40 }
 0x32c   : > { %v3124_v35 = vpop.f32.mrf.mxu0  ;;  %v11615_v43 = vadd.f32 %v3419_v1, %v3321_v53  ;;  %v14700_v1 = vld [vmem:[#allocation29_spill] sm:$0xff] }
 0x32d   : > { %v3125_v25 = vadd.f32 %v3124_v35, %v14695_v51  ;;  %v3421_v3 = vpop.f32.mrf.mxu3 }
 0x32f   : > { %v5798_v13 = vmax.f32 %v3125_v25, 0.0  ;;  %3670 = vmatmul.bf16.gmra.mxu2 %v14604_v37  ;;  %v3223_v2 = vpop.f32.mrf.mxu1 }
 0x330   : > { %v3224_v56 = vadd.f32 %v3223_v2, %v11201_v50  ;;  %v14701_v2 = vld [vmem:[#allocation92_spill] sm:$0xff] }
 0x331   : > { %v11619_v18 = vpack.c.bf16 %v5798_v13, %v5792_v7 }
 0x332   : > { %v3325_v12 = vpop.f32.mrf.mxu2  ;;  %v3323_v47 = vadd.f32 %v3322_v10, %v3224_v56  ;;  %3769 = vmatmul.bf16.gmra.mxu3 %v14697_v57  ;;  %v14702_v10 = vld [vmem:[#allocation96_spill] sm:$0xff] }
 0x333   : > { %14696 = vst [vmem:[#allocation91_spill] sm:$0xff] %v11619_v18 }
 0x334   : > { %v3127_v34 = vpop.f32.mrf.mxu0  ;;  %v11623_v35 = vadd.f32 %v3421_v3, %v3323_v47  ;;  %v14703_v47 = vld [vmem:[#allocation34_spill] sm:$0xff] }
 0x335   : > { %v3128_v40 = vadd.f32 %v3127_v34, %v14698_v55  ;;  %v3424_v51 = vpop.f32.mrf.mxu3 }
 0x336   : > { %14699 = vst [vmem:[#allocation93_spill] sm:$0xff] %v11623_v35 }
 0x337   : > { %3472 = vmatmul.bf16.gmra.mxu0 %v14700_v1  ;;  %v3226_v16 = vpop.f32.mrf.mxu1  ;;  %v5804_v34 = vmax.f32 %v3128_v40, 0.0  ;;  %v8571_v40 = vld [vmem:[%s14239_s1 + $0x638] sm:$0xf] }
 0x338   : > { %v3227_v25 = vadd.f32 %v3226_v16, %v11201_v50 }
 0x33a   : > { %v3327_v53 = vpop.f32.mrf.mxu2  ;;  %v3326_v37 = vadd.f32 %v3325_v12, %v3227_v25  ;;  %8657 = vmatmul.msk.bf16.gmra.mxu1 %vm1007_vm5, %v14701_v2  ;;  %v14705_v25 = vld [vmem:[#allocation36_spill] sm:$0xff] }
 0x33c   : > { %v3129_v7 = vpop.f32.mrf.mxu0  ;;  %v11630_v56 = vadd.f32 %v3424_v51, %v3326_v37  ;;  %v14707_v51 = vld [vmem:[#allocation33_spill] sm:$0xff] }
 0x33d   : > { %v3130_v13 = vadd.f32 %v3129_v7, %v14702_v10  ;;  %v3426_v18 = vpop.f32.mrf.mxu3  ;;  %v9154_v10 = vld [vmem:[%s14239_s1 + $0x64c] sm:$0xf0] }
 0x33f   : > { %v5810_v3 = vmax.f32 %v3130_v13, 0.0  ;;  %3675 = vmatmul.bf16.gmra.mxu2 %v14703_v47  ;;  %v3228_v55 = vpop.f32.mrf.mxu1 }
 0x340   : > { %v3229_v57 = vadd.f32 %v3228_v55, %v11201_v50  ;;  %v8971_v55 = vld [vmem:[%s14239_s1 + $0x9c] sm:$0xf] }
 0x341   : > { %v11634_v1 = vpack.c.bf16 %v5810_v3, %v5804_v34  ;;  %v9070_v3 = vld [vmem:[%s14239_s1 + $0x3ac] sm:$0xf0] }
 0x342   : > { %v3330_v16 = vpop.f32.mrf.mxu2  ;;  %v3328_v12 = vadd.f32 %v3327_v53, %v3229_v57  ;;  %3774 = vmatmul.bf16.gmra.mxu3 %v14705_v25  ;;  %v8572_v57 = vor.u32 %v9154_v10, %v8571_v40  ;;  %v8427_v10 = vld [vmem:[%s14239_s1 + $0x518] sm:$0xf] }
 0x343   : > { %14704 = vst [vmem:[#allocation94_spill] sm:$0xff] %v11634_v1 }
 0x344   : > { %v3132_v2 = vpop.f32.mrf.mxu0  ;;  %v11638_v7 = vadd.f32 %v3426_v18, %v3328_v12  ;;  %4034 = vmatpush.bf16.msrb.mxu2 %v8572_v57  ;;  %v14708_v18 = vld [vmem:[#allocation95_spill] sm:$0xff] }
 0x345   : > { %v3133_v35 = vadd.f32 %v3132_v2, %v11188_v58  ;;  %v3429_v37 = vpop.f32.mrf.mxu3  ;;  %v8235_v2 = vld [vmem:[%s14239_s1 + $0x398] sm:$0xf] }
 0x346   : > { %14706 = vst [vmem:[#allocation96_spill] sm:$0xff] %v11638_v7  ;;  %v8236_v40 = vor.u32 %v9070_v3, %v8235_v2  ;;  %v9412_v7 = vld [vmem:[%s14240_s2] sm:$0x3f] }
 0x347   : > { %3477 = vmatmul.bf16.gmra.mxu0 %v14707_v51  ;;  %v3231_v13 = vpop.f32.mrf.mxu1  ;;  %v5816_v2 = vmax.f32 %v3133_v35, 0.0 }
 0x348   : > { %v3232_v53 = vadd.f32 %v3231_v13, %v11201_v50  ;;  %v9118_v13 = vld [vmem:[%s14239_s1 + $0x52c] sm:$0xf0]  ;;  %3834 = vmatpush.bf16.msrb.mxu0 %v8236_v40 }
 0x349   : > { %v8428_v1 = vor.u32 %v9118_v13, %v8427_v10 }
 0x34a   : > { %v3332_v34 = vpop.f32.mrf.mxu2  ;;  %v3331_v58 = vadd.f32 %v3330_v16, %v3232_v53  ;;  %8658 = vmatmul.msk.bf16.gmra.mxu1 %vm1007_vm5, %v14708_v18  ;;  %v7853_v16 = vld [vmem:[%s14239_s1 + $0xb0] sm:$0xf0] }
 0x34b   : > { %v7856_v53 = vor.u32 %v8971_v55, %v7853_v16  ;;  %3933 = vmatpush.bf16.msrb.mxu1 %v8428_v1  ;;  %v14710_v16 = vld [vmem:[#allocation38_spill] sm:$0xff] }
 0x34c   : > { %v3134_v12 = vpop.f32.mrf.mxu0  ;;  %v11669_v25 = vadd.f32 %v3429_v37, %v3331_v58 }
 0x34d   : > { %v3135_v57 = vadd.f32 %v3134_v12, %v11203_v28  ;;  %v3431_v51 = vpop.f32.mrf.mxu3  ;;  %4131 = vmatpush.bf16.msrb.mxu3 %v7856_v53  ;;  %v11676_v28 = vperm.slane %v9412_v7, 2 }
 0x34f   : > { %v5822_v3 = vmax.f32 %v3135_v57, 0.0  ;;  %3680 = vmatmul.bf16.gmra.mxu2 %v14612_v33  ;;  %v3233_v47 = vpop.f32.mrf.mxu1  ;;  %v14711_v57 = vld [vmem:[#allocation97_spill] sm:$0xff] }
 0x350   : > { %v3234_v18 = vadd.f32 %v3233_v47, %v11201_v50 }
 0x351   : > { %v11678_v55 = vpack.c.bf16 %v5822_v3, %v5816_v2 }
 0x352   : > { %v3641_v37 = vpop.f32.mrf.mxu2  ;;  %v3333_v58 = vadd.f32 %v3332_v34, %v3234_v18  ;;  %3779 = vmatmul.bf16.gmra.mxu3 %v10601_v19 }
 0x353   : > { %14709 = vst [vmem:[#allocation121_spill] sm:$0xff] %v11678_v55  ;;  %v3642_v12 = vadd.f32 %v3641_v37, %v11676_v28  ;;  %v14714_v55 = vld [vmem:[#allocation4_spill] sm:$0xff] }
 0x354   : > { %v3443_v35 = vpop.f32.mrf.mxu0  ;;  %v11683_v1 = vadd.f32 %v3431_v51, %v3333_v58 }
 0x355   : > { %v3444_v40 = vadd.f32 %v3443_v35, %v11210_v6  ;;  %v3740_v50 = vpop.f32.mrf.mxu3 }
 0x356   : > { %v11685_v47 = vadd.f32 %v3740_v50, %v3642_v12 }
 0x357   : > { %3482 = vmatmul.bf16.gmra.mxu0 %v14710_v16  ;;  %v3542_v7 = vpop.f32.mrf.mxu1 }
 0x358   : > { %v3543_v10 = vadd.f32 %v3542_v7, %v3444_v40 }
 0x35a   : > { %v3643_v13 = vpop.f32.mrf.mxu2  ;;  %8659 = vmatmul.msk.bf16.gmra.mxu1 %vm1007_vm5, %v14711_v57  ;;  %v5613_v58 = vmax.f32 %v3543_v10, 0.0 }
 0x35b   : > { %v3644_v18 = vadd.f32 %v3643_v13, %v11676_v28 }
 0x35c   : > { %v3445_v34 = vpop.f32.mrf.mxu0 }
 0x35d   : > { %v3446_v53 = vadd.f32 %v3445_v34, %v11222_v60  ;;  %v3742_v2 = vpop.f32.mrf.mxu3  ;;  %v14713_v34 = vld [vmem:[#allocation42_spill] sm:$0xff] }
 0x35e   : > { %v11692_v6 = vadd.f32 %v3742_v2, %v3644_v18 }
 0x35f   : > { %3685 = vmatmul.bf16.gmra.mxu2 %v10634_v61  ;;  %v3544_v51 = vpop.f32.mrf.mxu1 }
 0x360   : > { %v3545_v3 = vadd.f32 %v3544_v51, %v3446_v53 }
 0x362   : > { %v3646_v37 = vpop.f32.mrf.mxu2  ;;  %v5619_v35 = vmax.f32 %v3545_v3, 0.0  ;;  %3784 = vmatmul.bf16.gmra.mxu3 %v10643_v62 }
 0x363   : > { %v3647_v50 = vadd.f32 %v3646_v37, %v11676_v28  ;;  %v9064_v37 = vld [vmem:[%s14239_s1 + $0x37c] sm:$0xf0] }
 0x364   : > { %v3448_v12 = vpop.f32.mrf.mxu0  ;;  %v11696_v40 = vpack.c.bf16 %v5619_v35, %v5613_v58  ;;  %v8965_v58 = vld [vmem:[%s14239_s1 + $0x6c] sm:$0xf] }
 0x365   : > { %v3449_v7 = vadd.f32 %v3448_v12, %v11235_v5  ;;  %v3745_v60 = vpop.f32.mrf.mxu3  ;;  %v8211_v5 = vld [vmem:[%s14239_s1 + $0x368] sm:$0xf] }
 0x366   : > { %14712 = vst [vmem:[#allocation122_spill] sm:$0xff] %v11696_v40  ;;  %v11700_v13 = vadd.f32 %v3745_v60, %v3647_v50  ;;  %v8212_v12 = vor.u32 %v9064_v37, %v8211_v5  ;;  %v7829_v50 = vld [vmem:[%s14239_s1 + $0x80] sm:$0xf0]  ;;  %v8403_v60 = vld [vmem:[%s14239_s1 + $0x4e8] sm:$0xf] }
 0x367   : > { %3487 = vmatmul.bf16.gmra.mxu0 %v14713_v34  ;;  %v3547_v18 = vpop.f32.mrf.mxu1 }
 0x368   : > { %v3548_v2 = vadd.f32 %v3547_v18, %v3449_v7  ;;  %v9112_v18 = vld [vmem:[%s14239_s1 + $0x4fc] sm:$0xf0]  ;;  %3835 = vmatpush.bf16.msrb.mxu0 %v8212_v12  ;;  %v14716_v12 = vld [vmem:[#allocation45_spill] sm:$0xff] }
 0x36a   : > { %v3648_v53 = vpop.f32.mrf.mxu2  ;;  %8660 = vmatmul.msk.bf16.gmra.mxu1 %vm1007_vm5, %v11219_v9 }
 0x36b   : > { %v3649_v51 = vadd.f32 %v3648_v53, %v11676_v28 }
 0x36c   : > { %v3450_v10 = vpop.f32.mrf.mxu0 }
 0x36d   : > { %v3451_v3 = vadd.f32 %v3450_v10, %v11259_v38  ;;  %v3747_v35 = vpop.f32.mrf.mxu3  ;;  %v7832_v38 = vor.u32 %v8965_v58, %v7829_v50  ;;  %v8404_v10 = vor.u32 %v9112_v18, %v8403_v60 }
 0x36e   : > { %v11719_v7 = vadd.f32 %v3747_v35, %v3649_v51  ;;  %v5625_v51 = vmax.f32 %v3548_v2, 0.0 }
 0x36f   : > { %3690 = vmatmul.bf16.gmra.mxu2 %v14619_v17  ;;  %v3549_v53 = vpop.f32.mrf.mxu1  ;;  %4132 = vmatpush.bf16.msrb.mxu3 %v7832_v38 }
 0x370   : > { %v3550_v5 = vadd.f32 %v3549_v53, %v3451_v3  ;;  %3934 = vmatpush.bf16.msrb.mxu1 %v8404_v10 }
 0x372   : > { %v3651_v37 = vpop.f32.mrf.mxu2  ;;  %v5631_v35 = vmax.f32 %v3550_v5, 0.0  ;;  %3789 = vmatmul.bf16.gmra.mxu3 %v14714_v55 }
 0x373   : > { %v3652_v50 = vadd.f32 %v3651_v37, %v11676_v28 }
 0x374   : > { %v3453_v58 = vpop.f32.mrf.mxu0  ;;  %v11731_v62 = vpack.c.bf16 %v5631_v35, %v5625_v51 }
 0x375   : > { %v3454_v40 = vadd.f32 %v3453_v58, %v11266_v27  ;;  %v3750_v19 = vpop.f32.mrf.mxu3 }
 0x376   : > { %14715 = vst [vmem:[#allocation123_spill] sm:$0xff] %v11731_v62  ;;  %v11733_v17 = vadd.f32 %v3750_v19, %v3652_v50 }
 0x377   : > { %3492 = vmatmul.bf16.gmra.mxu0 %v14716_v12  ;;  %v3552_v3 = vpop.f32.mrf.mxu1 }
 0x378   : > { %v3553_v38 = vadd.f32 %v3552_v3, %v3454_v40  ;;  %v14717_v40 = vld [vmem:[#allocation50_spill] sm:$0xff]  ;;  %v14718_v3 = vld [vmem:[#allocation52_spill] sm:$0xff] }
 0x37a   : > { %v3653_v60 = vpop.f32.mrf.mxu2  ;;  %8661 = vmatmul.msk.bf16.gmra.mxu1 %vm1007_vm5, %v11256_v26  ;;  %v5637_v51 = vmax.f32 %v3553_v38, 0.0 }
 0x37b   : > { %v3654_v18 = vadd.f32 %v3653_v60, %v11676_v28 }
 0x37c   : > { %v3455_v2 = vpop.f32.mrf.mxu0 }
 0x37d   : > { %v3456_v53 = vadd.f32 %v3455_v2, %v11278_v46  ;;  %v3752_v10 = vpop.f32.mrf.mxu3 }
 0x37e   : > { %v11740_v27 = vadd.f32 %v3752_v10, %v3654_v18  ;;  %v14721_v18 = vld [vmem:[#allocation48_spill] sm:$0xff] }
 0x37f   : > { %3695 = vmatmul.bf16.gmra.mxu2 %v14624_v29  ;;  %v3554_v19 = vpop.f32.mrf.mxu1 }
 0x380   : > { %v3555_v5 = vadd.f32 %v3554_v19, %v3456_v53  ;;  %v14722_v19 = vld [vmem:[#allocation103_spill] sm:$0xff] }
 0x382   : > { %v3656_v37 = vpop.f32.mrf.mxu2  ;;  %v5643_v35 = vmax.f32 %v3555_v5, 0.0  ;;  %3794 = vmatmul.bf16.gmra.mxu3 %v14717_v40 }
 0x383   : > { %v3657_v50 = vadd.f32 %v3656_v37, %v11676_v28 }
 0x384   : > { %v3458_v58 = vpop.f32.mrf.mxu0  ;;  %v11746_v60 = vpack.c.bf16 %v5643_v35, %v5637_v51  ;;  %v8547_v51 = vld [vmem:[%s14239_s1 + $0x608] sm:$0xf] }
 0x385   : > { %v3459_v62 = vadd.f32 %v3458_v58, %v14718_v3  ;;  %v3755_v46 = vpop.f32.mrf.mxu3 }
 0x386   : > { %14719 = vst [vmem:[#allocation52_spill] sm:$0xff] %v11746_v60  ;;  %v11748_v2 = vadd.f32 %v3755_v46, %v3657_v50 }
 0x387   : > { %3497 = vmatmul.bf16.gmra.mxu0 %v14721_v18  ;;  %v3557_v10 = vpop.f32.mrf.mxu1 }
 0x388   : > { %14720 = vst [vmem:[#allocation124_spill] sm:$0xff] %v11748_v2  ;;  %v3558_v55 = vadd.f32 %v3557_v10, %v3459_v62  ;;  %v9148_v62 = vld [vmem:[%s14239_s1 + $0x61c] sm:$0xf0] }
 0x389   : > { %v8548_v50 = vor.u32 %v9148_v62, %v8547_v51  ;;  %v8379_v51 = vld [vmem:[%s14239_s1 + $0x4b8] sm:$0xf] }
 0x38a   : > { %v3658_v53 = vpop.f32.mrf.mxu2  ;;  %8662 = vmatmul.msk.bf16.gmra.mxu1 %vm1007_vm5, %v14722_v19  ;;  %v5649_v10 = vmax.f32 %v3558_v55, 0.0  ;;  %v7805_v55 = vld [vmem:[%s14239_s1 + $0x50] sm:$0xf0] }
 0x38b   : > { %v3659_v5 = vadd.f32 %v3658_v53, %v11676_v28  ;;  %4035 = vmatpush.bf16.msrb.mxu2 %v8548_v50  ;;  %v14724_v53 = vld [vmem:[#allocation55_spill] sm:$0xff] }
 0x38c   : > { %v3460_v38 = vpop.f32.mrf.mxu0 }
 0x38d   : > { %v3461_v37 = vadd.f32 %v3460_v38, %v11321_v0  ;;  %v3757_v40 = vpop.f32.mrf.mxu3  ;;  %v9058_v38 = vld [vmem:[%s14239_s1 + $0x34c] sm:$0xf0] }
 0x38e   : > { %v11755_v58 = vadd.f32 %v3757_v40, %v3659_v5  ;;  %v8187_v40 = vld [vmem:[%s14239_s1 + $0x338] sm:$0xf] }
 0x38f   : > { %3700 = vmatmul.bf16.gmra.mxu2 %v10762_v30  ;;  %v3559_v35 = vpop.f32.mrf.mxu1  ;;  %v8188_v60 = vor.u32 %v9058_v38, %v8187_v40 }
 0x390   : > { %14723 = vst [vmem:[#allocation125_spill] sm:$0xff] %v11755_v58  ;;  %v3560_v3 = vadd.f32 %v3559_v35, %v3461_v37  ;;  %v8959_v37 = vld [vmem:[%s14239_s1 + $0x3c] sm:$0xf] }
 0x391   : > { %v7808_v50 = vor.u32 %v8959_v37, %v7805_v55  ;;  %3836 = vmatpush.bf16.msrb.mxu0 %v8188_v60  ;;  %v14726_v58 = vld [vmem:[#allocation53_spill] sm:$0xff] }
 0x392   : > { %v3661_v46 = vpop.f32.mrf.mxu2  ;;  %v5655_v0 = vmax.f32 %v3560_v3, 0.0  ;;  %3799 = vmatmul.bf16.gmra.mxu3 %v14724_v53  ;;  %v9106_v3 = vld [vmem:[%s14239_s1 + $0x4cc] sm:$0xf0] }
 0x393   : > { %v3662_v62 = vadd.f32 %v3661_v46, %v11676_v28  ;;  %v8380_v53 = vor.u32 %v9106_v3, %v8379_v51  ;;  %4133 = vmatpush.bf16.msrb.mxu3 %v7808_v50 }
 0x394   : > { %v3463_v5 = vpop.f32.mrf.mxu0  ;;  %v11785_v40 = vpack.c.bf16 %v5655_v0, %v5649_v10 }
 0x395   : > { %v3464_v35 = vadd.f32 %v3463_v5, %v11328_v20  ;;  %v3760_v38 = vpop.f32.mrf.mxu3  ;;  %3935 = vmatpush.bf16.msrb.mxu1 %v8380_v53 }
 0x396   : > { %14725 = vst [vmem:[#allocation126_spill] sm:$0xff] %v11785_v40  ;;  %v11787_v30 = vadd.f32 %v3760_v38, %v3662_v62  ;;  %v14728_v38 = vld [vmem:[#allocation57_spill] sm:$0xff] }
 0x397   : > { %3502 = vmatmul.bf16.gmra.mxu0 %v14726_v58  ;;  %v3562_v18 = vpop.f32.mrf.mxu1 }
 0x398   : > { %v3563_v46 = vadd.f32 %v3562_v18, %v3464_v35 }
 0x39a   : > { %v3663_v2 = vpop.f32.mrf.mxu2  ;;  %8663 = vmatmul.msk.bf16.gmra.mxu1 %vm1007_vm5, %v11309_v23  ;;  %v5661_v62 = vmax.f32 %v3563_v46, 0.0 }
 0x39b   : > { %v3664_v5 = vadd.f32 %v3663_v2, %v11676_v28 }
 0x39c   : > { %v3465_v20 = vpop.f32.mrf.mxu0 }
 0x39d   : > { %v3466_v10 = vadd.f32 %v3465_v20, %v11340_v41  ;;  %v3762_v0 = vpop.f32.mrf.mxu3 }
 0x39e   : > { %v11794_v60 = vadd.f32 %v3762_v0, %v3664_v5 }
 0x39f   : > { %3705 = vmatmul.bf16.gmra.mxu2 %v14631_v45  ;;  %v3564_v37 = vpop.f32.mrf.mxu1 }
 0x3a0   : > { %v3565_v55 = vadd.f32 %v3564_v37, %v3466_v10 }
 0x3a2   : > { %v3666_v51 = vpop.f32.mrf.mxu2  ;;  %v5667_v53 = vmax.f32 %v3565_v55, 0.0  ;;  %3804 = vmatmul.bf16.gmra.mxu3 %v10810_v22  ;;  %v14735_v22 = vld [vmem:[#allocation70_spill] sm:$0xff] }
 0x3a3   : > { %v3667_v35 = vadd.f32 %v3666_v51, %v11676_v28 }
 0x3a4   : > { %v3468_v18 = vpop.f32.mrf.mxu0  ;;  %v11800_v2 = vpack.c.bf16 %v5667_v53, %v5661_v62 }
 0x3a5   : > { %v3469_v50 = vadd.f32 %v3468_v18, %v11347_v59  ;;  %v3765_v41 = vpop.f32.mrf.mxu3 }
 0x3a6   : > { %14727 = vst [vmem:[#allocation127_spill] sm:$0xff] %v11800_v2  ;;  %v11802_v3 = vadd.f32 %v3765_v41, %v3667_v35 }
 0x3a7   : > { %3507 = vmatmul.bf16.gmra.mxu0 %v14728_v38  ;;  %v3567_v20 = vpop.f32.mrf.mxu1 }
 0x3a8   : > { %v3568_v5 = vadd.f32 %v3567_v20, %v3469_v50  ;;  %v14729_v50 = vld [vmem:[#allocation64_spill] sm:$0xff] }
 0x3aa   : > { %v3668_v10 = vpop.f32.mrf.mxu2  ;;  %8664 = vmatmul.msk.bf16.gmra.mxu1 %vm1007_vm5, %v11337_v39  ;;  %v5673_v18 = vmax.f32 %v3568_v5, 0.0  ;;  %v8953_v5 = vld [vmem:[%s14239_s1 + $0xc] sm:$0xf] }
 0x3ab   : > { %v3669_v0 = vadd.f32 %v3668_v10, %v11676_v28  ;;  %v9052_v10 = vld [vmem:[%s14239_s1 + $0x31c] sm:$0xf0] }
 0x3ac   : > { %v3470_v46 = vpop.f32.mrf.mxu0 }
 0x3ad   : > { %v3471_v37 = vadd.f32 %v3470_v46, %v11365_v15  ;;  %v3767_v55 = vpop.f32.mrf.mxu3  ;;  %v8163_v15 = vld [vmem:[%s14239_s1 + $0x308] sm:$0xf] }
 0x3ae   : > { %v11809_v59 = vadd.f32 %v3767_v55, %v3669_v0 }
 0x3af   : > { %3710 = vmatmul.bf16.gmra.mxu2 %v14636_v14  ;;  %v3569_v51 = vpop.f32.mrf.mxu1 }
 0x3b0   : > { %v3570_v62 = vadd.f32 %v3569_v51, %v3471_v37  ;;  %v8164_v37 = vor.u32 %v9052_v10, %v8163_v15  ;;  %v14731_v51 = vld [vmem:[#allocation61_spill] sm:$0xff] }
 0x3b2   : > { %v3671_v53 = vpop.f32.mrf.mxu2  ;;  %v5679_v35 = vmax.f32 %v3570_v62, 0.0  ;;  %3809 = vmatmul.bf16.gmra.mxu3 %v14729_v50  ;;  %3837 = vmatpush.bf16.msrb.mxu0 %v8164_v37 }
 0x3b3   : > { %v3672_v20 = vadd.f32 %v3671_v53, %v11676_v28  ;;  %v8355_v53 = vld [vmem:[%s14239_s1 + $0x488] sm:$0xf] }
 0x3b4   : > { %v3473_v41 = vpop.f32.mrf.mxu0  ;;  %v11824_v46 = vpack.c.bf16 %v5679_v35, %v5673_v18  ;;  %v9100_v18 = vld [vmem:[%s14239_s1 + $0x49c] sm:$0xf0] }
 0x3b5   : > { %v3474_v2 = vadd.f32 %v3473_v41, %v11384_v11  ;;  %v3770_v0 = vpop.f32.mrf.mxu3  ;;  %v7781_v11 = vld [vmem:[%s14239_s1 + $0x20] sm:$0xf0]  ;;  %v8356_v41 = vor.u32 %v9100_v18, %v8355_v53  ;;  %v14734_v18 = vld [vmem:[#allocation68_spill] sm:$0xff] }
 0x3b6   : > { %14730 = vst [vmem:[#allocation128_spill] sm:$0xff] %v11824_v46  ;;  %v11829_v55 = vadd.f32 %v3770_v0, %v3672_v20  ;;  %v7784_v62 = vor.u32 %v8953_v5, %v7781_v11  ;;  %v14732_v20 = vld [vmem:[#allocation108_spill] sm:$0xff] }
 0x3b7   : > { %3512 = vmatmul.bf16.gmra.mxu0 %v14731_v51  ;;  %v3572_v35 = vpop.f32.mrf.mxu1  ;;  %3936 = vmatpush.bf16.msrb.mxu1 %v8356_v41 }
 0x3b8   : > { %v3573_v15 = vadd.f32 %v3572_v35, %v3474_v2  ;;  %4134 = vmatpush.bf16.msrb.mxu3 %v7784_v62 }
 0x3ba   : > { %v3673_v10 = vpop.f32.mrf.mxu2  ;;  %8665 = vmatmul.msk.bf16.gmra.mxu1 %vm1007_vm5, %v14732_v20  ;;  %v5685_v2 = vmax.f32 %v3573_v15, 0.0 }
 0x3bb   : > { %v3674_v5 = vadd.f32 %v3673_v10, %v11676_v28 }
 0x3bc   : > { %v3475_v0 = vpop.f32.mrf.mxu0 }
 0x3bd   : > { %v3476_v11 = vadd.f32 %v3475_v0, %v11396_v44  ;;  %v3772_v46 = vpop.f32.mrf.mxu3 }
 0x3be   : > { %v11842_v40 = vadd.f32 %v3772_v46, %v3674_v5  ;;  %v14738_v46 = vld [vmem:[#allocation66_spill] sm:$0xff] }
 0x3bf   : > { %3715 = vmatmul.bf16.gmra.mxu2 %v14640_v49  ;;  %v3574_v50 = vpop.f32.mrf.mxu1 }
 0x3c0   : > { %14733 = vst [vmem:[#allocation129_spill] sm:$0xff] %v11842_v40  ;;  %v3575_v37 = vadd.f32 %v3574_v50, %v3476_v11  ;;  %v14739_v11 = vld [vmem:[#allocation110_spill] sm:$0xff] }
 0x3c2   : > { %v3676_v53 = vpop.f32.mrf.mxu2  ;;  %v5691_v62 = vmax.f32 %v3575_v37, 0.0  ;;  %3814 = vmatmul.bf16.gmra.mxu3 %v14734_v18  ;;  %v14740_v18 = vld [vmem:[#allocation113_spill] sm:$0xff] }
 0x3c3   : > { %v3677_v41 = vadd.f32 %v3676_v53, %v11676_v28 }
 0x3c4   : > { %v3478_v35 = vpop.f32.mrf.mxu0  ;;  %v11848_v10 = vpack.c.bf16 %v5691_v62, %v5685_v2  ;;  %v14741_v2 = vld [vmem:[#allocation72_spill] sm:$0xff] }
 0x3c5   : > { %v3479_v51 = vadd.f32 %v3478_v35, %v14735_v22  ;;  %v3775_v44 = vpop.f32.mrf.mxu3 }
 0x3c6   : > { %14736 = vst [vmem:[#allocation70_spill] sm:$0xff] %v11848_v10  ;;  %v11850_v0 = vadd.f32 %v3775_v44, %v3677_v41 }
 0x3c7   : > { %3517 = vmatmul.bf16.gmra.mxu0 %v14738_v46  ;;  %v3577_v5 = vpop.f32.mrf.mxu1 }
 0x3c8   : > { %14737 = vst [vmem:[#allocation130_spill] sm:$0xff] %v11850_v0  ;;  %v3578_v49 = vadd.f32 %v3577_v5, %v3479_v51  ;;  %v14742_v51 = vld [vmem:[#allocation73_spill] sm:$0xff] }
 0x3ca   : > { %v3678_v50 = vpop.f32.mrf.mxu2  ;;  %8666 = vmatmul.msk.bf16.gmra.mxu1 %vm1007_vm5, %v14739_v11  ;;  %v5697_v44 = vmax.f32 %v3578_v49, 0.0  ;;  %v8525_v49 = vld [vmem:[%s14239_s1 + $0x5f0] sm:$0xf0] }
 0x3cb   : > { %v3679_v37 = vadd.f32 %v3678_v50, %v11676_v28 }
 0x3cc   : > { %v3480_v15 = vpop.f32.mrf.mxu0 }
 0x3cd   : > { %v3481_v53 = vadd.f32 %v3480_v15, %v14740_v18  ;;  %v3777_v40 = vpop.f32.mrf.mxu3 }
 0x3ce   : > { %v11857_v22 = vadd.f32 %v3777_v40, %v3679_v37  ;;  %v14745_v40 = vld [vmem:[#allocation71_spill] sm:$0xff]  ;;  %v9139_v37 = vld [vmem:[%s14239_s1 + $0x5dc] sm:$0xf] }
 0x3cf   : > { %3720 = vmatmul.bf16.gmra.mxu2 %v14741_v2  ;;  %v3579_v62 = vpop.f32.mrf.mxu1 }
 0x3d0   : > { %v3580_v35 = vadd.f32 %v3579_v62, %v3481_v53  ;;  %v8528_v62 = vor.u32 %v9139_v37, %v8525_v49  ;;  %v9091_v37 = vld [vmem:[%s14239_s1 + $0x45c] sm:$0xf] }
 0x3d2   : > { %v3681_v41 = vpop.f32.mrf.mxu2  ;;  %v5703_v10 = vmax.f32 %v3580_v35, 0.0  ;;  %3819 = vmatmul.bf16.gmra.mxu3 %v14742_v51  ;;  %4424 = vmatpush.bf16.msra.mxu2 %v8528_v62 }
 0x3d3   : > { %v3682_v46 = vadd.f32 %v3681_v41, %v11676_v28 }
 0x3d4   : > { %v3483_v5 = vpop.f32.mrf.mxu0  ;;  %v11863_v50 = vpack.c.bf16 %v5703_v10, %v5697_v44  ;;  %v9043_v10 = vld [vmem:[%s14239_s1 + $0x2dc] sm:$0xf] }
 0x3d5   : > { %v3484_v0 = vadd.f32 %v3483_v5, %v11446_v48  ;;  %v3780_v18 = vpop.f32.mrf.mxu3  ;;  %v14746_v48 = vld [vmem:[#allocation112_spill] sm:$0xff] }
 0x3d6   : > { %14743 = vst [vmem:[#allocation113_spill] sm:$0xff] %v11863_v50  ;;  %v11865_v15 = vadd.f32 %v3780_v18, %v3682_v46  ;;  %v8141_v46 = vld [vmem:[%s14239_s1 + $0x2f0] sm:$0xf0]  ;;  %v9163_v18 = vld [vmem:[%s14239_s1 + $0x69c] sm:$0xf] }
 0x3d7   : > { %3522 = vmatmul.bf16.gmra.mxu0 %v14745_v40  ;;  %v3582_v53 = vpop.f32.mrf.mxu1  ;;  %v8144_v5 = vor.u32 %v9043_v10, %v8141_v46  ;;  %v8333_v10 = vld [vmem:[%s14239_s1 + $0x470] sm:$0xf0] }
 0x3d8   : > { %14744 = vst [vmem:[#allocation131_spill] sm:$0xff] %v11865_v15  ;;  %v3583_v35 = vadd.f32 %v3582_v53, %v3484_v0  ;;  %v8621_v0 = vld [vmem:[%s14239_s1 + $0x6b0] sm:$0xf0]  ;;  %v8336_v50 = vor.u32 %v9091_v37, %v8333_v10 }
 0x3d9   : > { %v8624_v62 = vor.u32 %v9163_v18, %v8621_v0  ;;  %4226 = vmatpush.bf16.msra.mxu0 %v8144_v5 }
 0x3da   : > { %v3683_v41 = vpop.f32.mrf.mxu2  ;;  %8667 = vmatmul.msk.bf16.gmra.mxu1 %vm1007_vm5, %v14746_v48 }
 0x3db   : > { %v3684_v49 = vadd.f32 %v3683_v41, %v11676_v28  ;;  %4527 = vmatpush.bf16.msra.mxu3 %v8624_v62  ;;  %4325 = vmatpush.bf16.msra.mxu1 %v8336_v50  ;;  %v5709_v41 = vmax.f32 %v3583_v35, 0.0 }
 0x3dc   : > { %v3485_v44 = vpop.f32.mrf.mxu0 }
 0x3dd   : > { %v3486_v53 = vadd.f32 %v3485_v44, %v11458_v4  ;;  %v3782_v46 = vpop.f32.mrf.mxu3 }
 0x3de   : > { %v11896_v51 = vadd.f32 %v3782_v46, %v3684_v49  ;;  %v14748_v49 = vld [vmem:[#allocation75_spill] sm:$0xff] }
 0x3df   : > { %3725 = vmatmul.bf16.gmra.mxu2 %v14651_v52  ;;  %v3584_v40 = vpop.f32.mrf.mxu1 }
 0x3e0   : > { %v3585_v15 = vadd.f32 %v3584_v40, %v3486_v53 }
 0x3e2   : > { %v3686_v2 = vpop.f32.mrf.mxu2  ;;  %v5715_v48 = vmax.f32 %v3585_v15, 0.0  ;;  %3824 = vmatmul.bf16.gmra.mxu3 %v14646_v54 }
 0x3e3   : > { %v3687_v44 = vadd.f32 %v3686_v2, %v11676_v28 }
 0x3e4   : > { %v3488_v4 = vpop.f32.mrf.mxu0  ;;  %v11902_v5 = vpack.c.bf16 %v5715_v48, %v5709_v41 }
 0x3e5   : > { %v3489_v18 = vadd.f32 %v3488_v4, %v11465_v24  ;;  %v3785_v0 = vpop.f32.mrf.mxu3 }
 0x3e6   : > { %14747 = vst [vmem:[#allocation132_spill] sm:$0xff] %v11902_v5  ;;  %v11904_v37 = vadd.f32 %v3785_v0, %v3687_v44  ;;  %v14750_v44 = vld [vmem:[#allocation5_spill] sm:$0xff] }
 0x3e7   : > { %3527 = vmatmul.bf16.gmra.mxu0 %v14748_v49  ;;  %v3587_v62 = vpop.f32.mrf.mxu1 }
 0x3e8   : > { %v3588_v50 = vadd.f32 %v3587_v62, %v3489_v18  ;;  %v14751_v62 = vld [vmem:[#allocation116_spill] sm:$0xff] }
 0x3ea   : > { %v3688_v40 = vpop.f32.mrf.mxu2  ;;  %8668 = vmatmul.msk.bf16.gmra.mxu1 %vm1007_vm5, %v11455_v31  ;;  %v5721_v41 = vmax.f32 %v3588_v50, 0.0  ;;  %v9133_v50 = vld [vmem:[%s14239_s1 + $0x5ac] sm:$0xf] }
 0x3eb   : > { %v3689_v35 = vadd.f32 %v3688_v40, %v11676_v28 }
 0x3ec   : > { %v3490_v15 = vpop.f32.mrf.mxu0 }
 0x3ed   : > { %v3491_v2 = vadd.f32 %v3490_v15, %v11473_v63  ;;  %v3787_v53 = vpop.f32.mrf.mxu3 }
 0x3ee   : > { %v11911_v24 = vadd.f32 %v3787_v53, %v3689_v35  ;;  %v14754_v35 = vld [vmem:[#allocation2_spill] sm:$0xff] }
 0x3ef   : > { %8669 = vmatmul.msk.bf16.vlgmr.msrb.gmra.mxu2 %vm1007_vm5, %v14656_v42  ;;  %v3589_v48 = vpop.f32.mrf.mxu1 }
 0x3f0   : > { %14749 = vst [vmem:[#allocation133_spill] sm:$0xff] %v11911_v24  ;;  %v3590_v10 = vadd.f32 %v3589_v48, %v3491_v2  ;;  %v14755_v48 = vld [vmem:[#allocation3_spill] sm:$0xff] }
 0x3f1   : > { %v14763_v24 = vld [vmem:[#allocation7_spill] sm:$0xff] }
 0x3f2   : > { %v3691_v46 = vpop.f32.mrf.mxu2  ;;  %v5727_v4 = vmax.f32 %v3590_v10, 0.0  ;;  %4135 = vmatmul.bf16.vlgmr.msrb.gmra.mxu3 %v14750_v44  ;;  %v8501_v10 = vld [vmem:[%s14239_s1 + $0x5c0] sm:$0xf0]  ;;  %v14758_v44 = vld [vmem:[#allocation79_spill] sm:$0xff] }
 0x3f3   : > { %v3692_v0 = vadd.f32 %v3691_v46, %v11676_v28 }
 0x3f4   : > { %v3493_v18 = vpop.f32.mrf.mxu0  ;;  %v11918_v5 = vpack.c.bf16 %v5727_v4, %v5721_v41  ;;  %v8504_v41 = vor.u32 %v9133_v50, %v8501_v10  ;;  %v8309_v50 = vld [vmem:[%s14239_s1 + $0x440] sm:$0xf0] }
 0x3f5   : > { %v3494_v40 = vadd.f32 %v3493_v18, %v14751_v62  ;;  %v3790_v63 = vpop.f32.mrf.mxu3  ;;  %v14756_v18 = vld [vmem:[#allocation80_spill] sm:$0xff]  ;;  %v9037_v62 = vld [vmem:[%s14239_s1 + $0x2ac] sm:$0xf] }
 0x3f6   : > { %14752 = vst [vmem:[#allocation116_spill] sm:$0xff] %v11918_v5  ;;  %v11920_v15 = vadd.f32 %v3790_v63, %v3692_v0  ;;  %4425 = vmatpush.bf16.msra.mxu2 %v8504_v41 }
 0x3f7   : > { %3838 = vmatmul.bf16.vlgmr.msrb.gmra.mxu0 %v14754_v35  ;;  %v3592_v53 = vpop.f32.mrf.mxu1 }
 0x3f8   : > { %14753 = vst [vmem:[#allocation134_spill] sm:$0xff] %v11920_v15  ;;  %v3593_v54 = vadd.f32 %v3592_v53, %v3494_v40  ;;  %v8117_v40 = vld [vmem:[%s14239_s1 + $0x2c0] sm:$0xf0] }
 0x3f9   : > { %v8120_v53 = vor.u32 %v9037_v62, %v8117_v40  ;;  %v14759_v62 = vld [vmem:[#allocation10_spill] sm:$0xff] }
 0x3fa   : > { %v3693_v2 = vpop.f32.mrf.mxu2  ;;  %3937 = vmatmul.bf16.vlgmr.msrb.gmra.mxu1 %v14755_v48  ;;  %v5733_v41 = vmax.f32 %v3593_v54, 0.0 }
 0x3fb   : > { %v3694_v4 = vadd.f32 %v3693_v2, %v11676_v28  ;;  %v9085_v2 = vld [vmem:[%s14239_s1 + $0x42c] sm:$0xf]  ;;  %4227 = vmatpush.bf16.msra.mxu0 %v8120_v53 }
 0x3fc   : > { %v3495_v46 = vpop.f32.mrf.mxu0 }
 0x3fd   : > { %v3496_v0 = vadd.f32 %v3495_v46, %v14756_v18  ;;  %v3792_v63 = vpop.f32.mrf.mxu3  ;;  %v8312_v46 = vor.u32 %v9085_v2, %v8309_v50  ;;  %v14764_v50 = vld [vmem:[#allocation9_spill] sm:$0xff] }
 0x3fe   : > { %v11938_v5 = vadd.f32 %v3792_v63, %v3694_v4 }
 0x3ff   : > { %8670 = vmatmul.msk.bf16.gmra.mxu2 %vm1007_vm5, %v14758_v44  ;;  %v3594_v10 = vpop.f32.mrf.mxu1  ;;  %4326 = vmatpush.bf16.msra.mxu1 %v8312_v46  ;;  %v14760_v44 = vld [vmem:[#allocation82_spill] sm:$0xff]  ;;  %v14765_v46 = vld [vmem:[#allocation83_spill] sm:$0xff] }
 0x400   : > { %14757 = vst [vmem:[#allocation80_spill] sm:$0xff] %v11938_v5  ;;  %v3595_v18 = vadd.f32 %v3594_v10, %v3496_v0 }
 0x402   : > { %v3696_v35 = vpop.f32.mrf.mxu2  ;;  %v5739_v4 = vmax.f32 %v3595_v18, 0.0  ;;  %4140 = vmatmul.bf16.gmra.mxu3 %v14759_v62 }
 0x403   : > { %v3697_v63 = vadd.f32 %v3696_v35, %v11676_v28 }
 0x404   : > { %v3498_v40 = vpop.f32.mrf.mxu0  ;;  %v11951_v15 = vpack.c.bf16 %v5739_v4, %v5733_v41 }
 0x405   : > { %v3499_v5 = vadd.f32 %v3498_v40, %v14760_v44  ;;  %v3795_v42 = vpop.f32.mrf.mxu3  ;;  %v14767_v44 = vld [vmem:[#allocation81_spill] sm:$0xff] }
 0x406   : > { %14761 = vst [vmem:[#allocation82_spill] sm:$0xff] %v11951_v15  ;;  %v11953_v48 = vadd.f32 %v3795_v42, %v3697_v63 }
 0x407   : > { %3843 = vmatmul.bf16.gmra.mxu0 %v14763_v24  ;;  %v3597_v53 = vpop.f32.mrf.mxu1  ;;  %v14769_v24 = vld [vmem:[#allocation119_spill] sm:$0xff] }
 0x408   : > { %14762 = vst [vmem:[#allocation135_spill] sm:$0xff] %v11953_v48  ;;  %v3598_v0 = vadd.f32 %v3597_v53, %v3499_v5  ;;  %v14768_v5 = vld [vmem:[#allocation14_spill] sm:$0xff] }
 0x40a   : > { %v3698_v2 = vpop.f32.mrf.mxu2  ;;  %3942 = vmatmul.bf16.gmra.mxu1 %v14764_v50  ;;  %v5745_v40 = vmax.f32 %v3598_v0, 0.0 }
 0x40b   : > { %v3699_v10 = vadd.f32 %v3698_v2, %v11676_v28 }
 0x40c   : > { %v3500_v54 = vpop.f32.mrf.mxu0 }
 0x40d   : > { %v3501_v18 = vadd.f32 %v3500_v54, %v14765_v46  ;;  %v3797_v35 = vpop.f32.mrf.mxu3  ;;  %v14771_v46 = vld [vmem:[#allocation12_spill] sm:$0xff] }
 0x40e   : > { %v11959_v62 = vadd.f32 %v3797_v35, %v3699_v10 }
 0x40f   : > { %8671 = vmatmul.msk.bf16.gmra.mxu2 %vm1007_vm5, %v14767_v44  ;;  %v3599_v42 = vpop.f32.mrf.mxu1 }
 0x410   : > { %14766 = vst [vmem:[#allocation83_spill] sm:$0xff] %v11959_v62  ;;  %v3600_v41 = vadd.f32 %v3599_v42, %v3501_v18  ;;  %v14772_v42 = vld [vmem:[#allocation13_spill] sm:$0xff] }
 0x412   : > { %v3701_v4 = vpop.f32.mrf.mxu2  ;;  %v5751_v63 = vmax.f32 %v3600_v41, 0.0  ;;  %4145 = vmatmul.bf16.gmra.mxu3 %v14768_v5 }
 0x413   : > { %v3702_v15 = vadd.f32 %v3701_v4, %v11676_v28 }
 0x414   : > { %v3503_v53 = vpop.f32.mrf.mxu0  ;;  %v11966_v48 = vpack.c.bf16 %v5751_v63, %v5745_v40 }
 0x415   : > { %v3504_v2 = vadd.f32 %v3503_v53, %v14769_v24  ;;  %v3800_v54 = vpop.f32.mrf.mxu3  ;;  %v9127_v24 = vld [vmem:[%s14239_s1 + $0x57c] sm:$0xf] }
 0x416   : > { %14770 = vst [vmem:[#allocation119_spill] sm:$0xff] %v11966_v48  ;;  %v11968_v10 = vadd.f32 %v3800_v54, %v3702_v15  ;;  %v8477_v15 = vld [vmem:[%s14239_s1 + $0x590] sm:$0xf0] }
 0x417   : > { %3848 = vmatmul.bf16.gmra.mxu0 %v14771_v46  ;;  %v3602_v35 = vpop.f32.mrf.mxu1  ;;  %v8480_v63 = vor.u32 %v9127_v24, %v8477_v15  ;;  %v9079_v24 = vld [vmem:[%s14239_s1 + $0x3fc] sm:$0xf] }
 0x418   : > { %v3603_v44 = vadd.f32 %v3602_v35, %v3504_v2  ;;  %v14774_v35 = vld [vmem:[#allocation18_spill] sm:$0xff] }
 0x419   : > { %4426 = vmatpush.bf16.msra.mxu2 %v8480_v63 }
 0x41a   : > { %v3703_v18 = vpop.f32.mrf.mxu2  ;;  %3947 = vmatmul.bf16.gmra.mxu1 %v14772_v42 }
 0x41b   : > { %v3704_v41 = vadd.f32 %v3703_v18, %v11676_v28  ;;  %v9031_v18 = vld [vmem:[%s14239_s1 + $0x27c] sm:$0xf] }
 0x41c   : > { %v3505_v0 = vpop.f32.mrf.mxu0 }
 0x41d   : > { %v3506_v5 = vadd.f32 %v3505_v0, %v11560_v32  ;;  %v3802_v4 = vpop.f32.mrf.mxu3  ;;  %v5757_v32 = vmax.f32 %v3603_v44, 0.0  ;;  %v8093_v0 = vld [vmem:[%s14239_s1 + $0x290] sm:$0xf0]  ;;  %v8597_v44 = vld [vmem:[%s14239_s1 + $0x680] sm:$0xf0] }
 0x41e   : > { %v11974_v62 = vadd.f32 %v3802_v4, %v3704_v41  ;;  %v8096_v4 = vor.u32 %v9031_v18, %v8093_v0 }
 0x41f   : > { %8672 = vmatmul.msk.bf16.gmra.mxu2 %vm1007_vm5, %v14680_v36  ;;  %v3604_v40 = vpop.f32.mrf.mxu1  ;;  %v14777_v36 = vld [vmem:[#allocation16_spill] sm:$0xff] }
 0x420   : > { %14773 = vst [vmem:[#allocation136_spill] sm:$0xff] %v11974_v62  ;;  %v3605_v53 = vadd.f32 %v3604_v40, %v3506_v5  ;;  %v9157_v5 = vld [vmem:[%s14239_s1 + $0x66c] sm:$0xf]  ;;  %4228 = vmatpush.bf16.msra.mxu0 %v8096_v4  ;;  %v14781_v4 = vld [vmem:[#allocation86_spill] sm:$0xff] }
 0x421   : > { %v8600_v63 = vor.u32 %v9157_v5, %v8597_v44  ;;  %v14779_v44 = vld [vmem:[#allocation87_spill] sm:$0xff] }
 0x422   : > { %v3706_v2 = vpop.f32.mrf.mxu2  ;;  %v5763_v54 = vmax.f32 %v3605_v53, 0.0  ;;  %4150 = vmatmul.bf16.gmra.mxu3 %v14774_v35  ;;  %v8285_v53 = vld [vmem:[%s14239_s1 + $0x410] sm:$0xf0] }
 0x423   : > { %v3707_v15 = vadd.f32 %v3706_v2, %v11676_v28  ;;  %v8288_v48 = vor.u32 %v9079_v24, %v8285_v53  ;;  %4528 = vmatpush.bf16.msra.mxu3 %v8600_v63 }
 0x424   : > { %v3508_v41 = vpop.f32.mrf.mxu0  ;;  %v12005_v18 = vpack.c.bf16 %v5763_v54, %v5757_v32 }
 0x425   : > { %v3509_v40 = vadd.f32 %v3508_v41, %v11567_v8  ;;  %v3805_v0 = vpop.f32.mrf.mxu3  ;;  %4327 = vmatpush.bf16.msra.mxu1 %v8288_v48  ;;  %v14778_v8 = vld [vmem:[#allocation17_spill] sm:$0xff] }
 0x426   : > { %14775 = vst [vmem:[#allocation137_spill] sm:$0xff] %v12005_v18  ;;  %v12007_v35 = vadd.f32 %v3805_v0, %v3707_v15 }
 0x427   : > { %3853 = vmatmul.bf16.gmra.mxu0 %v14777_v36  ;;  %v3607_v62 = vpop.f32.mrf.mxu1 }
 0x428   : > { %14776 = vst [vmem:[#allocation138_spill] sm:$0xff] %v12007_v35  ;;  %v3608_v2 = vadd.f32 %v3607_v62, %v3509_v40  ;;  %v14782_v62 = vld [vmem:[#allocation22_spill] sm:$0xff] }
 0x42a   : > { %v3708_v46 = vpop.f32.mrf.mxu2  ;;  %3952 = vmatmul.bf16.gmra.mxu1 %v14778_v8  ;;  %v5769_v53 = vmax.f32 %v3608_v2, 0.0 }
 0x42b   : > { %v3709_v5 = vadd.f32 %v3708_v46, %v11676_v28 }
 0x42c   : > { %v3510_v41 = vpop.f32.mrf.mxu0 }
 0x42d   : > { %v3511_v32 = vadd.f32 %v3510_v41, %v14779_v44  ;;  %v3807_v54 = vpop.f32.mrf.mxu3  ;;  %v14784_v44 = vld [vmem:[#allocation20_spill] sm:$0xff] }
 0x42e   : > { %v12013_v18 = vadd.f32 %v3807_v54, %v3709_v5 }
 0x42f   : > { %8673 = vmatmul.msk.bf16.gmra.mxu2 %vm1007_vm5, %v14781_v4  ;;  %v3609_v24 = vpop.f32.mrf.mxu1 }
 0x430   : > { %14780 = vst [vmem:[#allocation87_spill] sm:$0xff] %v12013_v18  ;;  %v3610_v15 = vadd.f32 %v3609_v24, %v3511_v32  ;;  %v14785_v24 = vld [vmem:[#allocation21_spill] sm:$0xff] }
 0x432   : > { %v3711_v63 = vpop.f32.mrf.mxu2  ;;  %v5775_v48 = vmax.f32 %v3610_v15, 0.0  ;;  %4155 = vmatmul.bf16.gmra.mxu3 %v14782_v62  ;;  %v14786_v62 = vld [vmem:[#allocation90_spill] sm:$0xff] }
 0x433   : > { %v3712_v0 = vadd.f32 %v3711_v63, %v11676_v28 }
 0x434   : > { %v3513_v40 = vpop.f32.mrf.mxu0  ;;  %v12020_v36 = vpack.c.bf16 %v5775_v48, %v5769_v53 }
 0x435   : > { %v3514_v46 = vadd.f32 %v3513_v40, %v11582_v21  ;;  %v3810_v41 = vpop.f32.mrf.mxu3  ;;  %v14788_v21 = vld [vmem:[#allocation89_spill] sm:$0xff] }
 0x436   : > { %14783 = vst [vmem:[#allocation139_spill] sm:$0xff] %v12020_v36  ;;  %v12022_v5 = vadd.f32 %v3810_v41, %v3712_v0 }
 0x437   : > { %3858 = vmatmul.bf16.gmra.mxu0 %v14784_v44  ;;  %v3612_v54 = vpop.f32.mrf.mxu1 }
 0x438   : > { %v3613_v4 = vadd.f32 %v3612_v54, %v3514_v46  ;;  %v14789_v46 = vld [vmem:[#allocation26_spill] sm:$0xff]  ;;  %v9121_v54 = vld [vmem:[%s14239_s1 + $0x54c] sm:$0xf] }
 0x43a   : > { %v3713_v32 = vpop.f32.mrf.mxu2  ;;  %3957 = vmatmul.bf16.gmra.mxu1 %v14785_v24  ;;  %v5781_v0 = vmax.f32 %v3613_v4, 0.0  ;;  %v8069_v4 = vld [vmem:[%s14239_s1 + $0x260] sm:$0xf0] }
 0x43b   : > { %v3714_v15 = vadd.f32 %v3713_v32, %v11676_v28 }
 0x43c   : > { %v3515_v2 = vpop.f32.mrf.mxu0 }
 0x43d   : > { %v3516_v18 = vadd.f32 %v3515_v2, %v14786_v62  ;;  %v3812_v63 = vpop.f32.mrf.mxu3  ;;  %v8453_v62 = vld [vmem:[%s14239_s1 + $0x560] sm:$0xf0] }
 0x43e   : > { %v12028_v35 = vadd.f32 %v3812_v63, %v3714_v15  ;;  %v8456_v2 = vor.u32 %v9121_v54, %v8453_v62  ;;  %v14792_v54 = vld [vmem:[#allocation24_spill] sm:$0xff] }
 0x43f   : > { %8674 = vmatmul.msk.bf16.gmra.mxu2 %vm1007_vm5, %v14788_v21  ;;  %v3614_v53 = vpop.f32.mrf.mxu1 }
 0x440   : > { %14787 = vst [vmem:[#allocation90_spill] sm:$0xff] %v12028_v35  ;;  %v3615_v48 = vadd.f32 %v3614_v53, %v3516_v18  ;;  %v9025_v18 = vld [vmem:[%s14239_s1 + $0x24c] sm:$0xf]  ;;  %4427 = vmatpush.bf16.msra.mxu2 %v8456_v2  ;;  %v14793_v2 = vld [vmem:[#allocation25_spill] sm:$0xff] }
 0x441   : > { %v8072_v36 = vor.u32 %v9025_v18, %v8069_v4  ;;  %v14794_v4 = vld [vmem:[#allocation93_spill] sm:$0xff] }
 0x442   : > { %v3716_v40 = vpop.f32.mrf.mxu2  ;;  %v5787_v41 = vmax.f32 %v3615_v48, 0.0  ;;  %4160 = vmatmul.bf16.gmra.mxu3 %v14789_v46 }
 0x443   : > { %v3717_v15 = vadd.f32 %v3716_v40, %v11676_v28  ;;  %v8261_v40 = vld [vmem:[%s14239_s1 + $0x3e0] sm:$0xf0]  ;;  %4229 = vmatpush.bf16.msra.mxu0 %v8072_v36 }
 0x444   : > { %v3518_v32 = vpop.f32.mrf.mxu0  ;;  %v12047_v53 = vpack.c.bf16 %v5787_v41, %v5781_v0 }
 0x445   : > { %v3519_v63 = vadd.f32 %v3518_v32, %v11615_v43  ;;  %v3815_v48 = vpop.f32.mrf.mxu3  ;;  %v9073_v43 = vld [vmem:[%s14239_s1 + $0x3cc] sm:$0xf] }
 0x446   : > { %14790 = vst [vmem:[#allocation140_spill] sm:$0xff] %v12047_v53  ;;  %v12049_v46 = vadd.f32 %v3815_v48, %v3717_v15  ;;  %v8264_v32 = vor.u32 %v9073_v43, %v8261_v40  ;;  %v14797_v40 = vld [vmem:[#allocation30_spill] sm:$0xff] }
 0x447   : > { %3863 = vmatmul.bf16.gmra.mxu0 %v14792_v54  ;;  %v3617_v62 = vpop.f32.mrf.mxu1 }
 0x448   : > { %14791 = vst [vmem:[#allocation141_spill] sm:$0xff] %v12049_v46  ;;  %v3618_v0 = vadd.f32 %v3617_v62, %v3519_v63  ;;  %4328 = vmatpush.bf16.msra.mxu1 %v8264_v32  ;;  %v14796_v46 = vld [vmem:[#allocation92_spill] sm:$0xff] }
 0x44a   : > { %v3718_v41 = vpop.f32.mrf.mxu2  ;;  %3962 = vmatmul.bf16.gmra.mxu1 %v14793_v2  ;;  %v5793_v43 = vmax.f32 %v3618_v0, 0.0 }
 0x44b   : > { %v3719_v18 = vadd.f32 %v3718_v41, %v11676_v28 }
 0x44c   : > { %v3520_v15 = vpop.f32.mrf.mxu0 }
 0x44d   : > { %v3521_v48 = vadd.f32 %v3520_v15, %v14794_v4  ;;  %v3817_v53 = vpop.f32.mrf.mxu3 }
 0x44e   : > { %v12061_v54 = vadd.f32 %v3817_v53, %v3719_v18  ;;  %v14799_v18 = vld [vmem:[#allocation28_spill] sm:$0xff] }
 0x44f   : > { %8675 = vmatmul.msk.bf16.gmra.mxu2 %vm1007_vm5, %v14796_v46  ;;  %v3619_v21 = vpop.f32.mrf.mxu1 }
 0x450   : > { %14795 = vst [vmem:[#allocation93_spill] sm:$0xff] %v12061_v54  ;;  %v3620_v35 = vadd.f32 %v3619_v21, %v3521_v48  ;;  %v14800_v48 = vld [vmem:[#allocation29_spill] sm:$0xff] }
 0x452   : > { %v3721_v36 = vpop.f32.mrf.mxu2  ;;  %v5799_v63 = vmax.f32 %v3620_v35, 0.0  ;;  %4165 = vmatmul.bf16.gmra.mxu3 %v14797_v40  ;;  %v14801_v40 = vld [vmem:[#allocation96_spill] sm:$0xff] }
 0x453   : > { %v3722_v32 = vadd.f32 %v3721_v36, %v11676_v28 }
 0x454   : > { %v3523_v62 = vpop.f32.mrf.mxu0  ;;  %v12068_v2 = vpack.c.bf16 %v5799_v63, %v5793_v43 }
 0x455   : > { %v3524_v41 = vadd.f32 %v3523_v62, %v11630_v56  ;;  %v3820_v15 = vpop.f32.mrf.mxu3  ;;  %v14802_v56 = vld [vmem:[#allocation95_spill] sm:$0xff] }
 0x456   : > { %14798 = vst [vmem:[#allocation142_spill] sm:$0xff] %v12068_v2  ;;  %v12070_v53 = vadd.f32 %v3820_v15, %v3722_v32 }
 0x457   : > { %3868 = vmatmul.bf16.gmra.mxu0 %v14799_v18  ;;  %v3622_v4 = vpop.f32.mrf.mxu1 }
 0x458   : > { %v3623_v46 = vadd.f32 %v3622_v4, %v3524_v41  ;;  %v14803_v41 = vld [vmem:[#allocation34_spill] sm:$0xff] }
 0x45a   : > { %v3723_v21 = vpop.f32.mrf.mxu2  ;;  %3967 = vmatmul.bf16.gmra.mxu1 %v14800_v48  ;;  %v5805_v32 = vmax.f32 %v3623_v46, 0.0  ;;  %v8429_v46 = vld [vmem:[%s14239_s1 + $0x530] sm:$0xf0] }
 0x45b   : > { %v3724_v0 = vadd.f32 %v3723_v21, %v11676_v28 }
 0x45c   : > { %v3525_v35 = vpop.f32.mrf.mxu0 }
 0x45d   : > { %v3526_v54 = vadd.f32 %v3525_v35, %v14801_v40  ;;  %v3822_v36 = vpop.f32.mrf.mxu3 }
 0x45e   : > { %v12076_v44 = vadd.f32 %v3822_v36, %v3724_v0  ;;  %v14806_v0 = vld [vmem:[#allocation32_spill] sm:$0xff] }
 0x45f   : > { %8676 = vmatmul.msk.bf16.gmra.mxu2 %vm1007_vm5, %v14802_v56  ;;  %v3624_v43 = vpop.f32.mrf.mxu1 }
 0x460   : > { %v3625_v63 = vadd.f32 %v3624_v43, %v3526_v54  ;;  %v9115_v54 = vld [vmem:[%s14239_s1 + $0x51c] sm:$0xf] }
 0x461   : > { %v8432_v43 = vor.u32 %v9115_v54, %v8429_v46 }
 0x462   : > { %v3726_v62 = vpop.f32.mrf.mxu2  ;;  %v5811_v15 = vmax.f32 %v3625_v63, 0.0  ;;  %4170 = vmatmul.bf16.gmra.mxu3 %v14803_v41 }
 0x463   : > { %v3727_v2 = vadd.f32 %v3726_v62, %v11676_v28  ;;  %4428 = vmatpush.bf16.msra.mxu2 %v8432_v43 }
 0x464   : > { %v3528_v4 = vpop.f32.mrf.mxu0  ;;  %v12083_v18 = vpack.c.bf16 %v5811_v15, %v5805_v32 }
 0x465   : > { %v3529_v21 = vadd.f32 %v3528_v4, %v11669_v25  ;;  %v3825_v40 = vpop.f32.mrf.mxu3  ;;  %v14807_v25 = vld [vmem:[#allocation33_spill] sm:$0xff] }
 0x466   : > { %14804 = vst [vmem:[#allocation96_spill] sm:$0xff] %v12083_v18  ;;  %v12085_v35 = vadd.f32 %v3825_v40, %v3727_v2  ;;  %v9019_v4 = vld [vmem:[%s14239_s1 + $0x21c] sm:$0xf]  ;;  %v8045_v40 = vld [vmem:[%s14239_s1 + $0x230] sm:$0xf0] }
 0x467   : > { %3873 = vmatmul.bf16.gmra.mxu0 %v14806_v0  ;;  %v3627_v36 = vpop.f32.mrf.mxu1  ;;  %v8048_v46 = vor.u32 %v9019_v4, %v8045_v40 }
 0x468   : > { %14805 = vst [vmem:[#allocation143_spill] sm:$0xff] %v12085_v35  ;;  %v3628_v63 = vadd.f32 %v3627_v36, %v3529_v21  ;;  %v9151_v21 = vld [vmem:[%s14239_s1 + $0x63c] sm:$0xf]  ;;  %v8237_v36 = vld [vmem:[%s14239_s1 + $0x3b0] sm:$0xf0] }
 0x469   : > { %4230 = vmatpush.bf16.msra.mxu0 %v8048_v46 }
 0x46a   : > { %v3728_v62 = vpop.f32.mrf.mxu2  ;;  %3972 = vmatmul.bf16.gmra.mxu1 %v14807_v25  ;;  %v5817_v41 = vmax.f32 %v3628_v63, 0.0 }
 0x46b   : > { %v3729_v2 = vadd.f32 %v3728_v62, %v11676_v28  ;;  %v8573_v28 = vld [vmem:[%s14239_s1 + $0x650] sm:$0xf0] }
 0x46c   : > { %v3530_v32 = vpop.f32.mrf.mxu0  ;;  %v8576_v62 = vor.u32 %v9151_v21, %v8573_v28 }
 0x46d   : > { %v3531_v15 = vadd.f32 %v3530_v32, %v11683_v1  ;;  %v3827_v54 = vpop.f32.mrf.mxu3  ;;  %v9067_v1 = vld [vmem:[%s14239_s1 + $0x39c] sm:$0xf] }
 0x46e   : > { %v12115_v43 = vadd.f32 %v3827_v54, %v3729_v2  ;;  %v8240_v32 = vor.u32 %v9067_v1, %v8237_v36  ;;  %4529 = vmatpush.bf16.msra.mxu3 %v8576_v62 }
 0x46f   : > { %8677 = vmatmul.msk.bf16.gmra.mxu2 %vm1007_vm5, %v14711_v57  ;;  %v3629_v4 = vpop.f32.mrf.mxu1  ;;  %v14809_v57 = vld [vmem:[#allocation37_spill] sm:$0xff] }
 0x470   : > { %v3630_v40 = vadd.f32 %v3629_v4, %v3531_v15  ;;  %4329 = vmatpush.bf16.msra.mxu1 %v8240_v32 }
 0x472   : > { %v4037_v18 = vpop.f32.mrf.mxu2  ;;  %v5823_v0 = vmax.f32 %v3630_v40, 0.0  ;;  %4175 = vmatmul.bf16.gmra.mxu3 %v14612_v33  ;;  %v14813_v33 = vld [vmem:[#allocation44_spill] sm:$0xff] }
 0x474   : > { %v3839_v35 = vpop.f32.mrf.mxu0  ;;  %v12121_v2 = vpack.c.bf16 %v5823_v0, %v5817_v41 }
 0x475   : > { %v3840_v56 = vadd.f32 %v3839_v35, %v11685_v47  ;;  %v12123_v54 = vpop.f32.mrf.mxu3 }
 0x476   : > { %14808 = vst [vmem:[#allocation144_spill] sm:$0xff] %v12121_v2 }
 0x477   : > { %3878 = vmatmul.bf16.gmra.mxu0 %v14809_v57  ;;  %v3938_v21 = vpop.f32.mrf.mxu1 }
 0x478   : > { %v3939_v28 = vadd.f32 %v3938_v21, %v3840_v56 }
 0x47a   : > { %v4039_v46 = vpop.f32.mrf.mxu2  ;;  %v4038_v15 = vadd.f32 %v4037_v18, %v3939_v28  ;;  %3977 = vmatmul.bf16.gmra.mxu1 %v14710_v16 }
 0x47c   : > { %v3841_v1 = vpop.f32.mrf.mxu0  ;;  %v5614_v56 = vmax.f32 %v4038_v15, 0.0  ;;  %v9109_v15 = vld [vmem:[%s14239_s1 + $0x4ec] sm:$0xf] }
 0x47d   : > { %v3842_v63 = vadd.f32 %v3841_v1, %v11692_v6  ;;  %v12128_v36 = vpop.f32.mrf.mxu3  ;;  %v14811_v6 = vld [vmem:[#allocation41_spill] sm:$0xff] }
 0x47f   : > { %8678 = vmatmul.msk.bf16.gmra.mxu2 %vm1007_vm5, %v11219_v9  ;;  %v3940_v47 = vpop.f32.mrf.mxu1 }
 0x480   : > { %v3941_v41 = vadd.f32 %v3940_v47, %v3842_v63 }
 0x482   : > { %v4042_v35 = vpop.f32.mrf.mxu2  ;;  %v4040_v0 = vadd.f32 %v4039_v46, %v3941_v41  ;;  %4180 = vmatmul.bf16.gmra.mxu3 %v10634_v61 }
 0x484   : > { %v3844_v62 = vpop.f32.mrf.mxu0  ;;  %v5620_v32 = vmax.f32 %v4040_v0, 0.0  ;;  %v8021_v0 = vld [vmem:[%s14239_s1 + $0x200] sm:$0xf0] }
 0x485   : > { %v3845_v18 = vadd.f32 %v3844_v62, %v11700_v13  ;;  %v12134_v4 = vpop.f32.mrf.mxu3  ;;  %v8405_v13 = vld [vmem:[%s14239_s1 + $0x500] sm:$0xf0]  ;;  %v9061_v62 = vld [vmem:[%s14239_s1 + $0x36c] sm:$0xf] }
 0x486   : > { %v12136_v40 = vpack.c.bf16 %v5620_v32, %v5614_v56  ;;  %v8408_v41 = vor.u32 %v9109_v15, %v8405_v13  ;;  %v8213_v56 = vld [vmem:[%s14239_s1 + $0x380] sm:$0xf0] }
 0x487   : > { %3883 = vmatmul.bf16.gmra.mxu0 %v14811_v6  ;;  %v3943_v21 = vpop.f32.mrf.mxu1  ;;  %v14812_v15 = vld [vmem:[#allocation46_spill] sm:$0xff] }
 0x488   : > { %14810 = vst [vmem:[#allocation37_spill] sm:$0xff] %v12136_v40  ;;  %v3944_v28 = vadd.f32 %v3943_v21, %v3845_v18  ;;  %4429 = vmatpush.bf16.msra.mxu2 %v8408_v41  ;;  %v8216_v18 = vor.u32 %v9061_v62, %v8213_v56 }
 0x48a   : > { %v4044_v1 = vpop.f32.mrf.mxu2  ;;  %v4043_v2 = vadd.f32 %v4042_v35, %v3944_v28  ;;  %3982 = vmatmul.bf16.gmra.mxu1 %v14713_v34  ;;  %v9013_v35 = vld [vmem:[%s14239_s1 + $0x1ec] sm:$0xf] }
 0x48b   : > { %4330 = vmatpush.bf16.msra.mxu1 %v8216_v18 }
 0x48c   : > { %v3846_v46 = vpop.f32.mrf.mxu0 }
 0x48d   : > { %v3847_v63 = vadd.f32 %v3846_v46, %v11719_v7  ;;  %v12147_v47 = vpop.f32.mrf.mxu3  ;;  %v8024_v7 = vor.u32 %v9013_v35, %v8021_v0  ;;  %v5626_v35 = vmax.f32 %v4043_v2, 0.0 }
 0x48f   : > { %8679 = vmatmul.msk.bf16.gmra.mxu2 %vm1007_vm5, %v11256_v26  ;;  %v3945_v32 = vpop.f32.mrf.mxu1  ;;  %4231 = vmatpush.bf16.msra.mxu0 %v8024_v7 }
 0x490   : > { %v3946_v21 = vadd.f32 %v3945_v32, %v3847_v63 }
 0x492   : > { %v4047_v28 = vpop.f32.mrf.mxu2  ;;  %v4045_v46 = vadd.f32 %v4044_v1, %v3946_v21  ;;  %4185 = vmatmul.bf16.gmra.mxu3 %v14812_v15 }
 0x494   : > { %v3849_v13 = vpop.f32.mrf.mxu0  ;;  %v5632_v0 = vmax.f32 %v4045_v46, 0.0 }
 0x495   : > { %v3850_v40 = vadd.f32 %v3849_v13, %v11733_v17  ;;  %v12165_v61 = vpop.f32.mrf.mxu3 }
 0x496   : > { %v12168_v26 = vpack.c.bf16 %v5632_v0, %v5626_v35 }
 0x497   : > { %3888 = vmatmul.bf16.gmra.mxu0 %v14813_v33  ;;  %v3948_v41 = vpop.f32.mrf.mxu1 }
 0x498   : > { %14814 = vst [vmem:[#allocation145_spill] sm:$0xff] %v12168_v26  ;;  %v3949_v62 = vadd.f32 %v3948_v41, %v3850_v40  ;;  %v14816_v41 = vld [vmem:[#allocation47_spill] sm:$0xff] }
 0x49a   : > { %v4049_v63 = vpop.f32.mrf.mxu2  ;;  %v4048_v7 = vadd.f32 %v4047_v28, %v3949_v62  ;;  %3987 = vmatmul.bf16.gmra.mxu1 %v14716_v12  ;;  %v14815_v28 = vld [vmem:[#allocation124_spill] sm:$0xff] }
 0x49c   : > { %v3851_v1 = vpop.f32.mrf.mxu0  ;;  %v5638_v40 = vmax.f32 %v4048_v7, 0.0  ;;  %v9103_v7 = vld [vmem:[%s14239_s1 + $0x4bc] sm:$0xf] }
 0x49d   : > { %v3852_v56 = vadd.f32 %v3851_v1, %v11740_v27  ;;  %v12172_v32 = vpop.f32.mrf.mxu3 }
 0x49f   : > { %8680 = vmatmul.msk.bf16.gmra.mxu2 %vm1007_vm5, %v14722_v19  ;;  %v3950_v17 = vpop.f32.mrf.mxu1 }
 0x4a0   : > { %v3951_v2 = vadd.f32 %v3950_v17, %v3852_v56  ;;  %v14818_v56 = vld [vmem:[#allocation48_spill] sm:$0xff]  ;;  %v14819_v17 = vld [vmem:[#allocation125_spill] sm:$0xff] }
 0x4a2   : > { %v4052_v18 = vpop.f32.mrf.mxu2  ;;  %v4050_v21 = vadd.f32 %v4049_v63, %v3951_v2  ;;  %4190 = vmatmul.bf16.gmra.mxu3 %v14624_v29 }
 0x4a4   : > { %v3854_v46 = vpop.f32.mrf.mxu0  ;;  %v5644_v13 = vmax.f32 %v4050_v21, 0.0  ;;  %v8381_v21 = vld [vmem:[%s14239_s1 + $0x4d0] sm:$0xf0] }
 0x4a5   : > { %v3855_v35 = vadd.f32 %v3854_v46, %v14815_v28  ;;  %v12178_v0 = vpop.f32.mrf.mxu3 }
 0x4a6   : > { %v12181_v27 = vpack.c.bf16 %v5644_v13, %v5638_v40 }
 0x4a7   : > { %3893 = vmatmul.bf16.gmra.mxu0 %v14816_v41  ;;  %v3953_v62 = vpop.f32.mrf.mxu1 }
 0x4a8   : > { %14817 = vst [vmem:[#allocation124_spill] sm:$0xff] %v12181_v27  ;;  %v3954_v1 = vadd.f32 %v3953_v62, %v3855_v35  ;;  %v14820_v35 = vld [vmem:[#allocation54_spill] sm:$0xff]  ;;  %v9007_v27 = vld [vmem:[%s14239_s1 + $0x1bc] sm:$0xf] }
 0x4aa   : > { %v4054_v26 = vpop.f32.mrf.mxu2  ;;  %v4053_v15 = vadd.f32 %v4052_v18, %v3954_v1  ;;  %3992 = vmatmul.bf16.gmra.mxu1 %v14818_v56  ;;  %v8384_v18 = vor.u32 %v9103_v7, %v8381_v21  ;;  %v14822_v21 = vld [vmem:[#allocation51_spill] sm:$0xff] }
 0x4ac   : > { %v3856_v63 = vpop.f32.mrf.mxu0  ;;  %4430 = vmatpush.bf16.msra.mxu2 %v8384_v18  ;;  %v5650_v1 = vmax.f32 %v4053_v15, 0.0  ;;  %v8549_v15 = vld [vmem:[%s14239_s1 + $0x620] sm:$0xf0]  ;;  %v8189_v18 = vld [vmem:[%s14239_s1 + $0x350] sm:$0xf0] }
 0x4ad   : > { %v3857_v2 = vadd.f32 %v3856_v63, %v14819_v17  ;;  %v12185_v29 = vpop.f32.mrf.mxu3 }
 0x4af   : > { %8681 = vmatmul.msk.bf16.gmra.mxu2 %vm1007_vm5, %v11309_v23  ;;  %v3955_v46 = vpop.f32.mrf.mxu1  ;;  %v7997_v23 = vld [vmem:[%s14239_s1 + $0x1d0] sm:$0xf0] }
 0x4b0   : > { %v3956_v40 = vadd.f32 %v3955_v46, %v3857_v2  ;;  %v8000_v2 = vor.u32 %v9007_v27, %v7997_v23 }
 0x4b2   : > { %v4057_v13 = vpop.f32.mrf.mxu2  ;;  %v4055_v28 = vadd.f32 %v4054_v26, %v3956_v40  ;;  %4195 = vmatmul.bf16.gmra.mxu3 %v14820_v35  ;;  %v9145_v26 = vld [vmem:[%s14239_s1 + $0x60c] sm:$0xf]  ;;  %4232 = vmatpush.bf16.msra.mxu0 %v8000_v2 }
 0x4b3   : > { %v8552_v46 = vor.u32 %v9145_v26, %v8549_v15 }
 0x4b4   : > { %v3859_v62 = vpop.f32.mrf.mxu0  ;;  %v5656_v63 = vmax.f32 %v4055_v28, 0.0 }
 0x4b5   : > { %v3860_v17 = vadd.f32 %v3859_v62, %v11787_v30  ;;  %v12203_v7 = vpop.f32.mrf.mxu3  ;;  %v9055_v30 = vld [vmem:[%s14239_s1 + $0x33c] sm:$0xf]  ;;  %4530 = vmatpush.bf16.msra.mxu3 %v8552_v46 }
 0x4b6   : > { %14821 = vst [vmem:[#allocation125_spill] sm:$0xff] %v12203_v7  ;;  %v12218_v23 = vpack.c.bf16 %v5656_v63, %v5650_v1  ;;  %v8192_v40 = vor.u32 %v9055_v30, %v8189_v18 }
 0x4b7   : > { %3898 = vmatmul.bf16.gmra.mxu0 %v14822_v21  ;;  %v3958_v27 = vpop.f32.mrf.mxu1 }
 0x4b8   : > { %14823 = vst [vmem:[#allocation146_spill] sm:$0xff] %v12218_v23  ;;  %v3959_v28 = vadd.f32 %v3958_v27, %v3860_v17  ;;  %4331 = vmatpush.bf16.msra.mxu1 %v8192_v40  ;;  %v14824_v27 = vld [vmem:[#allocation56_spill] sm:$0xff] }
 0x4ba   : > { %v4059_v62 = vpop.f32.mrf.mxu2  ;;  %v4058_v35 = vadd.f32 %v4057_v13, %v3959_v28  ;;  %3997 = vmatmul.bf16.gmra.mxu1 %v14726_v58 }
 0x4bc   : > { %v3861_v7 = vpop.f32.mrf.mxu0  ;;  %v5662_v30 = vmax.f32 %v4058_v35, 0.0 }
 0x4bd   : > { %v3862_v21 = vadd.f32 %v3861_v7, %v11794_v60  ;;  %v12222_v26 = vpop.f32.mrf.mxu3 }
 0x4bf   : > { %8682 = vmatmul.msk.bf16.gmra.mxu2 %vm1007_vm5, %v11337_v39  ;;  %v3960_v1 = vpop.f32.mrf.mxu1 }
 0x4c0   : > { %v3961_v63 = vadd.f32 %v3960_v1, %v3862_v21 }
 0x4c2   : > { %v4062_v15 = vpop.f32.mrf.mxu2  ;;  %v4060_v2 = vadd.f32 %v4059_v62, %v3961_v63  ;;  %4200 = vmatmul.bf16.gmra.mxu3 %v14631_v45 }
 0x4c4   : > { %v3864_v17 = vpop.f32.mrf.mxu0  ;;  %v5668_v46 = vmax.f32 %v4060_v2, 0.0 }
 0x4c5   : > { %v3865_v13 = vadd.f32 %v3864_v17, %v11802_v3  ;;  %v12228_v18 = vpop.f32.mrf.mxu3 }
 0x4c6   : > { %v12231_v60 = vpack.c.bf16 %v5668_v46, %v5662_v30 }
 0x4c7   : > { %3903 = vmatmul.bf16.gmra.mxu0 %v14824_v27  ;;  %v3963_v7 = vpop.f32.mrf.mxu1 }
 0x4c8   : > { %14825 = vst [vmem:[#allocation56_spill] sm:$0xff] %v12231_v60  ;;  %v3964_v40 = vadd.f32 %v3963_v7, %v3865_v13  ;;  %v8357_v13 = vld [vmem:[%s14239_s1 + $0x4a0] sm:$0xf0] }
 0x4ca   : > { %v4064_v28 = vpop.f32.mrf.mxu2  ;;  %v4063_v23 = vadd.f32 %v4062_v15, %v3964_v40  ;;  %4002 = vmatmul.bf16.gmra.mxu1 %v14728_v38 }
 0x4cc   : > { %v3866_v21 = vpop.f32.mrf.mxu0  ;;  %v5674_v30 = vmax.f32 %v4063_v23, 0.0  ;;  %v7973_v23 = vld [vmem:[%s14239_s1 + $0x1a0] sm:$0xf0] }
 0x4cd   : > { %v3867_v62 = vadd.f32 %v3866_v21, %v11809_v59  ;;  %v12235_v1 = vpop.f32.mrf.mxu3  ;;  %v9097_v59 = vld [vmem:[%s14239_s1 + $0x48c] sm:$0xf] }
 0x4ce   : > { %v8360_v40 = vor.u32 %v9097_v59, %v8357_v13 }
 0x4cf   : > { %8683 = vmatmul.msk.bf16.gmra.mxu2 %vm1007_vm5, %v14732_v20  ;;  %v3965_v3 = vpop.f32.mrf.mxu1 }
 0x4d0   : > { %v3966_v35 = vadd.f32 %v3965_v3, %v3867_v62  ;;  %v9049_v62 = vld [vmem:[%s14239_s1 + $0x30c] sm:$0xf]  ;;  %v8165_v3 = vld [vmem:[%s14239_s1 + $0x320] sm:$0xf0]  ;;  %4431 = vmatpush.bf16.msra.mxu2 %v8360_v40 }
 0x4d2   : > { %v4067_v63 = vpop.f32.mrf.mxu2  ;;  %v4065_v2 = vadd.f32 %v4064_v28, %v3966_v35  ;;  %4205 = vmatmul.bf16.gmra.mxu3 %v14636_v14  ;;  %v9001_v28 = vld [vmem:[%s14239_s1 + $0x18c] sm:$0xf]  ;;  %v14828_v14 = vld [vmem:[#allocation61_spill] sm:$0xff] }
 0x4d3   : > { %v7976_v21 = vor.u32 %v9001_v28, %v7973_v23  ;;  %v14829_v23 = vld [vmem:[#allocation129_spill] sm:$0xff] }
 0x4d4   : > { %v3869_v17 = vpop.f32.mrf.mxu0  ;;  %v5680_v46 = vmax.f32 %v4065_v2, 0.0 }
 0x4d5   : > { %v3870_v15 = vadd.f32 %v3869_v17, %v11829_v55  ;;  %v12247_v7 = vpop.f32.mrf.mxu3  ;;  %v14826_v55 = vld [vmem:[#allocation60_spill] sm:$0xff]  ;;  %v8168_v17 = vor.u32 %v9049_v62, %v8165_v3  ;;  %4233 = vmatpush.bf16.msra.mxu0 %v7976_v21  ;;  %v14831_v62 = vld [vmem:[#allocation67_spill] sm:$0xff] }
 0x4d6   : > { %v12262_v35 = vpack.c.bf16 %v5680_v46, %v5674_v30 }
 0x4d7   : > { %3908 = vmatmul.bf16.gmra.mxu0 %v14826_v55  ;;  %v3968_v2 = vpop.f32.mrf.mxu1  ;;  %4332 = vmatpush.bf16.msra.mxu1 %v8168_v17 }
 0x4d8   : > { %14827 = vst [vmem:[#allocation147_spill] sm:$0xff] %v12262_v35  ;;  %v3969_v59 = vadd.f32 %v3968_v2, %v3870_v15 }
 0x4da   : > { %v4069_v13 = vpop.f32.mrf.mxu2  ;;  %v4068_v60 = vadd.f32 %v4067_v63, %v3969_v59  ;;  %4007 = vmatmul.bf16.gmra.mxu1 %v14828_v14  ;;  %v14832_v63 = vld [vmem:[#allocation130_spill] sm:$0xff]  ;;  %v14833_v59 = vld [vmem:[#allocation65_spill] sm:$0xff] }
 0x4dc   : > { %v3871_v28 = vpop.f32.mrf.mxu0  ;;  %v5686_v21 = vmax.f32 %v4068_v60, 0.0  ;;  %v14836_v60 = vld [vmem:[#allocation112_spill] sm:$0xff] }
 0x4dd   : > { %v3872_v45 = vadd.f32 %v3871_v28, %v14829_v23  ;;  %v12266_v55 = vpop.f32.mrf.mxu3 }
 0x4de   : > { %14830 = vst [vmem:[#allocation129_spill] sm:$0xff] %v12266_v55 }
 0x4df   : > { %8684 = vmatmul.msk.bf16.gmra.mxu2 %vm1007_vm5, %v14739_v11  ;;  %v3970_v30 = vpop.f32.mrf.mxu1 }
 0x4e0   : > { %v3971_v46 = vadd.f32 %v3970_v30, %v3872_v45  ;;  %v14835_v45 = vld [vmem:[#allocation66_spill] sm:$0xff] }
 0x4e2   : > { %v4072_v35 = vpop.f32.mrf.mxu2  ;;  %v4070_v40 = vadd.f32 %v4069_v13, %v3971_v46  ;;  %4210 = vmatmul.bf16.gmra.mxu3 %v14831_v62 }
 0x4e4   : > { %v3874_v15 = vpop.f32.mrf.mxu0  ;;  %v5692_v3 = vmax.f32 %v4070_v40, 0.0 }
 0x4e5   : > { %v3875_v2 = vadd.f32 %v3874_v15, %v14832_v63  ;;  %v12272_v17 = vpop.f32.mrf.mxu3 }
 0x4e6   : > { %v12275_v28 = vpack.c.bf16 %v5692_v3, %v5686_v21  ;;  %v14837_v21 = vld [vmem:[#allocation72_spill] sm:$0xff] }
 0x4e7   : > { %3913 = vmatmul.bf16.gmra.mxu0 %v14833_v59  ;;  %v3973_v23 = vpop.f32.mrf.mxu1  ;;  %v14840_v59 = vld [vmem:[#allocation69_spill] sm:$0xff] }
 0x4e8   : > { %14834 = vst [vmem:[#allocation130_spill] sm:$0xff] %v12275_v28  ;;  %v3974_v55 = vadd.f32 %v3973_v23, %v3875_v2 }
 0x4ea   : > { %v4074_v11 = vpop.f32.mrf.mxu2  ;;  %v4073_v20 = vadd.f32 %v4072_v35, %v3974_v55  ;;  %4012 = vmatmul.bf16.gmra.mxu1 %v14835_v45  ;;  %v14838_v55 = vld [vmem:[#allocation131_spill] sm:$0xff] }
 0x4ec   : > { %v3876_v13 = vpop.f32.mrf.mxu0  ;;  %v5698_v2 = vmax.f32 %v4073_v20, 0.0 }
 0x4ed   : > { %v3877_v30 = vadd.f32 %v3876_v13, %v11857_v22  ;;  %v12279_v46 = vpop.f32.mrf.mxu3  ;;  %v8339_v22 = vld [vmem:[%s14239_s1 + $0x460] sm:$0xf]  ;;  %v9095_v13 = vld [vmem:[%s14239_s1 + $0x474] sm:$0xf0] }
 0x4ef   : > { %8685 = vmatmul.msk.bf16.gmra.mxu2 %vm1007_vm5, %v14836_v60  ;;  %v3975_v40 = vpop.f32.mrf.mxu1 }
 0x4f0   : > { %v3976_v15 = vadd.f32 %v3975_v40, %v3877_v30  ;;  %v8340_v40 = vor.u32 %v9095_v13, %v8339_v22 }
 0x4f2   : > { %v4077_v63 = vpop.f32.mrf.mxu2  ;;  %v4075_v62 = vadd.f32 %v4074_v11, %v3976_v15  ;;  %4215 = vmatmul.bf16.gmra.mxu3 %v14837_v21  ;;  %4820 = vmatpush.bf16.msrb.mxu2 %v8340_v40 }
 0x4f4   : > { %v3879_v3 = vpop.f32.mrf.mxu0  ;;  %v5704_v23 = vmax.f32 %v4075_v62, 0.0 }
 0x4f5   : > { %v3880_v35 = vadd.f32 %v3879_v3, %v14838_v55  ;;  %v12285_v28 = vpop.f32.mrf.mxu3  ;;  %v14842_v3 = vld [vmem:[#allocation71_spill] sm:$0xff] }
 0x4f6   : > { %14839 = vst [vmem:[#allocation131_spill] sm:$0xff] %v12285_v28  ;;  %v12294_v11 = vpack.c.bf16 %v5704_v23, %v5698_v2  ;;  %v8999_v2 = vld [vmem:[%s14239_s1 + $0x174] sm:$0xf0] }
 0x4f7   : > { %3918 = vmatmul.bf16.gmra.mxu0 %v14840_v59  ;;  %v3978_v30 = vpop.f32.mrf.mxu1  ;;  %v7955_v59 = vld [vmem:[%s14239_s1 + $0x160] sm:$0xf] }
 0x4f8   : > { %14841 = vst [vmem:[#allocation148_spill] sm:$0xff] %v12294_v11  ;;  %v3979_v20 = vadd.f32 %v3978_v30, %v3880_v35  ;;  %v7956_v22 = vor.u32 %v8999_v2, %v7955_v59  ;;  %v9143_v35 = vld [vmem:[%s14239_s1 + $0x5f4] sm:$0xf0] }
 0x4f9   : > { %v9047_v59 = vld [vmem:[%s14239_s1 + $0x2f4] sm:$0xf0] }
 0x4fa   : > { %v4079_v62 = vpop.f32.mrf.mxu2  ;;  %v4078_v15 = vadd.f32 %v4077_v63, %v3979_v20  ;;  %4017 = vmatmul.bf16.gmra.mxu1 %v14842_v3  ;;  %v8531_v63 = vld [vmem:[%s14239_s1 + $0x5e0] sm:$0xf]  ;;  %4622 = vmatpush.bf16.msrb.mxu0 %v7956_v22 }
 0x4fb   : > { %v8532_v13 = vor.u32 %v9143_v35, %v8531_v63  ;;  %v14845_v35 = vld [vmem:[#allocation74_spill] sm:$0xff] }
 0x4fc   : > { %v3881_v55 = vpop.f32.mrf.mxu0 }
 0x4fd   : > { %v3882_v21 = vadd.f32 %v3881_v55, %v11896_v51  ;;  %v12304_v23 = vpop.f32.mrf.mxu3  ;;  %v8147_v51 = vld [vmem:[%s14239_s1 + $0x2e0] sm:$0xf]  ;;  %4919 = vmatpush.bf16.msrb.mxu3 %v8532_v13 }
 0x4fe   : > { %14843 = vst [vmem:[#allocation149_spill] sm:$0xff] %v12304_v23  ;;  %v8148_v40 = vor.u32 %v9047_v59, %v8147_v51  ;;  %v5710_v23 = vmax.f32 %v4078_v15, 0.0  ;;  %v14847_v59 = vld [vmem:[#allocation133_spill] sm:$0xff]  ;;  %v14849_v15 = vld [vmem:[#allocation3_spill] sm:$0xff] }
 0x4ff   : > { %8686 = vmatmul.msk.bf16.gmra.mxu2 %vm1007_vm5, %v11455_v31  ;;  %v3980_v30 = vpop.f32.mrf.mxu1 }
 0x500   : > { %v3981_v20 = vadd.f32 %v3980_v30, %v3882_v21  ;;  %4721 = vmatpush.bf16.msrb.mxu1 %v8148_v40 }
 0x502   : > { %v4082_v55 = vpop.f32.mrf.mxu2  ;;  %v4080_v2 = vadd.f32 %v4079_v62, %v3981_v20  ;;  %4220 = vmatmul.bf16.gmra.mxu3 %v14651_v52  ;;  %v14850_v52 = vld [vmem:[#allocation78_spill] sm:$0xff] }
 0x504   : > { %v3884_v11 = vpop.f32.mrf.mxu0  ;;  %v5716_v60 = vmax.f32 %v4080_v2, 0.0 }
 0x505   : > { %v3885_v31 = vadd.f32 %v3884_v11, %v11904_v37  ;;  %v12322_v63 = vpop.f32.mrf.mxu3 }
 0x506   : > { %14844 = vst [vmem:[#allocation150_spill] sm:$0xff] %v12322_v63  ;;  %v12325_v28 = vpack.c.bf16 %v5716_v60, %v5710_v23 }
 0x507   : > { %3923 = vmatmul.bf16.gmra.mxu0 %v14845_v35  ;;  %v3983_v22 = vpop.f32.mrf.mxu1 }
 0x508   : > { %14846 = vst [vmem:[#allocation151_spill] sm:$0xff] %v12325_v28  ;;  %v3984_v51 = vadd.f32 %v3983_v22, %v3885_v31  ;;  %v14853_v28 = vld [vmem:[#allocation6_spill] sm:$0xff] }
 0x50a   : > { %v4084_v21 = vpop.f32.mrf.mxu2  ;;  %v4083_v13 = vadd.f32 %v4082_v55, %v3984_v51  ;;  %4022 = vmatmul.bf16.gmra.mxu1 %v14748_v49  ;;  %v14851_v55 = vld [vmem:[#allocation134_spill] sm:$0xff]  ;;  %v14860_v49 = vld [vmem:[#allocation11_spill] sm:$0xff] }
 0x50c   : > { %v3886_v62 = vpop.f32.mrf.mxu0  ;;  %v5722_v31 = vmax.f32 %v4083_v13, 0.0  ;;  %v8315_v13 = vld [vmem:[%s14239_s1 + $0x430] sm:$0xf] }
 0x50d   : > { %v3887_v30 = vadd.f32 %v3886_v62, %v14847_v59  ;;  %v12329_v40 = vpop.f32.mrf.mxu3 }
 0x50e   : > { %14848 = vst [vmem:[#allocation133_spill] sm:$0xff] %v12329_v40 }
 0x50f   : > { %4432 = vmatmul.bf16.vlgmr.msra.gmra.mxu2 %v14849_v15  ;;  %v3985_v37 = vpop.f32.mrf.mxu1 }
 0x510   : > { %v3986_v11 = vadd.f32 %v3985_v37, %v3887_v30  ;;  %v14855_v37 = vld [vmem:[#allocation2_spill] sm:$0xff] }
 0x512   : > { %v4087_v20 = vpop.f32.mrf.mxu2  ;;  %v4085_v2 = vadd.f32 %v4084_v21, %v3986_v11  ;;  %8687 = vmatmul.msk.bf16.vlgmr.msra.gmra.mxu3 %vm1007_vm5, %v14850_v52  ;;  %v14856_v11 = vld [vmem:[#allocation80_spill] sm:$0xff] }
 0x514   : > { %v3889_v60 = vpop.f32.mrf.mxu0  ;;  %v5728_v23 = vmax.f32 %v4085_v2, 0.0  ;;  %v9089_v2 = vld [vmem:[%s14239_s1 + $0x444] sm:$0xf0] }
 0x515   : > { %v3890_v22 = vadd.f32 %v3889_v60, %v14851_v55  ;;  %v12335_v51 = vpop.f32.mrf.mxu3 }
 0x516   : > { %14852 = vst [vmem:[#allocation134_spill] sm:$0xff] %v12335_v51  ;;  %v12338_v62 = vpack.c.bf16 %v5728_v23, %v5722_v31  ;;  %v8316_v31 = vor.u32 %v9089_v2, %v8315_v13  ;;  %v8507_v23 = vld [vmem:[%s14239_s1 + $0x5b0] sm:$0xf] }
 0x517   : > { %4234 = vmatmul.bf16.vlgmr.msra.gmra.mxu0 %v14853_v28  ;;  %v3988_v59 = vpop.f32.mrf.mxu1 }
 0x518   : > { %14854 = vst [vmem:[#allocation152_spill] sm:$0xff] %v12338_v62  ;;  %v3989_v15 = vadd.f32 %v3988_v59, %v3890_v22  ;;  %v9137_v22 = vld [vmem:[%s14239_s1 + $0x5c4] sm:$0xf0]  ;;  %v8123_v59 = vld [vmem:[%s14239_s1 + $0x2b0] sm:$0xf]  ;;  %4821 = vmatpush.bf16.msrb.mxu2 %v8316_v31 }
 0x519   : > { %v8508_v13 = vor.u32 %v9137_v22, %v8507_v23 }
 0x51a   : > { %v4089_v35 = vpop.f32.mrf.mxu2  ;;  %v4088_v30 = vadd.f32 %v4087_v20, %v3989_v15  ;;  %4333 = vmatmul.bf16.vlgmr.msra.gmra.mxu1 %v14855_v37  ;;  %v7931_v15 = vld [vmem:[%s14239_s1 + $0x130] sm:$0xf]  ;;  %v8993_v20 = vld [vmem:[%s14239_s1 + $0x144] sm:$0xf0] }
 0x51b   : > { %v7932_v55 = vor.u32 %v8993_v20, %v7931_v15  ;;  %4920 = vmatpush.bf16.msrb.mxu3 %v8508_v13  ;;  %v14858_v20 = vld [vmem:[#allocation79_spill] sm:$0xff] }
 0x51c   : > { %v3891_v21 = vpop.f32.mrf.mxu0  ;;  %v14859_v37 = vld [vmem:[#allocation135_spill] sm:$0xff] }
 0x51d   : > { %v3892_v52 = vadd.f32 %v3891_v21, %v14856_v11  ;;  %v12348_v60 = vpop.f32.mrf.mxu3  ;;  %v9041_v21 = vld [vmem:[%s14239_s1 + $0x2c4] sm:$0xf0]  ;;  %4623 = vmatpush.bf16.msrb.mxu0 %v7932_v55 }
 0x51e   : > { %14857 = vst [vmem:[#allocation80_spill] sm:$0xff] %v12348_v60  ;;  %v8124_v2 = vor.u32 %v9041_v21, %v8123_v59  ;;  %v5734_v60 = vmax.f32 %v4088_v30, 0.0  ;;  %v14862_v59 = vld [vmem:[#allocation7_spill] sm:$0xff] }
 0x51f   : > { %4437 = vmatmul.bf16.gmra.mxu2 %v14764_v50  ;;  %v3990_v11 = vpop.f32.mrf.mxu1 }
 0x520   : > { %v3991_v62 = vadd.f32 %v3990_v11, %v3892_v52  ;;  %4722 = vmatpush.bf16.msrb.mxu1 %v8124_v2  ;;  %v14864_v2 = vld [vmem:[#allocation81_spill] sm:$0xff] }
 0x522   : > { %v4092_v50 = vpop.f32.mrf.mxu2  ;;  %v4090_v15 = vadd.f32 %v4089_v35, %v3991_v62  ;;  %8688 = vmatmul.msk.bf16.gmra.mxu3 %vm1007_vm5, %v14858_v20  ;;  %v14863_v62 = vld [vmem:[#allocation83_spill] sm:$0xff] }
 0x524   : > { %v3894_v28 = vpop.f32.mrf.mxu0  ;;  %v5740_v51 = vmax.f32 %v4090_v15, 0.0 }
 0x525   : > { %v3895_v40 = vadd.f32 %v3894_v28, %v14859_v37  ;;  %v12372_v63 = vpop.f32.mrf.mxu3 }
 0x526   : > { %v12375_v31 = vpack.c.bf16 %v5740_v51, %v5734_v60 }
 0x527   : > { %4239 = vmatmul.bf16.gmra.mxu0 %v14860_v49  ;;  %v3993_v52 = vpop.f32.mrf.mxu1 }
 0x528   : > { %14861 = vst [vmem:[#allocation135_spill] sm:$0xff] %v12375_v31  ;;  %v3994_v23 = vadd.f32 %v3993_v52, %v3895_v40  ;;  %v14865_v52 = vld [vmem:[#allocation15_spill] sm:$0xff] }
 0x52a   : > { %v4094_v55 = vpop.f32.mrf.mxu2  ;;  %v4093_v22 = vadd.f32 %v4092_v50, %v3994_v23  ;;  %4338 = vmatmul.bf16.gmra.mxu1 %v14862_v59 }
 0x52c   : > { %v3896_v35 = vpop.f32.mrf.mxu0  ;;  %v5746_v40 = vmax.f32 %v4093_v22, 0.0  ;;  %v9083_v22 = vld [vmem:[%s14239_s1 + $0x414] sm:$0xf0] }
 0x52d   : > { %v3897_v21 = vadd.f32 %v3896_v35, %v14863_v62  ;;  %v12379_v11 = vpop.f32.mrf.mxu3 }
 0x52f   : > { %4442 = vmatmul.bf16.gmra.mxu2 %v14772_v42  ;;  %v3995_v28 = vpop.f32.mrf.mxu1  ;;  %v14876_v42 = vld [vmem:[#allocation87_spill] sm:$0xff] }
 0x530   : > { %v3996_v30 = vadd.f32 %v3995_v28, %v3897_v21  ;;  %v14867_v28 = vld [vmem:[#allocation12_spill] sm:$0xff] }
 0x532   : > { %v4097_v37 = vpop.f32.mrf.mxu2  ;;  %v4095_v13 = vadd.f32 %v4094_v55, %v3996_v30  ;;  %8689 = vmatmul.msk.bf16.gmra.mxu3 %vm1007_vm5, %v14864_v2  ;;  %v14868_v30 = vld [vmem:[#allocation136_spill] sm:$0xff] }
 0x534   : > { %v3899_v51 = vpop.f32.mrf.mxu0  ;;  %v5752_v60 = vmax.f32 %v4095_v13, 0.0 }
 0x535   : > { %v3900_v50 = vadd.f32 %v3899_v51, %v11968_v10  ;;  %v12385_v15 = vpop.f32.mrf.mxu3  ;;  %v8291_v10 = vld [vmem:[%s14239_s1 + $0x400] sm:$0xf] }
 0x536   : > { %v12388_v23 = vpack.c.bf16 %v5752_v60, %v5746_v40  ;;  %v8292_v51 = vor.u32 %v9083_v22, %v8291_v10  ;;  %v8987_v10 = vld [vmem:[%s14239_s1 + $0x114] sm:$0xf0] }
 0x537   : > { %4244 = vmatmul.bf16.gmra.mxu0 %v14865_v52  ;;  %v3998_v35 = vpop.f32.mrf.mxu1  ;;  %v14875_v52 = vld [vmem:[#allocation16_spill] sm:$0xff] }
 0x538   : > { %14866 = vst [vmem:[#allocation11_spill] sm:$0xff] %v12388_v23  ;;  %v3999_v62 = vadd.f32 %v3998_v35, %v3900_v50  ;;  %4822 = vmatpush.bf16.msrb.mxu2 %v8292_v51  ;;  %v14870_v50 = vld [vmem:[#allocation84_spill] sm:$0xff]  ;;  %v14873_v51 = vld [vmem:[#allocation19_spill] sm:$0xff] }
 0x53a   : > { %v4099_v31 = vpop.f32.mrf.mxu2  ;;  %v4098_v21 = vadd.f32 %v4097_v37, %v3999_v62  ;;  %4343 = vmatmul.bf16.gmra.mxu1 %v14867_v28 }
 0x53c   : > { %v3901_v55 = vpop.f32.mrf.mxu0  ;;  %v5758_v62 = vmax.f32 %v4098_v21, 0.0  ;;  %v9131_v21 = vld [vmem:[%s14239_s1 + $0x594] sm:$0xf0] }
 0x53d   : > { %v3902_v2 = vadd.f32 %v3901_v55, %v14868_v30  ;;  %v12392_v20 = vpop.f32.mrf.mxu3  ;;  %v14871_v30 = vld [vmem:[#allocation138_spill] sm:$0xff] }
 0x53e   : > { %14869 = vst [vmem:[#allocation83_spill] sm:$0xff] %v12392_v20 }
 0x53f   : > { %4447 = vmatmul.bf16.gmra.mxu2 %v14778_v8  ;;  %v4000_v13 = vpop.f32.mrf.mxu1  ;;  %v7907_v8 = vld [vmem:[%s14239_s1 + $0x100] sm:$0xf] }
 0x540   : > { %v4001_v37 = vadd.f32 %v4000_v13, %v3902_v2  ;;  %v7908_v22 = vor.u32 %v8987_v10, %v7907_v8  ;;  %v8099_v13 = vld [vmem:[%s14239_s1 + $0x280] sm:$0xf] }
 0x542   : > { %v4102_v40 = vpop.f32.mrf.mxu2  ;;  %v4100_v60 = vadd.f32 %v4099_v31, %v4001_v37  ;;  %8690 = vmatmul.msk.bf16.gmra.mxu3 %vm1007_vm5, %v14870_v50  ;;  %v8483_v31 = vld [vmem:[%s14239_s1 + $0x580] sm:$0xf]  ;;  %4624 = vmatpush.bf16.msrb.mxu0 %v7908_v22 }
 0x543   : > { %v8484_v37 = vor.u32 %v9131_v21, %v8483_v31  ;;  %v14878_v22 = vld [vmem:[#allocation86_spill] sm:$0xff] }
 0x544   : > { %v3904_v35 = vpop.f32.mrf.mxu0  ;;  %v5764_v55 = vmax.f32 %v4100_v60, 0.0  ;;  %v9035_v60 = vld [vmem:[%s14239_s1 + $0x294] sm:$0xf0] }
 0x545   : > { %v3905_v23 = vadd.f32 %v3904_v35, %v14871_v30  ;;  %v12410_v2 = vpop.f32.mrf.mxu3  ;;  %v8100_v30 = vor.u32 %v9035_v60, %v8099_v13  ;;  %4921 = vmatpush.bf16.msrb.mxu3 %v8484_v37 }
 0x546   : > { %14872 = vst [vmem:[#allocation136_spill] sm:$0xff] %v12410_v2  ;;  %v12425_v8 = vpack.c.bf16 %v5764_v55, %v5758_v62 }
 0x547   : > { %4249 = vmatmul.bf16.gmra.mxu0 %v14873_v51  ;;  %v4003_v35 = vpop.f32.mrf.mxu1  ;;  %4723 = vmatpush.bf16.msrb.mxu1 %v8100_v30 }
 0x548   : > { %14874 = vst [vmem:[#allocation138_spill] sm:$0xff] %v12425_v8  ;;  %v4004_v10 = vadd.f32 %v4003_v35, %v3905_v23  ;;  %v14880_v35 = vld [vmem:[#allocation23_spill] sm:$0xff] }
 0x54a   : > { %v4104_v50 = vpop.f32.mrf.mxu2  ;;  %v4103_v2 = vadd.f32 %v4102_v40, %v4004_v10  ;;  %4348 = vmatmul.bf16.gmra.mxu1 %v14875_v52 }
 0x54c   : > { %v3906_v20 = vpop.f32.mrf.mxu0  ;;  %v5770_v13 = vmax.f32 %v4103_v2, 0.0  ;;  %v14885_v2 = vld [vmem:[#allocation25_spill] sm:$0xff] }
 0x54d   : > { %v3907_v51 = vadd.f32 %v3906_v20, %v14876_v42  ;;  %v12429_v31 = vpop.f32.mrf.mxu3 }
 0x54e   : > { %14877 = vst [vmem:[#allocation87_spill] sm:$0xff] %v12429_v31 }
 0x54f   : > { %4452 = vmatmul.bf16.gmra.mxu2 %v14785_v24  ;;  %v4005_v21 = vpop.f32.mrf.mxu1 }
 0x550   : > { %v4006_v62 = vadd.f32 %v4005_v21, %v3907_v51  ;;  %v14882_v21 = vld [vmem:[#allocation20_spill] sm:$0xff] }
 0x552   : > { %v4107_v55 = vpop.f32.mrf.mxu2  ;;  %v4105_v8 = vadd.f32 %v4104_v50, %v4006_v62  ;;  %8691 = vmatmul.msk.bf16.gmra.mxu3 %vm1007_vm5, %v14878_v22  ;;  %v14883_v62 = vld [vmem:[#allocation90_spill] sm:$0xff] }
 0x554   : > { %v3909_v23 = vpop.f32.mrf.mxu0  ;;  %v5776_v37 = vmax.f32 %v4105_v8, 0.0 }
 0x555   : > { %v3910_v40 = vadd.f32 %v3909_v23, %v12022_v5  ;;  %v12435_v60 = vpop.f32.mrf.mxu3 }
 0x556   : > { %14879 = vst [vmem:[#allocation153_spill] sm:$0xff] %v12435_v60  ;;  %v12438_v42 = vpack.c.bf16 %v5776_v37, %v5770_v13 }
 0x557   : > { %4254 = vmatmul.bf16.gmra.mxu0 %v14880_v35  ;;  %v4008_v20 = vpop.f32.mrf.mxu1  ;;  %v14886_v35 = vld [vmem:[#allocation89_spill] sm:$0xff] }
 0x558   : > { %14881 = vst [vmem:[#allocation154_spill] sm:$0xff] %v12438_v42  ;;  %v4009_v30 = vadd.f32 %v4008_v20, %v3910_v40 }
 0x55a   : > { %v4109_v10 = vpop.f32.mrf.mxu2  ;;  %v4108_v51 = vadd.f32 %v4107_v55, %v4009_v30  ;;  %4353 = vmatmul.bf16.gmra.mxu1 %v14882_v21  ;;  %v14887_v55 = vld [vmem:[#allocation141_spill] sm:$0xff]  ;;  %v8267_v30 = vld [vmem:[%s14239_s1 + $0x3d0] sm:$0xf] }
 0x55b   : > { %v14892_v21 = vld [vmem:[#allocation93_spill] sm:$0xff] }
 0x55c   : > { %v3911_v50 = vpop.f32.mrf.mxu0  ;;  %v5782_v37 = vmax.f32 %v4108_v51, 0.0  ;;  %v8459_v51 = vld [vmem:[%s14239_s1 + $0x550] sm:$0xf] }
 0x55d   : > { %v3912_v22 = vadd.f32 %v3911_v50, %v14883_v62  ;;  %v12442_v24 = vpop.f32.mrf.mxu3  ;;  %v9077_v50 = vld [vmem:[%s14239_s1 + $0x3e4] sm:$0xf0] }
 0x55e   : > { %14884 = vst [vmem:[#allocation90_spill] sm:$0xff] %v12442_v24 }
 0x55f   : > { %4457 = vmatmul.bf16.gmra.mxu2 %v14885_v2  ;;  %v4010_v5 = vpop.f32.mrf.mxu1 }
 0x560   : > { %v4011_v8 = vadd.f32 %v4010_v5, %v3912_v22  ;;  %v8268_v22 = vor.u32 %v9077_v50, %v8267_v30  ;;  %v14889_v5 = vld [vmem:[#allocation27_spill] sm:$0xff] }
 0x561   : > { %v9029_v30 = vld [vmem:[%s14239_s1 + $0x264] sm:$0xf0] }
 0x562   : > { %v4112_v23 = vpop.f32.mrf.mxu2  ;;  %v4110_v60 = vadd.f32 %v4109_v10, %v4011_v8  ;;  %8692 = vmatmul.msk.bf16.gmra.mxu3 %vm1007_vm5, %v14886_v35  ;;  %v7883_v10 = vld [vmem:[%s14239_s1 + $0xd0] sm:$0xf]  ;;  %4823 = vmatpush.bf16.msrb.mxu2 %v8268_v22 }
 0x564   : > { %v3914_v13 = vpop.f32.mrf.mxu0  ;;  %v5788_v40 = vmax.f32 %v4110_v60, 0.0  ;;  %v8981_v60 = vld [vmem:[%s14239_s1 + $0xe4] sm:$0xf0] }
 0x565   : > { %v3915_v20 = vadd.f32 %v3914_v13, %v14887_v55  ;;  %v12454_v62 = vpop.f32.mrf.mxu3  ;;  %v7884_v8 = vor.u32 %v8981_v60, %v7883_v10  ;;  %v9125_v13 = vld [vmem:[%s14239_s1 + $0x564] sm:$0xf0]  ;;  %v8075_v55 = vld [vmem:[%s14239_s1 + $0x250] sm:$0xf] }
 0x566   : > { %14888 = vst [vmem:[#allocation141_spill] sm:$0xff] %v12454_v62  ;;  %v12475_v50 = vpack.c.bf16 %v5788_v40, %v5782_v37  ;;  %v8460_v35 = vor.u32 %v9125_v13, %v8459_v51  ;;  %v8076_v2 = vor.u32 %v9029_v30, %v8075_v55  ;;  %v14891_v62 = vld [vmem:[#allocation24_spill] sm:$0xff] }
 0x567   : > { %4259 = vmatmul.bf16.gmra.mxu0 %v14889_v5  ;;  %v4013_v42 = vpop.f32.mrf.mxu1  ;;  %v14893_v13 = vld [vmem:[#allocation92_spill] sm:$0xff] }
 0x568   : > { %14890 = vst [vmem:[#allocation155_spill] sm:$0xff] %v12475_v50  ;;  %v4014_v5 = vadd.f32 %v4013_v42, %v3915_v20  ;;  %4625 = vmatpush.bf16.msrb.mxu0 %v7884_v8  ;;  %4922 = vmatpush.bf16.msrb.mxu3 %v8460_v35  ;;  %v14896_v30 = vld [vmem:[#allocation28_spill] sm:$0xff]  ;;  %v14898_v50 = vld [vmem:[#allocation95_spill] sm:$0xff] }
 0x569   : > { %4724 = vmatpush.bf16.msrb.mxu1 %v8076_v2 }
 0x56a   : > { %v4114_v10 = vpop.f32.mrf.mxu2  ;;  %v4113_v60 = vadd.f32 %v4112_v23, %v4014_v5  ;;  %4358 = vmatmul.bf16.gmra.mxu1 %v14891_v62  ;;  %v14894_v5 = vld [vmem:[#allocation31_spill] sm:$0xff] }
 0x56c   : > { %v3916_v24 = vpop.f32.mrf.mxu0  ;;  %v5794_v35 = vmax.f32 %v4113_v60, 0.0 }
 0x56d   : > { %v3917_v31 = vadd.f32 %v3916_v24, %v14892_v21  ;;  %v12479_v52 = vpop.f32.mrf.mxu3 }
 0x56f   : > { %4462 = vmatmul.bf16.gmra.mxu2 %v14800_v48  ;;  %v4015_v37 = vpop.f32.mrf.mxu1 }
 0x570   : > { %v4016_v40 = vadd.f32 %v4015_v37, %v3917_v31 }
 0x572   : > { %v4117_v22 = vpop.f32.mrf.mxu2  ;;  %v4115_v51 = vadd.f32 %v4114_v10, %v4016_v40  ;;  %8693 = vmatmul.msk.bf16.gmra.mxu3 %vm1007_vm5, %v14893_v13 }
 0x574   : > { %v3919_v42 = vpop.f32.mrf.mxu0  ;;  %v5800_v2 = vmax.f32 %v4115_v51, 0.0 }
 0x575   : > { %v3920_v23 = vadd.f32 %v3919_v42, %v12070_v53  ;;  %v12485_v20 = vpop.f32.mrf.mxu3 }
 0x576   : > { %v12488_v24 = vpack.c.bf16 %v5800_v2, %v5794_v35 }
 0x577   : > { %4264 = vmatmul.bf16.gmra.mxu0 %v14894_v5  ;;  %v4018_v21 = vpop.f32.mrf.mxu1 }
 0x578   : > { %14895 = vst [vmem:[#allocation93_spill] sm:$0xff] %v12488_v24  ;;  %v4019_v8 = vadd.f32 %v4018_v21, %v3920_v23  ;;  %v14901_v24 = vld [vmem:[#allocation36_spill] sm:$0xff] }
 0x57a   : > { %v4119_v55 = vpop.f32.mrf.mxu2  ;;  %v4118_v31 = vadd.f32 %v4117_v22, %v4019_v8  ;;  %4363 = vmatmul.bf16.gmra.mxu1 %v14896_v30  ;;  %v14899_v22 = vld [vmem:[#allocation143_spill] sm:$0xff] }
 0x57c   : > { %v3921_v10 = vpop.f32.mrf.mxu0  ;;  %v5806_v2 = vmax.f32 %v4118_v31, 0.0 }
 0x57d   : > { %v3922_v37 = vadd.f32 %v3921_v10, %v12076_v44  ;;  %v12492_v40 = vpop.f32.mrf.mxu3 }
 0x57e   : > { %14897 = vst [vmem:[#allocation28_spill] sm:$0xff] %v12492_v40  ;;  %v14906_v40 = vld [vmem:[#allocation40_spill] sm:$0xff] }
 0x57f   : > { %4467 = vmatmul.bf16.gmra.mxu2 %v14807_v25  ;;  %v4020_v53 = vpop.f32.mrf.mxu1 }
 0x580   : > { %v4021_v60 = vadd.f32 %v4020_v53, %v3922_v37  ;;  %v9071_v37 = vld [vmem:[%s14239_s1 + $0x3b4] sm:$0xf0] }
 0x582   : > { %v4122_v51 = vpop.f32.mrf.mxu2  ;;  %v4120_v42 = vadd.f32 %v4119_v55, %v4021_v60  ;;  %8694 = vmatmul.msk.bf16.gmra.mxu3 %vm1007_vm5, %v14898_v50  ;;  %v8243_v55 = vld [vmem:[%s14239_s1 + $0x3a0] sm:$0xf] }
 0x583   : > { %v8244_v53 = vor.u32 %v9071_v37, %v8243_v55  ;;  %v9119_v37 = vld [vmem:[%s14239_s1 + $0x534] sm:$0xf0] }
 0x584   : > { %v3924_v35 = vpop.f32.mrf.mxu0  ;;  %v5812_v23 = vmax.f32 %v4120_v42, 0.0  ;;  %v14903_v42 = vld [vmem:[#allocation32_spill] sm:$0xff] }
 0x585   : > { %v3925_v21 = vadd.f32 %v3924_v35, %v14899_v22  ;;  %v12498_v8 = vpop.f32.mrf.mxu3  ;;  %4824 = vmatpush.bf16.msrb.mxu2 %v8244_v53  ;;  %v8051_v53 = vld [vmem:[%s14239_s1 + $0x220] sm:$0xf] }
 0x586   : > { %14900 = vst [vmem:[#allocation143_spill] sm:$0xff] %v12498_v8  ;;  %v12501_v44 = vpack.c.bf16 %v5812_v23, %v5806_v2  ;;  %v9413_v23 = vld [vmem:[%s14240_s2] sm:$0x3f] }
 0x587   : > { %4269 = vmatmul.bf16.gmra.mxu0 %v14901_v24  ;;  %v4023_v10 = vpop.f32.mrf.mxu1  ;;  %v12514_v22 = vperm.slane %v9413_v23, 3  ;;  %v14905_v24 = vld [vmem:[#allocation97_spill] sm:$0xff] }
 0x588   : > { %14902 = vst [vmem:[#allocation156_spill] sm:$0xff] %v12501_v44  ;;  %v4024_v13 = vadd.f32 %v4023_v10, %v3925_v21 }
 0x58a   : > { %v4124_v31 = vpop.f32.mrf.mxu2  ;;  %v4123_v60 = vadd.f32 %v4122_v51, %v4024_v13  ;;  %4368 = vmatmul.bf16.gmra.mxu1 %v14903_v42  ;;  %v7859_v13 = vld [vmem:[%s14239_s1 + $0xa0] sm:$0xf]  ;;  %v8975_v51 = vld [vmem:[%s14239_s1 + $0xb4] sm:$0xf0] }
 0x58b   : > { %v7860_v55 = vor.u32 %v8975_v51, %v7859_v13  ;;  %v4137_v13 = vadd.f32 %v12123_v54, %v12514_v22  ;;  %v4139_v54 = vadd.f32 %v12128_v36, %v12514_v22 }
 0x58c   : > { %v3926_v35 = vpop.f32.mrf.mxu0  ;;  %v5818_v25 = vmax.f32 %v4123_v60, 0.0 }
 0x58d   : > { %v3927_v2 = vadd.f32 %v3926_v35, %v12115_v43  ;;  %v12516_v21 = vpop.f32.mrf.mxu3  ;;  %v8435_v43 = vld [vmem:[%s14239_s1 + $0x520] sm:$0xf]  ;;  %v9023_v35 = vld [vmem:[%s14239_s1 + $0x234] sm:$0xf0]  ;;  %4626 = vmatpush.bf16.msrb.mxu0 %v7860_v55 }
 0x58e   : > { %14904 = vst [vmem:[#allocation157_spill] sm:$0xff] %v12516_v21  ;;  %v8436_v44 = vor.u32 %v9119_v37, %v8435_v43  ;;  %v8052_v50 = vor.u32 %v9023_v35, %v8051_v53 }
 0x58f   : > { %4472 = vmatmul.bf16.gmra.mxu2 %v14710_v16  ;;  %v4025_v10 = vpop.f32.mrf.mxu1 }
 0x590   : > { %v4026_v23 = vadd.f32 %v4025_v10, %v3927_v2  ;;  %4725 = vmatpush.bf16.msrb.mxu1 %v8052_v50  ;;  %4923 = vmatpush.bf16.msrb.mxu3 %v8436_v44 }
 0x592   : > { %v4433_v16 = vpop.f32.mrf.mxu2  ;;  %v4125_v51 = vadd.f32 %v4124_v31, %v4026_v23  ;;  %8695 = vmatmul.msk.bf16.gmra.mxu3 %vm1007_vm5, %v14905_v24 }
 0x594   : > { %v4235_v21 = vpop.f32.mrf.mxu0  ;;  %v5824_v8 = vmax.f32 %v4125_v51, 0.0  ;;  %v14908_v51 = vld [vmem:[#allocation8_spill] sm:$0xff] }
 0x595   : > { %v4236_v42 = vadd.f32 %v4235_v21, %v4137_v13  ;;  %v4532_v5 = vpop.f32.mrf.mxu3 }
 0x596   : > { %v12542_v2 = vpack.c.bf16 %v5824_v8, %v5818_v25  ;;  %v4142_v25 = vadd.f32 %v12134_v4, %v12514_v22  ;;  %v4144_v4 = vadd.f32 %v12147_v47, %v12514_v22  ;;  %v7835_v47 = vld [vmem:[%s14239_s1 + $0x70] sm:$0xf] }
 0x597   : > { %4274 = vmatmul.bf16.gmra.mxu0 %v14906_v40  ;;  %v4334_v43 = vpop.f32.mrf.mxu1 }
 0x598   : > { %14907 = vst [vmem:[#allocation40_spill] sm:$0xff] %v12542_v2  ;;  %v4335_v10 = vadd.f32 %v4334_v43, %v4236_v42  ;;  %v14911_v2 = vld [vmem:[#allocation4_spill] sm:$0xff] }
 0x59a   : > { %v4435_v55 = vpop.f32.mrf.mxu2  ;;  %v4434_v31 = vadd.f32 %v4433_v16, %v4335_v10  ;;  %4373 = vmatmul.bf16.gmra.mxu1 %v14809_v57 }
 0x59c   : > { %v4237_v50 = vpop.f32.mrf.mxu0  ;;  %v4533_v37 = vadd.f32 %v4532_v5, %v4434_v31 }
 0x59d   : > { %v4238_v44 = vadd.f32 %v4237_v50, %v4139_v54  ;;  %v4534_v60 = vpop.f32.mrf.mxu3 }
 0x59e   : > { %v5615_v13 = vmax.f32 %v4533_v37, 0.0  ;;  %v8219_v37 = vld [vmem:[%s14239_s1 + $0x370] sm:$0xf] }
 0x59f   : > { %4477 = vmatmul.bf16.gmra.mxu2 %v14713_v34  ;;  %v4336_v21 = vpop.f32.mrf.mxu1 }
 0x5a0   : > { %v4337_v53 = vadd.f32 %v4336_v21, %v4238_v44 }
 0x5a2   : > { %v4438_v35 = vpop.f32.mrf.mxu2  ;;  %v4436_v8 = vadd.f32 %v4435_v55, %v4337_v53  ;;  %8696 = vmatmul.msk.bf16.gmra.mxu3 %vm1007_vm5, %v11219_v9  ;;  %v9065_v53 = vld [vmem:[%s14239_s1 + $0x384] sm:$0xf0]  ;;  %v14947_v9 = vld [vmem:[#allocation5_spill] sm:$0xff] }
 0x5a4   : > { %v4240_v36 = vpop.f32.mrf.mxu0  ;;  %v4535_v16 = vadd.f32 %v4534_v60, %v4436_v8  ;;  %v8220_v8 = vor.u32 %v9065_v53, %v8219_v37 }
 0x5a5   : > { %v4241_v42 = vadd.f32 %v4240_v36, %v4142_v25  ;;  %v4537_v23 = vpop.f32.mrf.mxu3  ;;  %v8411_v36 = vld [vmem:[%s14239_s1 + $0x4f0] sm:$0xf] }
 0x5a6   : > { %v5621_v5 = vmax.f32 %v4535_v16, 0.0  ;;  %4825 = vmatpush.bf16.msrb.mxu2 %v8220_v8 }
 0x5a7   : > { %4279 = vmatmul.bf16.gmra.mxu0 %v14908_v51  ;;  %v4339_v43 = vpop.f32.mrf.mxu1 }
 0x5a8   : > { %v12553_v10 = vpack.c.bf16 %v5621_v5, %v5615_v13  ;;  %v4340_v54 = vadd.f32 %v4339_v43, %v4241_v42  ;;  %v8027_v13 = vld [vmem:[%s14239_s1 + $0x1f0] sm:$0xf]  ;;  %v9017_v5 = vld [vmem:[%s14239_s1 + $0x204] sm:$0xf0] }
 0x5aa   : > { %14909 = vst [vmem:[#allocation158_spill] sm:$0xff] %v12553_v10  ;;  %v4440_v31 = vpop.f32.mrf.mxu2  ;;  %v4439_v55 = vadd.f32 %v4438_v35, %v4340_v54  ;;  %4378 = vmatmul.bf16.gmra.mxu1 %v14811_v6  ;;  %v8969_v35 = vld [vmem:[%s14239_s1 + $0x84] sm:$0xf0] }
 0x5ab   : > { %v7836_v42 = vor.u32 %v8969_v35, %v7835_v47 }
 0x5ac   : > { %v4242_v50 = vpop.f32.mrf.mxu0  ;;  %v4538_v44 = vadd.f32 %v4537_v23, %v4439_v55  ;;  %v9113_v23 = vld [vmem:[%s14239_s1 + $0x504] sm:$0xf0]  ;;  %v4147_v55 = vadd.f32 %v12165_v61, %v12514_v22 }
 0x5ad   : > { %v4243_v60 = vadd.f32 %v4242_v50, %v4144_v4  ;;  %v4539_v21 = vpop.f32.mrf.mxu3  ;;  %v8412_v54 = vor.u32 %v9113_v23, %v8411_v36  ;;  %v8028_v4 = vor.u32 %v9017_v5, %v8027_v13  ;;  %4627 = vmatpush.bf16.msrb.mxu0 %v7836_v42 }
 0x5ae   : > { %v5627_v35 = vmax.f32 %v4538_v44, 0.0 }
 0x5af   : > { %4482 = vmatmul.bf16.gmra.mxu2 %v14716_v12  ;;  %v4341_v25 = vpop.f32.mrf.mxu1  ;;  %4924 = vmatpush.bf16.msrb.mxu3 %v8412_v54 }
 0x5b0   : > { %v4342_v16 = vadd.f32 %v4341_v25, %v4243_v60  ;;  %v14910_v60 = vld [vmem:[#allocation101_spill] sm:$0xff]  ;;  %4726 = vmatpush.bf16.msrb.mxu1 %v8028_v4 }
 0x5b2   : > { %v4443_v43 = vpop.f32.mrf.mxu2  ;;  %v4441_v50 = vadd.f32 %v4440_v31, %v4342_v16  ;;  %8697 = vmatmul.msk.bf16.gmra.mxu3 %vm1007_vm5, %v14910_v60  ;;  %v4149_v31 = vadd.f32 %v12172_v32, %v12514_v22 }
 0x5b4   : > { %v4245_v37 = vpop.f32.mrf.mxu0  ;;  %v4540_v53 = vadd.f32 %v4539_v21, %v4441_v50  ;;  %v4152_v50 = vadd.f32 %v12178_v0, %v12514_v22  ;;  %v4154_v0 = vadd.f32 %v12185_v29, %v12514_v22 }
 0x5b5   : > { %v4246_v25 = vadd.f32 %v4245_v37, %v4147_v55  ;;  %v4542_v47 = vpop.f32.mrf.mxu3 }
 0x5b6   : > { %v5633_v8 = vmax.f32 %v4540_v53, 0.0 }
 0x5b7   : > { %4284 = vmatmul.bf16.gmra.mxu0 %v14911_v2  ;;  %v4344_v36 = vpop.f32.mrf.mxu1 }
 0x5b8   : > { %v4345_v23 = vadd.f32 %v4344_v36, %v4246_v25  ;;  %v12588_v13 = vpack.c.bf16 %v5633_v8, %v5627_v35 }
 0x5ba   : > { %14912 = vst [vmem:[#allocation4_spill] sm:$0xff] %v12588_v13  ;;  %v4445_v61 = vpop.f32.mrf.mxu2  ;;  %v4444_v16 = vadd.f32 %v4443_v43, %v4345_v23  ;;  %4383 = vmatmul.bf16.gmra.mxu1 %v14813_v33  ;;  %v14919_v13 = vld [vmem:[#allocation51_spill] sm:$0xff] }
 0x5bc   : > { %v4247_v42 = vpop.f32.mrf.mxu0  ;;  %v4543_v5 = vadd.f32 %v4542_v47, %v4444_v16  ;;  %v14913_v47 = vld [vmem:[#allocation50_spill] sm:$0xff] }
 0x5bd   : > { %v4248_v21 = vadd.f32 %v4247_v42, %v4149_v31  ;;  %v4544_v54 = vpop.f32.mrf.mxu3 }
 0x5be   : > { %v5639_v35 = vmax.f32 %v4543_v5, 0.0  ;;  %v8195_v5 = vld [vmem:[%s14239_s1 + $0x340] sm:$0xf] }
 0x5bf   : > { %4487 = vmatmul.bf16.gmra.mxu2 %v14818_v56  ;;  %v4346_v44 = vpop.f32.mrf.mxu1 }
 0x5c0   : > { %v4347_v4 = vadd.f32 %v4346_v44, %v4248_v21 }
 0x5c2   : > { %v4448_v55 = vpop.f32.mrf.mxu2  ;;  %v4446_v37 = vadd.f32 %v4445_v61, %v4347_v4  ;;  %8698 = vmatmul.msk.bf16.gmra.mxu3 %vm1007_vm5, %v14722_v19  ;;  %v9059_v4 = vld [vmem:[%s14239_s1 + $0x354] sm:$0xf0] }
 0x5c4   : > { %v4250_v32 = vpop.f32.mrf.mxu0  ;;  %v4545_v43 = vadd.f32 %v4544_v54, %v4446_v37  ;;  %v8196_v37 = vor.u32 %v9059_v4, %v8195_v5  ;;  %v9011_v5 = vld [vmem:[%s14239_s1 + $0x1d4] sm:$0xf0] }
 0x5c5   : > { %v4251_v53 = vadd.f32 %v4250_v32, %v4152_v50  ;;  %v4547_v25 = vpop.f32.mrf.mxu3  ;;  %v14915_v32 = vld [vmem:[#allocation125_spill] sm:$0xff] }
 0x5c6   : > { %v5645_v8 = vmax.f32 %v4545_v43, 0.0  ;;  %4826 = vmatpush.bf16.msrb.mxu2 %v8196_v37  ;;  %v4157_v43 = vadd.f32 %v14915_v32, %v12514_v22 }
 0x5c7   : > { %4289 = vmatmul.bf16.gmra.mxu0 %v14913_v47  ;;  %v4349_v36 = vpop.f32.mrf.mxu1 }
 0x5c8   : > { %v4350_v23 = vadd.f32 %v4349_v36, %v4251_v53  ;;  %v12599_v31 = vpack.c.bf16 %v5645_v8, %v5639_v35 }
 0x5ca   : > { %14914 = vst [vmem:[#allocation50_spill] sm:$0xff] %v12599_v31  ;;  %v4450_v16 = vpop.f32.mrf.mxu2  ;;  %v4449_v61 = vadd.f32 %v4448_v55, %v4350_v23  ;;  %4388 = vmatmul.bf16.gmra.mxu1 %v14816_v41  ;;  %v7811_v23 = vld [vmem:[%s14239_s1 + $0x40] sm:$0xf] }
 0x5cc   : > { %v4252_v42 = vpop.f32.mrf.mxu0  ;;  %v4548_v21 = vadd.f32 %v4547_v25, %v4449_v61  ;;  %v14916_v25 = vld [vmem:[#allocation105_spill] sm:$0xff]  ;;  %v8387_v61 = vld [vmem:[%s14239_s1 + $0x4c0] sm:$0xf] }
 0x5cd   : > { %v4253_v54 = vadd.f32 %v4252_v42, %v4154_v0  ;;  %v4549_v44 = vpop.f32.mrf.mxu3  ;;  %v8963_v0 = vld [vmem:[%s14239_s1 + $0x54] sm:$0xf0] }
 0x5ce   : > { %v5651_v4 = vmax.f32 %v4548_v21, 0.0 }
 0x5cf   : > { %4492 = vmatmul.bf16.gmra.mxu2 %v14726_v58  ;;  %v4351_v50 = vpop.f32.mrf.mxu1 }
 0x5d0   : > { %v4352_v29 = vadd.f32 %v4351_v50, %v4253_v54  ;;  %v9107_v54 = vld [vmem:[%s14239_s1 + $0x4d4] sm:$0xf0]  ;;  %v14917_v50 = vld [vmem:[#allocation55_spill] sm:$0xff] }
 0x5d1   : > { %v8388_v37 = vor.u32 %v9107_v54, %v8387_v61  ;;  %v4162_v54 = vadd.f32 %v12228_v18, %v12514_v22  ;;  %v4164_v18 = vadd.f32 %v12235_v1, %v12514_v22 }
 0x5d2   : > { %v4453_v55 = vpop.f32.mrf.mxu2  ;;  %v4451_v53 = vadd.f32 %v4450_v16, %v4352_v29  ;;  %8699 = vmatmul.msk.bf16.gmra.mxu3 %vm1007_vm5, %v14916_v25  ;;  %v7812_v16 = vor.u32 %v8963_v0, %v7811_v23  ;;  %v4159_v0 = vadd.f32 %v12222_v26, %v12514_v22 }
 0x5d3   : > { %4925 = vmatpush.bf16.msrb.mxu3 %v8388_v37 }
 0x5d4   : > { %v4255_v35 = vpop.f32.mrf.mxu0  ;;  %v4550_v8 = vadd.f32 %v4549_v44, %v4451_v53  ;;  %v8003_v44 = vld [vmem:[%s14239_s1 + $0x1c0] sm:$0xf]  ;;  %4628 = vmatpush.bf16.msrb.mxu0 %v7812_v16 }
 0x5d5   : > { %v4256_v36 = vadd.f32 %v4255_v35, %v4157_v43  ;;  %v4552_v42 = vpop.f32.mrf.mxu3  ;;  %v8004_v29 = vor.u32 %v9011_v5, %v8003_v44 }
 0x5d6   : > { %v5657_v32 = vmax.f32 %v4550_v8, 0.0 }
 0x5d7   : > { %4294 = vmatmul.bf16.gmra.mxu0 %v14917_v50  ;;  %v4354_v43 = vpop.f32.mrf.mxu1  ;;  %4727 = vmatpush.bf16.msrb.mxu1 %v8004_v29 }
 0x5d8   : > { %v4355_v53 = vadd.f32 %v4354_v43, %v4256_v36  ;;  %v12634_v35 = vpack.c.bf16 %v5657_v32, %v5651_v4 }
 0x5da   : > { %14918 = vst [vmem:[#allocation125_spill] sm:$0xff] %v12634_v35  ;;  %v4455_v23 = vpop.f32.mrf.mxu2  ;;  %v4454_v31 = vadd.f32 %v4453_v55, %v4355_v53  ;;  %4393 = vmatmul.bf16.gmra.mxu1 %v14919_v13 }
 0x5dc   : > { %v4257_v21 = vpop.f32.mrf.mxu0  ;;  %v4553_v10 = vadd.f32 %v4552_v42, %v4454_v31  ;;  %v14920_v31 = vld [vmem:[#allocation59_spill] sm:$0xff] }
 0x5dd   : > { %v4258_v25 = vadd.f32 %v4257_v21, %v4159_v0  ;;  %v4554_v61 = vpop.f32.mrf.mxu3 }
 0x5de   : > { %v5663_v37 = vmax.f32 %v4553_v10, 0.0 }
 0x5df   : > { %4497 = vmatmul.bf16.gmra.mxu2 %v14728_v38  ;;  %v4356_v8 = vpop.f32.mrf.mxu1 }
 0x5e0   : > { %v4357_v16 = vadd.f32 %v4356_v8, %v4258_v25 }
 0x5e2   : > { %v4458_v36 = vpop.f32.mrf.mxu2  ;;  %v4456_v44 = vadd.f32 %v4455_v23, %v4357_v16  ;;  %8700 = vmatmul.msk.bf16.gmra.mxu3 %vm1007_vm5, %v11337_v39 }
 0x5e4   : > { %v4260_v26 = vpop.f32.mrf.mxu0  ;;  %v4555_v55 = vadd.f32 %v4554_v61, %v4456_v44 }
 0x5e5   : > { %v4261_v5 = vadd.f32 %v4260_v26, %v4162_v54  ;;  %v4557_v4 = vpop.f32.mrf.mxu3  ;;  %v4167_v54 = vadd.f32 %v12247_v7, %v12514_v22  ;;  %v14922_v26 = vld [vmem:[#allocation108_spill] sm:$0xff] }
 0x5e6   : > { %v5669_v42 = vmax.f32 %v4555_v55, 0.0 }
 0x5e7   : > { %4299 = vmatmul.bf16.gmra.mxu0 %v14920_v31  ;;  %v4359_v29 = vpop.f32.mrf.mxu1 }
 0x5e8   : > { %v4360_v32 = vadd.f32 %v4359_v29, %v4261_v5  ;;  %v12645_v43 = vpack.c.bf16 %v5669_v42, %v5663_v37  ;;  %v8171_v5 = vld [vmem:[%s14239_s1 + $0x310] sm:$0xf]  ;;  %v8957_v29 = vld [vmem:[%s14239_s1 + $0x24] sm:$0xf0] }
 0x5e9   : > { %v7787_v37 = vld [vmem:[%s14239_s1 + $0x10] sm:$0xf] }
 0x5ea   : > { %14921 = vst [vmem:[#allocation55_spill] sm:$0xff] %v12645_v43  ;;  %v4460_v25 = vpop.f32.mrf.mxu2  ;;  %v4459_v53 = vadd.f32 %v4458_v36, %v4360_v32  ;;  %4398 = vmatmul.bf16.gmra.mxu1 %v14824_v27  ;;  %v8363_v32 = vld [vmem:[%s14239_s1 + $0x490] sm:$0xf] }
 0x5ec   : > { %v4262_v23 = vpop.f32.mrf.mxu0  ;;  %v4558_v0 = vadd.f32 %v4557_v4, %v4459_v53  ;;  %v9053_v4 = vld [vmem:[%s14239_s1 + $0x324] sm:$0xf0]  ;;  %v14923_v53 = vld [vmem:[#allocation64_spill] sm:$0xff] }
 0x5ed   : > { %v4263_v21 = vadd.f32 %v4262_v23, %v4164_v18  ;;  %v4559_v61 = vpop.f32.mrf.mxu3  ;;  %v8172_v42 = vor.u32 %v9053_v4, %v8171_v5  ;;  %v7788_v23 = vor.u32 %v8957_v29, %v7787_v37  ;;  %v14925_v4 = vld [vmem:[#allocation129_spill] sm:$0xff] }
 0x5ee   : > { %v5675_v18 = vmax.f32 %v4558_v0, 0.0  ;;  %v4169_v37 = vadd.f32 %v14925_v4, %v12514_v22 }
 0x5ef   : > { %4502 = vmatmul.bf16.gmra.mxu2 %v14828_v14  ;;  %v4361_v10 = vpop.f32.mrf.mxu1  ;;  %4629 = vmatpush.bf16.msrb.mxu0 %v7788_v23 }
 0x5f0   : > { %v4362_v8 = vadd.f32 %v4361_v10, %v4263_v21  ;;  %v9005_v10 = vld [vmem:[%s14239_s1 + $0x1a4] sm:$0xf0]  ;;  %4827 = vmatpush.bf16.msrb.mxu2 %v8172_v42 }
 0x5f2   : > { %v4463_v16 = vpop.f32.mrf.mxu2  ;;  %v4461_v44 = vadd.f32 %v4460_v25, %v4362_v8  ;;  %8701 = vmatmul.msk.bf16.gmra.mxu3 %vm1007_vm5, %v14922_v26  ;;  %v9101_v25 = vld [vmem:[%s14239_s1 + $0x4a4] sm:$0xf0] }
 0x5f3   : > { %v8364_v21 = vor.u32 %v9101_v25, %v8363_v32  ;;  %v14926_v32 = vld [vmem:[#allocation60_spill] sm:$0xff]  ;;  %v14937_v26 = vld [vmem:[#allocation75_spill] sm:$0xff] }
 0x5f4   : > { %v4265_v1 = vpop.f32.mrf.mxu0  ;;  %v4560_v36 = vadd.f32 %v4559_v61, %v4461_v44  ;;  %v7979_v61 = vld [vmem:[%s14239_s1 + $0x190] sm:$0xf] }
 0x5f5   : > { %v4266_v55 = vadd.f32 %v4265_v1, %v4167_v54  ;;  %v4562_v7 = vpop.f32.mrf.mxu3  ;;  %v7980_v44 = vor.u32 %v9005_v10, %v7979_v61  ;;  %4926 = vmatpush.bf16.msrb.mxu3 %v8364_v21  ;;  %v14927_v61 = vld [vmem:[#allocation110_spill] sm:$0xff] }
 0x5f6   : > { %v5681_v8 = vmax.f32 %v4560_v36, 0.0 }
 0x5f7   : > { %4304 = vmatmul.bf16.gmra.mxu0 %v14923_v53  ;;  %v4364_v54 = vpop.f32.mrf.mxu1  ;;  %4728 = vmatpush.bf16.msrb.mxu1 %v7980_v44 }
 0x5f8   : > { %v4365_v1 = vadd.f32 %v4364_v54, %v4266_v55  ;;  %v12680_v0 = vpack.c.bf16 %v5681_v8, %v5675_v18  ;;  %v4172_v18 = vadd.f32 %v12272_v17, %v12514_v22  ;;  %v4174_v17 = vadd.f32 %v12279_v46, %v12514_v22 }
 0x5fa   : > { %14924 = vst [vmem:[#allocation59_spill] sm:$0xff] %v12680_v0  ;;  %v4465_v5 = vpop.f32.mrf.mxu2  ;;  %v4464_v29 = vadd.f32 %v4463_v16, %v4365_v1  ;;  %4403 = vmatmul.bf16.gmra.mxu1 %v14926_v32 }
 0x5fc   : > { %v4267_v25 = vpop.f32.mrf.mxu0  ;;  %v4563_v43 = vadd.f32 %v4562_v7, %v4464_v29  ;;  %v14928_v7 = vld [vmem:[#allocation68_spill] sm:$0xff] }
 0x5fd   : > { %v4268_v35 = vadd.f32 %v4267_v25, %v4169_v37  ;;  %v4564_v36 = vpop.f32.mrf.mxu3  ;;  %v14930_v25 = vld [vmem:[#allocation65_spill] sm:$0xff] }
 0x5fe   : > { %v5687_v44 = vmax.f32 %v4563_v43, 0.0 }
 0x5ff   : > { %4507 = vmatmul.bf16.gmra.mxu2 %v14835_v45  ;;  %v4366_v42 = vpop.f32.mrf.mxu1 }
 0x600   : > { %v4367_v55 = vadd.f32 %v4366_v42, %v4268_v35 }
 0x602   : > { %v4468_v23 = vpop.f32.mrf.mxu2  ;;  %v4466_v21 = vadd.f32 %v4465_v5, %v4367_v55  ;;  %8702 = vmatmul.msk.bf16.gmra.mxu3 %vm1007_vm5, %v14927_v61 }
 0x604   : > { %v4270_v10 = vpop.f32.mrf.mxu0  ;;  %v4565_v16 = vadd.f32 %v4564_v36, %v4466_v21 }
 0x605   : > { %v4271_v8 = vadd.f32 %v4270_v10, %v4172_v18  ;;  %v4567_v54 = vpop.f32.mrf.mxu3 }
 0x606   : > { %v5693_v1 = vmax.f32 %v4565_v16, 0.0  ;;  %v14931_v16 = vld [vmem:[#allocation131_spill] sm:$0xff] }
 0x607   : > { %4309 = vmatmul.bf16.gmra.mxu0 %v14928_v7  ;;  %v4369_v4 = vpop.f32.mrf.mxu1 }
 0x608   : > { %v4370_v37 = vadd.f32 %v4369_v4, %v4271_v8  ;;  %v12691_v29 = vpack.c.bf16 %v5693_v1, %v5687_v44  ;;  %v4177_v8 = vadd.f32 %v14931_v16, %v12514_v22  ;;  %v14932_v1 = vld [vmem:[#allocation112_spill] sm:$0xff] }
 0x60a   : > { %14929 = vst [vmem:[#allocation64_spill] sm:$0xff] %v12691_v29  ;;  %v4470_v35 = vpop.f32.mrf.mxu2  ;;  %v4469_v5 = vadd.f32 %v4468_v23, %v4370_v37  ;;  %4408 = vmatmul.bf16.gmra.mxu1 %v14930_v25 }
 0x60c   : > { %v4272_v42 = vpop.f32.mrf.mxu0  ;;  %v4568_v55 = vadd.f32 %v4567_v54, %v4469_v5  ;;  %v14933_v54 = vld [vmem:[#allocation73_spill] sm:$0xff] }
 0x60d   : > { %v4273_v36 = vadd.f32 %v4272_v42, %v4174_v17  ;;  %v4569_v18 = vpop.f32.mrf.mxu3  ;;  %v9044_v17 = vld [vmem:[%s14239_s1 + $0x2e4] sm:$0xf]  ;;  %v8149_v5 = vld [vmem:[%s14239_s1 + $0x2f8] sm:$0xf0] }
 0x60e   : > { %v5699_v29 = vmax.f32 %v4568_v55, 0.0  ;;  %v14935_v55 = vld [vmem:[#allocation149_spill] sm:$0xff] }
 0x60f   : > { %4512 = vmatmul.bf16.gmra.mxu2 %v14842_v3  ;;  %v4371_v43 = vpop.f32.mrf.mxu1  ;;  %v4179_v16 = vadd.f32 %v14935_v55, %v12514_v22 }
 0x610   : > { %v4372_v21 = vadd.f32 %v4371_v43, %v4273_v36  ;;  %v8152_v36 = vor.u32 %v9044_v17, %v8149_v5  ;;  %v8996_v5 = vld [vmem:[%s14239_s1 + $0x164] sm:$0xf] }
 0x612   : > { %v4473_v10 = vpop.f32.mrf.mxu2  ;;  %v4471_v44 = vadd.f32 %v4470_v35, %v4372_v21  ;;  %8703 = vmatmul.msk.bf16.gmra.mxu3 %vm1007_vm5, %v14932_v1  ;;  %5216 = vmatpush.bf16.msra.mxu2 %v8152_v36  ;;  %v7957_v36 = vld [vmem:[%s14239_s1 + $0x178] sm:$0xf0] }
 0x613   : > { %v7960_v55 = vor.u32 %v8996_v5, %v7957_v36 }
 0x614   : > { %v4275_v46 = vpop.f32.mrf.mxu0  ;;  %v4570_v23 = vadd.f32 %v4569_v18, %v4471_v44  ;;  %v14936_v44 = vld [vmem:[#allocation69_spill] sm:$0xff] }
 0x615   : > { %v4276_v4 = vadd.f32 %v4275_v46, %v4177_v8  ;;  %v4572_v37 = vpop.f32.mrf.mxu3  ;;  %5117 = vmatpush.bf16.msra.mxu1 %v7960_v55 }
 0x616   : > { %v5705_v42 = vmax.f32 %v4570_v23, 0.0  ;;  %v8627_v23 = vld [vmem:[%s14239_s1 + $0x6a0] sm:$0xf] }
 0x617   : > { %4314 = vmatmul.bf16.gmra.mxu0 %v14933_v54  ;;  %v4374_v35 = vpop.f32.mrf.mxu1 }
 0x618   : > { %v4375_v43 = vadd.f32 %v4374_v35, %v4276_v4  ;;  %v12708_v21 = vpack.c.bf16 %v5705_v42, %v5699_v29  ;;  %v9167_v29 = vld [vmem:[%s14239_s1 + $0x6b4] sm:$0xf0] }
 0x619   : > { %v8628_v17 = vor.u32 %v9167_v29, %v8627_v23  ;;  %v14939_v23 = vld [vmem:[#allocation114_spill] sm:$0xff] }
 0x61a   : > { %14934 = vst [vmem:[#allocation129_spill] sm:$0xff] %v12708_v21  ;;  %v4475_v18 = vpop.f32.mrf.mxu2  ;;  %v4474_v8 = vadd.f32 %v4473_v10, %v4375_v43  ;;  %4413 = vmatmul.bf16.gmra.mxu1 %v14936_v44  ;;  %v9092_v10 = vld [vmem:[%s14239_s1 + $0x464] sm:$0xf] }
 0x61b   : > { %5022 = vmatpush.bf16.msra.mxu0 %v8628_v17 }
 0x61c   : > { %v4277_v46 = vpop.f32.mrf.mxu0  ;;  %v4573_v0 = vadd.f32 %v4572_v37, %v4474_v8  ;;  %v8341_v37 = vld [vmem:[%s14239_s1 + $0x478] sm:$0xf0] }
 0x61d   : > { %v4278_v1 = vadd.f32 %v4277_v46, %v4179_v16  ;;  %v4574_v61 = vpop.f32.mrf.mxu3  ;;  %v8344_v35 = vor.u32 %v9092_v10, %v8341_v37  ;;  %v14938_v16 = vld [vmem:[#allocation150_spill] sm:$0xff]  ;;  %v14940_v37 = vld [vmem:[#allocation77_spill] sm:$0xff] }
 0x61e   : > { %v4182_v8 = vadd.f32 %v14938_v16, %v12514_v22  ;;  %v5711_v10 = vmax.f32 %v4573_v0, 0.0 }
 0x61f   : > { %4517 = vmatmul.bf16.gmra.mxu2 %v14937_v26  ;;  %v4376_v4 = vpop.f32.mrf.mxu1  ;;  %5315 = vmatpush.bf16.msra.mxu3 %v8344_v35 }
 0x620   : > { %v4377_v42 = vadd.f32 %v4376_v4, %v4278_v1 }
 0x622   : > { %v4478_v43 = vpop.f32.mrf.mxu2  ;;  %v4476_v46 = vadd.f32 %v4475_v18, %v4377_v42  ;;  %8704 = vmatmul.msk.bf16.gmra.mxu3 %vm1007_vm5, %v14939_v23  ;;  %v14942_v18 = vld [vmem:[#allocation133_spill] sm:$0xff]  ;;  %v14943_v23 = vld [vmem:[#allocation74_spill] sm:$0xff] }
 0x623   : > { %v4184_v42 = vadd.f32 %v14942_v18, %v12514_v22 }
 0x624   : > { %v4280_v29 = vpop.f32.mrf.mxu0  ;;  %v4575_v21 = vadd.f32 %v4574_v61, %v4476_v46  ;;  %v14944_v46 = vld [vmem:[#allocation2_spill] sm:$0xff] }
 0x625   : > { %v4281_v1 = vadd.f32 %v4280_v29, %v4182_v8  ;;  %v4577_v4 = vpop.f32.mrf.mxu3 }
 0x626   : > { %v5717_v39 = vmax.f32 %v4575_v21, 0.0 }
 0x627   : > { %4319 = vmatmul.bf16.gmra.mxu0 %v14940_v37  ;;  %v4379_v19 = vpop.f32.mrf.mxu1 }
 0x628   : > { %v4380_v17 = vadd.f32 %v4379_v19, %v4281_v1  ;;  %v12737_v5 = vpack.c.bf16 %v5717_v39, %v5711_v10  ;;  %v14945_v19 = vld [vmem:[#allocation134_spill] sm:$0xff]  ;;  %v14946_v10 = vld [vmem:[#allocation3_spill] sm:$0xff] }
 0x629   : > { %v4187_v39 = vadd.f32 %v14945_v19, %v12514_v22 }
 0x62a   : > { %14941 = vst [vmem:[#allocation68_spill] sm:$0xff] %v12737_v5  ;;  %v4480_v36 = vpop.f32.mrf.mxu2  ;;  %v4479_v16 = vadd.f32 %v4478_v43, %v4380_v17  ;;  %4418 = vmatmul.bf16.gmra.mxu1 %v14943_v23 }
 0x62c   : > { %v4282_v35 = vpop.f32.mrf.mxu0  ;;  %v4578_v55 = vadd.f32 %v4577_v4, %v4479_v16 }
 0x62d   : > { %v4283_v61 = vadd.f32 %v4282_v35, %v4184_v42  ;;  %v4579_v8 = vpop.f32.mrf.mxu3 }
 0x62e   : > { %v5723_v60 = vmax.f32 %v4578_v55, 0.0  ;;  %v9038_v55 = vld [vmem:[%s14239_s1 + $0x2b4] sm:$0xf] }
 0x62f   : > { %4828 = vmatmul.bf16.vlgmr.msrb.gmra.mxu2 %v14944_v46  ;;  %v4381_v0 = vpop.f32.mrf.mxu1 }
 0x630   : > { %v4382_v29 = vadd.f32 %v4381_v0, %v4283_v61  ;;  %v14949_v0 = vld [vmem:[#allocation80_spill] sm:$0xff] }
 0x631   : > { %v4189_v24 = vadd.f32 %v14949_v0, %v12514_v22  ;;  %v4192_v0 = vadd.f32 %v12372_v63, %v12514_v22  ;;  %v4194_v63 = vadd.f32 %v12379_v11, %v12514_v22 }
 0x632   : > { %v4483_v21 = vpop.f32.mrf.mxu2  ;;  %v4481_v1 = vadd.f32 %v4480_v36, %v4382_v29  ;;  %4927 = vmatmul.bf16.vlgmr.msrb.gmra.mxu3 %v14946_v10  ;;  %v14950_v36 = vld [vmem:[#allocation6_spill] sm:$0xff] }
 0x634   : > { %v4285_v5 = vpop.f32.mrf.mxu0  ;;  %v4580_v18 = vadd.f32 %v4579_v8, %v4481_v1 }
 0x635   : > { %v4286_v43 = vadd.f32 %v4285_v5, %v4187_v39  ;;  %v4582_v17 = vpop.f32.mrf.mxu3 }
 0x636   : > { %v5729_v4 = vmax.f32 %v4580_v18, 0.0  ;;  %v8990_v18 = vld [vmem:[%s14239_s1 + $0x134] sm:$0xf] }
 0x637   : > { %4630 = vmatmul.bf16.vlgmr.msrb.gmra.mxu0 %v14947_v9  ;;  %v4384_v42 = vpop.f32.mrf.mxu1 }
 0x638   : > { %v4385_v16 = vadd.f32 %v4384_v42, %v4286_v43  ;;  %v12747_v35 = vpack.c.bf16 %v5729_v4, %v5723_v60  ;;  %v8125_v60 = vld [vmem:[%s14239_s1 + $0x2c8] sm:$0xf0] }
 0x639   : > { %v8128_v1 = vor.u32 %v9038_v55, %v8125_v60  ;;  %v7933_v4 = vld [vmem:[%s14239_s1 + $0x148] sm:$0xf0] }
 0x63a   : > { %14948 = vst [vmem:[#allocation65_spill] sm:$0xff] %v12747_v35  ;;  %v4485_v61 = vpop.f32.mrf.mxu2  ;;  %v4484_v19 = vadd.f32 %v4483_v21, %v4385_v16  ;;  %4729 = vmatmul.bf16.vlgmr.msrb.gmra.mxu1 %v14950_v36  ;;  %v9086_v21 = vld [vmem:[%s14239_s1 + $0x434] sm:$0xf]  ;;  %v7936_v16 = vor.u32 %v8990_v18, %v7933_v4 }
 0x63b   : > { %5217 = vmatpush.bf16.msra.mxu2 %v8128_v1 }
 0x63c   : > { %v4287_v29 = vpop.f32.mrf.mxu0  ;;  %v4583_v10 = vadd.f32 %v4582_v17, %v4484_v19  ;;  %5118 = vmatpush.bf16.msra.mxu1 %v7936_v16 }
 0x63d   : > { %v4288_v8 = vadd.f32 %v4287_v29, %v4189_v24  ;;  %v4584_v5 = vpop.f32.mrf.mxu3  ;;  %v8317_v24 = vld [vmem:[%s14239_s1 + $0x448] sm:$0xf0]  ;;  %v14951_v29 = vld [vmem:[#allocation9_spill] sm:$0xff] }
 0x63e   : > { %v8320_v17 = vor.u32 %v9086_v21, %v8317_v24  ;;  %v14952_v21 = vld [vmem:[#allocation10_spill] sm:$0xff] }
 0x63f   : > { %4833 = vmatmul.bf16.gmra.mxu2 %v14862_v59  ;;  %v4386_v39 = vpop.f32.mrf.mxu1 }
 0x640   : > { %v4387_v43 = vadd.f32 %v4386_v39, %v4288_v8  ;;  %5316 = vmatpush.bf16.msra.mxu3 %v8320_v17  ;;  %v5735_v39 = vmax.f32 %v4583_v10, 0.0 }
 0x642   : > { %v4488_v42 = vpop.f32.mrf.mxu2  ;;  %v4486_v19 = vadd.f32 %v4485_v61, %v4387_v43  ;;  %4932 = vmatmul.bf16.gmra.mxu3 %v14951_v29 }
 0x644   : > { %v4290_v55 = vpop.f32.mrf.mxu0  ;;  %v4585_v60 = vadd.f32 %v4584_v5, %v4486_v19  ;;  %v14954_v19 = vld [vmem:[#allocation13_spill] sm:$0xff] }
 0x645   : > { %v4291_v35 = vadd.f32 %v4290_v55, %v4192_v0  ;;  %v4587_v8 = vpop.f32.mrf.mxu3 }
 0x646   : > { %v5741_v24 = vmax.f32 %v4585_v60, 0.0 }
 0x647   : > { %4635 = vmatmul.bf16.gmra.mxu0 %v14952_v21  ;;  %v4389_v59 = vpop.f32.mrf.mxu1 }
 0x648   : > { %v4390_v9 = vadd.f32 %v4389_v59, %v4291_v35  ;;  %v12775_v1 = vpack.c.bf16 %v5741_v24, %v5735_v39  ;;  %v4197_v59 = vadd.f32 %v12385_v15, %v12514_v22  ;;  %v14955_v39 = vld [vmem:[#allocation14_spill] sm:$0xff] }
 0x64a   : > { %14953 = vst [vmem:[#allocation131_spill] sm:$0xff] %v12775_v1  ;;  %v4490_v18 = vpop.f32.mrf.mxu2  ;;  %v4489_v61 = vadd.f32 %v4488_v42, %v4390_v9  ;;  %4734 = vmatmul.bf16.gmra.mxu1 %v14860_v49 }
 0x64c   : > { %v4292_v43 = vpop.f32.mrf.mxu0  ;;  %v4588_v17 = vadd.f32 %v4587_v8, %v4489_v61 }
 0x64d   : > { %v4293_v5 = vadd.f32 %v4292_v43, %v4194_v63  ;;  %v4589_v4 = vpop.f32.mrf.mxu3 }
 0x64e   : > { %v5747_v60 = vmax.f32 %v4588_v17, 0.0  ;;  %v9032_v17 = vld [vmem:[%s14239_s1 + $0x284] sm:$0xf] }
 0x64f   : > { %4838 = vmatmul.bf16.gmra.mxu2 %v14867_v28  ;;  %v4391_v10 = vpop.f32.mrf.mxu1 }
 0x650   : > { %v4392_v16 = vadd.f32 %v4391_v10, %v4293_v5  ;;  %v14957_v5 = vld [vmem:[#allocation83_spill] sm:$0xff] }
 0x651   : > { %v4199_v10 = vadd.f32 %v14957_v5, %v12514_v22 }
 0x652   : > { %v4493_v0 = vpop.f32.mrf.mxu2  ;;  %v4491_v35 = vadd.f32 %v4490_v18, %v4392_v16  ;;  %4937 = vmatmul.bf16.gmra.mxu3 %v14954_v19  ;;  %v14958_v18 = vld [vmem:[#allocation15_spill] sm:$0xff] }
 0x653   : > { %v14964_v19 = vld [vmem:[#allocation87_spill] sm:$0xff] }
 0x654   : > { %v4295_v55 = vpop.f32.mrf.mxu0  ;;  %v4590_v11 = vadd.f32 %v4589_v4, %v4491_v35  ;;  %v14959_v35 = vld [vmem:[#allocation16_spill] sm:$0xff]  ;;  %v4204_v29 = vadd.f32 %v14964_v19, %v12514_v22 }
 0x655   : > { %v4296_v9 = vadd.f32 %v4295_v55, %v4197_v59  ;;  %v4592_v42 = vpop.f32.mrf.mxu3  ;;  %v8101_v55 = vld [vmem:[%s14239_s1 + $0x298] sm:$0xf0] }
 0x656   : > { %v5753_v8 = vmax.f32 %v4590_v11, 0.0 }
 0x657   : > { %4640 = vmatmul.bf16.gmra.mxu0 %v14955_v39  ;;  %v4394_v24 = vpop.f32.mrf.mxu1  ;;  %v14965_v39 = vld [vmem:[#allocation19_spill] sm:$0xff] }
 0x658   : > { %v4395_v63 = vadd.f32 %v4394_v24, %v4296_v9  ;;  %v12785_v61 = vpack.c.bf16 %v5753_v8, %v5747_v60  ;;  %v8104_v9 = vor.u32 %v9032_v17, %v8101_v55  ;;  %v14960_v8 = vld [vmem:[#allocation136_spill] sm:$0xff]  ;;  %v9161_v17 = vld [vmem:[%s14239_s1 + $0x684] sm:$0xf0] }
 0x65a   : > { %14956 = vst [vmem:[#allocation149_spill] sm:$0xff] %v12785_v61  ;;  %v4495_v43 = vpop.f32.mrf.mxu2  ;;  %v4494_v15 = vadd.f32 %v4493_v0, %v4395_v63  ;;  %4739 = vmatmul.bf16.gmra.mxu1 %v14958_v18  ;;  %5218 = vmatpush.bf16.msra.mxu2 %v8104_v9  ;;  %v14961_v63 = vld [vmem:[#allocation17_spill] sm:$0xff] }
 0x65b   : > { %v7909_v9 = vld [vmem:[%s14239_s1 + $0x118] sm:$0xf0] }
 0x65c   : > { %v4297_v16 = vpop.f32.mrf.mxu0  ;;  %v4593_v1 = vadd.f32 %v4592_v42, %v4494_v15  ;;  %v4202_v42 = vadd.f32 %v14960_v8, %v12514_v22  ;;  %v14962_v8 = vld [vmem:[#allocation18_spill] sm:$0xff] }
 0x65d   : > { %v4298_v4 = vadd.f32 %v4297_v16, %v4199_v10  ;;  %v4594_v59 = vpop.f32.mrf.mxu3  ;;  %v8603_v16 = vld [vmem:[%s14239_s1 + $0x670] sm:$0xf] }
 0x65f   : > { %4843 = vmatmul.bf16.gmra.mxu2 %v14959_v35  ;;  %v4396_v11 = vpop.f32.mrf.mxu1 }
 0x660   : > { %v4397_v60 = vadd.f32 %v4396_v11, %v4298_v4  ;;  %v9080_v4 = vld [vmem:[%s14239_s1 + $0x404] sm:$0xf]  ;;  %v8604_v11 = vor.u32 %v9161_v17, %v8603_v16 }
 0x662   : > { %v4498_v0 = vpop.f32.mrf.mxu2  ;;  %v4496_v24 = vadd.f32 %v4495_v43, %v4397_v60  ;;  %4942 = vmatmul.bf16.gmra.mxu3 %v14961_v63  ;;  %v8293_v43 = vld [vmem:[%s14239_s1 + $0x418] sm:$0xf0]  ;;  %v5759_v60 = vmax.f32 %v4593_v1, 0.0  ;;  %5023 = vmatpush.bf16.msra.mxu0 %v8604_v11 }
 0x664   : > { %v4300_v5 = vpop.f32.mrf.mxu0  ;;  %v4595_v10 = vadd.f32 %v4594_v59, %v4496_v24  ;;  %v8984_v59 = vld [vmem:[%s14239_s1 + $0x104] sm:$0xf] }
 0x665   : > { %v4301_v15 = vadd.f32 %v4300_v5, %v4202_v42  ;;  %v4597_v55 = vpop.f32.mrf.mxu3  ;;  %v8296_v42 = vor.u32 %v9080_v4, %v8293_v43  ;;  %v7912_v24 = vor.u32 %v8984_v59, %v7909_v9  ;;  %v14966_v43 = vld [vmem:[#allocation20_spill] sm:$0xff] }
 0x666   : > { %v5765_v5 = vmax.f32 %v4595_v10, 0.0 }
 0x667   : > { %4645 = vmatmul.bf16.gmra.mxu0 %v14962_v8  ;;  %v4399_v61 = vpop.f32.mrf.mxu1  ;;  %5317 = vmatpush.bf16.msra.mxu3 %v8296_v42 }
 0x668   : > { %v4400_v16 = vadd.f32 %v4399_v61, %v4301_v15  ;;  %5119 = vmatpush.bf16.msra.mxu1 %v7912_v24  ;;  %v12819_v17 = vpack.c.bf16 %v5765_v5, %v5759_v60  ;;  %v14967_v15 = vld [vmem:[#allocation153_spill] sm:$0xff] }
 0x669   : > { %v4207_v59 = vadd.f32 %v14967_v15, %v12514_v22  ;;  %v14968_v60 = vld [vmem:[#allocation21_spill] sm:$0xff] }
 0x66a   : > { %14963 = vst [vmem:[#allocation150_spill] sm:$0xff] %v12819_v17  ;;  %v4500_v63 = vpop.f32.mrf.mxu2  ;;  %v4499_v35 = vadd.f32 %v4498_v0, %v4400_v16  ;;  %4744 = vmatmul.bf16.gmra.mxu1 %v14965_v39  ;;  %v14969_v16 = vld [vmem:[#allocation22_spill] sm:$0xff] }
 0x66c   : > { %v4302_v1 = vpop.f32.mrf.mxu0  ;;  %v4598_v28 = vadd.f32 %v4597_v55, %v4499_v35 }
 0x66d   : > { %v4303_v8 = vadd.f32 %v4302_v1, %v4204_v29  ;;  %v4599_v4 = vpop.f32.mrf.mxu3 }
 0x66e   : > { %v5771_v5 = vmax.f32 %v4598_v28, 0.0 }
 0x66f   : > { %4848 = vmatmul.bf16.gmra.mxu2 %v14966_v43  ;;  %v4401_v10 = vpop.f32.mrf.mxu1 }
 0x670   : > { %v4402_v11 = vadd.f32 %v4401_v10, %v4303_v8  ;;  %v14971_v10 = vld [vmem:[#allocation90_spill] sm:$0xff] }
 0x671   : > { %v4209_v17 = vadd.f32 %v14971_v10, %v12514_v22 }
 0x672   : > { %v4503_v61 = vpop.f32.mrf.mxu2  ;;  %v4501_v9 = vadd.f32 %v4500_v63, %v4402_v11  ;;  %4947 = vmatmul.bf16.gmra.mxu3 %v14968_v60  ;;  %v14972_v63 = vld [vmem:[#allocation23_spill] sm:$0xff] }
 0x674   : > { %v4305_v42 = vpop.f32.mrf.mxu0  ;;  %v4600_v19 = vadd.f32 %v4599_v4, %v4501_v9 }
 0x675   : > { %v4306_v0 = vadd.f32 %v4305_v42, %v4207_v59  ;;  %v4602_v24 = vpop.f32.mrf.mxu3 }
 0x676   : > { %v5777_v29 = vmax.f32 %v4600_v19, 0.0  ;;  %v14973_v19 = vld [vmem:[#allocation141_spill] sm:$0xff] }
 0x677   : > { %4650 = vmatmul.bf16.gmra.mxu0 %v14969_v16  ;;  %v4404_v35 = vpop.f32.mrf.mxu1 }
 0x678   : > { %v4405_v55 = vadd.f32 %v4404_v35, %v4306_v0  ;;  %v12829_v1 = vpack.c.bf16 %v5777_v29, %v5771_v5  ;;  %v4212_v0 = vadd.f32 %v14973_v19, %v12514_v22  ;;  %v14974_v29 = vld [vmem:[#allocation25_spill] sm:$0xff]  ;;  %v7885_v19 = vld [vmem:[%s14239_s1 + $0xe8] sm:$0xf0] }
 0x67a   : > { %14970 = vst [vmem:[#allocation77_spill] sm:$0xff] %v12829_v1  ;;  %v4505_v8 = vpop.f32.mrf.mxu2  ;;  %v4504_v15 = vadd.f32 %v4503_v61, %v4405_v55  ;;  %4749 = vmatmul.bf16.gmra.mxu1 %v14972_v63  ;;  %v9074_v55 = vld [vmem:[%s14239_s1 + $0x3d4] sm:$0xf]  ;;  %v14977_v1 = vld [vmem:[#allocation27_spill] sm:$0xff] }
 0x67c   : > { %v4307_v11 = vpop.f32.mrf.mxu0  ;;  %v4603_v60 = vadd.f32 %v4602_v24, %v4504_v15  ;;  %v9026_v24 = vld [vmem:[%s14239_s1 + $0x254] sm:$0xf] }
 0x67d   : > { %v4308_v4 = vadd.f32 %v4307_v11, %v4209_v17  ;;  %v4604_v59 = vpop.f32.mrf.mxu3  ;;  %v8077_v17 = vld [vmem:[%s14239_s1 + $0x268] sm:$0xf0] }
 0x67e   : > { %v8080_v11 = vor.u32 %v9026_v24, %v8077_v17 }
 0x67f   : > { %4853 = vmatmul.bf16.gmra.mxu2 %v14891_v62  ;;  %v4406_v28 = vpop.f32.mrf.mxu1 }
 0x680   : > { %v4407_v9 = vadd.f32 %v4406_v28, %v4308_v4  ;;  %v5783_v4 = vmax.f32 %v4603_v60, 0.0  ;;  %5219 = vmatpush.bf16.msra.mxu2 %v8080_v11 }
 0x682   : > { %v4508_v42 = vpop.f32.mrf.mxu2  ;;  %v4506_v5 = vadd.f32 %v4505_v8, %v4407_v9  ;;  %4952 = vmatmul.bf16.gmra.mxu3 %v14974_v29  ;;  %v8269_v8 = vld [vmem:[%s14239_s1 + $0x3e8] sm:$0xf0]  ;;  %v8978_v9 = vld [vmem:[%s14239_s1 + $0xd4] sm:$0xf] }
 0x683   : > { %v8272_v28 = vor.u32 %v9074_v55, %v8269_v8  ;;  %v4214_v55 = vadd.f32 %v12479_v52, %v12514_v22 }
 0x684   : > { %v4310_v35 = vpop.f32.mrf.mxu0  ;;  %v4605_v10 = vadd.f32 %v4604_v59, %v4506_v5  ;;  %v14975_v59 = vld [vmem:[#allocation26_spill] sm:$0xff] }
 0x685   : > { %v4311_v61 = vadd.f32 %v4310_v35, %v4212_v0  ;;  %v4607_v15 = vpop.f32.mrf.mxu3  ;;  %v7888_v35 = vor.u32 %v8978_v9, %v7885_v19  ;;  %5318 = vmatpush.bf16.msra.mxu3 %v8272_v28 }
 0x686   : > { %v5789_v0 = vmax.f32 %v4605_v10, 0.0 }
 0x687   : > { %4655 = vmatmul.bf16.gmra.mxu0 %v14975_v59  ;;  %v4409_v5 = vpop.f32.mrf.mxu1  ;;  %5120 = vmatpush.bf16.msra.mxu1 %v7888_v35 }
 0x688   : > { %v4410_v24 = vadd.f32 %v4409_v5, %v4311_v61  ;;  %v12857_v17 = vpack.c.bf16 %v5789_v0, %v5783_v4  ;;  %v4217_v4 = vadd.f32 %v12485_v20, %v12514_v22  ;;  %v14978_v5 = vld [vmem:[#allocation30_spill] sm:$0xff] }
 0x68a   : > { %14976 = vst [vmem:[#allocation133_spill] sm:$0xff] %v12857_v17  ;;  %v4510_v60 = vpop.f32.mrf.mxu2  ;;  %v4509_v8 = vadd.f32 %v4508_v42, %v4410_v24  ;;  %4754 = vmatmul.bf16.gmra.mxu1 %v14977_v1 }
 0x68c   : > { %v4312_v29 = vpop.f32.mrf.mxu0  ;;  %v4608_v59 = vadd.f32 %v4607_v15, %v4509_v8 }
 0x68d   : > { %v4313_v62 = vadd.f32 %v4312_v29, %v4214_v55  ;;  %v4609_v16 = vpop.f32.mrf.mxu3  ;;  %v14980_v55 = vld [vmem:[#allocation28_spill] sm:$0xff] }
 0x68e   : > { %v5795_v0 = vmax.f32 %v4608_v59, 0.0  ;;  %v4219_v8 = vadd.f32 %v14980_v55, %v12514_v22 }
 0x68f   : > { %4858 = vmatmul.bf16.gmra.mxu2 %v14896_v30  ;;  %v4411_v10 = vpop.f32.mrf.mxu1 }
 0x690   : > { %v4412_v11 = vadd.f32 %v4411_v10, %v4313_v62 }
 0x692   : > { %v4513_v61 = vpop.f32.mrf.mxu2  ;;  %v4511_v28 = vadd.f32 %v4510_v60, %v4412_v11  ;;  %4957 = vmatmul.bf16.gmra.mxu3 %v14800_v48  ;;  %v14981_v60 = vld [vmem:[#allocation31_spill] sm:$0xff]  ;;  %v14985_v48 = vld [vmem:[#allocation34_spill] sm:$0xff] }
 0x694   : > { %v4315_v9 = vpop.f32.mrf.mxu0  ;;  %v4610_v52 = vadd.f32 %v4609_v16, %v4511_v28  ;;  %v14982_v28 = vld [vmem:[#allocation32_spill] sm:$0xff] }
 0x695   : > { %v4316_v42 = vadd.f32 %v4315_v9, %v4217_v4  ;;  %v4612_v19 = vpop.f32.mrf.mxu3 }
 0x696   : > { %v5801_v29 = vmax.f32 %v4610_v52, 0.0 }
 0x697   : > { %4660 = vmatmul.bf16.gmra.mxu0 %v14978_v5  ;;  %v4414_v15 = vpop.f32.mrf.mxu1 }
 0x698   : > { %v4415_v35 = vadd.f32 %v4414_v15, %v4316_v42  ;;  %v12867_v24 = vpack.c.bf16 %v5801_v29, %v5795_v0  ;;  %v14983_v42 = vld [vmem:[#allocation143_spill] sm:$0xff]  ;;  %v14984_v15 = vld [vmem:[#allocation33_spill] sm:$0xff] }
 0x699   : > { %v4222_v0 = vadd.f32 %v14983_v42, %v12514_v22  ;;  %v14988_v42 = vld [vmem:[#allocation36_spill] sm:$0xff] }
 0x69a   : > { %14979 = vst [vmem:[#allocation74_spill] sm:$0xff] %v12867_v24  ;;  %v4515_v62 = vpop.f32.mrf.mxu2  ;;  %v4514_v20 = vadd.f32 %v4513_v61, %v4415_v35  ;;  %4759 = vmatmul.bf16.gmra.mxu1 %v14981_v60 }
 0x69c   : > { %v4317_v10 = vpop.f32.mrf.mxu0  ;;  %v4613_v11 = vadd.f32 %v4612_v19, %v4514_v20  ;;  %v9020_v19 = vld [vmem:[%s14239_s1 + $0x224] sm:$0xf] }
 0x69d   : > { %v4318_v16 = vadd.f32 %v4317_v10, %v4219_v8  ;;  %v4614_v4 = vpop.f32.mrf.mxu3  ;;  %v8053_v8 = vld [vmem:[%s14239_s1 + $0x238] sm:$0xf0] }
 0x69e   : > { %v5807_v17 = vmax.f32 %v4613_v11, 0.0 }
 0x69f   : > { %4863 = vmatmul.bf16.gmra.mxu2 %v14982_v28  ;;  %v4416_v59 = vpop.f32.mrf.mxu1 }
 0x6a0   : > { %v4417_v9 = vadd.f32 %v4416_v59, %v4318_v16 }
 0x6a2   : > { %v4518_v52 = vpop.f32.mrf.mxu2  ;;  %v4516_v29 = vadd.f32 %v4515_v62, %v4417_v9  ;;  %4962 = vmatmul.bf16.gmra.mxu3 %v14984_v15  ;;  %v8056_v62 = vor.u32 %v9020_v19, %v8053_v8  ;;  %v7861_v19 = vld [vmem:[%s14239_s1 + $0xb8] sm:$0xf0]  ;;  %v14989_v15 = vld [vmem:[#allocation38_spill] sm:$0xff] }
 0x6a4   : > { %v4320_v24 = vpop.f32.mrf.mxu0  ;;  %v4615_v55 = vadd.f32 %v4614_v4, %v4516_v29  ;;  %5220 = vmatpush.bf16.msra.mxu2 %v8056_v62  ;;  %v9155_v29 = vld [vmem:[%s14239_s1 + $0x654] sm:$0xf0] }
 0x6a5   : > { %v4321_v61 = vadd.f32 %v4320_v24, %v4222_v0  ;;  %v4617_v35 = vpop.f32.mrf.mxu3  ;;  %v14987_v24 = vld [vmem:[#allocation157_spill] sm:$0xff]  ;;  %v8579_v0 = vld [vmem:[%s14239_s1 + $0x640] sm:$0xf] }
 0x6a6   : > { %v5813_v20 = vmax.f32 %v4615_v55, 0.0  ;;  %v4224_v11 = vadd.f32 %v14987_v24, %v12514_v22  ;;  %v8245_v22 = vld [vmem:[%s14239_s1 + $0x3b8] sm:$0xf0] }
 0x6a7   : > { %4665 = vmatmul.bf16.gmra.mxu0 %v14985_v48  ;;  %v4419_v10 = vpop.f32.mrf.mxu1  ;;  %v12911_v48 = vld [vmem:[%s14240_s2] sm:$0x3f] }
 0x6a8   : > { %v4420_v16 = vadd.f32 %v4419_v10, %v4321_v61  ;;  %v12883_v59 = vpack.c.bf16 %v5813_v20, %v5807_v17  ;;  %v9068_v17 = vld [vmem:[%s14239_s1 + $0x3a4] sm:$0xf]  ;;  %v8580_v61 = vor.u32 %v9155_v29, %v8579_v0 }
 0x6a9   : > { %v8248_v10 = vor.u32 %v9068_v17, %v8245_v22  ;;  %v14990_v22 = vld [vmem:[#allocation39_spill] sm:$0xff] }
 0x6aa   : > { %14986 = vst [vmem:[#allocation2_spill] sm:$0xff] %v12883_v59  ;;  %v4520_v4 = vpop.f32.mrf.mxu2  ;;  %v4519_v9 = vadd.f32 %v4518_v52, %v4420_v16  ;;  %4764 = vmatmul.bf16.gmra.mxu1 %v14988_v42  ;;  %v8972_v52 = vld [vmem:[%s14239_s1 + $0xa4] sm:$0xf]  ;;  %5024 = vmatpush.bf16.msra.mxu0 %v8580_v61 }
 0x6ab   : > { %v7864_v62 = vor.u32 %v8972_v52, %v7861_v19  ;;  %5319 = vmatpush.bf16.msra.mxu3 %v8248_v10 }
 0x6ac   : > { %v4322_v55 = vpop.f32.mrf.mxu0  ;;  %v4618_v8 = vadd.f32 %v4617_v35, %v4519_v9  ;;  %v12914_v35 = vperm.slane %v12911_v48, 4 }
 0x6ad   : > { %v4323_v20 = vadd.f32 %v4322_v55, %v4224_v11  ;;  %v4619_v16 = vpop.f32.mrf.mxu3  ;;  %5121 = vmatpush.bf16.msra.mxu1 %v7864_v62 }
 0x6ae   : > { %v5819_v55 = vmax.f32 %v4618_v8, 0.0 }
 0x6af   : > { %4868 = vmatmul.bf16.gmra.mxu2 %v14809_v57  ;;  %v4421_v24 = vpop.f32.mrf.mxu1 }
 0x6b0   : > { %v4422_v0 = vadd.f32 %v4421_v24, %v4323_v20 }
 0x6b2   : > { %v4829_v29 = vpop.f32.mrf.mxu2  ;;  %v4521_v59 = vadd.f32 %v4520_v4, %v4422_v0  ;;  %4967 = vmatmul.bf16.gmra.mxu3 %v14989_v15 }
 0x6b4   : > { %v4631_v11 = vpop.f32.mrf.mxu0  ;;  %v4620_v9 = vadd.f32 %v4619_v16, %v4521_v59 }
 0x6b5   : > { %v4928_v17 = vpop.f32.mrf.mxu3  ;;  %v4632_v61 = vadd.f32 %v4631_v11, %v12914_v35 }
 0x6b6   : > { %v5825_v52 = vmax.f32 %v4620_v9, 0.0 }
 0x6b7   : > { %4670 = vmatmul.bf16.gmra.mxu0 %v14990_v22  ;;  %v4730_v4 = vpop.f32.mrf.mxu1 }
 0x6b8   : > { %v4731_v19 = vadd.f32 %v4730_v4, %v4632_v61  ;;  %v12918_v20 = vpack.c.bf16 %v5825_v52, %v5819_v55  ;;  %v14992_v4 = vld [vmem:[#allocation43_spill] sm:$0xff] }
 0x6ba   : > { %14991 = vst [vmem:[#allocation134_spill] sm:$0xff] %v12918_v20  ;;  %v4831_v10 = vpop.f32.mrf.mxu2  ;;  %v4830_v62 = vadd.f32 %v4829_v29, %v4731_v19  ;;  %4769 = vmatmul.bf16.gmra.mxu1 %v14906_v40 }
 0x6bc   : > { %v4633_v24 = vpop.f32.mrf.mxu0  ;;  %v12921_v0 = vadd.f32 %v4928_v17, %v4830_v62 }
 0x6bd   : > { %v4930_v15 = vpop.f32.mrf.mxu3  ;;  %v4634_v59 = vadd.f32 %v4633_v24, %v12914_v35 }
 0x6bf   : > { %4873 = vmatmul.bf16.gmra.mxu2 %v14811_v6  ;;  %v4732_v8 = vpop.f32.mrf.mxu1 }
 0x6c0   : > { %v4733_v16 = vadd.f32 %v4732_v8, %v4634_v59 }
 0x6c2   : > { %v4834_v11 = vpop.f32.mrf.mxu2  ;;  %v4832_v9 = vadd.f32 %v4831_v10, %v4733_v16  ;;  %4972 = vmatmul.bf16.gmra.mxu3 %v14713_v34  ;;  %v9014_v10 = vld [vmem:[%s14239_s1 + $0x1f4] sm:$0xf] }
 0x6c3   : > { %v9062_v16 = vld [vmem:[%s14239_s1 + $0x374] sm:$0xf] }
 0x6c4   : > { %v4636_v55 = vpop.f32.mrf.mxu0  ;;  %v12926_v61 = vadd.f32 %v4930_v15, %v4832_v9  ;;  %v8029_v15 = vld [vmem:[%s14239_s1 + $0x208] sm:$0xf0] }
 0x6c5   : > { %v4933_v29 = vpop.f32.mrf.mxu3  ;;  %v4637_v52 = vadd.f32 %v4636_v55, %v12914_v35  ;;  %v8032_v8 = vor.u32 %v9014_v10, %v8029_v15  ;;  %v7837_v10 = vld [vmem:[%s14239_s1 + $0x88] sm:$0xf0] }
 0x6c7   : > { %4675 = vmatmul.bf16.gmra.mxu0 %v14992_v4  ;;  %v4735_v17 = vpop.f32.mrf.mxu1  ;;  %5221 = vmatpush.bf16.msra.mxu2 %v8032_v8 }
 0x6c8   : > { %v4736_v19 = vadd.f32 %v4735_v17, %v4637_v52 }
 0x6ca   : > { %v4836_v62 = vpop.f32.mrf.mxu2  ;;  %v4835_v24 = vadd.f32 %v4834_v11, %v4736_v19  ;;  %4774 = vmatmul.bf16.gmra.mxu1 %v14908_v51  ;;  %v8221_v11 = vld [vmem:[%s14239_s1 + $0x388] sm:$0xf0]  ;;  %v8966_v19 = vld [vmem:[%s14239_s1 + $0x74] sm:$0xf] }
 0x6cb   : > { %v8224_v52 = vor.u32 %v9062_v16, %v8221_v11  ;;  %v7840_v20 = vor.u32 %v8966_v19, %v7837_v10 }
 0x6cc   : > { %v4638_v59 = vpop.f32.mrf.mxu0  ;;  %v12943_v9 = vadd.f32 %v4933_v29, %v4835_v24 }
 0x6cd   : > { %v4935_v55 = vpop.f32.mrf.mxu3  ;;  %v4639_v17 = vadd.f32 %v4638_v59, %v12914_v35  ;;  %5320 = vmatpush.bf16.msra.mxu3 %v8224_v52  ;;  %5122 = vmatpush.bf16.msra.mxu1 %v7840_v20 }
 0x6ce   : > { %14993 = vst [vmem:[#allocation80_spill] sm:$0xff] %v12943_v9 }
 0x6cf   : > { %4878 = vmatmul.bf16.gmra.mxu2 %v14813_v33  ;;  %v4737_v15 = vpop.f32.mrf.mxu1  ;;  %v14994_v33 = vld [vmem:[#allocation46_spill] sm:$0xff] }
 0x6d0   : > { %v4738_v29 = vadd.f32 %v4737_v15, %v4639_v17 }
 0x6d2   : > { %v4839_v24 = vpop.f32.mrf.mxu2  ;;  %v4837_v8 = vadd.f32 %v4836_v62, %v4738_v29  ;;  %4977 = vmatmul.bf16.gmra.mxu3 %v14716_v12 }
 0x6d4   : > { %v4641_v59 = vpop.f32.mrf.mxu0  ;;  %v12954_v16 = vadd.f32 %v4935_v55, %v4837_v8 }
 0x6d5   : > { %v4938_v11 = vpop.f32.mrf.mxu3  ;;  %v4642_v34 = vadd.f32 %v4641_v59, %v12914_v35 }
 0x6d7   : > { %4680 = vmatmul.bf16.gmra.mxu0 %v14994_v33  ;;  %v4740_v4 = vpop.f32.mrf.mxu1 }
 0x6d8   : > { %v4741_v9 = vadd.f32 %v4740_v4, %v4642_v34 }
 0x6da   : > { %v4841_v6 = vpop.f32.mrf.mxu2  ;;  %v4840_v51 = vadd.f32 %v4839_v24, %v4741_v9  ;;  %4779 = vmatmul.bf16.gmra.mxu1 %v14911_v2  ;;  %v14995_v24 = vld [vmem:[#allocation49_spill] sm:$0xff] }
 0x6dc   : > { %v4643_v52 = vpop.f32.mrf.mxu0  ;;  %v12959_v17 = vadd.f32 %v4938_v11, %v4840_v51 }
 0x6dd   : > { %v4940_v20 = vpop.f32.mrf.mxu3  ;;  %v4644_v62 = vadd.f32 %v4643_v52, %v12914_v35 }
 0x6df   : > { %4883 = vmatmul.bf16.gmra.mxu2 %v14816_v41  ;;  %v4742_v55 = vpop.f32.mrf.mxu1 }
 0x6e0   : > { %v4743_v19 = vadd.f32 %v4742_v55, %v4644_v62 }
 0x6e2   : > { %v4844_v10 = vpop.f32.mrf.mxu2  ;;  %v4842_v15 = vadd.f32 %v4841_v6, %v4743_v19  ;;  %4982 = vmatmul.bf16.gmra.mxu3 %v14818_v56  ;;  %v8005_v19 = vld [vmem:[%s14239_s1 + $0x1d8] sm:$0xf0] }
 0x6e4   : > { %v4646_v29 = vpop.f32.mrf.mxu0  ;;  %v12964_v34 = vadd.f32 %v4940_v20, %v4842_v15  ;;  %v9008_v20 = vld [vmem:[%s14239_s1 + $0x1c4] sm:$0xf] }
 0x6e5   : > { %v4943_v4 = vpop.f32.mrf.mxu3  ;;  %v4647_v9 = vadd.f32 %v4646_v29, %v12914_v35 }
 0x6e7   : > { %4685 = vmatmul.bf16.gmra.mxu0 %v14995_v24  ;;  %v4745_v51 = vpop.f32.mrf.mxu1 }
 0x6e8   : > { %v4746_v8 = vadd.f32 %v4745_v51, %v4647_v9  ;;  %v8555_v51 = vld [vmem:[%s14239_s1 + $0x610] sm:$0xf] }
 0x6ea   : > { %v4846_v59 = vpop.f32.mrf.mxu2  ;;  %v4845_v11 = vadd.f32 %v4844_v10, %v4746_v8  ;;  %4784 = vmatmul.bf16.gmra.mxu1 %v14913_v47  ;;  %v8008_v10 = vor.u32 %v9008_v20, %v8005_v19  ;;  %v9149_v8 = vld [vmem:[%s14239_s1 + $0x624] sm:$0xf0]  ;;  %v7813_v19 = vld [vmem:[%s14239_s1 + $0x58] sm:$0xf0] }
 0x6eb   : > { %v8556_v20 = vor.u32 %v9149_v8, %v8555_v51  ;;  %v14997_v8 = vld [vmem:[#allocation54_spill] sm:$0xff] }
 0x6ec   : > { %v4648_v52 = vpop.f32.mrf.mxu0  ;;  %v12969_v62 = vadd.f32 %v4943_v4, %v4845_v11  ;;  %5222 = vmatpush.bf16.msra.mxu2 %v8008_v10  ;;  %v9056_v11 = vld [vmem:[%s14239_s1 + $0x344] sm:$0xf] }
 0x6ed   : > { %v4945_v6 = vpop.f32.mrf.mxu3  ;;  %v4649_v55 = vadd.f32 %v4648_v52, %v12914_v35  ;;  %5025 = vmatpush.bf16.msra.mxu0 %v8556_v20 }
 0x6ee   : > { %14996 = vst [vmem:[#allocation6_spill] sm:$0xff] %v12969_v62 }
 0x6ef   : > { %4888 = vmatmul.bf16.gmra.mxu2 %v14919_v13  ;;  %v4747_v15 = vpop.f32.mrf.mxu1 }
 0x6f0   : > { %v4748_v29 = vadd.f32 %v4747_v15, %v4649_v55  ;;  %v8960_v55 = vld [vmem:[%s14239_s1 + $0x44] sm:$0xf] }
 0x6f1   : > { %v7816_v10 = vor.u32 %v8960_v55, %v7813_v19  ;;  %v14998_v19 = vld [vmem:[#allocation58_spill] sm:$0xff] }
 0x6f2   : > { %v4849_v9 = vpop.f32.mrf.mxu2  ;;  %v4847_v4 = vadd.f32 %v4846_v59, %v4748_v29  ;;  %4987 = vmatmul.bf16.gmra.mxu3 %v14726_v58  ;;  %v8197_v59 = vld [vmem:[%s14239_s1 + $0x358] sm:$0xf0] }
 0x6f3   : > { %v8200_v15 = vor.u32 %v9056_v11, %v8197_v59  ;;  %5123 = vmatpush.bf16.msra.mxu1 %v7816_v10 }
 0x6f4   : > { %v4651_v52 = vpop.f32.mrf.mxu0  ;;  %v12998_v29 = vadd.f32 %v4945_v6, %v4847_v4 }
 0x6f5   : > { %v4948_v58 = vpop.f32.mrf.mxu3  ;;  %v4652_v51 = vadd.f32 %v4651_v52, %v12914_v35  ;;  %5321 = vmatpush.bf16.msra.mxu3 %v8200_v15 }
 0x6f7   : > { %4690 = vmatmul.bf16.gmra.mxu0 %v14997_v8  ;;  %v4750_v56 = vpop.f32.mrf.mxu1 }
 0x6f8   : > { %v4751_v12 = vadd.f32 %v4750_v56, %v4652_v51 }
 0x6fa   : > { %v4851_v13 = vpop.f32.mrf.mxu2  ;;  %v4850_v24 = vadd.f32 %v4849_v9, %v4751_v12  ;;  %4789 = vmatmul.bf16.gmra.mxu1 %v14917_v50 }
 0x6fc   : > { %v4653_v62 = vpop.f32.mrf.mxu0  ;;  %v13003_v41 = vadd.f32 %v4948_v58, %v4850_v24 }
 0x6fd   : > { %v4950_v11 = vpop.f32.mrf.mxu3  ;;  %v4654_v6 = vadd.f32 %v4653_v62, %v12914_v35 }
 0x6ff   : > { %4893 = vmatmul.bf16.gmra.mxu2 %v14824_v27  ;;  %v4752_v4 = vpop.f32.mrf.mxu1 }
 0x700   : > { %v4753_v52 = vadd.f32 %v4752_v4, %v4654_v6 }
 0x702   : > { %v4854_v20 = vpop.f32.mrf.mxu2  ;;  %v4852_v59 = vadd.f32 %v4851_v13, %v4753_v52  ;;  %4992 = vmatmul.bf16.gmra.mxu3 %v14728_v38 }
 0x704   : > { %v4656_v55 = vpop.f32.mrf.mxu0  ;;  %v13008_v56 = vadd.f32 %v4950_v11, %v4852_v59 }
 0x705   : > { %v4953_v12 = vpop.f32.mrf.mxu3  ;;  %v4657_v9 = vadd.f32 %v4656_v55, %v12914_v35  ;;  %v7981_v55 = vld [vmem:[%s14239_s1 + $0x1a8] sm:$0xf0] }
 0x707   : > { %4695 = vmatmul.bf16.gmra.mxu0 %v14998_v19  ;;  %v4755_v58 = vpop.f32.mrf.mxu1 }
 0x708   : > { %v4756_v24 = vadd.f32 %v4755_v58, %v4657_v9  ;;  %v9050_v58 = vld [vmem:[%s14239_s1 + $0x314] sm:$0xf] }
 0x70a   : > { %v4856_v15 = vpop.f32.mrf.mxu2  ;;  %v4855_v62 = vadd.f32 %v4854_v20, %v4756_v24  ;;  %4794 = vmatmul.bf16.gmra.mxu1 %v14920_v31  ;;  %v9002_v20 = vld [vmem:[%s14239_s1 + $0x194] sm:$0xf]  ;;  %v8173_v24 = vld [vmem:[%s14239_s1 + $0x328] sm:$0xf0] }
 0x70b   : > { %v7984_v9 = vor.u32 %v9002_v20, %v7981_v55  ;;  %v7789_v20 = vld [vmem:[%s14239_s1 + $0x28] sm:$0xf0] }
 0x70c   : > { %v4658_v10 = vpop.f32.mrf.mxu0  ;;  %v13013_v51 = vadd.f32 %v4953_v12, %v4855_v62 }
 0x70d   : > { %v4955_v13 = vpop.f32.mrf.mxu3  ;;  %v4659_v6 = vadd.f32 %v4658_v10, %v12914_v35  ;;  %5223 = vmatpush.bf16.msra.mxu2 %v7984_v9  ;;  %v8176_v10 = vor.u32 %v9050_v58, %v8173_v24 }
 0x70f   : > { %4898 = vmatmul.bf16.gmra.mxu2 %v14926_v32  ;;  %v4757_v11 = vpop.f32.mrf.mxu1  ;;  %5322 = vmatpush.bf16.msra.mxu3 %v8176_v10 }
 0x710   : > { %v4758_v4 = vadd.f32 %v4757_v11, %v4659_v6  ;;  %v15000_v11 = vld [vmem:[#allocation62_spill] sm:$0xff] }
 0x712   : > { %v4859_v52 = vpop.f32.mrf.mxu2  ;;  %v4857_v59 = vadd.f32 %v4856_v15, %v4758_v4  ;;  %4997 = vmatmul.bf16.gmra.mxu3 %v14828_v14  ;;  %v8954_v4 = vld [vmem:[%s14239_s1 + $0x14] sm:$0xf] }
 0x713   : > { %v7792_v14 = vor.u32 %v8954_v4, %v7789_v20  ;;  %v15001_v4 = vld [vmem:[#allocation67_spill] sm:$0xff] }
 0x714   : > { %v4661_v12 = vpop.f32.mrf.mxu0  ;;  %v13030_v15 = vadd.f32 %v4955_v13, %v4857_v59 }
 0x715   : > { %v4958_v62 = vpop.f32.mrf.mxu3  ;;  %v4662_v6 = vadd.f32 %v4661_v12, %v12914_v35  ;;  %5124 = vmatpush.bf16.msra.mxu1 %v7792_v14 }
 0x716   : > { %14999 = vst [vmem:[#allocation10_spill] sm:$0xff] %v13030_v15 }
 0x717   : > { %4700 = vmatmul.bf16.gmra.mxu0 %v15000_v11  ;;  %v4760_v55 = vpop.f32.mrf.mxu1 }
 0x718   : > { %v4761_v13 = vadd.f32 %v4760_v55, %v4662_v6 }
 0x71a   : > { %v4861_v59 = vpop.f32.mrf.mxu2  ;;  %v4860_v9 = vadd.f32 %v4859_v52, %v4761_v13  ;;  %4799 = vmatmul.bf16.gmra.mxu1 %v14923_v53 }
 0x71c   : > { %v4663_v12 = vpop.f32.mrf.mxu0  ;;  %v13041_v58 = vadd.f32 %v4958_v62, %v4860_v9 }
 0x71d   : > { %v4960_v24 = vpop.f32.mrf.mxu3  ;;  %v4664_v38 = vadd.f32 %v4663_v12, %v12914_v35 }
 0x71f   : > { %4903 = vmatmul.bf16.gmra.mxu2 %v14930_v25  ;;  %v4762_v11 = vpop.f32.mrf.mxu1 }
 0x720   : > { %v4763_v32 = vadd.f32 %v4762_v11, %v4664_v38 }
 0x722   : > { %v4864_v15 = vpop.f32.mrf.mxu2  ;;  %v4862_v19 = vadd.f32 %v4861_v59, %v4763_v32  ;;  %5002 = vmatmul.bf16.gmra.mxu3 %v14835_v45 }
 0x724   : > { %v4666_v10 = vpop.f32.mrf.mxu0  ;;  %v13046_v6 = vadd.f32 %v4960_v24, %v4862_v19 }
 0x725   : > { %v4963_v14 = vpop.f32.mrf.mxu3  ;;  %v4667_v52 = vadd.f32 %v4666_v10, %v12914_v35 }
 0x727   : > { %4705 = vmatmul.bf16.gmra.mxu0 %v15001_v4  ;;  %v4765_v62 = vpop.f32.mrf.mxu1 }
 0x728   : > { %v4766_v20 = vadd.f32 %v4765_v62, %v4667_v52 }
 0x72a   : > { %v4866_v55 = vpop.f32.mrf.mxu2  ;;  %v4865_v13 = vadd.f32 %v4864_v15, %v4766_v20  ;;  %4804 = vmatmul.bf16.gmra.mxu1 %v14928_v7  ;;  %v15002_v20 = vld [vmem:[#allocation72_spill] sm:$0xff] }
 0x72c   : > { %v4668_v9 = vpop.f32.mrf.mxu0  ;;  %v13051_v38 = vadd.f32 %v4963_v14, %v4865_v13  ;;  %v9175_v14 = vld [vmem:[%s14241_s3 + $0x38] sm:$0xff] }
 0x72d   : > { %v4965_v32 = vpop.f32.mrf.mxu3  ;;  %v4669_v11 = vadd.f32 %v4668_v9, %v12914_v35  ;;  %6324 = vmatpush.bf16.msrb.mxu2 %v9175_v14 }
 0x72f   : > { %4908 = vmatmul.bf16.gmra.mxu2 %v14936_v44  ;;  %v4767_v19 = vpop.f32.mrf.mxu1 }
 0x730   : > { %v4768_v59 = vadd.f32 %v4767_v19, %v4669_v11 }
 0x732   : > { %v4869_v12 = vpop.f32.mrf.mxu2  ;;  %v4867_v24 = vadd.f32 %v4866_v55, %v4768_v59  ;;  %5007 = vmatmul.bf16.gmra.mxu3 %v14842_v3  ;;  %v9140_v55 = vld [vmem:[%s14239_s1 + $0x5e4] sm:$0xf]  ;;  %v9183_v59 = vld [vmem:[%s14241_s3 + $0x78] sm:$0xff] }
 0x733   : > { %6423 = vmatpush.bf16.msrb.mxu3 %v9183_v59 }
 0x734   : > { %v4671_v10 = vpop.f32.mrf.mxu0  ;;  %v13056_v52 = vadd.f32 %v4965_v32, %v4867_v24  ;;  %v8533_v32 = vld [vmem:[%s14239_s1 + $0x5f8] sm:$0xf0] }
 0x735   : > { %v4968_v15 = vpop.f32.mrf.mxu3  ;;  %v4672_v62 = vadd.f32 %v4671_v10, %v12914_v35  ;;  %v8536_v10 = vor.u32 %v9140_v55, %v8533_v32 }
 0x737   : > { %4710 = vmatmul.bf16.gmra.mxu0 %v15002_v20  ;;  %v4770_v13 = vpop.f32.mrf.mxu1 }
 0x738   : > { %v4771_v9 = vadd.f32 %v4770_v13, %v4672_v62  ;;  %v8629_v62 = vld [vmem:[%s14239_s1 + $0x6b8] sm:$0xf0]  ;;  %5414 = vmatpush.bf16.msrb.mxu0 %v8536_v10 }
 0x73a   : > { %v4871_v11 = vpop.f32.mrf.mxu2  ;;  %v4870_v19 = vadd.f32 %v4869_v12, %v4771_v9  ;;  %4809 = vmatmul.bf16.gmra.mxu1 %v14933_v54  ;;  %v9164_v12 = vld [vmem:[%s14239_s1 + $0x6a4] sm:$0xf] }
 0x73b   : > { %v8632_v14 = vor.u32 %v9164_v12, %v8629_v62 }
 0x73c   : > { %v4673_v24 = vpop.f32.mrf.mxu0  ;;  %v13079_v13 = vadd.f32 %v4968_v15, %v4870_v19  ;;  %v15003_v19 = vld [vmem:[#allocation76_spill] sm:$0xff] }
 0x73d   : > { %v4970_v9 = vpop.f32.mrf.mxu3  ;;  %v4674_v3 = vadd.f32 %v4673_v24, %v12914_v35  ;;  %5517 = vmatpush.bf16.msrb.mxu1 %v8632_v14 }
 0x73f   : > { %4913 = vmatmul.bf16.gmra.mxu2 %v14943_v23  ;;  %v4772_v55 = vpop.f32.mrf.mxu1 }
 0x740   : > { %v4773_v32 = vadd.f32 %v4772_v55, %v4674_v3 }
 0x742   : > { %v4874_v45 = vpop.f32.mrf.mxu2  ;;  %v4872_v20 = vadd.f32 %v4871_v11, %v4773_v32  ;;  %5012 = vmatmul.bf16.gmra.mxu3 %v14937_v26 }
 0x744   : > { %v4676_v44 = vpop.f32.mrf.mxu0  ;;  %v13084_v54 = vadd.f32 %v4970_v9, %v4872_v20 }
 0x745   : > { %v4973_v59 = vpop.f32.mrf.mxu3  ;;  %v4677_v15 = vadd.f32 %v4676_v44, %v12914_v35 }
 0x747   : > { %4715 = vmatmul.bf16.gmra.mxu0 %v15003_v19  ;;  %v4775_v10 = vpop.f32.mrf.mxu1 }
 0x748   : > { %v4776_v12 = vadd.f32 %v4775_v10, %v4677_v15 }
 0x74a   : > { %v4876_v24 = vpop.f32.mrf.mxu2  ;;  %v4875_v62 = vadd.f32 %v4874_v45, %v4776_v12  ;;  %4814 = vmatmul.bf16.gmra.mxu1 %v14940_v37  ;;  %v15006_v12 = vld [vmem:[#allocation78_spill] sm:$0xff] }
 0x74c   : > { %v4678_v14 = vpop.f32.mrf.mxu0  ;;  %v13089_v3 = vadd.f32 %v4973_v59, %v4875_v62 }
 0x74d   : > { %v4975_v11 = vpop.f32.mrf.mxu3  ;;  %v4679_v55 = vadd.f32 %v4678_v14, %v12914_v35 }
 0x74e   : > { %15004 = vst [vmem:[#allocation83_spill] sm:$0xff] %v13089_v3 }
 0x74f   : > { %5224 = vmatmul.bf16.vlgmr.msra.gmra.mxu2 %v14950_v36  ;;  %v4777_v20 = vpop.f32.mrf.mxu1  ;;  %v15007_v36 = vld [vmem:[#allocation5_spill] sm:$0xff] }
 0x750   : > { %v4778_v9 = vadd.f32 %v4777_v20, %v4679_v55  ;;  %v9182_v55 = vld [vmem:[%s14241_s3 + $0x70] sm:$0xff] }
 0x751   : > { %6424 = vmatpush.bf16.msrb.mxu3 %v9182_v55 }
 0x752   : > { %v4879_v32 = vpop.f32.mrf.mxu2  ;;  %v4877_v44 = vadd.f32 %v4876_v24, %v4778_v9  ;;  %5323 = vmatmul.bf16.vlgmr.msra.gmra.mxu3 %v14944_v46  ;;  %v9174_v24 = vld [vmem:[%s14241_s3 + $0x30] sm:$0xff] }
 0x753   : > { %6325 = vmatpush.bf16.msrb.mxu2 %v9174_v24  ;;  %v15008_v24 = vld [vmem:[#allocation7_spill] sm:$0xff] }
 0x754   : > { %v4681_v26 = vpop.f32.mrf.mxu0  ;;  %v13094_v15 = vadd.f32 %v4975_v11, %v4877_v44  ;;  %v9134_v11 = vld [vmem:[%s14239_s1 + $0x5b4] sm:$0xf] }
 0x755   : > { %v4978_v45 = vpop.f32.mrf.mxu3  ;;  %v4682_v10 = vadd.f32 %v4681_v26, %v12914_v35  ;;  %v8509_v26 = vld [vmem:[%s14239_s1 + $0x5c8] sm:$0xf0] }
 0x756   : > { %15005 = vst [vmem:[#allocation15_spill] sm:$0xff] %v13094_v15 }
 0x757   : > { %8705 = vmatmul.msk.bf16.vlgmr.msra.gmra.mxu0 %vm1007_vm5, %v15006_v12  ;;  %v4780_v59 = vpop.f32.mrf.mxu1 }
 0x758   : > { %v4781_v62 = vadd.f32 %v4780_v59, %v4682_v10 }
 0x75a   : > { %v4881_v14 = vpop.f32.mrf.mxu2  ;;  %v4880_v19 = vadd.f32 %v4879_v32, %v4781_v62  ;;  %5125 = vmatmul.bf16.vlgmr.msra.gmra.mxu1 %v15007_v36  ;;  %v8512_v32 = vor.u32 %v9134_v11, %v8509_v26 }
 0x75c   : > { %v4683_v46 = vpop.f32.mrf.mxu0  ;;  %v13112_v20 = vadd.f32 %v4978_v45, %v4880_v19  ;;  %5415 = vmatpush.bf16.msrb.mxu0 %v8512_v32  ;;  %v15009_v45 = vld [vmem:[#allocation79_spill] sm:$0xff] }
 0x75d   : > { %v4980_v9 = vpop.f32.mrf.mxu3  ;;  %v4684_v44 = vadd.f32 %v4683_v46, %v12914_v35 }
 0x75f   : > { %5229 = vmatmul.bf16.gmra.mxu2 %v14860_v49  ;;  %v4782_v10 = vpop.f32.mrf.mxu1 }
 0x760   : > { %v4783_v59 = vadd.f32 %v4782_v10, %v4684_v44 }
 0x762   : > { %v4884_v62 = vpop.f32.mrf.mxu2  ;;  %v4882_v36 = vadd.f32 %v4881_v14, %v4783_v59  ;;  %5328 = vmatmul.bf16.gmra.mxu3 %v15008_v24 }
 0x764   : > { %v4686_v12 = vpop.f32.mrf.mxu0  ;;  %v13117_v15 = vadd.f32 %v4980_v9, %v4882_v36  ;;  %v15010_v36 = vld [vmem:[#allocation12_spill] sm:$0xff] }
 0x765   : > { %v4983_v3 = vpop.f32.mrf.mxu3  ;;  %v4687_v19 = vadd.f32 %v4686_v12, %v12914_v35 }
 0x767   : > { %8706 = vmatmul.msk.bf16.gmra.mxu0 %vm1007_vm5, %v15009_v45  ;;  %v4785_v46 = vpop.f32.mrf.mxu1 }
 0x768   : > { %v4786_v11 = vadd.f32 %v4785_v46, %v4687_v19  ;;  %v15012_v46 = vld [vmem:[#allocation81_spill] sm:$0xff] }
 0x76a   : > { %v4886_v49 = vpop.f32.mrf.mxu2  ;;  %v4885_v26 = vadd.f32 %v4884_v62, %v4786_v11  ;;  %5130 = vmatmul.bf16.gmra.mxu1 %v14952_v21 }
 0x76c   : > { %v4688_v55 = vpop.f32.mrf.mxu0  ;;  %v13123_v32 = vadd.f32 %v4983_v3, %v4885_v26 }
 0x76d   : > { %v4985_v14 = vpop.f32.mrf.mxu3  ;;  %v4689_v44 = vadd.f32 %v4688_v55, %v12914_v35 }
 0x76f   : > { %5234 = vmatmul.bf16.gmra.mxu2 %v14958_v18  ;;  %v4787_v9 = vpop.f32.mrf.mxu1  ;;  %v15013_v18 = vld [vmem:[#allocation14_spill] sm:$0xff] }
 0x770   : > { %v4788_v10 = vadd.f32 %v4787_v9, %v4689_v44 }
 0x772   : > { %v4889_v12 = vpop.f32.mrf.mxu2  ;;  %v4887_v59 = vadd.f32 %v4886_v49, %v4788_v10  ;;  %5333 = vmatmul.bf16.gmra.mxu3 %v15010_v36 }
 0x774   : > { %v4691_v24 = vpop.f32.mrf.mxu0  ;;  %v13128_v19 = vadd.f32 %v4985_v14, %v4887_v59  ;;  %v9173_v14 = vld [vmem:[%s14241_s3 + $0x28] sm:$0xff] }
 0x775   : > { %v4988_v62 = vpop.f32.mrf.mxu3  ;;  %v4692_v21 = vadd.f32 %v4691_v24, %v12914_v35  ;;  %6326 = vmatpush.bf16.msrb.mxu2 %v9173_v14 }
 0x776   : > { %15011 = vst [vmem:[#allocation136_spill] sm:$0xff] %v13128_v19 }
 0x777   : > { %8707 = vmatmul.msk.bf16.gmra.mxu0 %vm1007_vm5, %v15012_v46  ;;  %v4790_v3 = vpop.f32.mrf.mxu1 }
 0x778   : > { %v4791_v11 = vadd.f32 %v4790_v3, %v4692_v21  ;;  %v8485_v3 = vld [vmem:[%s14239_s1 + $0x598] sm:$0xf0] }
 0x77a   : > { %v4891_v26 = vpop.f32.mrf.mxu2  ;;  %v4890_v55 = vadd.f32 %v4889_v12, %v4791_v11  ;;  %5135 = vmatmul.bf16.gmra.mxu1 %v15013_v18  ;;  %v15015_v12 = vld [vmem:[#allocation16_spill] sm:$0xff]  ;;  %v8605_v18 = vld [vmem:[%s14239_s1 + $0x688] sm:$0xf0] }
 0x77c   : > { %v4693_v44 = vpop.f32.mrf.mxu0  ;;  %v13134_v9 = vadd.f32 %v4988_v62, %v4890_v55  ;;  %v9128_v62 = vld [vmem:[%s14239_s1 + $0x584] sm:$0xf] }
 0x77d   : > { %v4990_v49 = vpop.f32.mrf.mxu3  ;;  %v4694_v10 = vadd.f32 %v4693_v44, %v12914_v35  ;;  %v8488_v55 = vor.u32 %v9128_v62, %v8485_v3 }
 0x77e   : > { %15014 = vst [vmem:[#allocation87_spill] sm:$0xff] %v13134_v9  ;;  %v15017_v9 = vld [vmem:[#allocation18_spill] sm:$0xff] }
 0x77f   : > { %5239 = vmatmul.bf16.gmra.mxu2 %v14965_v39  ;;  %v4792_v59 = vpop.f32.mrf.mxu1  ;;  %v9181_v39 = vld [vmem:[%s14241_s3 + $0x68] sm:$0xff]  ;;  %5416 = vmatpush.bf16.msrb.mxu0 %v8488_v55 }
 0x780   : > { %v4793_v36 = vadd.f32 %v4792_v59, %v4694_v10  ;;  %6425 = vmatpush.bf16.msrb.mxu3 %v9181_v39 }
 0x782   : > { %v4894_v24 = vpop.f32.mrf.mxu2  ;;  %v4892_v21 = vadd.f32 %v4891_v26, %v4793_v36  ;;  %5338 = vmatmul.bf16.gmra.mxu3 %v15015_v12  ;;  %v9158_v26 = vld [vmem:[%s14239_s1 + $0x674] sm:$0xf] }
 0x783   : > { %v8608_v44 = vor.u32 %v9158_v26, %v8605_v18  ;;  %v15016_v36 = vld [vmem:[#allocation84_spill] sm:$0xff] }
 0x784   : > { %v4696_v11 = vpop.f32.mrf.mxu0  ;;  %v13157_v10 = vadd.f32 %v4990_v49, %v4892_v21 }
 0x785   : > { %v4993_v14 = vpop.f32.mrf.mxu3  ;;  %v4697_v59 = vadd.f32 %v4696_v11, %v12914_v35  ;;  %5518 = vmatpush.bf16.msrb.mxu1 %v8608_v44 }
 0x787   : > { %8708 = vmatmul.msk.bf16.gmra.mxu0 %vm1007_vm5, %v15016_v36  ;;  %v4795_v12 = vpop.f32.mrf.mxu1 }
 0x788   : > { %v4796_v62 = vadd.f32 %v4795_v12, %v4697_v59  ;;  %v15018_v59 = vld [vmem:[#allocation86_spill] sm:$0xff] }
 0x78a   : > { %v4896_v3 = vpop.f32.mrf.mxu2  ;;  %v4895_v46 = vadd.f32 %v4894_v24, %v4796_v62  ;;  %5140 = vmatmul.bf16.gmra.mxu1 %v15017_v9 }
 0x78c   : > { %v4698_v19 = vpop.f32.mrf.mxu0  ;;  %v13163_v45 = vadd.f32 %v4993_v14, %v4895_v46 }
 0x78d   : > { %v4995_v39 = vpop.f32.mrf.mxu3  ;;  %v4699_v49 = vadd.f32 %v4698_v19, %v12914_v35 }
 0x78f   : > { %5244 = vmatmul.bf16.gmra.mxu2 %v14972_v63  ;;  %v4797_v21 = vpop.f32.mrf.mxu1  ;;  %v15019_v63 = vld [vmem:[#allocation22_spill] sm:$0xff] }
 0x790   : > { %v4798_v11 = vadd.f32 %v4797_v21, %v4699_v49 }
 0x792   : > { %v4899_v55 = vpop.f32.mrf.mxu2  ;;  %v4897_v26 = vadd.f32 %v4896_v3, %v4798_v11  ;;  %5343 = vmatmul.bf16.gmra.mxu3 %v14966_v43 }
 0x794   : > { %v4701_v18 = vpop.f32.mrf.mxu0  ;;  %v13168_v44 = vadd.f32 %v4995_v39, %v4897_v26 }
 0x795   : > { %v4998_v24 = vpop.f32.mrf.mxu3  ;;  %v4702_v9 = vadd.f32 %v4701_v18, %v12914_v35  ;;  %v15021_v18 = vld [vmem:[#allocation24_spill] sm:$0xff] }
 0x797   : > { %8709 = vmatmul.msk.bf16.gmra.mxu0 %vm1007_vm5, %v15018_v59  ;;  %v4800_v46 = vpop.f32.mrf.mxu1 }
 0x798   : > { %v4801_v14 = vadd.f32 %v4800_v46, %v4702_v9  ;;  %v9180_v46 = vld [vmem:[%s14241_s3 + $0x60] sm:$0xff] }
 0x799   : > { %6426 = vmatpush.bf16.msrb.mxu3 %v9180_v46 }
 0x79a   : > { %v4901_v19 = vpop.f32.mrf.mxu2  ;;  %v4900_v12 = vadd.f32 %v4899_v55, %v4801_v14  ;;  %5145 = vmatmul.bf16.gmra.mxu1 %v15019_v63  ;;  %v9172_v55 = vld [vmem:[%s14241_s3 + $0x20] sm:$0xff] }
 0x79b   : > { %6327 = vmatpush.bf16.msrb.mxu2 %v9172_v55  ;;  %v15023_v55 = vld [vmem:[#allocation26_spill] sm:$0xff] }
 0x79c   : > { %v4703_v62 = vpop.f32.mrf.mxu0  ;;  %v13174_v49 = vadd.f32 %v4998_v24, %v4900_v12  ;;  %v9122_v24 = vld [vmem:[%s14239_s1 + $0x554] sm:$0xf] }
 0x79d   : > { %v5000_v3 = vpop.f32.mrf.mxu3  ;;  %v4704_v43 = vadd.f32 %v4703_v62, %v12914_v35  ;;  %v15022_v62 = vld [vmem:[#allocation89_spill] sm:$0xff] }
 0x79e   : > { %15020 = vst [vmem:[#allocation19_spill] sm:$0xff] %v13174_v49 }
 0x79f   : > { %5249 = vmatmul.bf16.gmra.mxu2 %v14977_v1  ;;  %v4802_v39 = vpop.f32.mrf.mxu1  ;;  %v8461_v1 = vld [vmem:[%s14239_s1 + $0x568] sm:$0xf0] }
 0x7a0   : > { %v4803_v21 = vadd.f32 %v4802_v39, %v4704_v43  ;;  %v8464_v12 = vor.u32 %v9122_v24, %v8461_v1 }
 0x7a2   : > { %v4904_v11 = vpop.f32.mrf.mxu2  ;;  %v4902_v26 = vadd.f32 %v4901_v19, %v4803_v21  ;;  %5348 = vmatmul.bf16.gmra.mxu3 %v15021_v18  ;;  %5417 = vmatpush.bf16.msrb.mxu0 %v8464_v12 }
 0x7a4   : > { %v4706_v9 = vpop.f32.mrf.mxu0  ;;  %v13191_v14 = vadd.f32 %v5000_v3, %v4902_v26 }
 0x7a5   : > { %v5003_v19 = vpop.f32.mrf.mxu3  ;;  %v4707_v63 = vadd.f32 %v4706_v9, %v12914_v35 }
 0x7a7   : > { %8710 = vmatmul.msk.bf16.gmra.mxu0 %vm1007_vm5, %v15022_v62  ;;  %v4805_v43 = vpop.f32.mrf.mxu1 }
 0x7a8   : > { %v4806_v39 = vadd.f32 %v4805_v43, %v4707_v63  ;;  %v15024_v43 = vld [vmem:[#allocation92_spill] sm:$0xff] }
 0x7aa   : > { %v4906_v21 = vpop.f32.mrf.mxu2  ;;  %v4905_v18 = vadd.f32 %v4904_v11, %v4806_v39  ;;  %5150 = vmatmul.bf16.gmra.mxu1 %v15023_v55 }
 0x7ac   : > { %v4708_v59 = vpop.f32.mrf.mxu0  ;;  %v13197_v49 = vadd.f32 %v5003_v19, %v4905_v18 }
 0x7ad   : > { %v5005_v3 = vpop.f32.mrf.mxu3  ;;  %v4709_v26 = vadd.f32 %v4708_v59, %v12914_v35 }
 0x7af   : > { %5254 = vmatmul.bf16.gmra.mxu2 %v14981_v60  ;;  %v4807_v9 = vpop.f32.mrf.mxu1 }
 0x7b0   : > { %v4808_v24 = vadd.f32 %v4807_v9, %v4709_v26 }
 0x7b2   : > { %v4909_v1 = vpop.f32.mrf.mxu2  ;;  %v4907_v62 = vadd.f32 %v4906_v21, %v4808_v24  ;;  %5353 = vmatmul.bf16.gmra.mxu3 %v14896_v30 }
 0x7b4   : > { %v4711_v46 = vpop.f32.mrf.mxu0  ;;  %v13202_v12 = vadd.f32 %v5005_v3, %v4907_v62 }
 0x7b5   : > { %v5008_v11 = vpop.f32.mrf.mxu3  ;;  %v4712_v63 = vadd.f32 %v4711_v46, %v12914_v35 }
 0x7b7   : > { %8711 = vmatmul.msk.bf16.gmra.mxu0 %vm1007_vm5, %v15024_v43  ;;  %v4810_v19 = vpop.f32.mrf.mxu1 }
 0x7b8   : > { %v4811_v39 = vadd.f32 %v4810_v19, %v4712_v63  ;;  %v15025_v63 = vld [vmem:[#allocation95_spill] sm:$0xff] }
 0x7ba   : > { %v4911_v59 = vpop.f32.mrf.mxu2  ;;  %v4910_v18 = vadd.f32 %v4909_v1, %v4811_v39  ;;  %5155 = vmatmul.bf16.gmra.mxu1 %v14978_v5 }
 0x7bc   : > { %v4713_v60 = vpop.f32.mrf.mxu0  ;;  %v13208_v55 = vadd.f32 %v5008_v11, %v4910_v18  ;;  %v9171_v11 = vld [vmem:[%s14241_s3 + $0x18] sm:$0xff]  ;;  %v15026_v18 = vld [vmem:[#allocation34_spill] sm:$0xff] }
 0x7bd   : > { %v5010_v21 = vpop.f32.mrf.mxu3  ;;  %v4714_v30 = vadd.f32 %v4713_v60, %v12914_v35  ;;  %6328 = vmatpush.bf16.msrb.mxu2 %v9171_v11  ;;  %v8437_v60 = vld [vmem:[%s14239_s1 + $0x538] sm:$0xf0] }
 0x7bf   : > { %5259 = vmatmul.bf16.gmra.mxu2 %v14988_v42  ;;  %v4812_v62 = vpop.f32.mrf.mxu1 }
 0x7c0   : > { %v4813_v3 = vadd.f32 %v4812_v62, %v4714_v30 }
 0x7c2   : > { %v4914_v26 = vpop.f32.mrf.mxu2  ;;  %v4912_v9 = vadd.f32 %v4911_v59, %v4813_v3  ;;  %5358 = vmatmul.bf16.gmra.mxu3 %v14982_v28  ;;  %v9116_v28 = vld [vmem:[%s14239_s1 + $0x524] sm:$0xf] }
 0x7c3   : > { %v8440_v62 = vor.u32 %v9116_v28, %v8437_v60  ;;  %v9152_v3 = vld [vmem:[%s14239_s1 + $0x644] sm:$0xf] }
 0x7c4   : > { %v4716_v24 = vpop.f32.mrf.mxu0  ;;  %v13213_v46 = vadd.f32 %v5010_v21, %v4912_v9  ;;  %v9179_v21 = vld [vmem:[%s14241_s3 + $0x58] sm:$0xff] }
 0x7c5   : > { %v5013_v1 = vpop.f32.mrf.mxu3  ;;  %v4717_v5 = vadd.f32 %v4716_v24, %v12914_v35  ;;  %6427 = vmatpush.bf16.msrb.mxu3 %v9179_v21  ;;  %5418 = vmatpush.bf16.msrb.mxu0 %v8440_v62  ;;  %v13244_v21 = vperm.slane %v12911_v48, 5  ;;  %v15027_v62 = vld [vmem:[#allocation97_spill] sm:$0xff] }
 0x7c7   : > { %8712 = vmatmul.msk.bf16.gmra.mxu0 %vm1007_vm5, %v15025_v63  ;;  %v4815_v42 = vpop.f32.mrf.mxu1 }
 0x7c8   : > { %v4816_v19 = vadd.f32 %v4815_v42, %v4717_v5 }
 0x7ca   : > { %v4916_v39 = vpop.f32.mrf.mxu2  ;;  %v4915_v59 = vadd.f32 %v4914_v26, %v4816_v19  ;;  %5160 = vmatmul.bf16.gmra.mxu1 %v15026_v18  ;;  %v8581_v26 = vld [vmem:[%s14239_s1 + $0x658] sm:$0xf0] }
 0x7cb   : > { %v8584_v9 = vor.u32 %v9152_v3, %v8581_v26 }
 0x7cc   : > { %v4718_v30 = vpop.f32.mrf.mxu0  ;;  %v13237_v24 = vadd.f32 %v5013_v1, %v4915_v59 }
 0x7cd   : > { %v5015_v5 = vpop.f32.mrf.mxu3  ;;  %v4719_v11 = vadd.f32 %v4718_v30, %v12914_v35  ;;  %5519 = vmatpush.bf16.msrb.mxu1 %v8584_v9 }
 0x7cf   : > { %5264 = vmatmul.bf16.gmra.mxu2 %v14906_v40  ;;  %v4817_v42 = vpop.f32.mrf.mxu1 }
 0x7d0   : > { %v4818_v19 = vadd.f32 %v4817_v42, %v4719_v11 }
 0x7d2   : > { %v5225_v18 = vpop.f32.mrf.mxu2  ;;  %v4917_v28 = vadd.f32 %v4916_v39, %v4818_v19  ;;  %5363 = vmatmul.bf16.gmra.mxu3 %v14809_v57 }
 0x7d4   : > { %v5027_v60 = vpop.f32.mrf.mxu0  ;;  %v13246_v1 = vadd.f32 %v5015_v5, %v4917_v28  ;;  %v15028_v5 = vld [vmem:[#allocation8_spill] sm:$0xff] }
 0x7d5   : > { %v5028_v63 = vadd.f32 %v5027_v60, %v12921_v0  ;;  %v5324_v59 = vpop.f32.mrf.mxu3 }
 0x7d7   : > { %8713 = vmatmul.msk.bf16.gmra.mxu0 %vm1007_vm5, %v15027_v62  ;;  %v5126_v40 = vpop.f32.mrf.mxu1  ;;  %v5616_v26 = vmax.f32 %v5028_v63, 0.0 }
 0x7d8   : > { %v5127_v35 = vadd.f32 %v5126_v40, %v13244_v21  ;;  %v15031_v40 = vld [vmem:[#allocation80_spill] sm:$0xff] }
 0x7da   : > { %v5227_v30 = vpop.f32.mrf.mxu2  ;;  %v5226_v3 = vadd.f32 %v5225_v18, %v5127_v35  ;;  %5165 = vmatmul.bf16.gmra.mxu1 %v14990_v22  ;;  %v15030_v18 = vld [vmem:[#allocation41_spill] sm:$0xff] }
 0x7dc   : > { %v5029_v57 = vpop.f32.mrf.mxu0  ;;  %v13253_v0 = vadd.f32 %v5324_v59, %v5226_v3  ;;  %v15032_v3 = vld [vmem:[#allocation99_spill] sm:$0xff] }
 0x7dd   : > { %v5030_v39 = vadd.f32 %v5029_v57, %v12926_v61  ;;  %v5326_v48 = vpop.f32.mrf.mxu3 }
 0x7df   : > { %v5622_v9 = vmax.f32 %v5030_v39, 0.0  ;;  %5269 = vmatmul.bf16.gmra.mxu2 %v15028_v5  ;;  %v5128_v11 = vpop.f32.mrf.mxu1 }
 0x7e0   : > { %v5129_v19 = vadd.f32 %v5128_v11, %v13244_v21 }
 0x7e1   : > { %v13256_v42 = vpack.c.bf16 %v5622_v9, %v5616_v26  ;;  %v15033_v9 = vld [vmem:[#allocation43_spill] sm:$0xff] }
 0x7e2   : > { %v5230_v28 = vpop.f32.mrf.mxu2  ;;  %v5228_v60 = vadd.f32 %v5227_v30, %v5129_v19  ;;  %5368 = vmatmul.bf16.gmra.mxu3 %v15030_v18  ;;  %v9170_v30 = vld [vmem:[%s14241_s3 + $0x10] sm:$0xff] }
 0x7e3   : > { %15029 = vst [vmem:[#allocation20_spill] sm:$0xff] %v13256_v42  ;;  %6329 = vmatpush.bf16.msrb.mxu2 %v9170_v30  ;;  %v15036_v42 = vld [vmem:[#allocation101_spill] sm:$0xff] }
 0x7e4   : > { %v5032_v22 = vpop.f32.mrf.mxu0  ;;  %v13261_v61 = vadd.f32 %v5326_v48, %v5228_v60 }
 0x7e5   : > { %v5033_v35 = vadd.f32 %v5032_v22, %v15031_v40  ;;  %v5329_v59 = vpop.f32.mrf.mxu3  ;;  %v8413_v22 = vld [vmem:[%s14239_s1 + $0x508] sm:$0xf0] }
 0x7e7   : > { %8714 = vmatmul.msk.bf16.gmra.mxu0 %vm1007_vm5, %v15032_v3  ;;  %v5131_v63 = vpop.f32.mrf.mxu1  ;;  %v5628_v19 = vmax.f32 %v5033_v35, 0.0 }
 0x7e8   : > { %v5132_v57 = vadd.f32 %v5131_v63, %v13244_v21 }
 0x7ea   : > { %v5232_v39 = vpop.f32.mrf.mxu2  ;;  %v5231_v26 = vadd.f32 %v5230_v28, %v5132_v57  ;;  %5170 = vmatmul.bf16.gmra.mxu1 %v15033_v9  ;;  %v9110_v28 = vld [vmem:[%s14239_s1 + $0x4f4] sm:$0xf] }
 0x7ec   : > { %v5034_v5 = vpop.f32.mrf.mxu0  ;;  %v13271_v48 = vadd.f32 %v5329_v59, %v5231_v26  ;;  %v8416_v59 = vor.u32 %v9110_v28, %v8413_v22  ;;  %v15035_v26 = vld [vmem:[#allocation44_spill] sm:$0xff] }
 0x7ed   : > { %v5035_v11 = vadd.f32 %v5034_v5, %v12954_v16  ;;  %v5331_v60 = vpop.f32.mrf.mxu3  ;;  %v9178_v16 = vld [vmem:[%s14241_s3 + $0x50] sm:$0xff] }
 0x7ee   : > { %6428 = vmatpush.bf16.msrb.mxu3 %v9178_v16  ;;  %5419 = vmatpush.bf16.msrb.mxu0 %v8416_v59 }
 0x7ef   : > { %v5634_v18 = vmax.f32 %v5035_v11, 0.0  ;;  %5274 = vmatmul.bf16.gmra.mxu2 %v14911_v2  ;;  %v5133_v40 = vpop.f32.mrf.mxu1 }
 0x7f0   : > { %v5134_v35 = vadd.f32 %v5133_v40, %v13244_v21 }
 0x7f1   : > { %v13284_v63 = vpack.c.bf16 %v5634_v18, %v5628_v19 }
 0x7f2   : > { %v5235_v2 = vpop.f32.mrf.mxu2  ;;  %v5233_v57 = vadd.f32 %v5232_v39, %v5134_v35  ;;  %5373 = vmatmul.bf16.gmra.mxu3 %v15035_v26 }
 0x7f3   : > { %15034 = vst [vmem:[#allocation153_spill] sm:$0xff] %v13284_v63 }
 0x7f4   : > { %v5037_v9 = vpop.f32.mrf.mxu0  ;;  %v13288_v5 = vadd.f32 %v5331_v60, %v5233_v57 }
 0x7f5   : > { %v5038_v30 = vadd.f32 %v5037_v9, %v12959_v17  ;;  %v5334_v11 = vpop.f32.mrf.mxu3 }
 0x7f7   : > { %8715 = vmatmul.msk.bf16.gmra.mxu0 %vm1007_vm5, %v15036_v42  ;;  %v5136_v28 = vpop.f32.mrf.mxu1  ;;  %v5640_v17 = vmax.f32 %v5038_v30, 0.0 }
 0x7f8   : > { %v5137_v22 = vadd.f32 %v5136_v28, %v13244_v21 }
 0x7fa   : > { %v5237_v16 = vpop.f32.mrf.mxu2  ;;  %v5236_v19 = vadd.f32 %v5235_v2, %v5137_v22  ;;  %5175 = vmatmul.bf16.gmra.mxu1 %v14994_v33  ;;  %v15038_v2 = vld [vmem:[#allocation47_spill] sm:$0xff]  ;;  %v15039_v22 = vld [vmem:[#allocation6_spill] sm:$0xff] }
 0x7fc   : > { %v5039_v18 = vpop.f32.mrf.mxu0  ;;  %v13295_v40 = vadd.f32 %v5334_v11, %v5236_v19  ;;  %v15040_v19 = vld [vmem:[#allocation103_spill] sm:$0xff] }
 0x7fd   : > { %v5040_v39 = vadd.f32 %v5039_v18, %v12964_v34  ;;  %v5336_v59 = vpop.f32.mrf.mxu3 }
 0x7ff   : > { %v5646_v60 = vmax.f32 %v5040_v39, 0.0  ;;  %5279 = vmatmul.bf16.gmra.mxu2 %v14913_v47  ;;  %v5138_v35 = vpop.f32.mrf.mxu1 }
 0x800   : > { %v5139_v57 = vadd.f32 %v5138_v35, %v13244_v21 }
 0x801   : > { %v13299_v26 = vpack.c.bf16 %v5646_v60, %v5640_v17  ;;  %v15041_v17 = vld [vmem:[#allocation49_spill] sm:$0xff] }
 0x802   : > { %v5240_v9 = vpop.f32.mrf.mxu2  ;;  %v5238_v28 = vadd.f32 %v5237_v16, %v5139_v57  ;;  %5378 = vmatmul.bf16.gmra.mxu3 %v15038_v2 }
 0x803   : > { %15037 = vst [vmem:[#allocation90_spill] sm:$0xff] %v13299_v26 }
 0x804   : > { %v5042_v33 = vpop.f32.mrf.mxu0  ;;  %v13303_v34 = vadd.f32 %v5336_v59, %v5238_v28  ;;  %v9169_v28 = vld [vmem:[%s14241_s3 + $0x8] sm:$0xff] }
 0x805   : > { %v5043_v63 = vadd.f32 %v5042_v33, %v15039_v22  ;;  %v5339_v11 = vpop.f32.mrf.mxu3  ;;  %6330 = vmatpush.bf16.msrb.mxu2 %v9169_v28 }
 0x807   : > { %8716 = vmatmul.msk.bf16.gmra.mxu0 %vm1007_vm5, %v15040_v19  ;;  %v5141_v30 = vpop.f32.mrf.mxu1  ;;  %v5652_v2 = vmax.f32 %v5043_v63, 0.0  ;;  %v9104_v63 = vld [vmem:[%s14239_s1 + $0x4c4] sm:$0xf] }
 0x808   : > { %v5142_v47 = vadd.f32 %v5141_v30, %v13244_v21 }
 0x80a   : > { %v5242_v18 = vpop.f32.mrf.mxu2  ;;  %v5241_v39 = vadd.f32 %v5240_v9, %v5142_v47  ;;  %5180 = vmatmul.bf16.gmra.mxu1 %v15041_v17 }
 0x80c   : > { %v5044_v60 = vpop.f32.mrf.mxu0  ;;  %v13310_v35 = vadd.f32 %v5339_v11, %v5241_v39  ;;  %v9177_v11 = vld [vmem:[%s14241_s3 + $0x48] sm:$0xff] }
 0x80d   : > { %v5045_v16 = vadd.f32 %v5044_v60, %v12998_v29  ;;  %v5341_v57 = vpop.f32.mrf.mxu3  ;;  %v15043_v29 = vld [vmem:[#allocation51_spill] sm:$0xff]  ;;  %6429 = vmatpush.bf16.msrb.mxu3 %v9177_v11 }
 0x80e   : > { %v8557_v60 = vld [vmem:[%s14239_s1 + $0x628] sm:$0xf0] }
 0x80f   : > { %v5658_v59 = vmax.f32 %v5045_v16, 0.0  ;;  %5284 = vmatmul.bf16.gmra.mxu2 %v14917_v50  ;;  %v5143_v33 = vpop.f32.mrf.mxu1  ;;  %v8389_v50 = vld [vmem:[%s14239_s1 + $0x4d8] sm:$0xf0] }
 0x810   : > { %v5144_v22 = vadd.f32 %v5143_v33, %v13244_v21  ;;  %v8392_v17 = vor.u32 %v9104_v63, %v8389_v50  ;;  %v15044_v33 = vld [vmem:[#allocation105_spill] sm:$0xff] }
 0x811   : > { %v13317_v9 = vpack.c.bf16 %v5658_v59, %v5652_v2 }
 0x812   : > { %v5245_v30 = vpop.f32.mrf.mxu2  ;;  %v5243_v47 = vadd.f32 %v5242_v18, %v5144_v22  ;;  %5383 = vmatmul.bf16.gmra.mxu3 %v15043_v29  ;;  %v9146_v18 = vld [vmem:[%s14239_s1 + $0x614] sm:$0xf]  ;;  %5420 = vmatpush.bf16.msrb.mxu0 %v8392_v17 }
 0x813   : > { %15042 = vst [vmem:[#allocation23_spill] sm:$0xff] %v13317_v9  ;;  %v8560_v2 = vor.u32 %v9146_v18, %v8557_v60 }
 0x814   : > { %v5047_v39 = vpop.f32.mrf.mxu0  ;;  %v13336_v59 = vadd.f32 %v5341_v57, %v5243_v47 }
 0x815   : > { %v5048_v16 = vadd.f32 %v5047_v39, %v13003_v41  ;;  %v5344_v28 = vpop.f32.mrf.mxu3  ;;  %5520 = vmatpush.bf16.msrb.mxu1 %v8560_v2 }
 0x817   : > { %8717 = vmatmul.msk.bf16.gmra.mxu0 %vm1007_vm5, %v15044_v33  ;;  %v5146_v22 = vpop.f32.mrf.mxu1  ;;  %v5664_v47 = vmax.f32 %v5048_v16, 0.0 }
 0x818   : > { %v5147_v29 = vadd.f32 %v5146_v22, %v13244_v21 }
 0x81a   : > { %v5247_v63 = vpop.f32.mrf.mxu2  ;;  %v5246_v50 = vadd.f32 %v5245_v30, %v5147_v29  ;;  %5185 = vmatmul.bf16.gmra.mxu1 %v14997_v8 }
 0x81c   : > { %v5049_v9 = vpop.f32.mrf.mxu0  ;;  %v13343_v11 = vadd.f32 %v5344_v28, %v5246_v50  ;;  %v15046_v28 = vld [vmem:[#allocation107_spill] sm:$0xff] }
 0x81d   : > { %v5050_v41 = vadd.f32 %v5049_v9, %v13008_v56  ;;  %v5346_v57 = vpop.f32.mrf.mxu3 }
 0x81f   : > { %v5670_v39 = vmax.f32 %v5050_v41, 0.0  ;;  %5289 = vmatmul.bf16.gmra.mxu2 %v14920_v31  ;;  %v5148_v17 = vpop.f32.mrf.mxu1  ;;  %v15047_v41 = vld [vmem:[#allocation58_spill] sm:$0xff] }
 0x820   : > { %v5149_v18 = vadd.f32 %v5148_v17, %v13244_v21 }
 0x821   : > { %v13347_v60 = vpack.c.bf16 %v5670_v39, %v5664_v47 }
 0x822   : > { %v5250_v2 = vpop.f32.mrf.mxu2  ;;  %v5248_v22 = vadd.f32 %v5247_v63, %v5149_v18  ;;  %5388 = vmatmul.bf16.gmra.mxu3 %v14824_v27  ;;  %v15048_v63 = vld [vmem:[#allocation10_spill] sm:$0xff] }
 0x823   : > { %15045 = vst [vmem:[#allocation141_spill] sm:$0xff] %v13347_v60 }
 0x824   : > { %v5052_v8 = vpop.f32.mrf.mxu0  ;;  %v13351_v56 = vadd.f32 %v5346_v57, %v5248_v22 }
 0x825   : > { %v5053_v30 = vadd.f32 %v5052_v8, %v13013_v51  ;;  %v5349_v9 = vpop.f32.mrf.mxu3 }
 0x827   : > { %8718 = vmatmul.msk.bf16.gmra.mxu0 %vm1007_vm5, %v15046_v28  ;;  %v5151_v16 = vpop.f32.mrf.mxu1  ;;  %v5676_v51 = vmax.f32 %v5053_v30, 0.0 }
 0x828   : > { %v5152_v31 = vadd.f32 %v5151_v16, %v13244_v21 }
 0x82a   : > { %v5252_v29 = vpop.f32.mrf.mxu2  ;;  %v5251_v50 = vadd.f32 %v5250_v2, %v5152_v31  ;;  %5190 = vmatmul.bf16.gmra.mxu1 %v15047_v41  ;;  %v15050_v2 = vld [vmem:[#allocation60_spill] sm:$0xff]  ;;  %v9168_v31 = vld [vmem:[%s14241_s3] sm:$0xff] }
 0x82b   : > { %6331 = vmatpush.bf16.msrb.mxu2 %v9168_v31  ;;  %v15051_v41 = vld [vmem:[#allocation108_spill] sm:$0xff] }
 0x82c   : > { %v5054_v47 = vpop.f32.mrf.mxu0  ;;  %v13358_v27 = vadd.f32 %v5349_v9, %v5251_v50 }
 0x82d   : > { %v5055_v39 = vadd.f32 %v5054_v47, %v15048_v63  ;;  %v5351_v17 = vpop.f32.mrf.mxu3  ;;  %v8365_v47 = vld [vmem:[%s14239_s1 + $0x4a8] sm:$0xf0]  ;;  %v9176_v63 = vld [vmem:[%s14241_s3 + $0x40] sm:$0xff] }
 0x82e   : > { %6430 = vmatpush.bf16.msrb.mxu3 %v9176_v63 }
 0x82f   : > { %v5682_v57 = vmax.f32 %v5055_v39, 0.0  ;;  %5294 = vmatmul.bf16.gmra.mxu2 %v14923_v53  ;;  %v5153_v18 = vpop.f32.mrf.mxu1 }
 0x830   : > { %v5154_v22 = vadd.f32 %v5153_v18, %v13244_v21 }
 0x831   : > { %v13362_v8 = vpack.c.bf16 %v5682_v57, %v5676_v51  ;;  %v15052_v57 = vld [vmem:[#allocation62_spill] sm:$0xff] }
 0x832   : > { %v5255_v16 = vpop.f32.mrf.mxu2  ;;  %v5253_v60 = vadd.f32 %v5252_v29, %v5154_v22  ;;  %5393 = vmatmul.bf16.gmra.mxu3 %v15050_v2  ;;  %v9098_v29 = vld [vmem:[%s14239_s1 + $0x494] sm:$0xf] }
 0x833   : > { %15049 = vst [vmem:[#allocation27_spill] sm:$0xff] %v13362_v8  ;;  %v8368_v39 = vor.u32 %v9098_v29, %v8365_v47 }
 0x834   : > { %v5057_v9 = vpop.f32.mrf.mxu0  ;;  %v13369_v30 = vadd.f32 %v5351_v17, %v5253_v60 }
 0x835   : > { %v5058_v50 = vadd.f32 %v5057_v9, %v13041_v58  ;;  %v5354_v53 = vpop.f32.mrf.mxu3  ;;  %5421 = vmatpush.bf16.msrb.mxu0 %v8368_v39 }
 0x837   : > { %8719 = vmatmul.msk.bf16.gmra.mxu0 %vm1007_vm5, %v15051_v41  ;;  %v5156_v58 = vpop.f32.mrf.mxu1  ;;  %v5688_v9 = vmax.f32 %v5058_v50, 0.0 }
 0x838   : > { %v5157_v60 = vadd.f32 %v5156_v58, %v13244_v21 }
 0x83a   : > { %v5257_v17 = vpop.f32.mrf.mxu2  ;;  %v5256_v51 = vadd.f32 %v5255_v16, %v5157_v60  ;;  %5195 = vmatmul.bf16.gmra.mxu1 %v15052_v57  ;;  %v15054_v60 = vld [vmem:[#allocation110_spill] sm:$0xff] }
 0x83c   : > { %v5059_v18 = vpop.f32.mrf.mxu0  ;;  %v13385_v2 = vadd.f32 %v5354_v53, %v5256_v51 }
 0x83d   : > { %v5060_v22 = vadd.f32 %v5059_v18, %v13046_v6  ;;  %v5356_v31 = vpop.f32.mrf.mxu3 }
 0x83f   : > { %v5694_v8 = vmax.f32 %v5060_v22, 0.0  ;;  %5299 = vmatmul.bf16.gmra.mxu2 %v14928_v7  ;;  %v5158_v26 = vpop.f32.mrf.mxu1  ;;  %v15055_v22 = vld [vmem:[#allocation73_spill] sm:$0xff] }
 0x840   : > { %v5159_v29 = vadd.f32 %v5158_v26, %v13244_v21 }
 0x841   : > { %v13389_v47 = vpack.c.bf16 %v5694_v8, %v5688_v9 }
 0x842   : > { %v5260_v63 = vpop.f32.mrf.mxu2  ;;  %v5258_v58 = vadd.f32 %v5257_v17, %v5159_v29  ;;  %5398 = vmatmul.bf16.gmra.mxu3 %v14930_v25 }
 0x843   : > { %15053 = vst [vmem:[#allocation30_spill] sm:$0xff] %v13389_v47 }
 0x844   : > { %v5062_v16 = vpop.f32.mrf.mxu0  ;;  %v13393_v6 = vadd.f32 %v5356_v31, %v5258_v58 }
 0x845   : > { %v5063_v39 = vadd.f32 %v5062_v16, %v13051_v38  ;;  %v5359_v53 = vpop.f32.mrf.mxu3 }
 0x847   : > { %8720 = vmatmul.msk.bf16.gmra.mxu0 %vm1007_vm5, %v15054_v60  ;;  %v5161_v50 = vpop.f32.mrf.mxu1  ;;  %v5700_v38 = vmax.f32 %v5063_v39, 0.0  ;;  %v9207_v39 = vld [vmem:[%s14241_s3 + $0x138] sm:$0xff] }
 0x848   : > { %v5162_v7 = vadd.f32 %v5161_v50, %v13244_v21  ;;  %6720 = vmatpush.bf16.msra.mxu2 %v9207_v39 }
 0x84a   : > { %v5262_v51 = vpop.f32.mrf.mxu2  ;;  %v5261_v26 = vadd.f32 %v5260_v63, %v5162_v7  ;;  %5200 = vmatmul.bf16.gmra.mxu1 %v15001_v4  ;;  %v15057_v63 = vld [vmem:[#allocation69_spill] sm:$0xff]  ;;  %v15058_v7 = vld [vmem:[#allocation112_spill] sm:$0xff] }
 0x84c   : > { %v5064_v8 = vpop.f32.mrf.mxu0  ;;  %v13400_v25 = vadd.f32 %v5359_v53, %v5261_v26 }
 0x84d   : > { %v5065_v17 = vadd.f32 %v5064_v8, %v13056_v52  ;;  %v5361_v57 = vpop.f32.mrf.mxu3 }
 0x84f   : > { %v5706_v18 = vmax.f32 %v5065_v17, 0.0  ;;  %5304 = vmatmul.bf16.gmra.mxu2 %v15055_v22  ;;  %v5163_v31 = vpop.f32.mrf.mxu1 }
 0x850   : > { %v5164_v9 = vadd.f32 %v5163_v31, %v13244_v21 }
 0x851   : > { %v13404_v29 = vpack.c.bf16 %v5706_v18, %v5700_v38  ;;  %v15059_v38 = vld [vmem:[#allocation72_spill] sm:$0xff]  ;;  %v9199_v18 = vld [vmem:[%s14241_s3 + $0xf8] sm:$0xff] }
 0x852   : > { %v5265_v58 = vpop.f32.mrf.mxu2  ;;  %v5263_v16 = vadd.f32 %v5262_v51, %v5164_v9  ;;  %5403 = vmatmul.bf16.gmra.mxu3 %v15057_v63  ;;  %6621 = vmatpush.bf16.msra.mxu1 %v9199_v18  ;;  %v15062_v18 = vld [vmem:[#allocation114_spill] sm:$0xff] }
 0x853   : > { %15056 = vst [vmem:[#allocation28_spill] sm:$0xff] %v13404_v29 }
 0x854   : > { %v5067_v4 = vpop.f32.mrf.mxu0  ;;  %v13408_v52 = vadd.f32 %v5361_v57, %v5263_v16  ;;  %v9215_v57 = vld [vmem:[%s14241_s3 + $0x178] sm:$0xff] }
 0x855   : > { %v5068_v50 = vadd.f32 %v5067_v4, %v13079_v13  ;;  %v5364_v53 = vpop.f32.mrf.mxu3  ;;  %v9191_v13 = vld [vmem:[%s14241_s3 + $0xb8] sm:$0xff]  ;;  %6819 = vmatpush.bf16.msra.mxu3 %v9215_v57 }
 0x856   : > { %6522 = vmatpush.bf16.msra.mxu0 %v9191_v13  ;;  %v15061_v13 = vld [vmem:[#allocation83_spill] sm:$0xff] }
 0x857   : > { %8721 = vmatmul.msk.bf16.gmra.mxu0 %vm1007_vm5, %v15058_v7  ;;  %v5166_v26 = vpop.f32.mrf.mxu1  ;;  %v5712_v16 = vmax.f32 %v5068_v50, 0.0 }
 0x858   : > { %v5167_v8 = vadd.f32 %v5166_v26, %v13244_v21 }
 0x85a   : > { %v5267_v51 = vpop.f32.mrf.mxu2  ;;  %v5266_v17 = vadd.f32 %v5265_v58, %v5167_v8  ;;  %5205 = vmatmul.bf16.gmra.mxu1 %v15059_v38 }
 0x85c   : > { %v5069_v22 = vpop.f32.mrf.mxu0  ;;  %v13427_v9 = vadd.f32 %v5364_v53, %v5266_v17 }
 0x85d   : > { %v5070_v31 = vadd.f32 %v5069_v22, %v13084_v54  ;;  %v5366_v58 = vpop.f32.mrf.mxu3 }
 0x85f   : > { %v5718_v63 = vmax.f32 %v5070_v31, 0.0  ;;  %5309 = vmatmul.bf16.gmra.mxu2 %v14940_v37  ;;  %v5168_v4 = vpop.f32.mrf.mxu1 }
 0x860   : > { %v5169_v39 = vadd.f32 %v5168_v4, %v13244_v21 }
 0x861   : > { %v13431_v26 = vpack.c.bf16 %v5718_v63, %v5712_v16  ;;  %v15063_v16 = vld [vmem:[#allocation76_spill] sm:$0xff] }
 0x862   : > { %v5270_v8 = vpop.f32.mrf.mxu2  ;;  %v5268_v38 = vadd.f32 %v5267_v51, %v5169_v39  ;;  %5408 = vmatmul.bf16.gmra.mxu3 %v14943_v23  ;;  %v15064_v51 = vld [vmem:[#allocation15_spill] sm:$0xff] }
 0x863   : > { %15060 = vst [vmem:[#allocation31_spill] sm:$0xff] %v13431_v26 }
 0x864   : > { %v5072_v54 = vpop.f32.mrf.mxu0  ;;  %v13435_v53 = vadd.f32 %v5366_v58, %v5268_v38  ;;  %v15065_v38 = vld [vmem:[#allocation98_spill] sm:$0xff] }
 0x865   : > { %v5073_v57 = vadd.f32 %v5072_v54, %v15061_v13  ;;  %v5369_v17 = vpop.f32.mrf.mxu3 }
 0x867   : > { %8722 = vmatmul.msk.bf16.gmra.mxu0 %vm1007_vm5, %v15062_v18  ;;  %v5171_v50 = vpop.f32.mrf.mxu1  ;;  %v5724_v54 = vmax.f32 %v5073_v57, 0.0 }
 0x868   : > { %v5172_v37 = vadd.f32 %v5171_v50, %v13244_v21 }
 0x86a   : > { %v5272_v22 = vpop.f32.mrf.mxu2  ;;  %v5271_v31 = vadd.f32 %v5270_v8, %v5172_v37  ;;  %5210 = vmatmul.bf16.gmra.mxu1 %v15063_v16  ;;  %v15067_v8 = vld [vmem:[#allocation122_spill] sm:$0xff] }
 0x86c   : > { %v5074_v63 = vpop.f32.mrf.mxu0  ;;  %v13442_v23 = vadd.f32 %v5369_v17, %v5271_v31  ;;  %v15068_v31 = vld [vmem:[#allocation3_spill] sm:$0xff] }
 0x86d   : > { %v5075_v4 = vadd.f32 %v5074_v63, %v15064_v51  ;;  %v5371_v39 = vpop.f32.mrf.mxu3 }
 0x86f   : > { %v5730_v58 = vmax.f32 %v5075_v4, 0.0  ;;  %6332 = vmatmul.bf16.vlgmr.msrb.gmra.mxu2 %v15065_v38  ;;  %v5173_v13 = vpop.f32.mrf.mxu1 }
 0x870   : > { %v5174_v26 = vadd.f32 %v5173_v13, %v13244_v21  ;;  %v15069_v13 = vld [vmem:[#allocation78_spill] sm:$0xff] }
 0x871   : > { %v13446_v29 = vpack.c.bf16 %v5730_v58, %v5724_v54 }
 0x872   : > { %v5275_v50 = vpop.f32.mrf.mxu2  ;;  %v5273_v47 = vadd.f32 %v5272_v22, %v5174_v26  ;;  %6431 = vmatmul.bf16.vlgmr.msrb.gmra.mxu3 %v15067_v8  ;;  %v9206_v26 = vld [vmem:[%s14241_s3 + $0x130] sm:$0xff] }
 0x873   : > { %15066 = vst [vmem:[#allocation32_spill] sm:$0xff] %v13446_v29  ;;  %6721 = vmatpush.bf16.msra.mxu2 %v9206_v26  ;;  %v15071_v8 = vld [vmem:[#allocation100_spill] sm:$0xff] }
 0x874   : > { %v5077_v37 = vpop.f32.mrf.mxu0  ;;  %v13450_v63 = vadd.f32 %v5371_v39, %v5273_v47 }
 0x875   : > { %v5078_v16 = vadd.f32 %v5077_v37, %v13112_v20  ;;  %v5374_v17 = vpop.f32.mrf.mxu3  ;;  %v9214_v37 = vld [vmem:[%s14241_s3 + $0x170] sm:$0xff] }
 0x876   : > { %6820 = vmatpush.bf16.msra.mxu3 %v9214_v37 }
 0x877   : > { %5422 = vmatmul.bf16.vlgmr.msrb.gmra.mxu0 %v15068_v31  ;;  %v5176_v57 = vpop.f32.mrf.mxu1  ;;  %v5736_v54 = vmax.f32 %v5078_v16, 0.0 }
 0x878   : > { %v5177_v51 = vadd.f32 %v5176_v57, %v13244_v21 }
 0x87a   : > { %v5277_v4 = vpop.f32.mrf.mxu2  ;;  %v5276_v38 = vadd.f32 %v5275_v50, %v5177_v51  ;;  %8723 = vmatmul.msk.bf16.vlgmr.msrb.gmra.mxu1 %vm1007_vm5, %v15069_v13  ;;  %v9190_v50 = vld [vmem:[%s14241_s3 + $0xb0] sm:$0xff] }
 0x87b   : > { %6523 = vmatpush.bf16.msra.mxu0 %v9190_v50 }
 0x87c   : > { %v5079_v22 = vpop.f32.mrf.mxu0  ;;  %v13460_v47 = vadd.f32 %v5374_v17, %v5276_v38  ;;  %v15073_v38 = vld [vmem:[#allocation123_spill] sm:$0xff] }
 0x87d   : > { %v5080_v20 = vadd.f32 %v5079_v22, %v13117_v15  ;;  %v5376_v39 = vpop.f32.mrf.mxu3  ;;  %v9198_v15 = vld [vmem:[%s14241_s3 + $0xf0] sm:$0xff] }
 0x87e   : > { %15070 = vst [vmem:[#allocation143_spill] sm:$0xff] %v13460_v47  ;;  %6622 = vmatpush.bf16.msra.mxu1 %v9198_v15 }
 0x87f   : > { %v5742_v58 = vmax.f32 %v5080_v20, 0.0  ;;  %6337 = vmatmul.bf16.gmra.mxu2 %v15071_v8  ;;  %v5178_v31 = vpop.f32.mrf.mxu1  ;;  %v15075_v8 = vld [vmem:[#allocation9_spill] sm:$0xff] }
 0x880   : > { %v5179_v17 = vadd.f32 %v5178_v31, %v13244_v21 }
 0x881   : > { %v13473_v16 = vpack.c.bf16 %v5742_v58, %v5736_v54  ;;  %v15076_v54 = vld [vmem:[#allocation79_spill] sm:$0xff] }
 0x882   : > { %v5280_v57 = vpop.f32.mrf.mxu2  ;;  %v5278_v51 = vadd.f32 %v5277_v4, %v5179_v17  ;;  %6436 = vmatmul.bf16.gmra.mxu3 %v15073_v38  ;;  %v15077_v4 = vld [vmem:[#allocation136_spill] sm:$0xff] }
 0x883   : > { %15072 = vst [vmem:[#allocation157_spill] sm:$0xff] %v13473_v16 }
 0x884   : > { %v5082_v13 = vpop.f32.mrf.mxu0  ;;  %v13477_v22 = vadd.f32 %v5376_v39, %v5278_v51  ;;  %v15078_v51 = vld [vmem:[#allocation102_spill] sm:$0xff] }
 0x885   : > { %v5083_v26 = vadd.f32 %v5082_v13, %v13123_v32  ;;  %v5379_v20 = vpop.f32.mrf.mxu3 }
 0x886   : > { %15074 = vst [vmem:[#allocation36_spill] sm:$0xff] %v13477_v22  ;;  %v15081_v22 = vld [vmem:[#allocation87_spill] sm:$0xff] }
 0x887   : > { %5427 = vmatmul.bf16.gmra.mxu0 %v15075_v8  ;;  %v5181_v29 = vpop.f32.mrf.mxu1  ;;  %v5748_v32 = vmax.f32 %v5083_v26, 0.0 }
 0x888   : > { %v5182_v31 = vadd.f32 %v5181_v29, %v13244_v21 }
 0x88a   : > { %v5282_v50 = vpop.f32.mrf.mxu2  ;;  %v5281_v37 = vadd.f32 %v5280_v57, %v5182_v31  ;;  %8724 = vmatmul.msk.bf16.gmra.mxu1 %vm1007_vm5, %v15076_v54  ;;  %v15080_v31 = vld [vmem:[#allocation52_spill] sm:$0xff] }
 0x88c   : > { %v5084_v58 = vpop.f32.mrf.mxu0  ;;  %v13484_v17 = vadd.f32 %v5379_v20, %v5281_v37  ;;  %v15082_v37 = vld [vmem:[#allocation13_spill] sm:$0xff] }
 0x88d   : > { %v5085_v15 = vadd.f32 %v5084_v58, %v15077_v4  ;;  %v5381_v38 = vpop.f32.mrf.mxu3 }
 0x88f   : > { %v5754_v39 = vmax.f32 %v5085_v15, 0.0  ;;  %6342 = vmatmul.bf16.gmra.mxu2 %v15078_v51  ;;  %v5183_v13 = vpop.f32.mrf.mxu1 }
 0x890   : > { %v5184_v8 = vadd.f32 %v5183_v13, %v13244_v21  ;;  %v15083_v13 = vld [vmem:[#allocation81_spill] sm:$0xff] }
 0x891   : > { %v13488_v16 = vpack.c.bf16 %v5754_v39, %v5748_v32 }
 0x892   : > { %v5285_v29 = vpop.f32.mrf.mxu2  ;;  %v5283_v57 = vadd.f32 %v5282_v50, %v5184_v8  ;;  %6441 = vmatmul.bf16.gmra.mxu3 %v15080_v31  ;;  %v9205_v31 = vld [vmem:[%s14241_s3 + $0x128] sm:$0xff] }
 0x893   : > { %15079 = vst [vmem:[#allocation39_spill] sm:$0xff] %v13488_v16  ;;  %6722 = vmatpush.bf16.msra.mxu2 %v9205_v31 }
 0x894   : > { %v5087_v54 = vpop.f32.mrf.mxu0  ;;  %v13492_v58 = vadd.f32 %v5381_v38, %v5283_v57  ;;  %v15084_v57 = vld [vmem:[#allocation104_spill] sm:$0xff] }
 0x895   : > { %v5088_v47 = vadd.f32 %v5087_v54, %v15081_v22  ;;  %v5384_v20 = vpop.f32.mrf.mxu3 }
 0x897   : > { %5432 = vmatmul.bf16.gmra.mxu0 %v15082_v37  ;;  %v5186_v26 = vpop.f32.mrf.mxu1  ;;  %v5760_v22 = vmax.f32 %v5088_v47, 0.0  ;;  %v9189_v47 = vld [vmem:[%s14241_s3 + $0xa8] sm:$0xff] }
 0x898   : > { %v5187_v4 = vadd.f32 %v5186_v26, %v13244_v21  ;;  %6524 = vmatpush.bf16.msra.mxu0 %v9189_v47 }
 0x89a   : > { %v5287_v15 = vpop.f32.mrf.mxu2  ;;  %v5286_v51 = vadd.f32 %v5285_v29, %v5187_v4  ;;  %8725 = vmatmul.msk.bf16.gmra.mxu1 %vm1007_vm5, %v15083_v13 }
 0x89c   : > { %v5089_v32 = vpop.f32.mrf.mxu0  ;;  %v13499_v39 = vadd.f32 %v5384_v20, %v5286_v51  ;;  %v9213_v20 = vld [vmem:[%s14241_s3 + $0x168] sm:$0xff] }
 0x89d   : > { %v5090_v50 = vadd.f32 %v5089_v32, %v13157_v10  ;;  %v5386_v8 = vpop.f32.mrf.mxu3  ;;  %v15086_v10 = vld [vmem:[#allocation126_spill] sm:$0xff]  ;;  %v9197_v51 = vld [vmem:[%s14241_s3 + $0xe8] sm:$0xff]  ;;  %6821 = vmatpush.bf16.msra.mxu3 %v9213_v20 }
 0x89e   : > { %6623 = vmatpush.bf16.msra.mxu1 %v9197_v51  ;;  %v15088_v20 = vld [vmem:[#allocation106_spill] sm:$0xff] }
 0x89f   : > { %v5766_v38 = vmax.f32 %v5090_v50, 0.0  ;;  %6347 = vmatmul.bf16.gmra.mxu2 %v15084_v57  ;;  %v5188_v54 = vpop.f32.mrf.mxu1 }
 0x8a0   : > { %v5189_v29 = vadd.f32 %v5188_v54, %v13244_v21 }
 0x8a1   : > { %v13506_v37 = vpack.c.bf16 %v5766_v38, %v5760_v22  ;;  %v15087_v22 = vld [vmem:[#allocation17_spill] sm:$0xff] }
 0x8a2   : > { %v5290_v26 = vpop.f32.mrf.mxu2  ;;  %v5288_v4 = vadd.f32 %v5287_v15, %v5189_v29  ;;  %6446 = vmatmul.bf16.gmra.mxu3 %v15086_v10 }
 0x8a3   : > { %15085 = vst [vmem:[#allocation46_spill] sm:$0xff] %v13506_v37  ;;  %v15091_v37 = vld [vmem:[#allocation19_spill] sm:$0xff] }
 0x8a4   : > { %v5092_v13 = vpop.f32.mrf.mxu0  ;;  %v13519_v15 = vadd.f32 %v5386_v8, %v5288_v4 }
 0x8a5   : > { %v5093_v32 = vadd.f32 %v5092_v13, %v13163_v45  ;;  %v5389_v50 = vpop.f32.mrf.mxu3 }
 0x8a7   : > { %5437 = vmatmul.bf16.gmra.mxu0 %v15087_v22  ;;  %v5191_v38 = vpop.f32.mrf.mxu1  ;;  %v5772_v8 = vmax.f32 %v5093_v32, 0.0 }
 0x8a8   : > { %v5192_v57 = vadd.f32 %v5191_v38, %v13244_v21 }
 0x8aa   : > { %v5292_v31 = vpop.f32.mrf.mxu2  ;;  %v5291_v54 = vadd.f32 %v5290_v26, %v5192_v57  ;;  %8726 = vmatmul.msk.bf16.gmra.mxu1 %vm1007_vm5, %v15016_v36  ;;  %v15090_v57 = vld [vmem:[#allocation127_spill] sm:$0xff] }
 0x8ac   : > { %v5094_v29 = vpop.f32.mrf.mxu0  ;;  %v13526_v45 = vadd.f32 %v5389_v50, %v5291_v54  ;;  %v15092_v54 = vld [vmem:[#allocation21_spill] sm:$0xff] }
 0x8ad   : > { %v5095_v10 = vadd.f32 %v5094_v29, %v13168_v44  ;;  %v5391_v47 = vpop.f32.mrf.mxu3 }
 0x8af   : > { %v5778_v4 = vmax.f32 %v5095_v10, 0.0  ;;  %6352 = vmatmul.bf16.gmra.mxu2 %v15088_v20  ;;  %v5193_v51 = vpop.f32.mrf.mxu1 }
 0x8b0   : > { %v5194_v13 = vadd.f32 %v5193_v51, %v13244_v21  ;;  %v15093_v51 = vld [vmem:[#allocation86_spill] sm:$0xff] }
 0x8b1   : > { %v13530_v22 = vpack.c.bf16 %v5778_v4, %v5772_v8 }
 0x8b2   : > { %v5295_v38 = vpop.f32.mrf.mxu2  ;;  %v5293_v26 = vadd.f32 %v5292_v31, %v5194_v13  ;;  %6451 = vmatmul.bf16.gmra.mxu3 %v15090_v57 }
 0x8b3   : > { %15089 = vst [vmem:[#allocation54_spill] sm:$0xff] %v13530_v22 }
 0x8b4   : > { %v5097_v36 = vpop.f32.mrf.mxu0  ;;  %v13534_v44 = vadd.f32 %v5391_v47, %v5293_v26  ;;  %v15094_v26 = vld [vmem:[#allocation63_spill] sm:$0xff] }
 0x8b5   : > { %v5098_v16 = vadd.f32 %v5097_v36, %v15091_v37  ;;  %v5394_v50 = vpop.f32.mrf.mxu3 }
 0x8b7   : > { %5442 = vmatmul.bf16.gmra.mxu0 %v15092_v54  ;;  %v5196_v32 = vpop.f32.mrf.mxu1  ;;  %v5784_v37 = vmax.f32 %v5098_v16, 0.0 }
 0x8b8   : > { %v5197_v29 = vadd.f32 %v5196_v32, %v13244_v21 }
 0x8ba   : > { %v5297_v10 = vpop.f32.mrf.mxu2  ;;  %v5296_v20 = vadd.f32 %v5295_v38, %v5197_v29  ;;  %8727 = vmatmul.msk.bf16.gmra.mxu1 %vm1007_vm5, %v15093_v51  ;;  %v15096_v29 = vld [vmem:[#allocation128_spill] sm:$0xff] }
 0x8bc   : > { %v5099_v8 = vpop.f32.mrf.mxu0  ;;  %v13541_v4 = vadd.f32 %v5394_v50, %v5296_v20 }
 0x8bd   : > { %v5100_v31 = vadd.f32 %v5099_v8, %v13191_v14  ;;  %v5396_v13 = vpop.f32.mrf.mxu3  ;;  %v9204_v14 = vld [vmem:[%s14241_s3 + $0x120] sm:$0xff]  ;;  %v15097_v8 = vld [vmem:[#allocation25_spill] sm:$0xff] }
 0x8be   : > { %6723 = vmatpush.bf16.msra.mxu2 %v9204_v14 }
 0x8bf   : > { %v5790_v47 = vmax.f32 %v5100_v31, 0.0  ;;  %6357 = vmatmul.bf16.gmra.mxu2 %v15094_v26  ;;  %v5198_v57 = vpop.f32.mrf.mxu1  ;;  %v9188_v31 = vld [vmem:[%s14241_s3 + $0xa0] sm:$0xff] }
 0x8c0   : > { %v5199_v36 = vadd.f32 %v5198_v57, %v13244_v21  ;;  %6525 = vmatpush.bf16.msra.mxu0 %v9188_v31  ;;  %v15098_v57 = vld [vmem:[#allocation89_spill] sm:$0xff] }
 0x8c1   : > { %v13545_v54 = vpack.c.bf16 %v5790_v47, %v5784_v37  ;;  %v9196_v37 = vld [vmem:[%s14241_s3 + $0xe0] sm:$0xff] }
 0x8c2   : > { %v5300_v32 = vpop.f32.mrf.mxu2  ;;  %v5298_v38 = vadd.f32 %v5297_v10, %v5199_v36  ;;  %6456 = vmatmul.bf16.gmra.mxu3 %v15096_v29  ;;  %v9212_v10 = vld [vmem:[%s14241_s3 + $0x160] sm:$0xff]  ;;  %6624 = vmatpush.bf16.msra.mxu1 %v9196_v37 }
 0x8c3   : > { %15095 = vst [vmem:[#allocation67_spill] sm:$0xff] %v13545_v54  ;;  %6822 = vmatpush.bf16.msra.mxu3 %v9212_v10  ;;  %v15099_v54 = vld [vmem:[#allocation109_spill] sm:$0xff] }
 0x8c4   : > { %v5102_v50 = vpop.f32.mrf.mxu0  ;;  %v13552_v16 = vadd.f32 %v5396_v13, %v5298_v38 }
 0x8c5   : > { %v5103_v20 = vadd.f32 %v5102_v50, %v13197_v49  ;;  %v5399_v51 = vpop.f32.mrf.mxu3 }
 0x8c7   : > { %5447 = vmatmul.bf16.gmra.mxu0 %v15097_v8  ;;  %v5201_v47 = vpop.f32.mrf.mxu1  ;;  %v5796_v50 = vmax.f32 %v5103_v20, 0.0 }
 0x8c8   : > { %v5202_v49 = vadd.f32 %v5201_v47, %v13244_v21  ;;  %v15100_v47 = vld [vmem:[#allocation70_spill] sm:$0xff] }
 0x8ca   : > { %v5302_v13 = vpop.f32.mrf.mxu2  ;;  %v5301_v26 = vadd.f32 %v5300_v32, %v5202_v49  ;;  %8728 = vmatmul.msk.bf16.gmra.mxu1 %vm1007_vm5, %v15098_v57 }
 0x8cc   : > { %v5104_v36 = vpop.f32.mrf.mxu0  ;;  %v13568_v29 = vadd.f32 %v5399_v51, %v5301_v26  ;;  %v15101_v26 = vld [vmem:[#allocation29_spill] sm:$0xff] }
 0x8cd   : > { %v5105_v38 = vadd.f32 %v5104_v36, %v13202_v12  ;;  %v5401_v14 = vpop.f32.mrf.mxu3 }
 0x8cf   : > { %v5802_v8 = vmax.f32 %v5105_v38, 0.0  ;;  %6362 = vmatmul.bf16.gmra.mxu2 %v15099_v54  ;;  %v5203_v22 = vpop.f32.mrf.mxu1 }
 0x8d0   : > { %v5204_v31 = vadd.f32 %v5203_v22, %v13244_v21 }
 0x8d1   : > { %v13572_v10 = vpack.c.bf16 %v5802_v8, %v5796_v50 }
 0x8d2   : > { %v5305_v37 = vpop.f32.mrf.mxu2  ;;  %v5303_v32 = vadd.f32 %v5302_v13, %v5204_v31  ;;  %6461 = vmatmul.bf16.gmra.mxu3 %v15100_v47  ;;  %v15102_v31 = vld [vmem:[#allocation111_spill] sm:$0xff] }
 0x8d4   : > { %v5107_v49 = vpop.f32.mrf.mxu0  ;;  %v13576_v12 = vadd.f32 %v5401_v14, %v5303_v32 }
 0x8d5   : > { %v5108_v57 = vadd.f32 %v5107_v49, %v13208_v55  ;;  %v5404_v51 = vpop.f32.mrf.mxu3 }
 0x8d7   : > { %5452 = vmatmul.bf16.gmra.mxu0 %v15101_v26  ;;  %v5206_v20 = vpop.f32.mrf.mxu1  ;;  %v5808_v55 = vmax.f32 %v5108_v57, 0.0  ;;  %v9203_v57 = vld [vmem:[%s14241_s3 + $0x118] sm:$0xff] }
 0x8d8   : > { %v5207_v54 = vadd.f32 %v5206_v20, %v13244_v21  ;;  %v15103_v20 = vld [vmem:[#allocation113_spill] sm:$0xff]  ;;  %6724 = vmatpush.bf16.msra.mxu2 %v9203_v57 }
 0x8da   : > { %v5307_v36 = vpop.f32.mrf.mxu2  ;;  %v5306_v38 = vadd.f32 %v5305_v37, %v5207_v54  ;;  %8729 = vmatmul.msk.bf16.gmra.mxu1 %vm1007_vm5, %v15024_v43 }
 0x8dc   : > { %v5109_v22 = vpop.f32.mrf.mxu0  ;;  %v13583_v50 = vadd.f32 %v5404_v51, %v5306_v38  ;;  %v15104_v38 = vld [vmem:[#allocation33_spill] sm:$0xff] }
 0x8dd   : > { %v5110_v13 = vadd.f32 %v5109_v22, %v13213_v46  ;;  %v5406_v8 = vpop.f32.mrf.mxu3 }
 0x8df   : > { %v5814_v14 = vmax.f32 %v5110_v13, 0.0  ;;  %6367 = vmatmul.bf16.gmra.mxu2 %v15102_v31  ;;  %v5208_v32 = vpop.f32.mrf.mxu1  ;;  %v9195_v31 = vld [vmem:[%s14241_s3 + $0xd8] sm:$0xff] }
 0x8e0   : > { %v5209_v47 = vadd.f32 %v5208_v32, %v13244_v21  ;;  %6625 = vmatpush.bf16.msra.mxu1 %v9195_v31 }
 0x8e1   : > { %v13587_v49 = vpack.c.bf16 %v5814_v14, %v5808_v55  ;;  %v15105_v14 = vld [vmem:[#allocation95_spill] sm:$0xff] }
 0x8e2   : > { %v5310_v26 = vpop.f32.mrf.mxu2  ;;  %v5308_v37 = vadd.f32 %v5307_v36, %v5209_v47  ;;  %6466 = vmatmul.bf16.gmra.mxu3 %v15103_v20 }
 0x8e4   : > { %v5112_v43 = vpop.f32.mrf.mxu0  ;;  %v13591_v46 = vadd.f32 %v5406_v8, %v5308_v37  ;;  %v9211_v8 = vld [vmem:[%s14241_s3 + $0x158] sm:$0xff] }
 0x8e5   : > { %v5113_v54 = vadd.f32 %v5112_v43, %v13237_v24  ;;  %v5409_v51 = vpop.f32.mrf.mxu3  ;;  %v9187_v24 = vld [vmem:[%s14241_s3 + $0x98] sm:$0xff]  ;;  %6823 = vmatpush.bf16.msra.mxu3 %v9211_v8 }
 0x8e6   : > { %6526 = vmatpush.bf16.msra.mxu0 %v9187_v24 }
 0x8e7   : > { %5457 = vmatmul.bf16.gmra.mxu0 %v15104_v38  ;;  %v5211_v22 = vpop.f32.mrf.mxu1  ;;  %v5820_v20 = vmax.f32 %v5113_v54, 0.0  ;;  %v15106_v38 = vld [vmem:[#allocation35_spill] sm:$0xff] }
 0x8e8   : > { %v5212_v13 = vadd.f32 %v5211_v22, %v13244_v21 }
 0x8ea   : > { %v5312_v55 = vpop.f32.mrf.mxu2  ;;  %v5311_v36 = vadd.f32 %v5310_v26, %v5212_v13  ;;  %8730 = vmatmul.msk.bf16.gmra.mxu1 %vm1007_vm5, %v15105_v14  ;;  %v13617_v13 = vld [vmem:[%s14242_s4] ss:$0 sm:$0xff] }
 0x8ec   : > { %v5114_v32 = vpop.f32.mrf.mxu0  ;;  %v13610_v26 = vadd.f32 %v5409_v51, %v5311_v36  ;;  %v15107_v51 = vld [vmem:[#allocation132_spill] sm:$0xff] }
 0x8ed   : > { %v5115_v47 = vadd.f32 %v5114_v32, %v13246_v1  ;;  %v5411_v37 = vpop.f32.mrf.mxu3 }
 0x8ef   : > { %v5826_v43 = vmax.f32 %v5115_v47, 0.0  ;;  %6372 = vmatmul.bf16.gmra.mxu2 %v15106_v38  ;;  %v5213_v57 = vpop.f32.mrf.mxu1  ;;  %v15108_v47 = vld [vmem:[#allocation38_spill] sm:$0xff] }
 0x8f0   : > { %v5214_v22 = vadd.f32 %v5213_v57, %v13244_v21 }
 0x8f1   : > { %v13619_v14 = vpack.c.bf16 %v5826_v43, %v5820_v20 }
 0x8f2   : > { %v6333_v1 = vpop.f32.mrf.mxu2  ;;  %v5313_v24 = vadd.f32 %v5312_v55, %v5214_v22  ;;  %6471 = vmatmul.bf16.gmra.mxu3 %v15107_v51 }
 0x8f3   : > { %v6334_v54 = vadd.f32 %v13617_v13, %v6333_v1 }
 0x8f4   : > { %v5423_v36 = vpop.f32.mrf.mxu0  ;;  %v13624_v31 = vadd.f32 %v5411_v37, %v5313_v24  ;;  %v15109_v37 = vld [vmem:[#allocation115_spill] sm:$0xff] }
 0x8f5   : > { %v5424_v8 = vadd.f32 %v5423_v36, %v13253_v0  ;;  %v6432_v32 = vpop.f32.mrf.mxu3 }
 0x8f6   : > { %v13626_v21 = vadd.f32 %v6432_v32, %v6334_v54 }
 0x8f7   : > { %5462 = vmatmul.bf16.gmra.mxu0 %v15108_v47  ;;  %v5522_v38 = vpop.f32.mrf.mxu1 }
 0x8f8   : > { %v5523_v57 = vadd.f32 %v5522_v38, %v5424_v8  ;;  %v15110_v8 = vld [vmem:[#allocation116_spill] sm:$0xff] }
 0x8fa   : > { %v6335_v20 = vpop.f32.mrf.mxu2  ;;  %8731 = vmatmul.msk.bf16.gmra.mxu1 %vm1007_vm5, %v15027_v62  ;;  %v5617_v54 = vmax.f32 %v5523_v57, 0.0  ;;  %v9202_v57 = vld [vmem:[%s14241_s3 + $0x110] sm:$0xff] }
 0x8fb   : > { %v6336_v43 = vadd.f32 %v13617_v13, %v6335_v20  ;;  %6725 = vmatpush.bf16.msra.mxu2 %v9202_v57 }
 0x8fc   : > { %v5425_v55 = vpop.f32.mrf.mxu0 }
 0x8fd   : > { %v5426_v22 = vadd.f32 %v5425_v55, %v13261_v61  ;;  %v6434_v1 = vpop.f32.mrf.mxu3 }
 0x8fe   : > { %v13633_v0 = vadd.f32 %v6434_v1, %v6336_v43  ;;  %v15111_v43 = vld [vmem:[#allocation42_spill] sm:$0xff] }
 0x8ff   : > { %6377 = vmatmul.bf16.gmra.mxu2 %v15109_v37  ;;  %v5524_v24 = vpop.f32.mrf.mxu1 }
 0x900   : > { %v5525_v51 = vadd.f32 %v5524_v24, %v5426_v22 }
 0x902   : > { %v6338_v36 = vpop.f32.mrf.mxu2  ;;  %v5623_v32 = vmax.f32 %v5525_v51, 0.0  ;;  %6476 = vmatmul.bf16.gmra.mxu3 %v15110_v8  ;;  %v15112_v8 = vld [vmem:[#allocation117_spill] sm:$0xff] }
 0x903   : > { %v6339_v62 = vadd.f32 %v13617_v13, %v6338_v36  ;;  %v9186_v36 = vld [vmem:[%s14241_s3 + $0x90] sm:$0xff] }
 0x904   : > { %v5428_v47 = vpop.f32.mrf.mxu0  ;;  %v13637_v38 = vpack.c.bf16 %v5623_v32, %v5617_v54  ;;  %v9210_v54 = vld [vmem:[%s14241_s3 + $0x150] sm:$0xff]  ;;  %6527 = vmatpush.bf16.msra.mxu0 %v9186_v36 }
 0x905   : > { %v5429_v20 = vadd.f32 %v5428_v47, %v13271_v48  ;;  %v6437_v61 = vpop.f32.mrf.mxu3  ;;  %v9194_v47 = vld [vmem:[%s14241_s3 + $0xd0] sm:$0xff]  ;;  %6824 = vmatpush.bf16.msra.mxu3 %v9210_v54 }
 0x906   : > { %v13641_v55 = vadd.f32 %v6437_v61, %v6339_v62  ;;  %6626 = vmatpush.bf16.msra.mxu1 %v9194_v47 }
 0x907   : > { %5467 = vmatmul.bf16.gmra.mxu0 %v15111_v43  ;;  %v5527_v1 = vpop.f32.mrf.mxu1 }
 0x908   : > { %v5528_v37 = vadd.f32 %v5527_v1, %v5429_v20  ;;  %v15113_v1 = vld [vmem:[#allocation82_spill] sm:$0xff] }
 0x90a   : > { %v6340_v22 = vpop.f32.mrf.mxu2  ;;  %8732 = vmatmul.msk.bf16.gmra.mxu1 %vm1007_vm5, %v15032_v3  ;;  %v5629_v61 = vmax.f32 %v5528_v37, 0.0 }
 0x90b   : > { %v6341_v51 = vadd.f32 %v13617_v13, %v6340_v22 }
 0x90c   : > { %v5430_v24 = vpop.f32.mrf.mxu0 }
 0x90d   : > { %v5431_v48 = vadd.f32 %v5430_v24, %v13288_v5  ;;  %v6439_v32 = vpop.f32.mrf.mxu3 }
 0x90e   : > { %v13657_v3 = vadd.f32 %v6439_v32, %v6341_v51 }
 0x90f   : > { %6382 = vmatmul.bf16.gmra.mxu2 %v15112_v8  ;;  %v5529_v5 = vpop.f32.mrf.mxu1  ;;  %v15114_v8 = vld [vmem:[#allocation45_spill] sm:$0xff] }
 0x910   : > { %v5530_v62 = vadd.f32 %v5529_v5, %v5431_v48 }
 0x912   : > { %v6343_v20 = vpop.f32.mrf.mxu2  ;;  %v5635_v43 = vmax.f32 %v5530_v62, 0.0  ;;  %6481 = vmatmul.bf16.gmra.mxu3 %v15113_v1 }
 0x913   : > { %v6344_v57 = vadd.f32 %v13617_v13, %v6343_v20 }
 0x914   : > { %v5433_v22 = vpop.f32.mrf.mxu0  ;;  %v13666_v51 = vpack.c.bf16 %v5635_v43, %v5629_v61  ;;  %v15115_v61 = vld [vmem:[#allocation118_spill] sm:$0xff] }
 0x915   : > { %v5434_v24 = vadd.f32 %v5433_v22, %v13295_v40  ;;  %v6442_v36 = vpop.f32.mrf.mxu3 }
 0x916   : > { %v13668_v32 = vadd.f32 %v6442_v36, %v6344_v57 }
 0x917   : > { %5472 = vmatmul.bf16.gmra.mxu0 %v15114_v8  ;;  %v5532_v54 = vpop.f32.mrf.mxu1 }
 0x918   : > { %v5533_v48 = vadd.f32 %v5532_v54, %v5434_v24  ;;  %v15116_v24 = vld [vmem:[#allocation119_spill] sm:$0xff] }
 0x91a   : > { %v6345_v47 = vpop.f32.mrf.mxu2  ;;  %8733 = vmatmul.msk.bf16.gmra.mxu1 %vm1007_vm5, %v15036_v42  ;;  %v5641_v57 = vmax.f32 %v5533_v48, 0.0 }
 0x91b   : > { %v6346_v5 = vadd.f32 %v13617_v13, %v6345_v47 }
 0x91c   : > { %v5435_v37 = vpop.f32.mrf.mxu0 }
 0x91d   : > { %v5436_v62 = vadd.f32 %v5435_v37, %v13303_v34  ;;  %v6444_v20 = vpop.f32.mrf.mxu3 }
 0x91e   : > { %v13675_v40 = vadd.f32 %v6444_v20, %v6346_v5  ;;  %v15117_v5 = vld [vmem:[#allocation48_spill] sm:$0xff] }
 0x91f   : > { %6387 = vmatmul.bf16.gmra.mxu2 %v15115_v61  ;;  %v5534_v43 = vpop.f32.mrf.mxu1 }
 0x920   : > { %v5535_v1 = vadd.f32 %v5534_v43, %v5436_v62 }
 0x922   : > { %v6348_v22 = vpop.f32.mrf.mxu2  ;;  %v5647_v36 = vmax.f32 %v5535_v1, 0.0  ;;  %6486 = vmatmul.bf16.gmra.mxu3 %v15116_v24 }
 0x923   : > { %v6349_v42 = vadd.f32 %v13617_v13, %v6348_v22 }
 0x924   : > { %v5438_v8 = vpop.f32.mrf.mxu0  ;;  %v13681_v47 = vpack.c.bf16 %v5647_v36, %v5641_v57  ;;  %v15118_v57 = vld [vmem:[#allocation120_spill] sm:$0xff]  ;;  %v9201_v36 = vld [vmem:[%s14241_s3 + $0x108] sm:$0xff] }
 0x925   : > { %v5439_v54 = vadd.f32 %v5438_v8, %v13310_v35  ;;  %v6447_v34 = vpop.f32.mrf.mxu3  ;;  %6726 = vmatpush.bf16.msra.mxu2 %v9201_v36 }
 0x926   : > { %v13683_v37 = vadd.f32 %v6447_v34, %v6349_v42  ;;  %v15119_v34 = vld [vmem:[#allocation137_spill] sm:$0xff] }
 0x927   : > { %5477 = vmatmul.bf16.gmra.mxu0 %v15117_v5  ;;  %v5537_v20 = vpop.f32.mrf.mxu1  ;;  %v9209_v5 = vld [vmem:[%s14241_s3 + $0x148] sm:$0xff] }
 0x928   : > { %v5538_v61 = vadd.f32 %v5537_v20, %v5439_v54  ;;  %v9193_v20 = vld [vmem:[%s14241_s3 + $0xc8] sm:$0xff]  ;;  %6825 = vmatpush.bf16.msra.mxu3 %v9209_v5 }
 0x929   : > { %6627 = vmatpush.bf16.msra.mxu1 %v9193_v20 }
 0x92a   : > { %v6350_v62 = vpop.f32.mrf.mxu2  ;;  %8734 = vmatmul.msk.bf16.gmra.mxu1 %vm1007_vm5, %v15040_v19  ;;  %v5653_v54 = vmax.f32 %v5538_v61, 0.0 }
 0x92b   : > { %v6351_v43 = vadd.f32 %v13617_v13, %v6350_v62 }
 0x92c   : > { %v5440_v48 = vpop.f32.mrf.mxu0 }
 0x92d   : > { %v5441_v1 = vadd.f32 %v5440_v48, %v13336_v59  ;;  %v6449_v22 = vpop.f32.mrf.mxu3  ;;  %v9185_v59 = vld [vmem:[%s14241_s3 + $0x88] sm:$0xff] }
 0x92e   : > { %v13690_v35 = vadd.f32 %v6449_v22, %v6351_v43  ;;  %6528 = vmatpush.bf16.msra.mxu0 %v9185_v59 }
 0x92f   : > { %6392 = vmatmul.bf16.gmra.mxu2 %v15118_v57  ;;  %v5539_v24 = vpop.f32.mrf.mxu1  ;;  %v15120_v57 = vld [vmem:[#allocation53_spill] sm:$0xff] }
 0x930   : > { %v5540_v8 = vadd.f32 %v5539_v24, %v5441_v1 }
 0x932   : > { %v6353_v42 = vpop.f32.mrf.mxu2  ;;  %v5659_v19 = vmax.f32 %v5540_v8, 0.0  ;;  %6491 = vmatmul.bf16.gmra.mxu3 %v15119_v34 }
 0x933   : > { %v6354_v48 = vadd.f32 %v13617_v13, %v6353_v42 }
 0x934   : > { %v5443_v62 = vpop.f32.mrf.mxu0  ;;  %v13708_v43 = vpack.c.bf16 %v5659_v19, %v5653_v54  ;;  %v15121_v19 = vld [vmem:[#allocation85_spill] sm:$0xff] }
 0x935   : > { %v5444_v61 = vadd.f32 %v5443_v62, %v13343_v11  ;;  %v6452_v1 = vpop.f32.mrf.mxu3 }
 0x936   : > { %v13710_v22 = vadd.f32 %v6452_v1, %v6354_v48 }
 0x937   : > { %5482 = vmatmul.bf16.gmra.mxu0 %v15120_v57  ;;  %v5542_v36 = vpop.f32.mrf.mxu1 }
 0x938   : > { %v5543_v24 = vadd.f32 %v5542_v36, %v5444_v61  ;;  %v15122_v61 = vld [vmem:[#allocation139_spill] sm:$0xff] }
 0x93a   : > { %v6355_v8 = vpop.f32.mrf.mxu2  ;;  %8735 = vmatmul.msk.bf16.gmra.mxu1 %vm1007_vm5, %v15044_v33  ;;  %v5665_v48 = vmax.f32 %v5543_v24, 0.0 }
 0x93b   : > { %v6356_v42 = vadd.f32 %v13617_v13, %v6355_v8 }
 0x93c   : > { %v5445_v34 = vpop.f32.mrf.mxu0 }
 0x93d   : > { %v5446_v11 = vadd.f32 %v5445_v34, %v13351_v56  ;;  %v6454_v59 = vpop.f32.mrf.mxu3 }
 0x93e   : > { %v13717_v54 = vadd.f32 %v6454_v59, %v6356_v42  ;;  %v15123_v42 = vld [vmem:[#allocation57_spill] sm:$0xff] }
 0x93f   : > { %6397 = vmatmul.bf16.gmra.mxu2 %v15121_v19  ;;  %v5544_v5 = vpop.f32.mrf.mxu1 }
 0x940   : > { %v5545_v20 = vadd.f32 %v5544_v5, %v5446_v11 }
 0x942   : > { %v6358_v62 = vpop.f32.mrf.mxu2  ;;  %v5671_v1 = vmax.f32 %v5545_v20, 0.0  ;;  %6496 = vmatmul.bf16.gmra.mxu3 %v15122_v61 }
 0x943   : > { %v6359_v33 = vadd.f32 %v13617_v13, %v6358_v62 }
 0x944   : > { %v5448_v57 = vpop.f32.mrf.mxu0  ;;  %v13723_v8 = vpack.c.bf16 %v5671_v1, %v5665_v48  ;;  %v15124_v48 = vld [vmem:[#allocation88_spill] sm:$0xff] }
 0x945   : > { %v5449_v36 = vadd.f32 %v5448_v57, %v13358_v27  ;;  %v6457_v56 = vpop.f32.mrf.mxu3 }
 0x946   : > { %v13725_v34 = vadd.f32 %v6457_v56, %v6359_v33 }
 0x947   : > { %5487 = vmatmul.bf16.gmra.mxu0 %v15123_v42  ;;  %v5547_v59 = vpop.f32.mrf.mxu1 }
 0x948   : > { %v5548_v19 = vadd.f32 %v5547_v59, %v5449_v36  ;;  %v15125_v36 = vld [vmem:[#allocation140_spill] sm:$0xff] }
 0x94a   : > { %v6360_v11 = vpop.f32.mrf.mxu2  ;;  %8736 = vmatmul.msk.bf16.gmra.mxu1 %vm1007_vm5, %v15046_v28  ;;  %v5677_v33 = vmax.f32 %v5548_v19, 0.0  ;;  %v9200_v28 = vld [vmem:[%s14241_s3 + $0x100] sm:$0xff] }
 0x94b   : > { %v6361_v5 = vadd.f32 %v13617_v13, %v6360_v11  ;;  %6727 = vmatpush.bf16.msra.mxu2 %v9200_v28  ;;  %v9184_v11 = vld [vmem:[%s14241_s3 + $0x80] sm:$0xff] }
 0x94c   : > { %v5450_v24 = vpop.f32.mrf.mxu0  ;;  %v9208_v19 = vld [vmem:[%s14241_s3 + $0x140] sm:$0xff]  ;;  %6529 = vmatpush.bf16.msra.mxu0 %v9184_v11 }
 0x94d   : > { %v5451_v20 = vadd.f32 %v5450_v24, %v13369_v30  ;;  %v6459_v62 = vpop.f32.mrf.mxu3  ;;  %6826 = vmatpush.bf16.msra.mxu3 %v9208_v19 }
 0x94e   : > { %v13732_v27 = vadd.f32 %v6459_v62, %v6361_v5  ;;  %v15126_v62 = vld [vmem:[#allocation61_spill] sm:$0xff] }
 0x94f   : > { %6402 = vmatmul.bf16.gmra.mxu2 %v15124_v48  ;;  %v5549_v1 = vpop.f32.mrf.mxu1 }
 0x950   : > { %v5550_v61 = vadd.f32 %v5549_v1, %v5451_v20 }
 0x952   : > { %v6363_v57 = vpop.f32.mrf.mxu2  ;;  %v5683_v56 = vmax.f32 %v5550_v61, 0.0  ;;  %6501 = vmatmul.bf16.gmra.mxu3 %v15125_v36 }
 0x953   : > { %v6364_v59 = vadd.f32 %v13617_v13, %v6363_v57 }
 0x954   : > { %v5453_v42 = vpop.f32.mrf.mxu0  ;;  %v13747_v24 = vpack.c.bf16 %v5683_v56, %v5677_v33 }
 0x955   : > { %v5454_v30 = vadd.f32 %v5453_v42, %v13385_v2  ;;  %v6462_v5 = vpop.f32.mrf.mxu3  ;;  %v9192_v2 = vld [vmem:[%s14241_s3 + $0xc0] sm:$0xff]  ;;  %v15127_v42 = vld [vmem:[#allocation91_spill] sm:$0xff] }
 0x956   : > { %v13749_v20 = vadd.f32 %v6462_v5, %v6364_v59  ;;  %6628 = vmatpush.bf16.msra.mxu1 %v9192_v2 }
 0x957   : > { %5492 = vmatmul.bf16.gmra.mxu0 %v15126_v62  ;;  %v5552_v48 = vpop.f32.mrf.mxu1  ;;  %v15128_v62 = vld [vmem:[#allocation142_spill] sm:$0xff] }
 0x958   : > { %v5553_v1 = vadd.f32 %v5552_v48, %v5454_v30 }
 0x95a   : > { %v6365_v61 = vpop.f32.mrf.mxu2  ;;  %8737 = vmatmul.msk.bf16.gmra.mxu1 %vm1007_vm5, %v15051_v41  ;;  %v5689_v11 = vmax.f32 %v5553_v1, 0.0 }
 0x95b   : > { %v6366_v33 = vadd.f32 %v13617_v13, %v6365_v61 }
 0x95c   : > { %v5455_v57 = vpop.f32.mrf.mxu0 }
 0x95d   : > { %v5456_v56 = vadd.f32 %v5455_v57, %v13393_v6  ;;  %v6464_v36 = vpop.f32.mrf.mxu3 }
 0x95e   : > { %v13759_v28 = vadd.f32 %v6464_v36, %v6366_v33  ;;  %v15129_v33 = vld [vmem:[#allocation66_spill] sm:$0xff] }
 0x95f   : > { %6407 = vmatmul.bf16.gmra.mxu2 %v15127_v42  ;;  %v5554_v59 = vpop.f32.mrf.mxu1 }
 0x960   : > { %v5555_v19 = vadd.f32 %v5554_v59, %v5456_v56 }
 0x962   : > { %v6368_v5 = vpop.f32.mrf.mxu2  ;;  %v5695_v30 = vmax.f32 %v5555_v19, 0.0  ;;  %6506 = vmatmul.bf16.gmra.mxu3 %v15128_v62 }
 0x963   : > { %v6369_v41 = vadd.f32 %v13617_v13, %v6368_v5 }
 0x964   : > { %v5458_v2 = vpop.f32.mrf.mxu0  ;;  %v13765_v61 = vpack.c.bf16 %v5695_v30, %v5689_v11  ;;  %v15130_v11 = vld [vmem:[#allocation94_spill] sm:$0xff] }
 0x965   : > { %v5459_v48 = vadd.f32 %v5458_v2, %v13400_v25  ;;  %v6467_v6 = vpop.f32.mrf.mxu3 }
 0x966   : > { %v13767_v57 = vadd.f32 %v6467_v6, %v6369_v41 }
 0x967   : > { %5497 = vmatmul.bf16.gmra.mxu0 %v15129_v33  ;;  %v5557_v36 = vpop.f32.mrf.mxu1 }
 0x968   : > { %v5558_v42 = vadd.f32 %v5557_v36, %v5459_v48  ;;  %v15131_v48 = vld [vmem:[#allocation96_spill] sm:$0xff] }
 0x96a   : > { %v6370_v56 = vpop.f32.mrf.mxu2  ;;  %8738 = vmatmul.msk.bf16.gmra.mxu1 %vm1007_vm5, %v15054_v60  ;;  %v5701_v41 = vmax.f32 %v5558_v42, 0.0 }
 0x96b   : > { %v6371_v59 = vadd.f32 %v13617_v13, %v6370_v56 }
 0x96c   : > { %v5460_v1 = vpop.f32.mrf.mxu0 }
 0x96d   : > { %v5461_v19 = vadd.f32 %v5460_v1, %v13408_v52  ;;  %v6469_v5 = vpop.f32.mrf.mxu3 }
 0x96e   : > { %v13774_v25 = vadd.f32 %v6469_v5, %v6371_v59  ;;  %v15132_v59 = vld [vmem:[#allocation71_spill] sm:$0xff] }
 0x96f   : > { %6412 = vmatmul.bf16.gmra.mxu2 %v15130_v11  ;;  %v5559_v30 = vpop.f32.mrf.mxu1 }
 0x970   : > { %v5560_v62 = vadd.f32 %v5559_v30, %v5461_v19 }
 0x972   : > { %v6373_v2 = vpop.f32.mrf.mxu2  ;;  %v5707_v6 = vmax.f32 %v5560_v62, 0.0  ;;  %6511 = vmatmul.bf16.gmra.mxu3 %v15131_v48 }
 0x973   : > { %v6374_v60 = vadd.f32 %v13617_v13, %v6373_v2 }
 0x974   : > { %v5463_v33 = vpop.f32.mrf.mxu0  ;;  %v13780_v56 = vpack.c.bf16 %v5707_v6, %v5701_v41  ;;  %v15133_v41 = vld [vmem:[#allocation121_spill] sm:$0xff] }
 0x975   : > { %v5464_v36 = vadd.f32 %v5463_v33, %v13427_v9  ;;  %v6472_v52 = vpop.f32.mrf.mxu3 }
 0x976   : > { %v13782_v1 = vadd.f32 %v6472_v52, %v6374_v60 }
 0x977   : > { %5502 = vmatmul.bf16.gmra.mxu0 %v15132_v59  ;;  %v5562_v5 = vpop.f32.mrf.mxu1 }
 0x978   : > { %v5563_v11 = vadd.f32 %v5562_v5, %v5464_v36  ;;  %v15134_v36 = vld [vmem:[#allocation144_spill] sm:$0xff] }
 0x97a   : > { %v6375_v19 = vpop.f32.mrf.mxu2  ;;  %8739 = vmatmul.msk.bf16.gmra.mxu1 %vm1007_vm5, %v15058_v7  ;;  %v5713_v60 = vmax.f32 %v5563_v11, 0.0 }
 0x97b   : > { %v6376_v30 = vadd.f32 %v13617_v13, %v6375_v19 }
 0x97c   : > { %v5465_v42 = vpop.f32.mrf.mxu0 }
 0x97d   : > { %v5466_v62 = vadd.f32 %v5465_v42, %v13435_v53  ;;  %v6474_v2 = vpop.f32.mrf.mxu3 }
 0x97e   : > { %v13789_v9 = vadd.f32 %v6474_v2, %v6376_v30  ;;  %v15136_v30 = vld [vmem:[#allocation75_spill] sm:$0xff] }
 0x97f   : > { %6417 = vmatmul.bf16.gmra.mxu2 %v15133_v41  ;;  %v5564_v6 = vpop.f32.mrf.mxu1 }
 0x980   : > { %v5565_v48 = vadd.f32 %v5564_v6, %v5466_v62 }
 0x982   : > { %v6378_v33 = vpop.f32.mrf.mxu2  ;;  %v5719_v52 = vmax.f32 %v5565_v48, 0.0  ;;  %6516 = vmatmul.bf16.gmra.mxu3 %v15134_v36 }
 0x983   : > { %v6379_v7 = vadd.f32 %v13617_v13, %v6378_v33 }
 0x984   : > { %v5468_v59 = vpop.f32.mrf.mxu0  ;;  %v13795_v19 = vpack.c.bf16 %v5719_v52, %v5713_v60  ;;  %v15138_v60 = vld [vmem:[#allocation20_spill] sm:$0xff] }
 0x985   : > { %v5469_v5 = vadd.f32 %v5468_v59, %v13442_v23  ;;  %v6477_v53 = vpop.f32.mrf.mxu3 }
 0x986   : > { %v13797_v42 = vadd.f32 %v6477_v53, %v6379_v7 }
 0x987   : > { %5507 = vmatmul.bf16.gmra.mxu0 %v15136_v30  ;;  %v5567_v2 = vpop.f32.mrf.mxu1  ;;  %v15139_v30 = vld [vmem:[#allocation143_spill] sm:$0xff] }
 0x988   : > { %15135 = vst [vmem:[#allocation5_spill] sm:$0xff] %v13797_v42  ;;  %v5568_v41 = vadd.f32 %v5567_v2, %v5469_v5 }
 0x98a   : > { %v6380_v62 = vpop.f32.mrf.mxu2  ;;  %8740 = vmatmul.msk.bf16.gmra.mxu1 %vm1007_vm5, %v15062_v18  ;;  %v5725_v7 = vmax.f32 %v5568_v41, 0.0 }
 0x98b   : > { %v6381_v6 = vadd.f32 %v13617_v13, %v6380_v62 }
 0x98c   : > { %v5470_v11 = vpop.f32.mrf.mxu0 }
 0x98d   : > { %v5471_v48 = vadd.f32 %v5470_v11, %v13450_v63  ;;  %v6479_v33 = vpop.f32.mrf.mxu3 }
 0x98e   : > { %v13804_v23 = vadd.f32 %v6479_v33, %v6381_v6  ;;  %v15140_v6 = vld [vmem:[#allocation37_spill] sm:$0xff] }
 0x98f   : > { %6728 = vmatmul.bf16.vlgmr.msra.gmra.mxu2 %v15138_v60  ;;  %v5569_v52 = vpop.f32.mrf.mxu1 }
 0x990   : > { %15137 = vst [vmem:[#allocation7_spill] sm:$0xff] %v13804_v23  ;;  %v5570_v36 = vadd.f32 %v5569_v52, %v5471_v48  ;;  %v15141_v52 = vld [vmem:[#allocation158_spill] sm:$0xff] }
 0x992   : > { %v6383_v59 = vpop.f32.mrf.mxu2  ;;  %v5731_v53 = vmax.f32 %v5570_v36, 0.0  ;;  %6827 = vmatmul.bf16.vlgmr.msra.gmra.mxu3 %v13637_v38  ;;  %v15142_v36 = vld [vmem:[#allocation36_spill] sm:$0xff] }
 0x993   : > { %v6384_v18 = vadd.f32 %v13617_v13, %v6383_v59 }
 0x994   : > { %v5473_v5 = vpop.f32.mrf.mxu0  ;;  %v13810_v62 = vpack.c.bf16 %v5731_v53, %v5725_v7  ;;  %v15143_v7 = vld [vmem:[#allocation153_spill] sm:$0xff] }
 0x995   : > { %v5474_v2 = vadd.f32 %v5473_v5, %v15139_v30  ;;  %v6482_v63 = vpop.f32.mrf.mxu3 }
 0x996   : > { %v13812_v11 = vadd.f32 %v6482_v63, %v6384_v18 }
 0x997   : > { %6530 = vmatmul.bf16.vlgmr.msra.gmra.mxu0 %v15140_v6  ;;  %v5572_v33 = vpop.f32.mrf.mxu1 }
 0x998   : > { %v5573_v60 = vadd.f32 %v5572_v33, %v5474_v2 }
 0x99a   : > { %v6385_v48 = vpop.f32.mrf.mxu2  ;;  %6629 = vmatmul.bf16.vlgmr.msra.gmra.mxu1 %v15141_v52  ;;  %v5737_v30 = vmax.f32 %v5573_v60, 0.0 }
 0x99b   : > { %v6386_v38 = vadd.f32 %v13617_v13, %v6385_v48 }
 0x99c   : > { %v5475_v41 = vpop.f32.mrf.mxu0 }
 0x99d   : > { %v5476_v23 = vadd.f32 %v5475_v41, %v15142_v36  ;;  %v6484_v59 = vpop.f32.mrf.mxu3 }
 0x99e   : > { %v13818_v42 = vadd.f32 %v6484_v59, %v6386_v38  ;;  %v15144_v38 = vld [vmem:[#allocation145_spill] sm:$0xff] }
 0x99f   : > { %6733 = vmatmul.bf16.gmra.mxu2 %v15143_v7  ;;  %v5574_v53 = vpop.f32.mrf.mxu1  ;;  %v15145_v7 = vld [vmem:[#allocation4_spill] sm:$0xff] }
 0x9a0   : > { %v5575_v5 = vadd.f32 %v5574_v53, %v5476_v23 }
 0x9a2   : > { %v6388_v18 = vpop.f32.mrf.mxu2  ;;  %v5743_v63 = vmax.f32 %v5575_v5, 0.0  ;;  %6832 = vmatmul.bf16.gmra.mxu3 %v13666_v51 }
 0x9a3   : > { %v6389_v6 = vadd.f32 %v13617_v13, %v6388_v18 }
 0x9a4   : > { %v5478_v2 = vpop.f32.mrf.mxu0  ;;  %v13824_v48 = vpack.c.bf16 %v5743_v63, %v5737_v30 }
 0x9a5   : > { %v5479_v33 = vadd.f32 %v5478_v2, %v13484_v17  ;;  %v6487_v52 = vpop.f32.mrf.mxu3  ;;  %v15146_v17 = vld [vmem:[#allocation90_spill] sm:$0xff] }
 0x9a6   : > { %v13826_v41 = vadd.f32 %v6487_v52, %v6389_v6 }
 0x9a7   : > { %6535 = vmatmul.bf16.gmra.mxu0 %v15144_v38  ;;  %v5577_v36 = vpop.f32.mrf.mxu1 }
 0x9a8   : > { %v5578_v59 = vadd.f32 %v5577_v36, %v5479_v33 }
 0x9aa   : > { %v6390_v23 = vpop.f32.mrf.mxu2  ;;  %6634 = vmatmul.bf16.gmra.mxu1 %v15145_v7  ;;  %v5749_v6 = vmax.f32 %v5578_v59, 0.0 }
 0x9ab   : > { %v6391_v51 = vadd.f32 %v13617_v13, %v6390_v23 }
 0x9ac   : > { %v5480_v60 = vpop.f32.mrf.mxu0 }
 0x9ad   : > { %v5481_v53 = vadd.f32 %v5480_v60, %v13492_v58  ;;  %v6489_v5 = vpop.f32.mrf.mxu3  ;;  %v15147_v60 = vld [vmem:[#allocation124_spill] sm:$0xff] }
 0x9ae   : > { %v13832_v18 = vadd.f32 %v6489_v5, %v6391_v51 }
 0x9af   : > { %6738 = vmatmul.bf16.gmra.mxu2 %v15146_v17  ;;  %v5579_v30 = vpop.f32.mrf.mxu1  ;;  %v15148_v17 = vld [vmem:[#allocation50_spill] sm:$0xff] }
 0x9b0   : > { %v5580_v63 = vadd.f32 %v5579_v30, %v5481_v53 }
 0x9b2   : > { %v6393_v2 = vpop.f32.mrf.mxu2  ;;  %v5755_v52 = vmax.f32 %v5580_v63, 0.0  ;;  %6837 = vmatmul.bf16.gmra.mxu3 %v13681_v47 }
 0x9b3   : > { %v6394_v38 = vadd.f32 %v13617_v13, %v6393_v2 }
 0x9b4   : > { %v5483_v33 = vpop.f32.mrf.mxu0  ;;  %v13838_v23 = vpack.c.bf16 %v5755_v52, %v5749_v6 }
 0x9b5   : > { %v5484_v36 = vadd.f32 %v5483_v33, %v13499_v39  ;;  %v6492_v58 = vpop.f32.mrf.mxu3  ;;  %v15149_v39 = vld [vmem:[#allocation23_spill] sm:$0xff] }
 0x9b6   : > { %v13840_v7 = vadd.f32 %v6492_v58, %v6394_v38 }
 0x9b7   : > { %6540 = vmatmul.bf16.gmra.mxu0 %v15147_v60  ;;  %v5582_v51 = vpop.f32.mrf.mxu1 }
 0x9b8   : > { %v5583_v5 = vadd.f32 %v5582_v51, %v5484_v36 }
 0x9ba   : > { %v6395_v53 = vpop.f32.mrf.mxu2  ;;  %6639 = vmatmul.bf16.gmra.mxu1 %v15148_v17  ;;  %v5761_v38 = vmax.f32 %v5583_v5, 0.0 }
 0x9bb   : > { %v6396_v47 = vadd.f32 %v13617_v13, %v6395_v53 }
 0x9bc   : > { %v5485_v59 = vpop.f32.mrf.mxu0 }
 0x9bd   : > { %v5486_v30 = vadd.f32 %v5485_v59, %v13519_v15  ;;  %v6494_v63 = vpop.f32.mrf.mxu3  ;;  %v15150_v59 = vld [vmem:[#allocation146_spill] sm:$0xff] }
 0x9be   : > { %v13846_v2 = vadd.f32 %v6494_v63, %v6396_v47 }
 0x9bf   : > { %6743 = vmatmul.bf16.gmra.mxu2 %v15149_v39  ;;  %v5584_v6 = vpop.f32.mrf.mxu1  ;;  %v15151_v39 = vld [vmem:[#allocation125_spill] sm:$0xff] }
 0x9c0   : > { %v5585_v52 = vadd.f32 %v5584_v6, %v5486_v30 }
 0x9c2   : > { %v6398_v33 = vpop.f32.mrf.mxu2  ;;  %v5767_v58 = vmax.f32 %v5585_v52, 0.0  ;;  %6842 = vmatmul.bf16.gmra.mxu3 %v13708_v43 }
 0x9c3   : > { %v6399_v60 = vadd.f32 %v13617_v13, %v6398_v33 }
 0x9c4   : > { %v5488_v36 = vpop.f32.mrf.mxu0  ;;  %v13852_v53 = vpack.c.bf16 %v5767_v58, %v5761_v38 }
 0x9c5   : > { %v5489_v51 = vadd.f32 %v5488_v36, %v13526_v45  ;;  %v6497_v15 = vpop.f32.mrf.mxu3  ;;  %v15152_v45 = vld [vmem:[#allocation141_spill] sm:$0xff] }
 0x9c6   : > { %v13854_v17 = vadd.f32 %v6497_v15, %v6399_v60 }
 0x9c7   : > { %6545 = vmatmul.bf16.gmra.mxu0 %v15150_v59  ;;  %v5587_v47 = vpop.f32.mrf.mxu1 }
 0x9c8   : > { %v5588_v63 = vadd.f32 %v5587_v47, %v5489_v51 }
 0x9ca   : > { %v6400_v30 = vpop.f32.mrf.mxu2  ;;  %6644 = vmatmul.bf16.gmra.mxu1 %v15151_v39  ;;  %v5773_v60 = vmax.f32 %v5588_v63, 0.0 }
 0x9cb   : > { %v6401_v43 = vadd.f32 %v13617_v13, %v6400_v30 }
 0x9cc   : > { %v5490_v5 = vpop.f32.mrf.mxu0 }
 0x9cd   : > { %v5491_v6 = vadd.f32 %v5490_v5, %v13534_v44  ;;  %v6499_v52 = vpop.f32.mrf.mxu3  ;;  %v15153_v5 = vld [vmem:[#allocation56_spill] sm:$0xff] }
 0x9ce   : > { %v13860_v33 = vadd.f32 %v6499_v52, %v6401_v43 }
 0x9cf   : > { %6748 = vmatmul.bf16.gmra.mxu2 %v15152_v45  ;;  %v5589_v38 = vpop.f32.mrf.mxu1  ;;  %v15154_v45 = vld [vmem:[#allocation55_spill] sm:$0xff] }
 0x9d0   : > { %v5590_v58 = vadd.f32 %v5589_v38, %v5491_v6 }
 0x9d2   : > { %v6403_v36 = vpop.f32.mrf.mxu2  ;;  %v5779_v15 = vmax.f32 %v5590_v58, 0.0  ;;  %6847 = vmatmul.bf16.gmra.mxu3 %v13723_v8 }
 0x9d3   : > { %v6404_v59 = vadd.f32 %v13617_v13, %v6403_v36 }
 0x9d4   : > { %v5493_v51 = vpop.f32.mrf.mxu0  ;;  %v13866_v30 = vpack.c.bf16 %v5779_v15, %v5773_v60 }
 0x9d5   : > { %v5494_v47 = vadd.f32 %v5493_v51, %v13541_v4  ;;  %v6502_v44 = vpop.f32.mrf.mxu3  ;;  %v15155_v4 = vld [vmem:[#allocation27_spill] sm:$0xff] }
 0x9d6   : > { %v13868_v39 = vadd.f32 %v6502_v44, %v6404_v59 }
 0x9d7   : > { %6550 = vmatmul.bf16.gmra.mxu0 %v15153_v5  ;;  %v5592_v43 = vpop.f32.mrf.mxu1 }
 0x9d8   : > { %v5593_v52 = vadd.f32 %v5592_v43, %v5494_v47 }
 0x9da   : > { %v6405_v6 = vpop.f32.mrf.mxu2  ;;  %6649 = vmatmul.bf16.gmra.mxu1 %v15154_v45  ;;  %v5785_v59 = vmax.f32 %v5593_v52, 0.0 }
 0x9db   : > { %v6406_v8 = vadd.f32 %v13617_v13, %v6405_v6 }
 0x9dc   : > { %v5495_v63 = vpop.f32.mrf.mxu0 }
 0x9dd   : > { %v5496_v38 = vadd.f32 %v5495_v63, %v13552_v16  ;;  %v6504_v58 = vpop.f32.mrf.mxu3  ;;  %v15156_v63 = vld [vmem:[#allocation147_spill] sm:$0xff] }
 0x9de   : > { %v13874_v36 = vadd.f32 %v6504_v58, %v6406_v8 }
 0x9df   : > { %6753 = vmatmul.bf16.gmra.mxu2 %v15155_v4  ;;  %v5594_v60 = vpop.f32.mrf.mxu1  ;;  %v15157_v4 = vld [vmem:[#allocation59_spill] sm:$0xff] }
 0x9e0   : > { %v5595_v15 = vadd.f32 %v5594_v60, %v5496_v38 }
 0x9e2   : > { %v6408_v51 = vpop.f32.mrf.mxu2  ;;  %v5791_v44 = vmax.f32 %v5595_v15, 0.0  ;;  %6852 = vmatmul.bf16.gmra.mxu3 %v13747_v24 }
 0x9e3   : > { %v6409_v5 = vadd.f32 %v13617_v13, %v6408_v51 }
 0x9e4   : > { %v5498_v47 = vpop.f32.mrf.mxu0  ;;  %v13880_v6 = vpack.c.bf16 %v5791_v44, %v5785_v59 }
 0x9e5   : > { %v5499_v43 = vadd.f32 %v5498_v47, %v13568_v29  ;;  %v6507_v16 = vpop.f32.mrf.mxu3  ;;  %v15158_v29 = vld [vmem:[#allocation30_spill] sm:$0xff] }
 0x9e6   : > { %v13882_v45 = vadd.f32 %v6507_v16, %v6409_v5 }
 0x9e7   : > { %6555 = vmatmul.bf16.gmra.mxu0 %v15156_v63  ;;  %v5597_v8 = vpop.f32.mrf.mxu1 }
 0x9e8   : > { %v5598_v58 = vadd.f32 %v5597_v8, %v5499_v43 }
 0x9ea   : > { %v6410_v38 = vpop.f32.mrf.mxu2  ;;  %6654 = vmatmul.bf16.gmra.mxu1 %v15157_v4  ;;  %v5797_v5 = vmax.f32 %v5598_v58, 0.0 }
 0x9eb   : > { %v6411_v24 = vadd.f32 %v13617_v13, %v6410_v38 }
 0x9ec   : > { %v5500_v52 = vpop.f32.mrf.mxu0 }
 0x9ed   : > { %v5501_v60 = vadd.f32 %v5500_v52, %v13576_v12  ;;  %v6509_v15 = vpop.f32.mrf.mxu3  ;;  %v15159_v52 = vld [vmem:[#allocation130_spill] sm:$0xff] }
 0x9ee   : > { %v13888_v51 = vadd.f32 %v6509_v15, %v6411_v24 }
 0x9ef   : > { %6758 = vmatmul.bf16.gmra.mxu2 %v15158_v29  ;;  %v5599_v59 = vpop.f32.mrf.mxu1  ;;  %v15160_v29 = vld [vmem:[#allocation64_spill] sm:$0xff] }
 0x9f0   : > { %v5600_v44 = vadd.f32 %v5599_v59, %v5501_v60 }
 0x9f2   : > { %v6413_v47 = vpop.f32.mrf.mxu2  ;;  %v5803_v16 = vmax.f32 %v5600_v44, 0.0  ;;  %6857 = vmatmul.bf16.gmra.mxu3 %v13765_v61 }
 0x9f3   : > { %v6414_v63 = vadd.f32 %v13617_v13, %v6413_v47 }
 0x9f4   : > { %v5503_v43 = vpop.f32.mrf.mxu0  ;;  %v13894_v38 = vpack.c.bf16 %v5803_v16, %v5797_v5 }
 0x9f5   : > { %v5504_v8 = vadd.f32 %v5503_v43, %v13583_v50  ;;  %v6512_v12 = vpop.f32.mrf.mxu3  ;;  %v15161_v50 = vld [vmem:[#allocation28_spill] sm:$0xff] }
 0x9f6   : > { %v13896_v4 = vadd.f32 %v6512_v12, %v6414_v63 }
 0x9f7   : > { %6560 = vmatmul.bf16.gmra.mxu0 %v15159_v52  ;;  %v5602_v24 = vpop.f32.mrf.mxu1 }
 0x9f8   : > { %v5603_v15 = vadd.f32 %v5602_v24, %v5504_v8 }
 0x9fa   : > { %v6415_v60 = vpop.f32.mrf.mxu2  ;;  %6659 = vmatmul.bf16.gmra.mxu1 %v15160_v29  ;;  %v5809_v63 = vmax.f32 %v5603_v15, 0.0 }
 0x9fb   : > { %v6416_v61 = vadd.f32 %v13617_v13, %v6415_v60 }
 0x9fc   : > { %v5505_v58 = vpop.f32.mrf.mxu0 }
 0x9fd   : > { %v5506_v59 = vadd.f32 %v5505_v58, %v13591_v46  ;;  %v6514_v44 = vpop.f32.mrf.mxu3  ;;  %v15162_v58 = vld [vmem:[#allocation148_spill] sm:$0xff] }
 0x9fe   : > { %v13902_v47 = vadd.f32 %v6514_v44, %v6416_v61 }
 0x9ff   : > { %6763 = vmatmul.bf16.gmra.mxu2 %v15161_v50  ;;  %v5604_v5 = vpop.f32.mrf.mxu1  ;;  %v15163_v50 = vld [vmem:[#allocation129_spill] sm:$0xff] }
 0xa00   : > { %v5605_v16 = vadd.f32 %v5604_v5, %v5506_v59 }
 0xa02   : > { %v6418_v43 = vpop.f32.mrf.mxu2  ;;  %v5815_v12 = vmax.f32 %v5605_v16, 0.0  ;;  %6862 = vmatmul.bf16.gmra.mxu3 %v13780_v56 }
 0xa03   : > { %v6419_v52 = vadd.f32 %v13617_v13, %v6418_v43 }
 0xa04   : > { %v5508_v8 = vpop.f32.mrf.mxu0  ;;  %v13908_v60 = vpack.c.bf16 %v5815_v12, %v5809_v63 }
 0xa05   : > { %v5509_v24 = vadd.f32 %v5508_v8, %v13610_v26  ;;  %v6517_v46 = vpop.f32.mrf.mxu3  ;;  %v15165_v26 = vld [vmem:[#allocation31_spill] sm:$0xff] }
 0xa06   : > { %v13910_v29 = vadd.f32 %v6517_v46, %v6419_v52 }
 0xa07   : > { %6565 = vmatmul.bf16.gmra.mxu0 %v15162_v58  ;;  %v5607_v61 = vpop.f32.mrf.mxu1 }
 0xa08   : > { %v5608_v44 = vadd.f32 %v5607_v61, %v5509_v24 }
 0xa0a   : > { %v6420_v59 = vpop.f32.mrf.mxu2  ;;  %6664 = vmatmul.bf16.gmra.mxu1 %v15163_v50  ;;  %v5821_v52 = vmax.f32 %v5608_v44, 0.0 }
 0xa0b   : > { %v6421_v56 = vadd.f32 %v13617_v13, %v6420_v59  ;;  %v15166_v59 = vld [vmem:[#allocation151_spill] sm:$0xff] }
 0xa0c   : > { %v5510_v15 = vpop.f32.mrf.mxu0 }
 0xa0d   : > { %v5511_v5 = vadd.f32 %v5510_v15, %v13624_v31  ;;  %v6519_v16 = vpop.f32.mrf.mxu3 }
 0xa0e   : > { %v13916_v43 = vadd.f32 %v6519_v16, %v6421_v56  ;;  %v15167_v16 = vld [vmem:[#allocation68_spill] sm:$0xff] }
 0xa0f   : > { %6768 = vmatmul.bf16.gmra.mxu2 %v15165_v26  ;;  %v5609_v63 = vpop.f32.mrf.mxu1 }
 0xa10   : > { %15164 = vst [vmem:[#allocation12_spill] sm:$0xff] %v13916_v43  ;;  %v5610_v12 = vadd.f32 %v5609_v63, %v5511_v5 }
 0xa12   : > { %v6729_v8 = vpop.f32.mrf.mxu2  ;;  %v5827_v46 = vmax.f32 %v5610_v12, 0.0  ;;  %6867 = vmatmul.bf16.gmra.mxu3 %v13795_v19  ;;  %v15168_v12 = vld [vmem:[#allocation32_spill] sm:$0xff] }
 0xa14   : > { %v6531_v24 = vpop.f32.mrf.mxu0  ;;  %v13920_v58 = vpack.c.bf16 %v5827_v46, %v5821_v52 }
 0xa15   : > { %v6828_v61 = vpop.f32.mrf.mxu3  ;;  %v6532_v13 = vadd.f32 %v6531_v24, %v13626_v21 }
 0xa17   : > { %6570 = vmatmul.bf16.gmra.mxu0 %v15166_v59  ;;  %v6630_v31 = vpop.f32.mrf.mxu1 }
 0xa18   : > { %v6631_v50 = vadd.f32 %v6630_v31, %v6532_v13 }
 0xa1a   : > { %v6731_v15 = vpop.f32.mrf.mxu2  ;;  %v6730_v56 = vadd.f32 %v6729_v8, %v6631_v50  ;;  %6669 = vmatmul.bf16.gmra.mxu1 %v15167_v16  ;;  %v15169_v50 = vld [vmem:[#allocation152_spill] sm:$0xff] }
 0xa1c   : > { %v6533_v5 = vpop.f32.mrf.mxu0  ;;  %v6829_v26 = vadd.f32 %v6828_v61, %v6730_v56 }
 0xa1d   : > { %v6830_v44 = vpop.f32.mrf.mxu3  ;;  %v6534_v19 = vadd.f32 %v6533_v5, %v13633_v0 }
 0xa1e   : > { %v6918_v63 = vsub.f32 0.0, %v6829_v26 }
 0xa1f   : > { %6773 = vmatmul.bf16.gmra.mxu2 %v15168_v12  ;;  %v6632_v52 = vpop.f32.mrf.mxu1  ;;  %v15170_v12 = vld [vmem:[#allocation65_spill] sm:$0xff] }
 0xa20   : > { %v6954_v46 = vmul.f32 1.442695, %v6918_v63  ;;  %v6633_v43 = vadd.f32 %v6632_v52, %v6534_v19 }
 0xa22   : > { %v6734_v21 = vpop.f32.mrf.mxu2  ;;  %9245 = vpow2.f32 %v6954_v46  ;;  %v6732_v24 = vadd.f32 %v6731_v15, %v6633_v43  ;;  %6872 = vmatmul.bf16.gmra.mxu3 %v13810_v62 }
 0xa24   : > { %v6536_v13 = vpop.f32.mrf.mxu0  ;;  %v6831_v8 = vadd.f32 %v6830_v44, %v6732_v24 }
 0xa25   : > { %v6833_v59 = vpop.f32.mrf.mxu3  ;;  %v6537_v61 = vadd.f32 %v6536_v13, %v13641_v55  ;;  %v15171_v55 = vld [vmem:[#allocation157_spill] sm:$0xff] }
 0xa26   : > { %v6919_v31 = vsub.f32 0.0, %v6831_v8 }
 0xa27   : > { %6575 = vmatmul.bf16.gmra.mxu0 %v15169_v50  ;;  %v6635_v56 = vpop.f32.mrf.mxu1 }
 0xa28   : > { %v9246_v0 = vpop.eup %9245  ;;  %v6956_v16 = vmul.f32 1.442695, %v6919_v31  ;;  %v6636_v5 = vadd.f32 %v6635_v56, %v6537_v61 }
 0xa29   : > { %v7026_v26 = vadd.f32 1.0, %v9246_v0 }
 0xa2a   : > { %v6736_v63 = vpop.f32.mrf.mxu2  ;;  %9247 = vpow2.f32 %v6956_v16  ;;  %v6735_v19 = vadd.f32 %v6734_v21, %v6636_v5  ;;  %6674 = vmatmul.bf16.gmra.mxu1 %v15170_v12 }
 0xa2b   : > { %9249 = vrcp.f32 %v7026_v26  ;;  %v7071_v16 = vand.u32 2147483647, %v7026_v26  ;;  %v7073_v5 = vand.u32 2147483648, %v7026_v26  ;;  %vm7067_vm8 = vweird.f32 %v7026_v26 }
 0xa2c   : > { %v6538_v62 = vpop.f32.mrf.mxu0  ;;  %v6834_v43 = vadd.f32 %v6833_v59, %v6735_v19 }
 0xa2d   : > { %v6835_v15 = vpop.f32.mrf.mxu3  ;;  %v6539_v52 = vadd.f32 %v6538_v62, %v13657_v3  ;;  %vm7072_vm11 = vcmp.eq.f32.partialorder %v7071_v16, 8.507059e+37 }
 0xa2e   : > { %v6920_v44 = vsub.f32 0.0, %v6834_v43 }
 0xa2f   : > { %6778 = vmatmul.bf16.gmra.mxu2 %v15171_v55  ;;  %v6637_v46 = vpop.f32.mrf.mxu1 }
 0xa30   : > { %v9248_v24 = vpop.eup %9247  ;;  %v6958_v13 = vmul.f32 1.442695, %v6920_v44  ;;  %v6638_v8 = vadd.f32 %v6637_v46, %v6539_v52  ;;  %v15172_v44 = vld [vmem:[#allocation135_spill] sm:$0xff] }
 0xa31   : > { %v9250_v31 = vpop.eup %9249  ;;  %v13933_v61 = vadd.f32 1.0, %v9248_v24 }
 0xa32   : > { %v6739_v21 = vpop.f32.mrf.mxu2  ;;  %v7063_v50 = vmul.f32 %v9250_v31, %v7026_v26  ;;  %9251 = vpow2.f32 %v6958_v13  ;;  %v6737_v56 = vadd.f32 %v6736_v63, %v6638_v8  ;;  %6877 = vmatmul.bf16.gmra.mxu3 %v13824_v48  ;;  %vm7068_vm7 = vweird.f32 %v9250_v31  ;;  %v15173_v26 = vld [vmem:[#allocation131_spill] sm:$0xff] }
 0xa33   : > { %9253 = vrcp.f32 %v13933_v61  ;;  %vm7069_vm9 = vmor %vm7067_vm8, %vm7068_vm7  ;;  %vm7082_vm13 = vweird.f32 %v13933_v61 }
 0xa34   : > { %v6541_v59 = vpop.f32.mrf.mxu0  ;;  %v7064_v3 = vsub.f32 1.0, %v7063_v50  ;;  %v6836_v0 = vadd.f32 %v6835_v15, %v6737_v56  ;;  %v7074_v15 = vor.u32 1.1754944e-38, %v7073_v5  ;;  %v7086_v5 = vand.u32 2147483647, %v13933_v61 }
 0xa35   : > { %v6838_v19 = vpop.f32.mrf.mxu3  ;;  %v6542_v43 = vadd.f32 %v6541_v59, %v13668_v32 }
 0xa36   : > { %v7065_v12 = vmul.f32 %v9250_v31, %v7064_v3  ;;  %v6921_v62 = vsub.f32 0.0, %v6836_v0  ;;  %vm7087_vm15 = vcmp.eq.f32.partialorder %v7086_v5, 8.507059e+37 }
 0xa37   : > { %6580 = vmatmul.bf16.gmra.mxu0 %v15172_v44  ;;  %v6640_v52 = vpop.f32.mrf.mxu1  ;;  %v15174_v44 = vld [vmem:[#allocation39_spill] sm:$0xff] }
 0xa38   : > { %v9252_v63 = vpop.eup %9251  ;;  %v7066_v55 = vadd.f32 %v9250_v31, %v7065_v12  ;;  %v6960_v48 = vmul.f32 1.442695, %v6921_v62  ;;  %v6641_v46 = vadd.f32 %v6640_v52, %v6542_v43  ;;  %v7088_v12 = vand.u32 2147483648, %v13933_v61 }
 0xa39   : > { %v9254_v24 = vpop.eup %9253  ;;  %v13945_v13 = vadd.f32 1.0, %v9252_v63 }
 0xa3a   : > { %v6741_v32 = vpop.f32.mrf.mxu2  ;;  %v7070_v8 = vsel %vm7069_vm9, %v9250_v31, %v7066_v55  ;;  %v7078_v50 = vmul.f32 %v9254_v24, %v13933_v61  ;;  %9255 = vpow2.f32 %v6960_v48  ;;  %6679 = vmatmul.bf16.gmra.mxu1 %v15173_v26  ;;  %v6740_v0 = vadd.f32 %v6739_v21, %v6641_v46 }
 0xa3b   : > { %v7075_v56 = vsel %vm7072_vm11, %v7074_v15, %v7070_v8  ;;  %9257 = vrcp.f32 %v13945_v13  ;;  %vm7083_vm12 = vweird.f32 %v9254_v24  ;;  %v7089_v15 = vor.u32 1.1754944e-38, %v7088_v12 }
 0xa3c   : > { %v6543_v59 = vpop.f32.mrf.mxu0  ;;  %7603 = vst.msk [vmem:[%s13943_s19] sm:$0xff] %vm7602_vm10, %v7075_v56  ;;  %v7079_v3 = vsub.f32 1.0, %v7078_v50  ;;  %v6839_v16 = vadd.f32 %v6838_v19, %v6740_v0  ;;  %vm7084_vm14 = vmor %vm7082_vm13, %vm7083_vm12  ;;  %v7101_v0 = vand.u32 2147483647, %v13945_v13  ;;  %v7103_v12 = vand.u32 2147483648, %v13945_v13 }
 0xa3d   : > { %v6840_v62 = vpop.f32.mrf.mxu3  ;;  %v6544_v43 = vadd.f32 %v6543_v59, %v13675_v40  ;;  %vm7097_vm1 = vweird.f32 %v13945_v13 }
 0xa3e   : > { %v7080_v31 = vmul.f32 %v9254_v24, %v7079_v3  ;;  %v6922_v48 = vsub.f32 0.0, %v6839_v16  ;;  %vm7102_vm3 = vcmp.eq.f32.partialorder %v7101_v0, 8.507059e+37 }
 0xa3f   : > { %6783 = vmatmul.bf16.gmra.mxu2 %v15174_v44  ;;  %v6642_v52 = vpop.f32.mrf.mxu1 }
 0xa40   : > { %v9256_v63 = vpop.eup %9255  ;;  %v7081_v55 = vadd.f32 %v9254_v24, %v7080_v31  ;;  %v6643_v21 = vadd.f32 %v6642_v52, %v6544_v43  ;;  %v6962_v19 = vmul.f32 1.442695, %v6922_v48 }
 0xa41   : > { %v9258_v46 = vpop.eup %9257  ;;  %v13957_v8 = vadd.f32 1.0, %v9256_v63 }
 0xa42   : > { %v6744_v50 = vpop.f32.mrf.mxu2  ;;  %v7085_v26 = vsel %vm7084_vm14, %v9254_v24, %v7081_v55  ;;  %v7093_v40 = vmul.f32 %v9258_v46, %v13945_v13  ;;  %6882 = vmatmul.bf16.gmra.mxu3 %v13838_v23  ;;  %v6742_v3 = vadd.f32 %v6741_v32, %v6643_v21  ;;  %vm7098_vm0 = vweird.f32 %v9258_v46  ;;  %v15175_v23 = vld [vmem:[#allocation11_spill] sm:$0xff] }
 0xa43   : > { %v7090_v56 = vsel %vm7087_vm15, %v7089_v15, %v7085_v26  ;;  %9259 = vrcp.f32 %v13957_v8  ;;  %vm7099_vm2 = vmor %vm7097_vm1, %vm7098_vm0  ;;  %v7104_v55 = vor.u32 1.1754944e-38, %v7103_v12  ;;  %vm7112_vm5 = vweird.f32 %v13957_v8 }
 0xa44   : > { %v6546_v61 = vpop.f32.mrf.mxu0  ;;  %7604 = vst.msk [vmem:[%s13943_s19 + $0x8] sm:$0xff] %vm7602_vm10, %v7090_v56  ;;  %v7094_v59 = vsub.f32 1.0, %v7093_v40  ;;  %9261 = vpow2.f32 %v6962_v19  ;;  %v6841_v31 = vadd.f32 %v6840_v62, %v6742_v3  ;;  %v7118_v3 = vand.u32 2147483648, %v13957_v8 }
 0xa45   : > { %v6843_v24 = vpop.f32.mrf.mxu3  ;;  %v6547_v16 = vadd.f32 %v6546_v61, %v13683_v37  ;;  %v15176_v37 = vld [vmem:[#allocation149_spill] sm:$0xff] }
 0xa46   : > { %v7095_v5 = vmul.f32 %v9258_v46, %v7094_v59  ;;  %v6923_v52 = vsub.f32 0.0, %v6841_v31  ;;  %v7116_v59 = vand.u32 2147483647, %v13957_v8  ;;  %v15177_v31 = vld [vmem:[#allocation46_spill] sm:$0xff] }
 0xa47   : > { %6585 = vmatmul.bf16.gmra.mxu0 %v15175_v23  ;;  %v6645_v43 = vpop.f32.mrf.mxu1 }
 0xa48   : > { %v7096_v44 = vadd.f32 %v9258_v46, %v7095_v5  ;;  %v6646_v63 = vadd.f32 %v6645_v43, %v6547_v16  ;;  %v6964_v26 = vmul.f32 1.442695, %v6923_v52  ;;  %vm7117_vm7 = vcmp.eq.f32.partialorder %v7116_v59, 8.507059e+37 }
 0xa49   : > { %v9260_v32 = vpop.eup %9259 }
 0xa4a   : > { %v6746_v48 = vpop.f32.mrf.mxu2  ;;  %v9262_v21 = vpop.eup %9261  ;;  %v7100_v15 = vsel %vm7099_vm2, %v9258_v46, %v7096_v44  ;;  %v7108_v62 = vmul.f32 %v9260_v32, %v13957_v8  ;;  %6684 = vmatmul.bf16.gmra.mxu1 %v15176_v37  ;;  %v6745_v56 = vadd.f32 %v6744_v50, %v6646_v63  ;;  %9263 = vpow2.f32 %v6964_v26 }
 0xa4b   : > { %v7105_v40 = vsel %vm7102_vm3, %v7104_v55, %v7100_v15  ;;  %v13971_v19 = vadd.f32 1.0, %v9262_v21  ;;  %vm7113_vm4 = vweird.f32 %v9260_v32  ;;  %v7119_v44 = vor.u32 1.1754944e-38, %v7118_v3 }
 0xa4c   : > { %v6548_v13 = vpop.f32.mrf.mxu0  ;;  %7605 = vst.msk [vmem:[%s13943_s19 + $0x10] sm:$0xff] %vm7602_vm10, %v7105_v40  ;;  %v7109_v61 = vsub.f32 1.0, %v7108_v62  ;;  %v6844_v12 = vadd.f32 %v6843_v24, %v6745_v56  ;;  %vm7114_vm6 = vmor %vm7112_vm5, %vm7113_vm4 }
 0xa4d   : > { %9265 = vrcp.f32 %v13971_v19  ;;  %v6845_v46 = vpop.f32.mrf.mxu3  ;;  %v6549_v5 = vadd.f32 %v6548_v13, %v13690_v35  ;;  %v15178_v13 = vld [vmem:[#allocation138_spill] sm:$0xff]  ;;  %vm7127_vm9 = vweird.f32 %v13971_v19 }
 0xa4e   : > { %v7110_v0 = vmul.f32 %v9260_v32, %v7109_v61  ;;  %v6924_v23 = vsub.f32 0.0, %v6844_v12  ;;  %v7133_v61 = vand.u32 2147483648, %v13971_v19 }
 0xa4f   : > { %6788 = vmatmul.bf16.gmra.mxu2 %v15177_v31  ;;  %v6647_v50 = vpop.f32.mrf.mxu1 }
 0xa50   : > { %v7111_v16 = vadd.f32 %v9260_v32, %v7110_v0  ;;  %v6648_v43 = vadd.f32 %v6647_v50, %v6549_v5  ;;  %v9264_v63 = vpop.eup %9263  ;;  %v6966_v21 = vmul.f32 1.442695, %v6924_v23  ;;  %v7134_v23 = vor.u32 1.1754944e-38, %v7133_v61 }
 0xa51   : > { %v13982_v62 = vadd.f32 1.0, %v9264_v63 }
 0xa52   : > { %v6749_v52 = vpop.f32.mrf.mxu2  ;;  %v7115_v55 = vsel %vm7114_vm6, %v9260_v32, %v7111_v16  ;;  %v6747_v15 = vadd.f32 %v6746_v48, %v6648_v43  ;;  %6887 = vmatmul.bf16.gmra.mxu3 %v13852_v53  ;;  %9267 = vpow2.f32 %v6966_v21  ;;  %v7131_v53 = vand.u32 2147483647, %v13971_v19 }
 0xa53   : > { %v9266_v35 = vpop.eup %9265  ;;  %v7120_v24 = vsel %vm7117_vm7, %v7119_v44, %v7115_v55  ;;  %9269 = vrcp.f32 %v13982_v62  ;;  %vm7142_vm14 = vweird.f32 %v13982_v62 }
 0xa54   : > { %v6551_v26 = vpop.f32.mrf.mxu0  ;;  %7606 = vst.msk [vmem:[%s13943_s19 + $0x18] sm:$0xff] %vm7602_vm10, %v7120_v24  ;;  %v7123_v8 = vmul.f32 %v9266_v35, %v13971_v19  ;;  %v6846_v37 = vadd.f32 %v6845_v46, %v6747_v15  ;;  %vm7128_vm8 = vweird.f32 %v9266_v35  ;;  %vm7132_vm12 = vcmp.eq.f32.partialorder %v7131_v53, 8.507059e+37 }
 0xa55   : > { %v6848_v40 = vpop.f32.mrf.mxu3  ;;  %v6552_v48 = vadd.f32 %v6551_v26, %v13710_v22  ;;  %v15179_v22 = vld [vmem:[#allocation150_spill] sm:$0xff]  ;;  %vm7129_vm11 = vmor %vm7127_vm9, %vm7128_vm8 }
 0xa56   : > { %v7124_v32 = vsub.f32 1.0, %v7123_v8  ;;  %v6925_v56 = vsub.f32 0.0, %v6846_v37  ;;  %v15180_v8 = vld [vmem:[#allocation54_spill] sm:$0xff]  ;;  %v7146_v37 = vand.u32 2147483647, %v13982_v62 }
 0xa57   : > { %6590 = vmatmul.bf16.gmra.mxu0 %v15178_v13  ;;  %v6650_v59 = vpop.f32.mrf.mxu1 }
 0xa58   : > { %v7125_v3 = vmul.f32 %v9266_v35, %v7124_v32  ;;  %v6968_v0 = vmul.f32 1.442695, %v6925_v56  ;;  %v6651_v12 = vadd.f32 %v6650_v59, %v6552_v48  ;;  %v9268_v46 = vpop.eup %9267  ;;  %vm7147_vm0 = vcmp.eq.f32.partialorder %v7146_v37, 8.507059e+37 }
 0xa59   : > { %v9270_v16 = vpop.eup %9269  ;;  %v13994_v43 = vadd.f32 1.0, %v9268_v46 }
 0xa5a   : > { %v6751_v5 = vpop.f32.mrf.mxu2  ;;  %v7126_v31 = vadd.f32 %v9266_v35, %v7125_v3  ;;  %9271 = vpow2.f32 %v6968_v0  ;;  %v6750_v50 = vadd.f32 %v6749_v52, %v6651_v12  ;;  %6689 = vmatmul.bf16.gmra.mxu1 %v15179_v22  ;;  %v7138_v55 = vmul.f32 %v9270_v16, %v13982_v62 }
 0xa5b   : > { %9273 = vrcp.f32 %v13994_v43  ;;  %vm7143_vm13 = vweird.f32 %v9270_v16  ;;  %vm7157_vm2 = vweird.f32 %v13994_v43 }
 0xa5c   : > { %v6553_v44 = vpop.f32.mrf.mxu0  ;;  %v7130_v63 = vsel %vm7129_vm11, %v9266_v35, %v7126_v31  ;;  %v6849_v21 = vadd.f32 %v6848_v40, %v6750_v50  ;;  %v7139_v52 = vsub.f32 1.0, %v7138_v55  ;;  %v7148_v35 = vand.u32 2147483648, %v13982_v62  ;;  %vm7144_vm15 = vmor %vm7142_vm14, %vm7143_vm13 }
 0xa5d   : > { %v7135_v15 = vsel %vm7132_vm12, %v7134_v23, %v7130_v63  ;;  %v6850_v19 = vpop.f32.mrf.mxu3  ;;  %v6554_v26 = vadd.f32 %v6553_v44, %v13717_v54  ;;  %v7161_v63 = vand.u32 2147483647, %v13994_v43  ;;  %v7163_v55 = vand.u32 2147483648, %v13994_v43 }
 0xa5e   : > { %7607 = vst.msk [vmem:[%s13943_s19 + $0x20] sm:$0xff] %vm7602_vm10, %v7135_v15  ;;  %v6926_v24 = vsub.f32 0.0, %v6849_v21  ;;  %v7140_v48 = vmul.f32 %v9270_v16, %v7139_v52  ;;  %v7149_v0 = vor.u32 1.1754944e-38, %v7148_v35  ;;  %v15182_v35 = vld [vmem:[#allocation77_spill] sm:$0xff] }
 0xa5f   : > { %6793 = vmatmul.bf16.gmra.mxu2 %v15180_v8  ;;  %v6652_v32 = vpop.f32.mrf.mxu1  ;;  %vm7162_vm4 = vcmp.eq.f32.partialorder %v7161_v63, 8.507059e+37 }
 0xa60   : > { %v9272_v56 = vpop.eup %9271  ;;  %v6970_v40 = vmul.f32 1.442695, %v6926_v24  ;;  %v6653_v13 = vadd.f32 %v6652_v32, %v6554_v26  ;;  %v7141_v59 = vadd.f32 %v9270_v16, %v7140_v48  ;;  %v7164_v32 = vor.u32 1.1754944e-38, %v7163_v55 }
 0xa61   : > { %v14004_v53 = vadd.f32 1.0, %v9272_v56  ;;  %v9274_v3 = vpop.eup %9273 }
 0xa62   : > { %v6754_v61 = vpop.f32.mrf.mxu2  ;;  %9275 = vpow2.f32 %v6970_v40  ;;  %v6752_v54 = vadd.f32 %v6751_v5, %v6653_v13  ;;  %6892 = vmatmul.bf16.gmra.mxu3 %v13866_v30  ;;  %v7145_v46 = vsel %vm7144_vm15, %v9270_v16, %v7141_v59  ;;  %v7153_v31 = vmul.f32 %v9274_v3, %v13994_v43  ;;  %v15181_v30 = vld [vmem:[#allocation154_spill] sm:$0xff] }
 0xa63   : > { %9277 = vrcp.f32 %v14004_v53  ;;  %v7150_v22 = vsel %vm7147_vm0, %v7149_v0, %v7145_v46  ;;  %vm7158_vm1 = vweird.f32 %v9274_v3  ;;  %v7178_v43 = vand.u32 2147483648, %v14004_v53 }
 0xa64   : > { %v6556_v12 = vpop.f32.mrf.mxu0  ;;  %v6851_v50 = vadd.f32 %v6850_v19, %v6752_v54  ;;  %7608 = vst.msk [vmem:[%s13943_s19 + $0x28] sm:$0xff] %vm7602_vm10, %v7150_v22  ;;  %v7154_v62 = vsub.f32 1.0, %v7153_v31  ;;  %vm7159_vm3 = vmor %vm7157_vm2, %vm7158_vm1  ;;  %v7176_v54 = vand.u32 2147483647, %v14004_v53  ;;  %vm7172_vm6 = vweird.f32 %v14004_v53 }
 0xa65   : > { %v6853_v23 = vpop.f32.mrf.mxu3  ;;  %v6557_v5 = vadd.f32 %v6556_v12, %v13725_v34 }
 0xa66   : > { %v6927_v44 = vsub.f32 0.0, %v6851_v50  ;;  %v7155_v15 = vmul.f32 %v9274_v3, %v7154_v62  ;;  %v15183_v50 = vld [vmem:[#allocation67_spill] sm:$0xff]  ;;  %vm7177_vm8 = vcmp.eq.f32.partialorder %v7176_v54, 8.507059e+37 }
 0xa67   : > { %6595 = vmatmul.bf16.gmra.mxu0 %v15181_v30  ;;  %v6655_v21 = vpop.f32.mrf.mxu1  ;;  %v7179_v30 = vor.u32 1.1754944e-38, %v7178_v43 }
 0xa68   : > { %v9276_v16 = vpop.eup %9275  ;;  %v6972_v52 = vmul.f32 1.442695, %v6927_v44  ;;  %v6656_v19 = vadd.f32 %v6655_v21, %v6557_v5  ;;  %v7156_v37 = vadd.f32 %v9274_v3, %v7155_v15 }
 0xa69   : > { %v9278_v24 = vpop.eup %9277  ;;  %v14016_v26 = vadd.f32 1.0, %v9276_v16 }
 0xa6a   : > { %v6756_v8 = vpop.f32.mrf.mxu2  ;;  %v7168_v34 = vmul.f32 %v9278_v24, %v14004_v53  ;;  %9279 = vpow2.f32 %v6972_v52  ;;  %6694 = vmatmul.bf16.gmra.mxu1 %v15182_v35  ;;  %v7160_v48 = vsel %vm7159_vm3, %v9274_v3, %v7156_v37  ;;  %v6755_v13 = vadd.f32 %v6754_v61, %v6656_v19 }
 0xa6b   : > { %9281 = vrcp.f32 %v14016_v26  ;;  %v7165_v59 = vsel %vm7162_vm4, %v7164_v32, %v7160_v48  ;;  %vm7173_vm5 = vweird.f32 %v9278_v24  ;;  %v7191_v19 = vand.u32 2147483647, %v14016_v26 }
 0xa6c   : > { %v6558_v56 = vpop.f32.mrf.mxu0  ;;  %v7169_v40 = vsub.f32 1.0, %v7168_v34  ;;  %7609 = vst.msk [vmem:[%s13943_s19 + $0x30] sm:$0xff] %vm7602_vm10, %v7165_v59  ;;  %v6854_v46 = vadd.f32 %v6853_v23, %v6755_v13  ;;  %vm7174_vm7 = vmor %vm7172_vm6, %vm7173_vm5  ;;  %v7193_v37 = vand.u32 2147483648, %v14016_v26  ;;  %vm7187_vm11 = vweird.f32 %v14016_v26 }
 0xa6d   : > { %v6855_v0 = vpop.f32.mrf.mxu3  ;;  %v6559_v31 = vadd.f32 %v6558_v56, %v13732_v27  ;;  %vm7192_vm13 = vcmp.eq.f32.partialorder %v7191_v19, 8.507059e+37 }
 0xa6e   : > { %v7170_v12 = vmul.f32 %v9278_v24, %v7169_v40  ;;  %v6928_v61 = vsub.f32 0.0, %v6854_v46  ;;  %v7194_v59 = vor.u32 1.1754944e-38, %v7193_v37 }
 0xa6f   : > { %6798 = vmatmul.bf16.gmra.mxu2 %v15183_v50  ;;  %v6657_v22 = vpop.f32.mrf.mxu1 }
 0xa70   : > { %v9280_v3 = vpop.eup %9279  ;;  %v7171_v62 = vadd.f32 %v9278_v24, %v7170_v12  ;;  %v6658_v44 = vadd.f32 %v6657_v22, %v6559_v31  ;;  %v6974_v23 = vmul.f32 1.442695, %v6928_v61 }
 0xa71   : > { %v9282_v5 = vpop.eup %9281  ;;  %v14029_v63 = vadd.f32 1.0, %v9280_v3 }
 0xa72   : > { %v6759_v55 = vpop.f32.mrf.mxu2  ;;  %v7175_v21 = vsel %vm7174_vm7, %v9278_v24, %v7171_v62  ;;  %v7183_v27 = vmul.f32 %v9282_v5, %v14016_v26  ;;  %6897 = vmatmul.bf16.gmra.mxu3 %v13880_v6  ;;  %v6757_v52 = vadd.f32 %v6756_v8, %v6658_v44  ;;  %vm7188_vm9 = vweird.f32 %v9282_v5  ;;  %v15184_v6 = vld [vmem:[#allocation155_spill] sm:$0xff] }
 0xa73   : > { %v7180_v16 = vsel %vm7177_vm8, %v7179_v30, %v7175_v21  ;;  %9283 = vrcp.f32 %v14029_v63  ;;  %vm7189_vm12 = vmor %vm7187_vm11, %vm7188_vm9  ;;  %v7206_v62 = vand.u32 2147483647, %v14029_v63  ;;  %v7208_v61 = vand.u32 2147483648, %v14029_v63 }
 0xa74   : > { %v6561_v53 = vpop.f32.mrf.mxu0  ;;  %7610 = vst.msk [vmem:[%s13943_s19 + $0x38] sm:$0xff] %vm7602_vm10, %v7180_v16  ;;  %v7184_v15 = vsub.f32 1.0, %v7183_v27  ;;  %9285 = vpow2.f32 %v6974_v23  ;;  %v6856_v35 = vadd.f32 %v6855_v0, %v6757_v52  ;;  %vm7202_vm15 = vweird.f32 %v14029_v63 }
 0xa75   : > { %v6858_v24 = vpop.f32.mrf.mxu3  ;;  %v6562_v32 = vadd.f32 %v6561_v53, %v13749_v20  ;;  %v15185_v20 = vld [vmem:[#allocation133_spill] sm:$0xff]  ;;  %v7209_v53 = vor.u32 1.1754944e-38, %v7208_v61  ;;  %vm7207_vm1 = vcmp.eq.f32.partialorder %v7206_v62, 8.507059e+37 }
 0xa76   : > { %v7185_v34 = vmul.f32 %v9282_v5, %v7184_v15  ;;  %v6929_v40 = vsub.f32 0.0, %v6856_v35 }
 0xa77   : > { %6600 = vmatmul.bf16.gmra.mxu0 %v15184_v6  ;;  %v6660_v56 = vpop.f32.mrf.mxu1 }
 0xa78   : > { %v7186_v48 = vadd.f32 %v9282_v5, %v7185_v34  ;;  %v6661_v13 = vadd.f32 %v6660_v56, %v6562_v32  ;;  %v6976_v46 = vmul.f32 1.442695, %v6929_v40 }
 0xa79   : > { %v9284_v8 = vpop.eup %9283 }
 0xa7a   : > { %v6761_v54 = vpop.f32.mrf.mxu2  ;;  %v9286_v43 = vpop.eup %9285  ;;  %v7190_v12 = vsel %vm7189_vm12, %v9282_v5, %v7186_v48  ;;  %v7198_v0 = vmul.f32 %v9284_v8, %v14029_v63  ;;  %6699 = vmatmul.bf16.gmra.mxu1 %v15185_v20  ;;  %v6760_v22 = vadd.f32 %v6759_v55, %v6661_v13  ;;  %9287 = vpow2.f32 %v6976_v46  ;;  %v15186_v13 = vld [vmem:[#allocation93_spill] sm:$0xff] }
 0xa7b   : > { %v7195_v31 = vsel %vm7192_vm13, %v7194_v59, %v7190_v12  ;;  %v14043_v50 = vadd.f32 1.0, %v9286_v43  ;;  %vm7203_vm14 = vweird.f32 %v9284_v8 }
 0xa7c   : > { %v6563_v26 = vpop.f32.mrf.mxu0  ;;  %7611 = vst.msk [vmem:[%s13943_s19 + $0x40] sm:$0xff] %vm7602_vm10, %v7195_v31  ;;  %v7199_v3 = vsub.f32 1.0, %v7198_v0  ;;  %v6859_v30 = vadd.f32 %v6858_v24, %v6760_v22  ;;  %vm7204_vm0 = vmor %vm7202_vm15, %vm7203_vm14 }
 0xa7d   : > { %9289 = vrcp.f32 %v14043_v50  ;;  %v6860_v44 = vpop.f32.mrf.mxu3  ;;  %v6564_v21 = vadd.f32 %v6563_v26, %v13759_v28  ;;  %vm7217_vm3 = vweird.f32 %v14043_v50 }
 0xa7e   : > { %v7200_v5 = vmul.f32 %v9284_v8, %v7199_v3  ;;  %v6930_v23 = vsub.f32 0.0, %v6859_v30 }
 0xa7f   : > { %6803 = vmatmul.bf16.gmra.mxu2 %v13572_v10  ;;  %v6662_v55 = vpop.f32.mrf.mxu1 }
 0xa80   : > { %v7201_v27 = vadd.f32 %v9284_v8, %v7200_v5  ;;  %v6663_v16 = vadd.f32 %v6662_v55, %v6564_v21  ;;  %v9288_v52 = vpop.eup %9287  ;;  %v6978_v37 = vmul.f32 1.442695, %v6930_v23 }
 0xa81   : > { %v14054_v10 = vadd.f32 1.0, %v9288_v52 }
 0xa82   : > { %v6764_v15 = vpop.f32.mrf.mxu2  ;;  %v7205_v19 = vsel %vm7204_vm0, %v9284_v8, %v7201_v27  ;;  %v6762_v34 = vadd.f32 %v6761_v54, %v6663_v16  ;;  %6902 = vmatmul.bf16.gmra.mxu3 %v13894_v38  ;;  %9291 = vpow2.f32 %v6978_v37  ;;  %v7221_v38 = vand.u32 2147483647, %v14043_v50 }
 0xa83   : > { %v9290_v28 = vpop.eup %9289  ;;  %v7210_v24 = vsel %vm7207_vm1, %v7209_v53, %v7205_v19  ;;  %9293 = vrcp.f32 %v14054_v10  ;;  %v7223_v8 = vand.u32 2147483648, %v14043_v50  ;;  %v7236_v23 = vand.u32 2147483647, %v14054_v10 }
 0xa84   : > { %v6566_v35 = vpop.f32.mrf.mxu0  ;;  %7612 = vst.msk [vmem:[%s13943_s19 + $0x48] sm:$0xff] %vm7602_vm10, %v7210_v24  ;;  %v7213_v63 = vmul.f32 %v9290_v28, %v14043_v50  ;;  %v6861_v32 = vadd.f32 %v6860_v44, %v6762_v34  ;;  %vm7218_vm2 = vweird.f32 %v9290_v28  ;;  %vm7222_vm5 = vcmp.eq.f32.partialorder %v7221_v38, 8.507059e+37 }
 0xa85   : > { %v6863_v6 = vpop.f32.mrf.mxu3  ;;  %v6567_v40 = vadd.f32 %v6566_v35, %v13767_v57  ;;  %v15187_v57 = vld [vmem:[#allocation74_spill] sm:$0xff]  ;;  %vm7219_vm4 = vmor %vm7217_vm3, %vm7218_vm2  ;;  %v7224_v26 = vor.u32 1.1754944e-38, %v7223_v8  ;;  %v7238_v16 = vand.u32 2147483648, %v14054_v10  ;;  %vm7232_vm7 = vweird.f32 %v14054_v10 }
 0xa86   : > { %v7214_v56 = vsub.f32 1.0, %v7213_v63  ;;  %v6931_v48 = vsub.f32 0.0, %v6861_v32  ;;  %vm7237_vm9 = vcmp.eq.f32.partialorder %v7236_v23, 8.507059e+37 }
 0xa87   : > { %6605 = vmatmul.bf16.gmra.mxu0 %v15186_v13  ;;  %v6665_v59 = vpop.f32.mrf.mxu1  ;;  %v7239_v35 = vor.u32 1.1754944e-38, %v7238_v16 }
 0xa88   : > { %v7215_v54 = vmul.f32 %v9290_v28, %v7214_v56  ;;  %v6980_v43 = vmul.f32 1.442695, %v6931_v48  ;;  %v6666_v12 = vadd.f32 %v6665_v59, %v6567_v40  ;;  %v9292_v46 = vpop.eup %9291 }
 0xa89   : > { %v9294_v22 = vpop.eup %9293  ;;  %v14066_v3 = vadd.f32 1.0, %v9292_v46 }
 0xa8a   : > { %v6766_v0 = vpop.f32.mrf.mxu2  ;;  %v7216_v20 = vadd.f32 %v9290_v28, %v7215_v54  ;;  %9295 = vpow2.f32 %v6980_v43  ;;  %v6765_v31 = vadd.f32 %v6764_v15, %v6666_v12  ;;  %6704 = vmatmul.bf16.gmra.mxu1 %v15187_v57  ;;  %v7228_v44 = vmul.f32 %v9294_v22, %v14054_v10 }
 0xa8b   : > { %9297 = vrcp.f32 %v14066_v3  ;;  %vm7233_vm6 = vweird.f32 %v9294_v22  ;;  %v7251_v8 = vand.u32 2147483647, %v14066_v3  ;;  %v7253_v59 = vand.u32 2147483648, %v14066_v3 }
 0xa8c   : > { %v6568_v62 = vpop.f32.mrf.mxu0  ;;  %v7220_v61 = vsel %vm7219_vm4, %v9290_v28, %v7216_v20  ;;  %v6864_v5 = vadd.f32 %v6863_v6, %v6765_v31  ;;  %v7229_v21 = vsub.f32 1.0, %v7228_v44  ;;  %vm7234_vm8 = vmor %vm7232_vm7, %vm7233_vm6  ;;  %vm7247_vm12 = vweird.f32 %v14066_v3 }
 0xa8d   : > { %v7225_v30 = vsel %vm7222_vm5, %v7224_v26, %v7220_v61  ;;  %v6865_v50 = vpop.f32.mrf.mxu3  ;;  %v6569_v27 = vadd.f32 %v6568_v62, %v13774_v25  ;;  %v15189_v26 = vld [vmem:[#allocation2_spill] sm:$0xff]  ;;  %v7254_v62 = vor.u32 1.1754944e-38, %v7253_v59  ;;  %vm7252_vm14 = vcmp.eq.f32.partialorder %v7251_v8, 8.507059e+37 }
 0xa8e   : > { %7613 = vst.msk [vmem:[%s13943_s19 + $0x50] sm:$0xff] %vm7602_vm10, %v7225_v30  ;;  %v6932_v55 = vsub.f32 0.0, %v6864_v5  ;;  %v7230_v52 = vmul.f32 %v9294_v22, %v7229_v21 }
 0xa8f   : > { %6808 = vmatmul.bf16.gmra.mxu2 %v13587_v49  ;;  %v6667_v53 = vpop.f32.mrf.mxu1 }
 0xa90   : > { %v9296_v15 = vpop.eup %9295  ;;  %v6982_v19 = vmul.f32 1.442695, %v6932_v55  ;;  %v6668_v37 = vadd.f32 %v6667_v53, %v6569_v27  ;;  %v7231_v24 = vadd.f32 %v9294_v22, %v7230_v52 }
 0xa91   : > { %v14076_v34 = vadd.f32 1.0, %v9296_v15  ;;  %v9298_v49 = vpop.eup %9297 }
 0xa92   : > { %v6769_v28 = vpop.f32.mrf.mxu2  ;;  %9299 = vpow2.f32 %v6982_v19  ;;  %v6767_v25 = vadd.f32 %v6766_v0, %v6668_v37  ;;  %6907 = vmatmul.bf16.gmra.mxu3 %v13908_v60  ;;  %v7235_v32 = vsel %vm7234_vm8, %v9294_v22, %v7231_v24  ;;  %v7243_v6 = vmul.f32 %v9298_v49, %v14066_v3  ;;  %v15188_v60 = vld [vmem:[#allocation156_spill] sm:$0xff] }
 0xa93   : > { %9301 = vrcp.f32 %v14076_v34  ;;  %v7240_v48 = vsel %vm7237_vm9, %v7239_v35, %v7235_v32  ;;  %vm7248_vm11 = vweird.f32 %v9298_v49  ;;  %v7266_v21 = vand.u32 2147483647, %v14076_v34 }
 0xa94   : > { %v6571_v63 = vpop.f32.mrf.mxu0  ;;  %v6866_v56 = vadd.f32 %v6865_v50, %v6767_v25  ;;  %7614 = vst.msk [vmem:[%s13943_s19 + $0x58] sm:$0xff] %vm7602_vm10, %v7240_v48  ;;  %v7244_v10 = vsub.f32 1.0, %v7243_v6  ;;  %vm7249_vm13 = vmor %vm7247_vm12, %vm7248_vm11  ;;  %v7268_v3 = vand.u32 2147483648, %v14076_v34  ;;  %vm7262_vm0 = vweird.f32 %v14076_v34 }
 0xa95   : > { %v6868_v40 = vpop.f32.mrf.mxu3  ;;  %v6572_v38 = vadd.f32 %v6571_v63, %v13782_v1  ;;  %vm7267_vm2 = vcmp.eq.f32.partialorder %v7266_v21, 8.507059e+37 }
 0xa96   : > { %v6933_v13 = vsub.f32 0.0, %v6866_v56  ;;  %v7245_v12 = vmul.f32 %v9298_v49, %v7244_v10  ;;  %v7269_v24 = vor.u32 1.1754944e-38, %v7268_v3 }
 0xa97   : > { %6610 = vmatmul.bf16.gmra.mxu0 %v15188_v60  ;;  %v6670_v54 = vpop.f32.mrf.mxu1 }
 0xa98   : > { %v9300_v43 = vpop.eup %9299  ;;  %v6984_v0 = vmul.f32 1.442695, %v6933_v13  ;;  %v6671_v46 = vadd.f32 %v6670_v54, %v6572_v38  ;;  %v7246_v22 = vadd.f32 %v9298_v49, %v7245_v12  ;;  %v15190_v38 = vld [vmem:[#allocation5_spill] sm:$0xff] }
 0xa99   : > { %v9302_v20 = vpop.eup %9301  ;;  %v14088_v31 = vadd.f32 1.0, %v9300_v43 }
 0xa9a   : > { %v6771_v57 = vpop.f32.mrf.mxu2  ;;  %v7258_v1 = vmul.f32 %v9302_v20, %v14076_v34  ;;  %9303 = vpow2.f32 %v6984_v0  ;;  %6709 = vmatmul.bf16.gmra.mxu1 %v15189_v26  ;;  %v7250_v44 = vsel %vm7249_vm13, %v9298_v49, %v7246_v22  ;;  %v6770_v30 = vadd.f32 %v6769_v28, %v6671_v46  ;;  %v15192_v26 = vld [vmem:[#allocation134_spill] sm:$0xff] }
 0xa9b   : > { %9305 = vrcp.f32 %v14088_v31  ;;  %v7255_v50 = vsel %vm7252_vm14, %v7254_v62, %v7250_v44  ;;  %vm7263_vm15 = vweird.f32 %v9302_v20  ;;  %v7281_v56 = vand.u32 2147483647, %v14088_v31 }
 0xa9c   : > { %v6573_v61 = vpop.f32.mrf.mxu0  ;;  %v7259_v5 = vsub.f32 1.0, %v7258_v1  ;;  %7615 = vst.msk [vmem:[%s13943_s19 + $0x60] sm:$0xff] %vm7602_vm10, %v7255_v50  ;;  %v6869_v23 = vadd.f32 %v6868_v40, %v6770_v30  ;;  %vm7264_vm1 = vmor %vm7262_vm0, %vm7263_vm15  ;;  %v7283_v48 = vand.u32 2147483648, %v14088_v31  ;;  %vm7277_vm4 = vweird.f32 %v14088_v31 }
 0xa9d   : > { %v6870_v55 = vpop.f32.mrf.mxu3  ;;  %v6574_v16 = vadd.f32 %v6573_v61, %v13789_v9  ;;  %vm7282_vm6 = vcmp.eq.f32.partialorder %v7281_v56, 8.507059e+37 }
 0xa9e   : > { %v7260_v27 = vmul.f32 %v9302_v20, %v7259_v5  ;;  %v6934_v19 = vsub.f32 0.0, %v6869_v23  ;;  %v7284_v0 = vor.u32 1.1754944e-38, %v7283_v48 }
 0xa9f   : > { %6813 = vmatmul.bf16.gmra.mxu2 %v13619_v14  ;;  %v6672_v53 = vpop.f32.mrf.mxu1 }
 0xaa0   : > { %v9304_v15 = vpop.eup %9303  ;;  %v7261_v52 = vadd.f32 %v9302_v20, %v7260_v27  ;;  %v6673_v37 = vadd.f32 %v6672_v53, %v6574_v16  ;;  %v6986_v63 = vmul.f32 1.442695, %v6934_v19  ;;  %v15193_v27 = vld [vmem:[#allocation7_spill] sm:$0xff] }
 0xaa1   : > { %v9306_v28 = vpop.eup %9305  ;;  %v14101_v25 = vadd.f32 1.0, %v9304_v15 }
 0xaa2   : > { %v6774_v49 = vpop.f32.mrf.mxu2  ;;  %v7265_v35 = vsel %vm7264_vm1, %v9302_v20, %v7261_v52  ;;  %v7273_v9 = vmul.f32 %v9306_v28, %v14088_v31  ;;  %6912 = vmatmul.bf16.gmra.mxu3 %v13920_v58  ;;  %v6772_v6 = vadd.f32 %v6771_v57, %v6673_v37  ;;  %vm7278_vm3 = vweird.f32 %v9306_v28  ;;  %v15191_v58 = vld [vmem:[#allocation40_spill] sm:$0xff] }
 0xaa3   : > { %v7270_v14 = vsel %vm7267_vm2, %v7269_v24, %v7265_v35  ;;  %9307 = vrcp.f32 %v14101_v25  ;;  %vm7279_vm5 = vmor %vm7277_vm4, %vm7278_vm3  ;;  %v7296_v30 = vand.u32 2147483647, %v14101_v25  ;;  %v7298_v50 = vand.u32 2147483648, %v14101_v25 }
 0xaa4   : > { %v6576_v34 = vpop.f32.mrf.mxu0  ;;  %7616 = vst.msk [vmem:[%s13943_s19 + $0x68] sm:$0xff] %vm7602_vm10, %v7270_v14  ;;  %v7274_v32 = vsub.f32 1.0, %v7273_v9  ;;  %9309 = vpow2.f32 %v6986_v63  ;;  %v6871_v13 = vadd.f32 %v6870_v55, %v6772_v6  ;;  %vm7292_vm8 = vweird.f32 %v14101_v25 }
 0xaa5   : > { %v6873_v40 = vpop.f32.mrf.mxu3  ;;  %v6577_v60 = vadd.f32 %v6576_v34, %v15190_v38  ;;  %v7299_v19 = vor.u32 1.1754944e-38, %v7298_v50  ;;  %vm7297_vm11 = vcmp.eq.f32.partialorder %v7296_v30, 8.507059e+37 }
 0xaa6   : > { %v7275_v10 = vmul.f32 %v9306_v28, %v7274_v32  ;;  %v6935_v54 = vsub.f32 0.0, %v6871_v13 }
 0xaa7   : > { %6615 = vmatmul.bf16.gmra.mxu0 %v15191_v58  ;;  %v6675_v8 = vpop.f32.mrf.mxu1 }
 0xaa8   : > { %v7276_v59 = vadd.f32 %v9306_v28, %v7275_v10  ;;  %v6676_v43 = vadd.f32 %v6675_v8, %v6577_v60  ;;  %v6988_v1 = vmul.f32 1.442695, %v6935_v54 }
 0xaa9   : > { %v9308_v12 = vpop.eup %9307 }
 0xaaa   : > { %v6776_v46 = vpop.f32.mrf.mxu2  ;;  %v9310_v20 = vpop.eup %9309  ;;  %v7280_v57 = vsel %vm7279_vm5, %v9306_v28, %v7276_v59  ;;  %v7288_v22 = vmul.f32 %v9308_v12, %v14101_v25  ;;  %6714 = vmatmul.bf16.gmra.mxu1 %v15192_v26  ;;  %v6775_v44 = vadd.f32 %v6774_v49, %v6676_v43  ;;  %9311 = vpow2.f32 %v6988_v1 }
 0xaab   : > { %v7285_v62 = vsel %vm7282_vm6, %v7284_v0, %v7280_v57  ;;  %v7042_v61 = vadd.f32 1.0, %v9310_v20  ;;  %vm7293_vm7 = vweird.f32 %v9308_v12 }
 0xaac   : > { %v6578_v5 = vpop.f32.mrf.mxu0  ;;  %7617 = vst.msk [vmem:[%s13943_s19 + $0x70] sm:$0xff] %vm7602_vm10, %v7285_v62  ;;  %v7289_v31 = vsub.f32 1.0, %v7288_v22  ;;  %v6874_v55 = vadd.f32 %v6873_v40, %v6775_v44  ;;  %vm7294_vm9 = vmor %vm7292_vm8, %vm7293_vm7 }
 0xaad   : > { %9313 = vrcp.f32 %v7042_v61  ;;  %v6875_v21 = vpop.f32.mrf.mxu3  ;;  %v6579_v23 = vadd.f32 %v6578_v5, %v15193_v27  ;;  %v7311_v10 = vand.u32 2147483647, %v7042_v61  ;;  %v7313_v13 = vand.u32 2147483648, %v7042_v61 }
 0xaae   : > { %v7290_v3 = vmul.f32 %v9308_v12, %v7289_v31  ;;  %v6936_v15 = vsub.f32 0.0, %v6874_v55  ;;  %vm7307_vm13 = vweird.f32 %v7042_v61 }
 0xaaf   : > { %v6677_v16 = vpop.f32.mrf.mxu1  ;;  %vm7312_vm15 = vcmp.eq.f32.partialorder %v7311_v10, 8.507059e+37 }
 0xab0   : > { %v7291_v53 = vadd.f32 %v9308_v12, %v7290_v3  ;;  %v6678_v52 = vadd.f32 %v6677_v16, %v6579_v23  ;;  %v9312_v28 = vpop.eup %9311  ;;  %v6990_v49 = vmul.f32 1.442695, %v6936_v15 }
 0xab1   : > { %v7043_v14 = vadd.f32 1.0, %v9312_v28 }
 0xab2   : > { %v6779_v37 = vpop.f32.mrf.mxu2  ;;  %v7295_v24 = vsel %vm7294_vm9, %v9308_v12, %v7291_v53  ;;  %v6777_v35 = vadd.f32 %v6776_v46, %v6678_v52  ;;  %9315 = vpow2.f32 %v6990_v49  ;;  %v7314_v46 = vor.u32 1.1754944e-38, %v7313_v13 }
 0xab3   : > { %v9314_v9 = vpop.eup %9313  ;;  %v7300_v63 = vsel %vm7297_vm11, %v7299_v19, %v7295_v24  ;;  %9317 = vrcp.f32 %v7043_v14  ;;  %v7326_v31 = vand.u32 2147483647, %v7043_v14  ;;  %v7328_v30 = vand.u32 2147483648, %v7043_v14 }
 0xab4   : > { %v6581_v34 = vpop.f32.mrf.mxu0  ;;  %7618 = vst.msk [vmem:[%s13943_s19 + $0x78] sm:$0xff] %vm7602_vm10, %v7300_v63  ;;  %v7303_v32 = vmul.f32 %v9314_v9, %v7042_v61  ;;  %v6876_v6 = vadd.f32 %v6875_v21, %v6777_v35  ;;  %vm7308_vm12 = vweird.f32 %v9314_v9  ;;  %vm7322_vm1 = vweird.f32 %v7043_v14 }
 0xab5   : > { %v6878_v25 = vpop.f32.mrf.mxu3  ;;  %v6582_v40 = vadd.f32 %v6581_v34, %v13812_v11  ;;  %vm7309_vm14 = vmor %vm7307_vm13, %vm7308_vm12  ;;  %v7329_v19 = vor.u32 1.1754944e-38, %v7328_v30  ;;  %vm7327_vm3 = vcmp.eq.f32.partialorder %v7326_v31, 8.507059e+37 }
 0xab6   : > { %v7304_v56 = vsub.f32 1.0, %v7303_v32  ;;  %v6937_v48 = vsub.f32 0.0, %v6876_v6 }
 0xab7   : > { %v6680_v38 = vpop.f32.mrf.mxu1 }
 0xab8   : > { %v7305_v60 = vmul.f32 %v9314_v9, %v7304_v56  ;;  %v6992_v58 = vmul.f32 1.442695, %v6937_v48  ;;  %v6681_v8 = vadd.f32 %v6680_v38, %v6582_v40  ;;  %v9316_v54 = vpop.eup %9315 }
 0xab9   : > { %v9318_v0 = vpop.eup %9317  ;;  %v14124_v20 = vadd.f32 1.0, %v9316_v54 }
 0xaba   : > { %v6781_v59 = vpop.f32.mrf.mxu2  ;;  %v7306_v43 = vadd.f32 %v9314_v9, %v7305_v60  ;;  %9319 = vpow2.f32 %v6992_v58  ;;  %v6780_v12 = vadd.f32 %v6779_v37, %v6681_v8  ;;  %v7318_v22 = vmul.f32 %v9318_v0, %v7043_v14 }
 0xabb   : > { %9321 = vrcp.f32 %v14124_v20  ;;  %vm7323_vm0 = vweird.f32 %v9318_v0  ;;  %v7341_v34 = vand.u32 2147483647, %v14124_v20  ;;  %v7343_v32 = vand.u32 2147483648, %v14124_v20 }
 0xabc   : > { %v6583_v11 = vpop.f32.mrf.mxu0  ;;  %v7310_v57 = vsel %vm7309_vm14, %v9314_v9, %v7306_v43  ;;  %v6879_v1 = vadd.f32 %v6878_v25, %v6780_v12  ;;  %v7319_v44 = vsub.f32 1.0, %v7318_v22  ;;  %vm7324_vm2 = vmor %vm7322_vm1, %vm7323_vm0  ;;  %vm7337_vm5 = vweird.f32 %v14124_v20 }
 0xabd   : > { %v7315_v26 = vsel %vm7312_vm15, %v7314_v46, %v7310_v57  ;;  %v6880_v62 = vpop.f32.mrf.mxu3  ;;  %v6584_v5 = vadd.f32 %v6583_v11, %v13818_v42  ;;  %v7344_v58 = vor.u32 1.1754944e-38, %v7343_v32  ;;  %vm7342_vm7 = vcmp.eq.f32.partialorder %v7341_v34, 8.507059e+37 }
 0xabe   : > { %7619 = vst.msk [vmem:[%s13943_s19 + $0x80] sm:$0xff] %vm7602_vm10, %v7315_v26  ;;  %v6938_v61 = vsub.f32 0.0, %v6879_v1  ;;  %v7320_v3 = vmul.f32 %v9318_v0, %v7319_v44 }
 0xabf   : > { %v6682_v50 = vpop.f32.mrf.mxu1 }
 0xac0   : > { %v9320_v21 = vpop.eup %9319  ;;  %v6994_v55 = vmul.f32 1.442695, %v6938_v61  ;;  %v6683_v27 = vadd.f32 %v6682_v50, %v6584_v5  ;;  %v7321_v53 = vadd.f32 %v9318_v0, %v7320_v3 }
 0xac1   : > { %v14130_v23 = vadd.f32 1.0, %v9320_v21  ;;  %v9322_v52 = vpop.eup %9321 }
 0xac2   : > { %v6784_v16 = vpop.f32.mrf.mxu2  ;;  %9323 = vpow2.f32 %v6994_v55  ;;  %v6782_v15 = vadd.f32 %v6781_v59, %v6683_v27  ;;  %v7325_v37 = vsel %vm7324_vm2, %v9318_v0, %v7321_v53  ;;  %v7333_v28 = vmul.f32 %v9322_v52, %v14124_v20 }
 0xac3   : > { %9325 = vrcp.f32 %v14130_v23  ;;  %v7330_v49 = vsel %vm7327_vm3, %v7329_v19, %v7325_v37  ;;  %vm7338_vm4 = vweird.f32 %v9322_v52  ;;  %v7356_v0 = vand.u32 2147483647, %v14130_v23 }
 0xac4   : > { %v6586_v42 = vpop.f32.mrf.mxu0  ;;  %v6881_v24 = vadd.f32 %v6880_v62, %v6782_v15  ;;  %7620 = vst.msk [vmem:[%s13943_s19 + $0x88] sm:$0xff] %vm7602_vm10, %v7330_v49  ;;  %v7334_v9 = vsub.f32 1.0, %v7333_v28  ;;  %vm7339_vm6 = vmor %vm7337_vm5, %vm7338_vm4  ;;  %v7358_v46 = vand.u32 2147483648, %v14130_v23  ;;  %vm7352_vm9 = vweird.f32 %v14130_v23 }
 0xac5   : > { %v6883_v35 = vpop.f32.mrf.mxu3  ;;  %v6587_v14 = vadd.f32 %v6586_v42, %v13826_v41  ;;  %vm7357_vm12 = vcmp.eq.f32.partialorder %v7356_v0, 8.507059e+37 }
 0xac6   : > { %v6939_v63 = vsub.f32 0.0, %v6881_v24  ;;  %v7335_v56 = vmul.f32 %v9322_v52, %v7334_v9  ;;  %v7359_v31 = vor.u32 1.1754944e-38, %v7358_v46 }
 0xac7   : > { %v6685_v6 = vpop.f32.mrf.mxu1 }
 0xac8   : > { %v9324_v25 = vpop.eup %9323  ;;  %v6996_v48 = vmul.f32 1.442695, %v6939_v63  ;;  %v6686_v40 = vadd.f32 %v6685_v6, %v6587_v14  ;;  %v7336_v60 = vadd.f32 %v9322_v52, %v7335_v56 }
 0xac9   : > { %v9326_v10 = vpop.eup %9325  ;;  %v14139_v13 = vadd.f32 1.0, %v9324_v25 }
 0xaca   : > { %v6786_v38 = vpop.f32.mrf.mxu2  ;;  %v7348_v41 = vmul.f32 %v9326_v10, %v14130_v23  ;;  %9327 = vpow2.f32 %v6996_v48  ;;  %v7340_v59 = vsel %vm7339_vm6, %v9322_v52, %v7336_v60  ;;  %v6785_v43 = vadd.f32 %v6784_v16, %v6686_v40 }
 0xacb   : > { %9329 = vrcp.f32 %v14139_v13  ;;  %v7345_v12 = vsel %vm7342_vm7, %v7344_v58, %v7340_v59  ;;  %vm7353_vm8 = vweird.f32 %v9326_v10  ;;  %v7371_v53 = vand.u32 2147483647, %v14139_v13 }
 0xacc   : > { %v6588_v8 = vpop.f32.mrf.mxu0  ;;  %v7349_v54 = vsub.f32 1.0, %v7348_v41  ;;  %7621 = vst.msk [vmem:[%s13943_s19 + $0x90] sm:$0xff] %vm7602_vm10, %v7345_v12  ;;  %v6884_v57 = vadd.f32 %v6883_v35, %v6785_v43  ;;  %vm7354_vm11 = vmor %vm7352_vm9, %vm7353_vm8  ;;  %v7373_v15 = vand.u32 2147483648, %v14139_v13  ;;  %vm7367_vm14 = vweird.f32 %v14139_v13 }
 0xacd   : > { %v6885_v11 = vpop.f32.mrf.mxu3  ;;  %v6589_v22 = vadd.f32 %v6588_v8, %v13832_v18  ;;  %vm7372_vm0 = vcmp.eq.f32.partialorder %v7371_v53, 8.507059e+37 }
 0xace   : > { %v7350_v20 = vmul.f32 %v9326_v10, %v7349_v54  ;;  %v6940_v44 = vsub.f32 0.0, %v6884_v57  ;;  %v7374_v63 = vor.u32 1.1754944e-38, %v7373_v15 }
 0xacf   : > { %v6687_v1 = vpop.f32.mrf.mxu1 }
 0xad0   : > { %v9328_v26 = vpop.eup %9327  ;;  %v7351_v62 = vadd.f32 %v9326_v10, %v7350_v20  ;;  %v6688_v61 = vadd.f32 %v6687_v1, %v6589_v22  ;;  %v6998_v55 = vmul.f32 1.442695, %v6940_v44 }
 0xad1   : > { %v9330_v5 = vpop.eup %9329  ;;  %v7047_v30 = vadd.f32 1.0, %v9328_v26 }
 0xad2   : > { %v6789_v50 = vpop.f32.mrf.mxu2  ;;  %v7355_v21 = vsel %vm7354_vm11, %v9326_v10, %v7351_v62  ;;  %v7363_v3 = vmul.f32 %v9330_v5, %v14139_v13  ;;  %v6787_v23 = vadd.f32 %v6786_v38, %v6688_v61  ;;  %vm7368_vm13 = vweird.f32 %v9330_v5 }
 0xad3   : > { %v7360_v27 = vsel %vm7357_vm12, %v7359_v31, %v7355_v21  ;;  %9331 = vrcp.f32 %v7047_v30  ;;  %vm7369_vm15 = vmor %vm7367_vm14, %vm7368_vm13  ;;  %v7386_v13 = vand.u32 2147483647, %v7047_v30  ;;  %v7388_v38 = vand.u32 2147483648, %v7047_v30 }
 0xad4   : > { %v6591_v18 = vpop.f32.mrf.mxu0  ;;  %7622 = vst.msk [vmem:[%s13943_s19 + $0x98] sm:$0xff] %vm7602_vm10, %v7360_v27  ;;  %v7364_v16 = vsub.f32 1.0, %v7363_v3  ;;  %9333 = vpow2.f32 %v6998_v55  ;;  %v6886_v42 = vadd.f32 %v6885_v11, %v6787_v23  ;;  %vm7382_vm2 = vweird.f32 %v7047_v30 }
 0xad5   : > { %v6888_v52 = vpop.f32.mrf.mxu3  ;;  %v6592_v37 = vadd.f32 %v6591_v18, %v13840_v7  ;;  %v7389_v0 = vor.u32 1.1754944e-38, %v7388_v38  ;;  %vm7387_vm4 = vcmp.eq.f32.partialorder %v7386_v13, 8.507059e+37 }
 0xad6   : > { %v7365_v19 = vmul.f32 %v9330_v5, %v7364_v16  ;;  %v6941_v49 = vsub.f32 0.0, %v6886_v42 }
 0xad7   : > { %v6690_v28 = vpop.f32.mrf.mxu1 }
 0xad8   : > { %v7366_v24 = vadd.f32 %v9330_v5, %v7365_v19  ;;  %v6691_v35 = vadd.f32 %v6690_v28, %v6592_v37  ;;  %v7000_v25 = vmul.f32 1.442695, %v6941_v49 }
 0xad9   : > { %v9332_v9 = vpop.eup %9331 }
 0xada   : > { %v6791_v14 = vpop.f32.mrf.mxu2  ;;  %v9334_v34 = vpop.eup %9333  ;;  %v7370_v32 = vsel %vm7369_vm15, %v9330_v5, %v7366_v24  ;;  %v7378_v6 = vmul.f32 %v9332_v9, %v7047_v30  ;;  %v6790_v40 = vadd.f32 %v6789_v50, %v6691_v35  ;;  %9335 = vpow2.f32 %v7000_v25 }
 0xadb   : > { %v7375_v56 = vsel %vm7372_vm0, %v7374_v63, %v7370_v32  ;;  %v7048_v48 = vadd.f32 1.0, %v9334_v34  ;;  %vm7383_vm1 = vweird.f32 %v9332_v9 }
 0xadc   : > { %v6593_v7 = vpop.f32.mrf.mxu0  ;;  %7623 = vst.msk [vmem:[%s13943_s19 + $0xa0] sm:$0xff] %vm7602_vm10, %v7375_v56  ;;  %v7379_v10 = vsub.f32 1.0, %v7378_v6  ;;  %v6889_v58 = vadd.f32 %v6888_v52, %v6790_v40  ;;  %vm7384_vm3 = vmor %vm7382_vm2, %vm7383_vm1 }
 0xadd   : > { %9337 = vrcp.f32 %v7048_v48  ;;  %v6890_v60 = vpop.f32.mrf.mxu3  ;;  %v6594_v8 = vadd.f32 %v6593_v7, %v13846_v2  ;;  %v7401_v21 = vand.u32 2147483647, %v7048_v48  ;;  %v7403_v3 = vand.u32 2147483648, %v7048_v48 }
 0xade   : > { %v7380_v41 = vmul.f32 %v9332_v9, %v7379_v10  ;;  %v6942_v43 = vsub.f32 0.0, %v6889_v58  ;;  %vm7397_vm6 = vweird.f32 %v7048_v48 }
 0xadf   : > { %v6692_v59 = vpop.f32.mrf.mxu1  ;;  %v7404_v42 = vor.u32 1.1754944e-38, %v7403_v3  ;;  %vm7402_vm8 = vcmp.eq.f32.partialorder %v7401_v21, 8.507059e+37 }
 0xae0   : > { %v7381_v54 = vadd.f32 %v9332_v9, %v7380_v41  ;;  %v6693_v12 = vadd.f32 %v6692_v59, %v6594_v8  ;;  %v9336_v11 = vpop.eup %9335  ;;  %v7002_v57 = vmul.f32 1.442695, %v6942_v43 }
 0xae1   : > { %v7049_v62 = vadd.f32 1.0, %v9336_v11 }
 0xae2   : > { %v6794_v46 = vpop.f32.mrf.mxu2  ;;  %v7385_v20 = vsel %vm7384_vm3, %v9332_v9, %v7381_v54  ;;  %v6792_v22 = vadd.f32 %v6791_v14, %v6693_v12  ;;  %9339 = vpow2.f32 %v7002_v57 }
 0xae3   : > { %v9338_v1 = vpop.eup %9337  ;;  %v7390_v26 = vsel %vm7387_vm4, %v7389_v0, %v7385_v20  ;;  %9341 = vrcp.f32 %v7049_v62  ;;  %v7416_v32 = vand.u32 2147483647, %v7049_v62  ;;  %v7418_v6 = vand.u32 2147483648, %v7049_v62 }
 0xae4   : > { %v6596_v44 = vpop.f32.mrf.mxu0  ;;  %7624 = vst.msk [vmem:[%s13943_s19 + $0xa8] sm:$0xff] %vm7602_vm10, %v7390_v26  ;;  %v7393_v2 = vmul.f32 %v9338_v1, %v7048_v48  ;;  %v6891_v61 = vadd.f32 %v6890_v60, %v6792_v22  ;;  %vm7398_vm5 = vweird.f32 %v9338_v1  ;;  %vm7412_vm11 = vweird.f32 %v7049_v62 }
 0xae5   : > { %v6893_v5 = vpop.f32.mrf.mxu3  ;;  %v6597_v50 = vadd.f32 %v6596_v44, %v13854_v17  ;;  %vm7399_vm7 = vmor %vm7397_vm6, %vm7398_vm5  ;;  %v7419_v58 = vor.u32 1.1754944e-38, %v7418_v6  ;;  %vm7417_vm13 = vcmp.eq.f32.partialorder %v7416_v32, 8.507059e+37 }
 0xae6   : > { %v7394_v31 = vsub.f32 1.0, %v7393_v2  ;;  %v6943_v30 = vsub.f32 0.0, %v6891_v61 }
 0xae7   : > { %v6695_v55 = vpop.f32.mrf.mxu1 }
 0xae8   : > { %v7395_v27 = vmul.f32 %v9338_v1, %v7394_v31  ;;  %v7004_v18 = vmul.f32 1.442695, %v6943_v30  ;;  %v6696_v16 = vadd.f32 %v6695_v55, %v6597_v50  ;;  %v9340_v53 = vpop.eup %9339 }
 0xae9   : > { %v9342_v19 = vpop.eup %9341  ;;  %v14163_v37 = vadd.f32 1.0, %v9340_v53 }
 0xaea   : > { %v6796_v23 = vpop.f32.mrf.mxu2  ;;  %v7396_v15 = vadd.f32 %v9338_v1, %v7395_v27  ;;  %9343 = vpow2.f32 %v7004_v18  ;;  %v6795_v52 = vadd.f32 %v6794_v46, %v6696_v16  ;;  %v7408_v24 = vmul.f32 %v9342_v19, %v7049_v62 }
 0xaeb   : > { %9345 = vrcp.f32 %v14163_v37  ;;  %vm7413_vm9 = vweird.f32 %v9342_v19  ;;  %v7431_v20 = vand.u32 2147483647, %v14163_v37  ;;  %v7433_v57 = vand.u32 2147483648, %v14163_v37 }
 0xaec   : > { %v6598_v17 = vpop.f32.mrf.mxu0  ;;  %v7400_v28 = vsel %vm7399_vm7, %v9338_v1, %v7396_v15  ;;  %v6894_v49 = vadd.f32 %v6893_v5, %v6795_v52  ;;  %v7409_v63 = vsub.f32 1.0, %v7408_v24  ;;  %vm7414_vm12 = vmor %vm7412_vm11, %vm7413_vm9  ;;  %vm7427_vm15 = vweird.f32 %v14163_v37 }
 0xaed   : > { %v7405_v35 = vsel %vm7402_vm8, %v7404_v42, %v7400_v28  ;;  %v6895_v9 = vpop.f32.mrf.mxu3  ;;  %v6599_v34 = vadd.f32 %v6598_v17, %v13860_v33  ;;  %v7434_v30 = vor.u32 1.1754944e-38, %v7433_v57  ;;  %vm7432_vm1 = vcmp.eq.f32.partialorder %v7431_v20, 8.507059e+37 }
 0xaee   : > { %7625 = vst.msk [vmem:[%s13943_s19 + $0xb0] sm:$0xff] %vm7602_vm10, %v7405_v35  ;;  %v6944_v14 = vsub.f32 0.0, %v6894_v49  ;;  %v7410_v48 = vmul.f32 %v9342_v19, %v7409_v63 }
 0xaef   : > { %v6697_v25 = vpop.f32.mrf.mxu1 }
 0xaf0   : > { %v9344_v56 = vpop.eup %9343  ;;  %v7006_v40 = vmul.f32 1.442695, %v6944_v14  ;;  %v6698_v7 = vadd.f32 %v6697_v25, %v6599_v34  ;;  %v7411_v38 = vadd.f32 %v9342_v19, %v7410_v48 }
 0xaf1   : > { %v14169_v10 = vadd.f32 1.0, %v9344_v56  ;;  %v9346_v41 = vpop.eup %9345 }
 0xaf2   : > { %v6799_v13 = vpop.f32.mrf.mxu2  ;;  %9347 = vpow2.f32 %v7006_v40  ;;  %v6797_v60 = vadd.f32 %v6796_v23, %v6698_v7  ;;  %v7415_v8 = vsel %vm7414_vm12, %v9342_v19, %v7411_v38  ;;  %v7423_v59 = vmul.f32 %v9346_v41, %v14163_v37 }
 0xaf3   : > { %9349 = vrcp.f32 %v14169_v10  ;;  %v7420_v43 = vsel %vm7417_vm13, %v7419_v58, %v7415_v8  ;;  %vm7428_vm14 = vweird.f32 %v9346_v41  ;;  %v7446_v18 = vand.u32 2147483647, %v14169_v10 }
 0xaf4   : > { %v6601_v33 = vpop.f32.mrf.mxu0  ;;  %v6896_v54 = vadd.f32 %v6895_v9, %v6797_v60  ;;  %7626 = vst.msk [vmem:[%s13943_s19 + $0xb8] sm:$0xff] %vm7602_vm10, %v7420_v43  ;;  %v7424_v0 = vsub.f32 1.0, %v7423_v59  ;;  %vm7429_vm0 = vmor %vm7427_vm15, %vm7428_vm14  ;;  %v7448_v16 = vand.u32 2147483648, %v14169_v10  ;;  %vm7442_vm3 = vweird.f32 %v14169_v10 }
 0xaf5   : > { %v6898_v12 = vpop.f32.mrf.mxu3  ;;  %v6602_v11 = vadd.f32 %v6601_v33, %v13868_v39  ;;  %vm7447_vm5 = vcmp.eq.f32.partialorder %v7446_v18, 8.507059e+37 }
 0xaf6   : > { %v6945_v46 = vsub.f32 0.0, %v6896_v54  ;;  %v7425_v26 = vmul.f32 %v9346_v41, %v7424_v0  ;;  %v7449_v49 = vor.u32 1.1754944e-38, %v7448_v16 }
 0xaf7   : > { %v6700_v22 = vpop.f32.mrf.mxu1 }
 0xaf8   : > { %v9348_v1 = vpop.eup %9347  ;;  %v7008_v62 = vmul.f32 1.442695, %v6945_v46  ;;  %v6701_v44 = vadd.f32 %v6700_v22, %v6602_v11  ;;  %v7426_v31 = vadd.f32 %v9346_v41, %v7425_v26 }
 0xaf9   : > { %v9350_v2 = vpop.eup %9349  ;;  %v14178_v61 = vadd.f32 1.0, %v9348_v1 }
 0xafa   : > { %v6801_v5 = vpop.f32.mrf.mxu2  ;;  %v7438_v39 = vmul.f32 %v9350_v2, %v14169_v10  ;;  %9351 = vpow2.f32 %v7008_v62  ;;  %v7430_v21 = vsel %vm7429_vm0, %v9346_v41, %v7426_v31  ;;  %v6800_v55 = vadd.f32 %v6799_v13, %v6701_v44 }
 0xafb   : > { %9353 = vrcp.f32 %v14178_v61  ;;  %v7435_v27 = vsel %vm7432_vm1, %v7434_v30, %v7430_v21  ;;  %vm7443_vm2 = vweird.f32 %v9350_v2  ;;  %v7461_v56 = vand.u32 2147483647, %v14178_v61 }
 0xafc   : > { %v6603_v50 = vpop.f32.mrf.mxu0  ;;  %v7439_v3 = vsub.f32 1.0, %v7438_v39  ;;  %7627 = vst.msk [vmem:[%s13943_s19 + $0xc0] sm:$0xff] %vm7602_vm10, %v7435_v27  ;;  %v6899_v15 = vadd.f32 %v6898_v12, %v6800_v55  ;;  %vm7444_vm4 = vmor %vm7442_vm3, %vm7443_vm2  ;;  %v7463_v48 = vand.u32 2147483648, %v14178_v61  ;;  %vm7457_vm7 = vweird.f32 %v14178_v61 }
 0xafd   : > { %v6900_v23 = vpop.f32.mrf.mxu3  ;;  %v6604_v52 = vadd.f32 %v6603_v50, %v13874_v36  ;;  %vm7462_vm9 = vcmp.eq.f32.partialorder %v7461_v56, 8.507059e+37 }
 0xafe   : > { %v7440_v53 = vmul.f32 %v9350_v2, %v7439_v3  ;;  %v6946_v17 = vsub.f32 0.0, %v6899_v15  ;;  %v7464_v8 = vor.u32 1.1754944e-38, %v7463_v48 }
 0xaff   : > { %v6702_v19 = vpop.f32.mrf.mxu1 }
 0xb00   : > { %v9352_v42 = vpop.eup %9351  ;;  %v7441_v37 = vadd.f32 %v9350_v2, %v7440_v53  ;;  %v6703_v28 = vadd.f32 %v6702_v19, %v6604_v52  ;;  %v7010_v34 = vmul.f32 1.442695, %v6946_v17 }
 0xb01   : > { %v9354_v24 = vpop.eup %9353  ;;  %v7053_v35 = vadd.f32 1.0, %v9352_v42 }
 0xb02   : > { %v6804_v9 = vpop.f32.mrf.mxu2  ;;  %v7445_v63 = vsel %vm7444_vm4, %v9350_v2, %v7441_v37  ;;  %v7453_v14 = vmul.f32 %v9354_v24, %v14178_v61  ;;  %v6802_v25 = vadd.f32 %v6801_v5, %v6703_v28  ;;  %vm7458_vm6 = vweird.f32 %v9354_v24 }
 0xb03   : > { %v7450_v32 = vsel %vm7447_vm5, %v7449_v49, %v7445_v63  ;;  %9355 = vrcp.f32 %v7053_v35  ;;  %vm7459_vm8 = vmor %vm7457_vm7, %vm7458_vm6  ;;  %v7476_v22 = vand.u32 2147483647, %v7053_v35  ;;  %v7478_v1 = vand.u32 2147483648, %v7053_v35 }
 0xb04   : > { %v6606_v36 = vpop.f32.mrf.mxu0  ;;  %7628 = vst.msk [vmem:[%s13943_s19 + $0xc8] sm:$0xff] %vm7602_vm10, %v7450_v32  ;;  %v7454_v6 = vsub.f32 1.0, %v7453_v14  ;;  %9357 = vpow2.f32 %v7010_v34  ;;  %v6901_v10 = vadd.f32 %v6900_v23, %v6802_v25  ;;  %vm7472_vm12 = vweird.f32 %v7053_v35 }
 0xb05   : > { %v6903_v40 = vpop.f32.mrf.mxu3  ;;  %v6607_v13 = vadd.f32 %v6606_v36, %v13882_v45  ;;  %v7479_v30 = vor.u32 1.1754944e-38, %v7478_v1  ;;  %vm7477_vm14 = vcmp.eq.f32.partialorder %v7476_v22, 8.507059e+37 }
 0xb06   : > { %v7455_v7 = vmul.f32 %v9354_v24, %v7454_v6  ;;  %v6947_v41 = vsub.f32 0.0, %v6901_v10 }
 0xb07   : > { %v6705_v38 = vpop.f32.mrf.mxu1 }
 0xb08   : > { %v7456_v60 = vadd.f32 %v9354_v24, %v7455_v7  ;;  %v6706_v58 = vadd.f32 %v6705_v38, %v6607_v13  ;;  %v7012_v12 = vmul.f32 1.442695, %v6947_v41 }
 0xb09   : > { %v9356_v33 = vpop.eup %9355 }
 0xb0a   : > { %v9358_v59 = vpop.eup %9357  ;;  %v7460_v54 = vsel %vm7459_vm8, %v9354_v24, %v7456_v60  ;;  %v7468_v43 = vmul.f32 %v9356_v33, %v7053_v35  ;;  %v6805_v11 = vadd.f32 %v6804_v9, %v6706_v58  ;;  %v6806_v20 = vpop.f32.mrf.mxu2  ;;  %9359 = vpow2.f32 %v7012_v12 }
 0xb0b   : > { %v7465_v0 = vsel %vm7462_vm9, %v7464_v8, %v7460_v54  ;;  %v7054_v46 = vadd.f32 1.0, %v9358_v59  ;;  %vm7473_vm11 = vweird.f32 %v9356_v33 }
 0xb0c   : > { %v6608_v45 = vpop.f32.mrf.mxu0  ;;  %7629 = vst.msk [vmem:[%s13943_s19 + $0xd0] sm:$0xff] %vm7602_vm10, %v7465_v0  ;;  %v7469_v57 = vsub.f32 1.0, %v7468_v43  ;;  %v6904_v44 = vadd.f32 %v6903_v40, %v6805_v11  ;;  %vm7474_vm13 = vmor %vm7472_vm12, %vm7473_vm11 }
 0xb0d   : > { %9361 = vrcp.f32 %v7054_v46  ;;  %v6905_v26 = vpop.f32.mrf.mxu3  ;;  %v6609_v2 = vadd.f32 %v6608_v45, %v13888_v51  ;;  %v7491_v37 = vand.u32 2147483647, %v7054_v46  ;;  %v7493_v17 = vand.u32 2147483648, %v7054_v46 }
 0xb0e   : > { %v7470_v62 = vmul.f32 %v9356_v33, %v7469_v57  ;;  %v6948_v31 = vsub.f32 0.0, %v6904_v44  ;;  %vm7487_vm0 = vweird.f32 %v7054_v46 }
 0xb0f   : > { %v6707_v61 = vpop.f32.mrf.mxu1  ;;  %v7494_v36 = vor.u32 1.1754944e-38, %v7493_v17  ;;  %vm7492_vm2 = vcmp.eq.f32.partialorder %v7491_v37, 8.507059e+37 }
 0xb10   : > { %v7471_v5 = vadd.f32 %v9356_v33, %v7470_v62  ;;  %v6708_v39 = vadd.f32 %v6707_v61, %v6609_v2  ;;  %v9360_v50 = vpop.eup %9359  ;;  %v7014_v3 = vmul.f32 1.442695, %v6948_v31 }
 0xb11   : > { %v7055_v16 = vadd.f32 1.0, %v9360_v50 }
 0xb12   : > { %v7475_v21 = vsel %vm7474_vm13, %v9356_v33, %v7471_v5  ;;  %v6807_v55 = vadd.f32 %v6806_v20, %v6708_v39  ;;  %9363 = vpow2.f32 %v7014_v3  ;;  %v6809_v15 = vpop.f32.mrf.mxu2 }
 0xb13   : > { %v9362_v27 = vpop.eup %9361  ;;  %v7480_v18 = vsel %vm7477_vm14, %v7479_v30, %v7475_v21  ;;  %9365 = vrcp.f32 %v7055_v16  ;;  %v7506_v38 = vand.u32 2147483647, %v7055_v16  ;;  %v7508_v60 = vand.u32 2147483648, %v7055_v16 }
 0xb14   : > { %v6611_v23 = vpop.f32.mrf.mxu0  ;;  %7630 = vst.msk [vmem:[%s13943_s19 + $0xd8] sm:$0xff] %vm7602_vm10, %v7480_v18  ;;  %v7483_v51 = vmul.f32 %v9362_v27, %v7054_v46  ;;  %v6906_v53 = vadd.f32 %v6905_v26, %v6807_v55  ;;  %vm7488_vm15 = vweird.f32 %v9362_v27  ;;  %vm7502_vm4 = vweird.f32 %v7055_v16 }
 0xb15   : > { %v6612_v42 = vadd.f32 %v6611_v23, %v13896_v4  ;;  %v6908_v28 = vpop.f32.mrf.mxu3  ;;  %vm7489_vm1 = vmor %vm7487_vm0, %vm7488_vm15  ;;  %vm7507_vm6 = vcmp.eq.f32.partialorder %v7506_v38, 8.507059e+37 }
 0xb16   : > { %v7484_v52 = vsub.f32 1.0, %v7483_v51  ;;  %v6949_v19 = vsub.f32 0.0, %v6906_v53 }
 0xb17   : > { %v6710_v24 = vpop.f32.mrf.mxu1 }
 0xb18   : > { %v7485_v49 = vmul.f32 %v9362_v27, %v7484_v52  ;;  %v7016_v35 = vmul.f32 1.442695, %v6949_v19  ;;  %v6711_v9 = vadd.f32 %v6710_v24, %v6612_v42  ;;  %v9364_v63 = vpop.eup %9363 }
 0xb19   : > { %v9366_v32 = vpop.eup %9365  ;;  %v14202_v6 = vadd.f32 1.0, %v9364_v63 }
 0xb1a   : > { %v7486_v14 = vadd.f32 %v9362_v27, %v7485_v49  ;;  %9367 = vpow2.f32 %v7016_v35  ;;  %v6810_v34 = vadd.f32 %v6809_v15, %v6711_v9  ;;  %v7498_v56 = vmul.f32 %v9366_v32, %v7055_v16  ;;  %v6811_v41 = vpop.f32.mrf.mxu2 }
 0xb1b   : > { %9369 = vrcp.f32 %v14202_v6  ;;  %vm7503_vm3 = vweird.f32 %v9366_v32  ;;  %v7521_v2 = vand.u32 2147483647, %v14202_v6  ;;  %v7523_v61 = vand.u32 2147483648, %v14202_v6 }
 0xb1c   : > { %v6613_v4 = vpop.f32.mrf.mxu0  ;;  %v7490_v25 = vsel %vm7489_vm1, %v9362_v27, %v7486_v14  ;;  %v6909_v48 = vadd.f32 %v6908_v28, %v6810_v34  ;;  %v7499_v7 = vsub.f32 1.0, %v7498_v56  ;;  %vm7504_vm5 = vmor %vm7502_vm4, %vm7503_vm3  ;;  %vm7517_vm8 = vweird.f32 %v14202_v6  ;;  %v15194_v28 = vld [vmem:[#allocation12_spill] sm:$0xff] }
 0xb1d   : > { %v7495_v40 = vsel %vm7492_vm2, %v7494_v36, %v7490_v25  ;;  %v6614_v13 = vadd.f32 %v6613_v4, %v13902_v47  ;;  %v6910_v12 = vpop.f32.mrf.mxu3  ;;  %v7509_v47 = vor.u32 1.1754944e-38, %v7508_v60  ;;  %vm7522_vm11 = vcmp.eq.f32.partialorder %v7521_v2, 8.507059e+37 }
 0xb1e   : > { %7631 = vst.msk [vmem:[%s13943_s19 + $0xe0] sm:$0xff] %vm7602_vm10, %v7495_v40  ;;  %v6950_v10 = vsub.f32 0.0, %v6909_v48  ;;  %v7500_v8 = vmul.f32 %v9366_v32, %v7499_v7 }
 0xb1f   : > { %v6712_v58 = vpop.f32.mrf.mxu1 }
 0xb20   : > { %v9368_v33 = vpop.eup %9367  ;;  %v7018_v59 = vmul.f32 1.442695, %v6950_v10  ;;  %v6713_v54 = vadd.f32 %v6712_v58, %v6614_v13  ;;  %v7501_v0 = vadd.f32 %v9366_v32, %v7500_v8 }
 0xb21   : > { %v14208_v43 = vadd.f32 1.0, %v9368_v33  ;;  %v9370_v11 = vpop.eup %9369 }
 0xb22   : > { %9371 = vpow2.f32 %v7018_v59  ;;  %v6812_v46 = vadd.f32 %v6811_v41, %v6713_v54  ;;  %v7505_v45 = vsel %vm7504_vm5, %v9366_v32, %v7501_v0  ;;  %v7513_v57 = vmul.f32 %v9370_v11, %v14202_v6  ;;  %v6814_v55 = vpop.f32.mrf.mxu2 }
 0xb23   : > { %9373 = vrcp.f32 %v14208_v43  ;;  %v7510_v1 = vsel %vm7507_vm6, %v7509_v47, %v7505_v45  ;;  %vm7518_vm7 = vweird.f32 %v9370_v11  ;;  %v7536_v19 = vand.u32 2147483647, %v14208_v43 }
 0xb24   : > { %v6616_v20 = vpop.f32.mrf.mxu0  ;;  %v6911_v22 = vadd.f32 %v6910_v12, %v6812_v46  ;;  %7632 = vst.msk [vmem:[%s13943_s19 + $0xe8] sm:$0xff] %vm7602_vm10, %v7510_v1  ;;  %v7514_v26 = vsub.f32 1.0, %v7513_v57  ;;  %vm7519_vm9 = vmor %vm7517_vm8, %vm7518_vm7  ;;  %v7538_v42 = vand.u32 2147483648, %v14208_v43  ;;  %vm7532_vm13 = vweird.f32 %v14208_v43 }
 0xb25   : > { %v6617_v44 = vadd.f32 %v6616_v20, %v13910_v29  ;;  %v7524_v29 = vor.u32 1.1754944e-38, %v7523_v61  ;;  %v6913_v16 = vpop.f32.mrf.mxu3  ;;  %vm7537_vm15 = vcmp.eq.f32.partialorder %v7536_v19, 8.507059e+37 }
 0xb26   : > { %v6951_v62 = vsub.f32 0.0, %v6911_v22  ;;  %v7515_v39 = vmul.f32 %v9370_v11, %v7514_v26  ;;  %v7539_v32 = vor.u32 1.1754944e-38, %v7538_v42 }
 0xb27   : > { %v6715_v5 = vpop.f32.mrf.mxu1 }
 0xb28   : > { %v9372_v31 = vpop.eup %9371  ;;  %v7020_v30 = vmul.f32 1.442695, %v6951_v62  ;;  %v6716_v50 = vadd.f32 %v6715_v5, %v6617_v44  ;;  %v7516_v27 = vadd.f32 %v9370_v11, %v7515_v39 }
 0xb29   : > { %v9374_v21 = vpop.eup %9373  ;;  %v7058_v3 = vadd.f32 1.0, %v9372_v31 }
 0xb2a   : > { %v7528_v18 = vmul.f32 %v9374_v21, %v14208_v43  ;;  %9375 = vpow2.f32 %v7020_v30  ;;  %v7520_v51 = vsel %vm7519_vm9, %v9370_v11, %v7516_v27  ;;  %v6815_v15 = vadd.f32 %v6814_v55, %v6716_v50  ;;  %v6816_v48 = vpop.f32.mrf.mxu2 }
 0xb2b   : > { %9377 = vrcp.f32 %v7058_v3  ;;  %v7525_v52 = vsel %vm7522_vm11, %v7524_v29, %v7520_v51  ;;  %vm7533_vm12 = vweird.f32 %v9374_v21  ;;  %v7553_v10 = vand.u32 2147483648, %v7058_v3 }
 0xb2c   : > { %v6618_v23 = vpop.f32.mrf.mxu0  ;;  %v7529_v53 = vsub.f32 1.0, %v7528_v18  ;;  %7633 = vst.msk [vmem:[%s13943_s19 + $0xf0] sm:$0xff] %vm7602_vm10, %v7525_v52  ;;  %v6914_v17 = vadd.f32 %v6913_v16, %v6815_v15  ;;  %vm7534_vm14 = vmor %vm7532_vm13, %vm7533_vm12  ;;  %v7551_v60 = vand.u32 2147483647, %v7058_v3  ;;  %vm7547_vm1 = vweird.f32 %v7058_v3 }
 0xb2d   : > { %v6619_v24 = vadd.f32 %v6618_v23, %v15194_v28  ;;  %v6915_v13 = vpop.f32.mrf.mxu3  ;;  %v7554_v59 = vor.u32 1.1754944e-38, %v7553_v10 }
 0xb2e   : > { %v7530_v37 = vmul.f32 %v9374_v21, %v7529_v53  ;;  %v6952_v63 = vsub.f32 0.0, %v6914_v17  ;;  %vm7552_vm3 = vcmp.eq.f32.partialorder %v7551_v60, 8.507059e+37 }
 0xb2f   : > { %v6717_v49 = vpop.f32.mrf.mxu1 }
 0xb30   : > { %v9376_v35 = vpop.eup %9375  ;;  %v7531_v9 = vadd.f32 %v9374_v21, %v7530_v37  ;;  %v6718_v14 = vadd.f32 %v6717_v49, %v6619_v24  ;;  %v7022_v25 = vmul.f32 1.442695, %v6952_v63 }
 0xb31   : > { %v9378_v34 = vpop.eup %9377  ;;  %v7059_v36 = vadd.f32 1.0, %v9376_v35 }
 0xb32   : > { %v7535_v6 = vsel %vm7534_vm14, %v9374_v21, %v7531_v9  ;;  %v7543_v4 = vmul.f32 %v9378_v34, %v7058_v3  ;;  %v6817_v7 = vadd.f32 %v6816_v48, %v6718_v14  ;;  %vm7548_vm0 = vweird.f32 %v9378_v34 }
 0xb33   : > { %v7540_v56 = vsel %vm7537_vm15, %v7539_v32, %v7535_v6  ;;  %9379 = vrcp.f32 %v7059_v36  ;;  %vm7549_vm2 = vmor %vm7547_vm1, %vm7548_vm0  ;;  %v7568_v20 = vand.u32 2147483648, %v7059_v36  ;;  %v7566_v57 = vand.u32 2147483647, %v7059_v36 }
 0xb34   : > { %7634 = vst.msk [vmem:[%s13943_s19 + $0xf8] sm:$0xff] %vm7602_vm10, %v7540_v56  ;;  %v7544_v40 = vsub.f32 1.0, %v7543_v4  ;;  %9381 = vpow2.f32 %v7022_v25  ;;  %v6916_v41 = vadd.f32 %v6915_v13, %v6817_v7  ;;  %vm7562_vm5 = vweird.f32 %v7059_v36 }
 0xb35   : > { %v7569_v1 = vor.u32 1.1754944e-38, %v7568_v20  ;;  %vm7567_vm7 = vcmp.eq.f32.partialorder %v7566_v57, 8.507059e+37 }
 0xb36   : > { %v7545_v38 = vmul.f32 %v9378_v34, %v7544_v40  ;;  %v6953_v33 = vsub.f32 0.0, %v6916_v41 }
 0xb38   : > { %v7546_v58 = vadd.f32 %v9378_v34, %v7545_v38  ;;  %v7024_v0 = vmul.f32 1.442695, %v6953_v33 }
 0xb39   : > { %v9380_v8 = vpop.eup %9379 }
 0xb3a   : > { %v9382_v54 = vpop.eup %9381  ;;  %v7550_v43 = vsel %vm7549_vm2, %v9378_v34, %v7546_v58  ;;  %v7558_v12 = vmul.f32 %v9380_v8, %v7059_v36  ;;  %9383 = vpow2.f32 %v7024_v0  ;;  %vm7563_vm4 = vweird.f32 %v9380_v8 }
 0xb3b   : > { %v7555_v46 = vsel %vm7552_vm3, %v7554_v59, %v7550_v43  ;;  %v7060_v11 = vadd.f32 1.0, %v9382_v54  ;;  %vm7564_vm6 = vmor %vm7562_vm5, %vm7563_vm4 }
 0xb3c   : > { %7635 = vst.msk [vmem:[%s13943_s19 + $0x100] sm:$0xff] %vm7602_vm10, %v7555_v46  ;;  %v7559_v47 = vsub.f32 1.0, %v7558_v12 }
 0xb3d   : > { %9385 = vrcp.f32 %v7060_v11  ;;  %v7583_v39 = vand.u32 2147483648, %v7060_v11  ;;  %v7581_v50 = vand.u32 2147483647, %v7060_v11  ;;  %vm7577_vm9 = vweird.f32 %v7060_v11 }
 0xb3e   : > { %v7560_v45 = vmul.f32 %v9380_v8, %v7559_v47 }
 0xb3f   : > { %v7584_v55 = vor.u32 1.1754944e-38, %v7583_v39  ;;  %vm7582_vm12 = vcmp.eq.f32.partialorder %v7581_v50, 8.507059e+37 }
 0xb40   : > { %v7561_v22 = vadd.f32 %v9380_v8, %v7560_v45  ;;  %v9384_v26 = vpop.eup %9383 }
 0xb41   : > { %v7061_v61 = vadd.f32 1.0, %v9384_v26 }
 0xb42   : > { %v7565_v62 = vsel %vm7564_vm6, %v9380_v8, %v7561_v22 }
 0xb43   : > { %v9386_v44 = vpop.eup %9385  ;;  %v7570_v2 = vsel %vm7567_vm7, %v7569_v1, %v7565_v62  ;;  %9387 = vrcp.f32 %v7061_v61  ;;  %v7598_v23 = vand.u32 2147483648, %v7061_v61  ;;  %v7596_v53 = vand.u32 2147483647, %v7061_v61 }
 0xb44   : > { %7636 = vst.msk [vmem:[%s13943_s19 + $0x108] sm:$0xff] %vm7602_vm10, %v7570_v2  ;;  %v7573_v5 = vmul.f32 %v9386_v44, %v7060_v11  ;;  %vm7578_vm8 = vweird.f32 %v9386_v44  ;;  %vm7592_vm14 = vweird.f32 %v7061_v61 }
 0xb45   : > { %vm7579_vm11 = vmor %vm7577_vm9, %vm7578_vm8  ;;  %v7599_v52 = vor.u32 1.1754944e-38, %v7598_v23  ;;  %vm7597_vm0 = vcmp.eq.f32.partialorder %v7596_v53, 8.507059e+37 }
 0xb46   : > { %v7574_v31 = vsub.f32 1.0, %v7573_v5 }
 0xb48   : > { %v7575_v30 = vmul.f32 %v9386_v44, %v7574_v31 }
 0xb49   : > { %v9388_v3 = vpop.eup %9387 }
 0xb4a   : > { %v7576_v21 = vadd.f32 %v9386_v44, %v7575_v30  ;;  %v7588_v18 = vmul.f32 %v9388_v3, %v7061_v61  ;;  %vm7593_vm13 = vweird.f32 %v9388_v3 }
 0xb4b   : > { %vm7594_vm15 = vmor %vm7592_vm14, %vm7593_vm13 }
 0xb4c   : > { %v7580_v27 = vsel %vm7579_vm11, %v9386_v44, %v7576_v21  ;;  %v7589_v16 = vsub.f32 1.0, %v7588_v18 }
 0xb4d   : > { %v7585_v29 = vsel %vm7582_vm12, %v7584_v55, %v7580_v27 }
 0xb4e   : > { %7637 = vst.msk [vmem:[%s13943_s19 + $0x110] sm:$0xff] %vm7602_vm10, %v7585_v29  ;;  %v7590_v51 = vmul.f32 %v9388_v3, %v7589_v16 }
 0xb50   : > { %v7591_v15 = vadd.f32 %v9388_v3, %v7590_v51 }
 0xb52   : > { %v7595_v19 = vsel %vm7594_vm15, %v9388_v3, %v7591_v15 }
 0xb53   : > { %v7600_v42 = vsel %vm7597_vm0, %v7599_v52, %v7595_v19 }
 0xb54   : > { %7638 = vst.msk [vmem:[%s13943_s19 + $0x118] sm:$0xff] %vm7602_vm10, %v7600_v42 }
 0xb55 PF: > { %s15_s18 = sadd.s32 1, %s9421_s18  }
 0xb56   : > { %p12_p4 = scmp.ge.s32.totalorder %s15_s18, 4  }
 0xb58   :  { %14 = sbr.rel (!%p12_p4) target bundleno = 1 (0x1), region = 70 }

</bundles_post_ra>
